<compile_context>
chip_gen: v7x
topology: tpu7x:2x2x1
jax: 0.10.0
libtpu: 0.0.40
codegen_flags: <defaults>
</compile_context>

<pallas_src>
import functools

import jax
import jax.numpy as jnp
from jax import lax
from jax.experimental import pallas as pl
from jax.experimental.pallas import tpu as pltpu


def _derive_tile_t(T, D, K, n_q, budget_bytes, dist_itemsize):
    """Pick the T-tile from a per-step VMEM budget (double-buffered blocks)."""
    per_row = (2 * 4 * D                    # x tile
               + 2 * 4 * D                  # quantized-out tile
               + 2 * 4 * n_q                # indices tile
               + 2 * 4 * n_q * D            # sub_quants tile
               + 2 * dist_itemsize * n_q * K)  # dist tile (0 if not emitted)
    tt = int(budget_bytes) // max(per_row, 1)
    tt = max(tt, 128)
    tt = (tt // 128) * 128                  # lane-dense outputs along T
    tt = min(tt, 2048)                      # diminishing returns past ~2K rows
    if tt >= T:
        return T                            # full-dim block: no ragged tile
    return tt


def _rvq_kernel(x_ref, cb_ref, esq_ref, quant_ref, idx_ref, subq_ref, *rest,
                num_quantizers, tile_t, t_total, emit_dist):
    """Residual VQ over one (batch, T-tile) block.

    x_ref    [TT, D]          input rows for this tile
    cb_ref   [n_q, K, D]      codebooks (VMEM-resident, constant index map)
    esq_ref  [n_q, K]         precomputed ||e||^2
    quant_ref[TT, D]          sum of selected embeddings
    idx_ref  [n_q, TT]        selected code ids (lane-dense along T)
    subq_ref [n_q, D, TT]     per-layer quantized vectors (lane-dense along T)
    dist_ref [n_q, TT, K]     negative squared distances (optional)
    loss_ref [8, 128]         per-tile unnormalized commitment-loss partial
    """
    if emit_dist:
        dist_ref, loss_ref = rest
    else:
        (loss_ref,) = rest

    K = cb_ref.shape[1]
    x = x_ref[...]                                              # [TT, D] f32

    # Row validity (ragged last T-tile). Only the loss needs it: out-of-bounds
    # output rows are dropped by Pallas on writeback.
    t0 = pl.program_id(1) * tile_t
    row_ids = lax.broadcasted_iota(jnp.int32, (tile_t, 1), 0) + t0
    row_valid = row_ids < t_total                               # [TT, 1]

    iota_k = lax.broadcasted_iota(jnp.int32, (tile_t, K), 1)    # [TT, K]

    residual = x
    quant_acc = jnp.zeros_like(x)
    r_sq = jnp.sum(x * x, axis=-1, keepdims=True)               # [TT, 1]
    loss_rows = jnp.zeros((tile_t, 1), jnp.float32)

    # n_q is small (<= 8 by default) so a static unroll keeps the MXU fed.
    # TODO(synk): for much larger n_q switch to lax.fori_loop carries.
    for q in range(num_quantizers):
        cb = cb_ref[q]                                          # [K, D]
        e_sq = esq_ref[pl.ds(q, 1), :]                          # [1, K]

        # Expanded-form distance (same form as the encodec reference):
        # dist = -(||r||^2 - 2 r.e + ||e||^2)
        re = lax.dot_general(residual, cb, (((1,), (1,)), ((), ())),
                             preferred_element_type=jnp.float32)  # [TT, K]
        dist = 2.0 * re - r_sq - e_sq                           # [TT, K] f32

        # argmax over codes, first-max tie break (matches torch.argmax).
        # TODO(synk): a packed single-pass max+argmax would save one XLU
        # reduction per layer but risks tie-break / precision drift vs torch.
        max_d = jnp.max(dist, axis=-1, keepdims=True)           # [TT, 1]
        idx_kd = jnp.min(jnp.where(dist == max_d, iota_k, K),
                         axis=-1, keepdims=True)                # [TT, 1] int32

        # Embedding lookup as one-hot matmuls (MXU-friendly, no gather).
        # The second, transposed matmul produces the sub_quants tile already
        # lane-dense along T; exactly one nonzero per row -> bit-identical.
        onehot = (iota_k == idx_kd).astype(jnp.float32)         # [TT, K]
        quantized = jnp.dot(onehot, cb,
                            preferred_element_type=jnp.float32)  # [TT, D]
        quantized_t = lax.dot_general(cb, onehot, (((0,), (1,)), ((), ())),
                                      preferred_element_type=jnp.float32)  # [D, TT]

        residual = residual - quantized
        # Exact forms: ||r_new||^2 == ||quantized - r_old||^2 is both this
        # layer's commitment error and the next layer's ||r||^2.
        r_sq = jnp.sum(residual * residual, axis=-1, keepdims=True)
        loss_rows = loss_rows + r_sq
        quant_acc = quant_acc + quantized

        idx_ref[q] = idx_kd[:, 0]
        subq_ref[q] = quantized_t
        if emit_dist:
            dist_ref[q] = dist.astype(dist_ref.dtype)

    quant_ref[...] = quant_acc
    partial = jnp.sum(jnp.where(row_valid, loss_rows, 0.0))
    # Small VMEM splat (4 KiB/tile, negligible next to dist); an SMEM scalar
    # output would be smaller still but this form is kept for lowering safety.
    loss_ref[...] = jnp.full((8, 128), partial, jnp.float32)


def costume_quantizer_forward(x, codebooks, commitment_weight=0.1, *,
                              return_dist=True, dist_dtype=jnp.float32,
                              vmem_budget_mb=24):
    """x: [B, T, D] float32.  codebooks: [n_q, K, D] float32.

    Returns dict mirroring CostumeQuantizer.forward (default config:
    codec_dim == input_size, codec_range=None -> no projections / tanh):
      x           [B, T, D]       quantized output
      indices     [n_q, B, T]     code ids per quantizer layer
      commit_loss scalar          mean per-layer MSE(quantized, residual) * w
      sub_quants  [n_q, B, D, T]  per-layer quantized vectors ([B, D, T] layout)
      dist        [n_q, B, T, K]  negative squared distances (None if disabled)

    vmem_budget_mb: per-step pipelined-block budget used to derive the T-tile.
    Re-derive per generation: ~24 MiB is safe everywhere; push toward 64-80 on
    v5e/v6e (128 MiB VMEM), keep <=~32 on v7x (64 MiB VMEM) and prefer a
    slightly smaller tile over collapsing the grid to a single block per chip.
    """
    B, T, D = x.shape
    n_q, K, D2 = codebooks.shape
    assert D2 == D

    x = x.astype(jnp.float32)
    cb = codebooks.astype(jnp.float32)
    e_sq = jnp.sum(cb * cb, axis=-1)                             # [n_q, K]

    dist_itemsize = jnp.dtype(dist_dtype).itemsize if return_dist else 0
    resident_bytes = 2 * (cb.size + e_sq.size) * 4               # codebooks x2 bufs
    budget = max(vmem_budget_mb * (1 << 20) - resident_bytes, 1 << 20)
    tile_t = _derive_tile_t(T, D, K, n_q, budget, dist_itemsize)
    n_t = pl.cdiv(T, tile_t)

    kernel = functools.partial(_rvq_kernel, num_quantizers=n_q, tile_t=tile_t,
                               t_total=T, emit_dist=return_dist)

    out_shapes = [
        jax.ShapeDtypeStruct((B, T, D), jnp.float32),            # quantized
        jax.ShapeDtypeStruct((B, n_q, T), jnp.int32),            # indices
        jax.ShapeDtypeStruct((n_q, B, D, T), jnp.float32),       # sub_quants
    ]
    out_specs = [
        pl.BlockSpec((None, tile_t, D), lambda b, t: (b, t, 0)),
        pl.BlockSpec((None, n_q, tile_t), lambda b, t: (b, 0, t)),
        pl.BlockSpec((n_q, None, D, tile_t), lambda b, t: (0, b, 0, t)),
    ]
    if return_dist:
        out_shapes.append(jax.ShapeDtypeStruct((n_q, B, T, K), dist_dtype))
        out_specs.append(
            pl.BlockSpec((n_q, None, tile_t, K), lambda b, t: (0, b, t, 0)))
    out_shapes.append(jax.ShapeDtypeStruct((B, n_t, 8, 128), jnp.float32))
    out_specs.append(pl.BlockSpec((None, None, 8, 128), lambda b, t: (b, t, 0, 0)))

    vmem_limit = int(min((vmem_budget_mb + 8) * (1 << 20) + resident_bytes,
                         100 * (1 << 20)))

    outs = pl.pallas_call(
        kernel,
        out_shape=tuple(out_shapes),
        grid=(B, n_t),
        in_specs=[
            pl.BlockSpec((None, tile_t, D), lambda b, t: (b, t, 0)),
            # Codebook tables: constant index map -> VMEM-resident across the
            # grid (redundant copies elided by the pipeline).
            # TODO(synk): pipeline_mode=pl.Buffered(1) would halve their VMEM
            # footprint for production-sized codebooks.
            pl.BlockSpec((n_q, K, D), lambda b, t: (0, 0, 0)),
            pl.BlockSpec((n_q, K), lambda b, t: (0, 0)),
        ],
        out_specs=tuple(out_specs),
        compiler_params=pltpu.CompilerParams(
            dimension_semantics=("parallel", "parallel"),  # megacore on v7x
            vmem_limit_bytes=vmem_limit,
        ),
    )(x, cb, e_sq)

    if return_dist:
        quant, idx, subq, dist, loss_part = outs
    else:
        quant, idx, subq, loss_part = outs
        dist = None

    indices = jnp.transpose(idx, (1, 0, 2))                      # tiny int32 copy
    commit_loss = (jnp.sum(loss_part[:, :, 0, 0])
                   * jnp.float32(commitment_weight / n_q)
                   / jnp.float32(B * T * D))
    # TODO(synk): EMA codebook updates / kmeans init / DDP sync / quantize
    # dropout / bandwidth-based n_q selection are training-time state with no
    # forward-value effect under the default config.
    return dict(x=quant, indices=indices, commit_loss=commit_loss,
                sub_quants=subq, dist=dist)


def _reference(x, codebooks, commitment_weight):
    """Pure-JAX RVQ reference for correctness checking."""
    B, T, D = x.shape
    n_q, K, _ = codebooks.shape
    r = x.reshape(-1, D).astype(jnp.float32)
    quant = jnp.zeros_like(r)
    loss = jnp.float32(0.0)
    idxs = []
    for q in range(n_q):
        cb = codebooks[q].astype(jnp.float32)
        d = -(jnp.sum(r * r, -1, keepdims=True) - 2.0 * (r @ cb.T)
              + jnp.sum(cb * cb, -1)[None, :])
        idx = jnp.argmax(d, axis=-1)
        sel = cb[idx]
        loss = loss + jnp.mean((sel - r) ** 2)
        quant = quant + sel
        r = r - sel
        idxs.append(idx)
    return (quant.reshape(B, T, D),
            jnp.stack(idxs).reshape(n_q, B, T),
            loss * commitment_weight / n_q)


if __name__ == "__main__":
    # Small, module-consistent shapes: input_size (= codec_dim) = 32,
    # codebook_size = 64, num_quantizers = 4, batch = 2, seq = 150.
    B, T, D = 2, 150, 32
    n_q, K = 4, 64
    commitment_weight = 0.1

    key = jax.random.PRNGKey(0)
    kx, kc = jax.random.split(key)
    x = jax.random.normal(kx, (B, T, D), dtype=jnp.float32)
    # deterministic synthetic codebooks (stand-in for rq.vq codebook embeddings)
    codebooks = jax.random.normal(kc, (n_q, K, D), dtype=jnp.float32)

    out = costume_quantizer_forward(x, codebooks, commitment_weight)
    jax.block_until_ready(out["x"])
    jax.block_until_ready(out["indices"])
    jax.block_until_ready(out["commit_loss"])
    jax.block_until_ready(out["sub_quants"])
    jax.block_until_ready(out["dist"])

    assert out["x"].shape == (B, T, D)
    assert out["indices"].shape == (n_q, B, T)
    assert out["sub_quants"].shape == (n_q, B, D, T)
    assert out["dist"].shape == (n_q, B, T, K)

    ref_x, ref_idx, ref_loss = _reference(x, codebooks, commitment_weight)
    assert bool(jnp.all(out["indices"] == ref_idx))
    assert bool(jnp.allclose(out["x"], ref_x, atol=1e-4, rtol=1e-4))
    assert bool(jnp.allclose(out["commit_loss"], ref_loss, atol=1e-5, rtol=1e-4))
    # sub_quants consistency: per-layer quantized vectors sum to the output.
    recon = jnp.sum(out["sub_quants"], axis=0).transpose(0, 2, 1)
    assert bool(jnp.allclose(recon, out["x"], atol=1e-5, rtol=1e-5))

    print("KERNEL_OK")
</pallas_src>

<mosaic_0001>
module attributes {stable_mosaic.version = 11 : i64} {
  func.func @_rvq_kernel(%arg0: i32, %arg1: i32, %arg2: memref<1x150x32xf32, #tpu.memory_space<vmem>>, %arg3: memref<4x64x32xf32, #tpu.memory_space<vmem>>, %arg4: memref<4x64xf32, #tpu.memory_space<vmem>>, %arg5: memref<1x150x32xf32, #tpu.memory_space<vmem>>, %arg6: memref<1x4x150xi32, #tpu.memory_space<vmem>>, %arg7: memref<4x1x32x150xf32, #tpu.memory_space<vmem>>, %arg8: memref<4x1x150x64xf32, #tpu.memory_space<vmem>>, %arg9: memref<1x1x8x128xf32, #tpu.memory_space<vmem>>) attributes {dimension_semantics = [#tpu.dimension_semantics<parallel>, #tpu.dimension_semantics<parallel>], iteration_bounds = array<i64: 2, 1>, scalar_prefetch = 0 : i64, scratch_operands = 0 : i64, tpu.core_type = #tpu.core_type<tc>, window_params = [{transform_indices = @transform_0, window_bounds = array<i64: 1, 150, 32>}, {pipeline_mode = #tpu.pipeline_mode<synchronous>, transform_indices = @transform_1, window_bounds = array<i64: 4, 64, 32>}, {pipeline_mode = #tpu.pipeline_mode<synchronous>, transform_indices = @transform_2, window_bounds = array<i64: 4, 64>}, {transform_indices = @transform_3, window_bounds = array<i64: 1, 150, 32>}, {transform_indices = @transform_4, window_bounds = array<i64: 1, 4, 150>}, {transform_indices = @transform_5, window_bounds = array<i64: 4, 1, 32, 150>}, {transform_indices = @transform_6, window_bounds = array<i64: 4, 1, 150, 64>}, {transform_indices = @transform_7, window_bounds = array<i64: 1, 1, 8, 128>}]} {
    %c0 = arith.constant 0 : index
    %c0_0 = arith.constant 0 : index
    %c0_1 = arith.constant 0 : index
    %0 = vector.load %arg2[%c0, %c0_0, %c0_1] : memref<1x150x32xf32, #tpu.memory_space<vmem>>, vector<1x150x32xf32>
    %1 = vector.shape_cast %0 : vector<1x150x32xf32> to vector<150x32xf32>
    %c150_i32 = arith.constant 150 : i32
    %2 = arith.muli %arg1, %c150_i32 : i32
    %3 = tpu.iota {dimensions = array<i32: 0>} : vector<150x1xi32>
    %4 = vector.broadcast %2 : i32 to vector<150x1xi32>
    %5 = arith.addi %3, %4 : vector<150x1xi32>
    %c150_i32_2 = arith.constant 150 : i32
    %6 = vector.broadcast %c150_i32_2 : i32 to vector<150x1xi32>
    %7 = arith.cmpi slt, %5, %6 : vector<150x1xi32>
    %8 = tpu.iota {dimensions = array<i32: 1>} : vector<150x64xi32>
    %cst = arith.constant 0.000000e+00 : f32
    %9 = vector.broadcast %cst : f32 to vector<150x32xf32>
    %10 = arith.mulf %1, %1 : vector<150x32xf32>
    %cst_3 = arith.constant dense<0.000000e+00> : vector<150xf32>
    %11 = vector.multi_reduction <add>, %10, %cst_3 [1] : vector<150x32xf32> to vector<150xf32>
    %12 = vector.shape_cast %11 : vector<150xf32> to vector<150x1xf32>
    %cst_4 = arith.constant 0.000000e+00 : f32
    %13 = vector.broadcast %cst_4 : f32 to vector<150x1xf32>
    %c0_5 = arith.constant 0 : index
    %c0_6 = arith.constant 0 : index
    %c0_7 = arith.constant 0 : index
    %14 = vector.load %arg3[%c0_5, %c0_6, %c0_7] : memref<4x64x32xf32, #tpu.memory_space<vmem>>, vector<1x64x32xf32>
    %15 = vector.shape_cast %14 : vector<1x64x32xf32> to vector<64x32xf32>
    %c0_8 = arith.constant 0 : index
    %c0_9 = arith.constant 0 : index
    %16 = vector.load %arg4[%c0_8, %c0_9] : memref<4x64xf32, #tpu.memory_space<vmem>>, vector<1x64xf32>
    %cst_10 = arith.constant dense<0.000000e+00> : vector<150x64xf32>
    %17 = tpu.matmul %1, %15, %cst_10 {dimension_numbers = #tpu.dot_dimension_numbers<[1], [1], [0], [0], [0, 0, 1, 0], [], []>} : vector<150x32xf32>, vector<64x32xf32>, vector<150x64xf32> -> vector<150x64xf32>
    %cst_11 = arith.constant 2.000000e+00 : f32
    %18 = vector.broadcast %cst_11 : f32 to vector<150x64xf32>
    %19 = arith.mulf %18, %17 : vector<150x64xf32>
    %20 = vector.broadcast %12 : vector<150x1xf32> to vector<150x64xf32>
    %21 = arith.subf %19, %20 : vector<150x64xf32>
    %22 = vector.broadcast %16 : vector<1x64xf32> to vector<150x64xf32>
    %23 = arith.subf %21, %22 : vector<150x64xf32>
    %cst_12 = arith.constant dense<0xFF800000> : vector<150xf32>
    %24 = vector.multi_reduction <maximumf>, %23, %cst_12 [1] : vector<150x64xf32> to vector<150xf32>
    %25 = vector.shape_cast %24 : vector<150xf32> to vector<150x1xf32>
    %26 = vector.broadcast %25 : vector<150x1xf32> to vector<150x64xf32>
    %27 = arith.cmpf oeq, %23, %26 : vector<150x64xf32>
    %c64_i32 = arith.constant 64 : i32
    %28 = vector.broadcast %c64_i32 : i32 to vector<150x64xi32>
    %29 = arith.select %27, %8, %28 : vector<150x64xi1>, vector<150x64xi32>
    %cst_13 = arith.constant dense<2147483647> : vector<150xi32>
    %30 = vector.multi_reduction <minsi>, %29, %cst_13 [1] : vector<150x64xi32> to vector<150xi32>
    %31 = vector.shape_cast %30 : vector<150xi32> to vector<150x1xi32>
    %32 = vector.broadcast %31 : vector<150x1xi32> to vector<150x64xi32>
    %33 = arith.cmpi eq, %8, %32 : vector<150x64xi32>
    %34 = arith.extui %33 : vector<150x64xi1> to vector<150x64xi32>
    %35 = arith.sitofp %34 : vector<150x64xi32> to vector<150x64xf32>
    %cst_14 = arith.constant dense<0.000000e+00> : vector<150x32xf32>
    %36 = tpu.matmul %35, %15, %cst_14 {dimension_numbers = #tpu.dot_dimension_numbers<[1], [0], [0], [1], [0, 0, 1, 1], [], []>} : vector<150x64xf32>, vector<64x32xf32>, vector<150x32xf32> -> vector<150x32xf32>
    %cst_15 = arith.constant dense<0.000000e+00> : vector<32x150xf32>
    %37 = tpu.matmul %15, %35, %cst_15 {dimension_numbers = #tpu.dot_dimension_numbers<[0], [1], [1], [0], [0, 1, 1, 0], [], []>} : vector<64x32xf32>, vector<150x64xf32>, vector<32x150xf32> -> vector<32x150xf32>
    %38 = arith.subf %1, %36 : vector<150x32xf32>
    %39 = arith.mulf %38, %38 : vector<150x32xf32>
    %cst_16 = arith.constant dense<0.000000e+00> : vector<150xf32>
    %40 = vector.multi_reduction <add>, %39, %cst_16 [1] : vector<150x32xf32> to vector<150xf32>
    %41 = vector.shape_cast %40 : vector<150xf32> to vector<150x1xf32>
    %42 = arith.addf %13, %41 : vector<150x1xf32>
    %43 = arith.addf %9, %36 : vector<150x32xf32>
    %44 = vector.shape_cast %31 : vector<150x1xi32> to vector<150xi32>
    %c0_17 = arith.constant 0 : index
    %c0_18 = arith.constant 0 : index
    %c0_19 = arith.constant 0 : index
    %45 = vector.load %arg6[%c0_17, %c0_18, %c0_19] : memref<1x4x150xi32, #tpu.memory_space<vmem>>, vector<1x1x150xi32>
    %46 = vector.shape_cast %45 : vector<1x1x150xi32> to vector<150xi32>
    %47 = vector.shape_cast %44 : vector<150xi32> to vector<1x1x150xi32>
    tpu.vector_store %arg6[%c0_17, %c0_18, %c0_19], %47 {strides = array<i32>} : memref<1x4x150xi32, #tpu.memory_space<vmem>>, vector<1x1x150xi32>,
    %c0_20 = arith.constant 0 : index
    %c0_21 = arith.constant 0 : index
    %c0_22 = arith.constant 0 : index
    %c0_23 = arith.constant 0 : index
    %48 = vector.load %arg7[%c0_20, %c0_21, %c0_22, %c0_23] : memref<4x1x32x150xf32, #tpu.memory_space<vmem>>, vector<1x1x32x150xf32>
    %49 = vector.shape_cast %48 : vector<1x1x32x150xf32> to vector<32x150xf32>
    %50 = vector.shape_cast %37 : vector<32x150xf32> to vector<1x1x32x150xf32>
    tpu.vector_store %arg7[%c0_20, %c0_21, %c0_22, %c0_23], %50 {strides = array<i32>} : memref<4x1x32x150xf32, #tpu.memory_space<vmem>>, vector<1x1x32x150xf32>,
    %c0_24 = arith.constant 0 : index
    %c0_25 = arith.constant 0 : index
    %c0_26 = arith.constant 0 : index
    %c0_27 = arith.constant 0 : index
    %51 = vector.load %arg8[%c0_24, %c0_25, %c0_26, %c0_27] : memref<4x1x150x64xf32, #tpu.memory_space<vmem>>, vector<1x1x150x64xf32>
    %52 = vector.shape_cast %51 : vector<1x1x150x64xf32> to vector<150x64xf32>
    %53 = vector.shape_cast %23 : vector<150x64xf32> to vector<1x1x150x64xf32>
    tpu.vector_store %arg8[%c0_24, %c0_25, %c0_26, %c0_27], %53 {strides = array<i32>} : memref<4x1x150x64xf32, #tpu.memory_space<vmem>>, vector<1x1x150x64xf32>,
    %c1 = arith.constant 1 : index
    %c0_28 = arith.constant 0 : index
    %c0_29 = arith.constant 0 : index
    %54 = vector.load %arg3[%c1, %c0_28, %c0_29] : memref<4x64x32xf32, #tpu.memory_space<vmem>>, vector<1x64x32xf32>
    %55 = vector.shape_cast %54 : vector<1x64x32xf32> to vector<64x32xf32>
    %c1_30 = arith.constant 1 : index
    %c0_31 = arith.constant 0 : index
    %56 = vector.load %arg4[%c1_30, %c0_31] : memref<4x64xf32, #tpu.memory_space<vmem>>, vector<1x64xf32>
    %cst_32 = arith.constant dense<0.000000e+00> : vector<150x64xf32>
    %57 = tpu.matmul %38, %55, %cst_32 {dimension_numbers = #tpu.dot_dimension_numbers<[1], [1], [0], [0], [0, 0, 1, 0], [], []>} : vector<150x32xf32>, vector<64x32xf32>, vector<150x64xf32> -> vector<150x64xf32>
    %cst_33 = arith.constant 2.000000e+00 : f32
    %58 = vector.broadcast %cst_33 : f32 to vector<150x64xf32>
    %59 = arith.mulf %58, %57 : vector<150x64xf32>
    %60 = vector.broadcast %41 : vector<150x1xf32> to vector<150x64xf32>
    %61 = arith.subf %59, %60 : vector<150x64xf32>
    %62 = vector.broadcast %56 : vector<1x64xf32> to vector<150x64xf32>
    %63 = arith.subf %61, %62 : vector<150x64xf32>
    %cst_34 = arith.constant dense<0xFF800000> : vector<150xf32>
    %64 = vector.multi_reduction <maximumf>, %63, %cst_34 [1] : vector<150x64xf32> to vector<150xf32>
    %65 = vector.shape_cast %64 : vector<150xf32> to vector<150x1xf32>
    %66 = vector.broadcast %65 : vector<150x1xf32> to vector<150x64xf32>
    %67 = arith.cmpf oeq, %63, %66 : vector<150x64xf32>
    %c64_i32_35 = arith.constant 64 : i32
    %68 = vector.broadcast %c64_i32_35 : i32 to vector<150x64xi32>
    %69 = arith.select %67, %8, %68 : vector<150x64xi1>, vector<150x64xi32>
    %cst_36 = arith.constant dense<2147483647> : vector<150xi32>
    %70 = vector.multi_reduction <minsi>, %69, %cst_36 [1] : vector<150x64xi32> to vector<150xi32>
    %71 = vector.shape_cast %70 : vector<150xi32> to vector<150x1xi32>
    %72 = vector.broadcast %71 : vector<150x1xi32> to vector<150x64xi32>
    %73 = arith.cmpi eq, %8, %72 : vector<150x64xi32>
    %74 = arith.extui %73 : vector<150x64xi1> to vector<150x64xi32>
    %75 = arith.sitofp %74 : vector<150x64xi32> to vector<150x64xf32>
    %cst_37 = arith.constant dense<0.000000e+00> : vector<150x32xf32>
    %76 = tpu.matmul %75, %55, %cst_37 {dimension_numbers = #tpu.dot_dimension_numbers<[1], [0], [0], [1], [0, 0, 1, 1], [], []>} : vector<150x64xf32>, vector<64x32xf32>, vector<150x32xf32> -> vector<150x32xf32>
    %cst_38 = arith.constant dense<0.000000e+00> : vector<32x150xf32>
    %77 = tpu.matmul %55, %75, %cst_38 {dimension_numbers = #tpu.dot_dimension_numbers<[0], [1], [1], [0], [0, 1, 1, 0], [], []>} : vector<64x32xf32>, vector<150x64xf32>, vector<32x150xf32> -> vector<32x150xf32>
    %78 = arith.subf %38, %76 : vector<150x32xf32>
    %79 = arith.mulf %78, %78 : vector<150x32xf32>
    %cst_39 = arith.constant dense<0.000000e+00> : vector<150xf32>
    %80 = vector.multi_reduction <add>, %79, %cst_39 [1] : vector<150x32xf32> to vector<150xf32>
    %81 = vector.shape_cast %80 : vector<150xf32> to vector<150x1xf32>
    %82 = arith.addf %42, %81 : vector<150x1xf32>
    %83 = arith.addf %43, %76 : vector<150x32xf32>
    %84 = vector.shape_cast %71 : vector<150x1xi32> to vector<150xi32>
    %c0_40 = arith.constant 0 : index
    %c1_41 = arith.constant 1 : index
    %c0_42 = arith.constant 0 : index
    %85 = vector.load %arg6[%c0_40, %c1_41, %c0_42] : memref<1x4x150xi32, #tpu.memory_space<vmem>>, vector<1x1x150xi32>
    %86 = vector.shape_cast %85 : vector<1x1x150xi32> to vector<150xi32>
    %87 = vector.shape_cast %84 : vector<150xi32> to vector<1x1x150xi32>
    tpu.vector_store %arg6[%c0_40, %c1_41, %c0_42], %87 {strides = array<i32>} : memref<1x4x150xi32, #tpu.memory_space<vmem>>, vector<1x1x150xi32>,
    %c1_43 = arith.constant 1 : index
    %c0_44 = arith.constant 0 : index
    %c0_45 = arith.constant 0 : index
    %c0_46 = arith.constant 0 : index
    %88 = vector.load %arg7[%c1_43, %c0_44, %c0_45, %c0_46] : memref<4x1x32x150xf32, #tpu.memory_space<vmem>>, vector<1x1x32x150xf32>
    %89 = vector.shape_cast %88 : vector<1x1x32x150xf32> to vector<32x150xf32>
    %90 = vector.shape_cast %77 : vector<32x150xf32> to vector<1x1x32x150xf32>
    tpu.vector_store %arg7[%c1_43, %c0_44, %c0_45, %c0_46], %90 {strides = array<i32>} : memref<4x1x32x150xf32, #tpu.memory_space<vmem>>, vector<1x1x32x150xf32>,
    %c1_47 = arith.constant 1 : index
    %c0_48 = arith.constant 0 : index
    %c0_49 = arith.constant 0 : index
    %c0_50 = arith.constant 0 : index
    %91 = vector.load %arg8[%c1_47, %c0_48, %c0_49, %c0_50] : memref<4x1x150x64xf32, #tpu.memory_space<vmem>>, vector<1x1x150x64xf32>
    %92 = vector.shape_cast %91 : vector<1x1x150x64xf32> to vector<150x64xf32>
    %93 = vector.shape_cast %63 : vector<150x64xf32> to vector<1x1x150x64xf32>
    tpu.vector_store %arg8[%c1_47, %c0_48, %c0_49, %c0_50], %93 {strides = array<i32>} : memref<4x1x150x64xf32, #tpu.memory_space<vmem>>, vector<1x1x150x64xf32>,
    %c2 = arith.constant 2 : index
    %c0_51 = arith.constant 0 : index
    %c0_52 = arith.constant 0 : index
    %94 = vector.load %arg3[%c2, %c0_51, %c0_52] : memref<4x64x32xf32, #tpu.memory_space<vmem>>, vector<1x64x32xf32>
    %95 = vector.shape_cast %94 : vector<1x64x32xf32> to vector<64x32xf32>
    %c2_53 = arith.constant 2 : index
    %c0_54 = arith.constant 0 : index
    %96 = vector.load %arg4[%c2_53, %c0_54] : memref<4x64xf32, #tpu.memory_space<vmem>>, vector<1x64xf32>
    %cst_55 = arith.constant dense<0.000000e+00> : vector<150x64xf32>
    %97 = tpu.matmul %78, %95, %cst_55 {dimension_numbers = #tpu.dot_dimension_numbers<[1], [1], [0], [0], [0, 0, 1, 0], [], []>} : vector<150x32xf32>, vector<64x32xf32>, vector<150x64xf32> -> vector<150x64xf32>
    %cst_56 = arith.constant 2.000000e+00 : f32
    %98 = vector.broadcast %cst_56 : f32 to vector<150x64xf32>
    %99 = arith.mulf %98, %97 : vector<150x64xf32>
    %100 = vector.broadcast %81 : vector<150x1xf32> to vector<150x64xf32>
    %101 = arith.subf %99, %100 : vector<150x64xf32>
    %102 = vector.broadcast %96 : vector<1x64xf32> to vector<150x64xf32>
    %103 = arith.subf %101, %102 : vector<150x64xf32>
    %cst_57 = arith.constant dense<0xFF800000> : vector<150xf32>
    %104 = vector.multi_reduction <maximumf>, %103, %cst_57 [1] : vector<150x64xf32> to vector<150xf32>
    %105 = vector.shape_cast %104 : vector<150xf32> to vector<150x1xf32>
    %106 = vector.broadcast %105 : vector<150x1xf32> to vector<150x64xf32>
    %107 = arith.cmpf oeq, %103, %106 : vector<150x64xf32>
    %c64_i32_58 = arith.constant 64 : i32
    %108 = vector.broadcast %c64_i32_58 : i32 to vector<150x64xi32>
    %109 = arith.select %107, %8, %108 : vector<150x64xi1>, vector<150x64xi32>
    %cst_59 = arith.constant dense<2147483647> : vector<150xi32>
    %110 = vector.multi_reduction <minsi>, %109, %cst_59 [1] : vector<150x64xi32> to vector<150xi32>
    %111 = vector.shape_cast %110 : vector<150xi32> to vector<150x1xi32>
    %112 = vector.broadcast %111 : vector<150x1xi32> to vector<150x64xi32>
    %113 = arith.cmpi eq, %8, %112 : vector<150x64xi32>
    %114 = arith.extui %113 : vector<150x64xi1> to vector<150x64xi32>
    %115 = arith.sitofp %114 : vector<150x64xi32> to vector<150x64xf32>
    %cst_60 = arith.constant dense<0.000000e+00> : vector<150x32xf32>
    %116 = tpu.matmul %115, %95, %cst_60 {dimension_numbers = #tpu.dot_dimension_numbers<[1], [0], [0], [1], [0, 0, 1, 1], [], []>} : vector<150x64xf32>, vector<64x32xf32>, vector<150x32xf32> -> vector<150x32xf32>
    %cst_61 = arith.constant dense<0.000000e+00> : vector<32x150xf32>
    %117 = tpu.matmul %95, %115, %cst_61 {dimension_numbers = #tpu.dot_dimension_numbers<[0], [1], [1], [0], [0, 1, 1, 0], [], []>} : vector<64x32xf32>, vector<150x64xf32>, vector<32x150xf32> -> vector<32x150xf32>
    %118 = arith.subf %78, %116 : vector<150x32xf32>
    %119 = arith.mulf %118, %118 : vector<150x32xf32>
    %cst_62 = arith.constant dense<0.000000e+00> : vector<150xf32>
    %120 = vector.multi_reduction <add>, %119, %cst_62 [1] : vector<150x32xf32> to vector<150xf32>
    %121 = vector.shape_cast %120 : vector<150xf32> to vector<150x1xf32>
    %122 = arith.addf %82, %121 : vector<150x1xf32>
    %123 = arith.addf %83, %116 : vector<150x32xf32>
    %124 = vector.shape_cast %111 : vector<150x1xi32> to vector<150xi32>
    %c0_63 = arith.constant 0 : index
    %c2_64 = arith.constant 2 : index
    %c0_65 = arith.constant 0 : index
    %125 = vector.load %arg6[%c0_63, %c2_64, %c0_65] : memref<1x4x150xi32, #tpu.memory_space<vmem>>, vector<1x1x150xi32>
    %126 = vector.shape_cast %125 : vector<1x1x150xi32> to vector<150xi32>
    %127 = vector.shape_cast %124 : vector<150xi32> to vector<1x1x150xi32>
    tpu.vector_store %arg6[%c0_63, %c2_64, %c0_65], %127 {strides = array<i32>} : memref<1x4x150xi32, #tpu.memory_space<vmem>>, vector<1x1x150xi32>,
    %c2_66 = arith.constant 2 : index
    %c0_67 = arith.constant 0 : index
    %c0_68 = arith.constant 0 : index
    %c0_69 = arith.constant 0 : index
    %128 = vector.load %arg7[%c2_66, %c0_67, %c0_68, %c0_69] : memref<4x1x32x150xf32, #tpu.memory_space<vmem>>, vector<1x1x32x150xf32>
    %129 = vector.shape_cast %128 : vector<1x1x32x150xf32> to vector<32x150xf32>
    %130 = vector.shape_cast %117 : vector<32x150xf32> to vector<1x1x32x150xf32>
    tpu.vector_store %arg7[%c2_66, %c0_67, %c0_68, %c0_69], %130 {strides = array<i32>} : memref<4x1x32x150xf32, #tpu.memory_space<vmem>>, vector<1x1x32x150xf32>,
    %c2_70 = arith.constant 2 : index
    %c0_71 = arith.constant 0 : index
    %c0_72 = arith.constant 0 : index
    %c0_73 = arith.constant 0 : index
    %131 = vector.load %arg8[%c2_70, %c0_71, %c0_72, %c0_73] : memref<4x1x150x64xf32, #tpu.memory_space<vmem>>, vector<1x1x150x64xf32>
    %132 = vector.shape_cast %131 : vector<1x1x150x64xf32> to vector<150x64xf32>
    %133 = vector.shape_cast %103 : vector<150x64xf32> to vector<1x1x150x64xf32>
    tpu.vector_store %arg8[%c2_70, %c0_71, %c0_72, %c0_73], %133 {strides = array<i32>} : memref<4x1x150x64xf32, #tpu.memory_space<vmem>>, vector<1x1x150x64xf32>,
    %c3 = arith.constant 3 : index
    %c0_74 = arith.constant 0 : index
    %c0_75 = arith.constant 0 : index
    %134 = vector.load %arg3[%c3, %c0_74, %c0_75] : memref<4x64x32xf32, #tpu.memory_space<vmem>>, vector<1x64x32xf32>
    %135 = vector.shape_cast %134 : vector<1x64x32xf32> to vector<64x32xf32>
    %c3_76 = arith.constant 3 : index
    %c0_77 = arith.constant 0 : index
    %136 = vector.load %arg4[%c3_76, %c0_77] : memref<4x64xf32, #tpu.memory_space<vmem>>, vector<1x64xf32>
    %cst_78 = arith.constant dense<0.000000e+00> : vector<150x64xf32>
    %137 = tpu.matmul %118, %135, %cst_78 {dimension_numbers = #tpu.dot_dimension_numbers<[1], [1], [0], [0], [0, 0, 1, 0], [], []>} : vector<150x32xf32>, vector<64x32xf32>, vector<150x64xf32> -> vector<150x64xf32>
    %cst_79 = arith.constant 2.000000e+00 : f32
    %138 = vector.broadcast %cst_79 : f32 to vector<150x64xf32>
    %139 = arith.mulf %138, %137 : vector<150x64xf32>
    %140 = vector.broadcast %121 : vector<150x1xf32> to vector<150x64xf32>
    %141 = arith.subf %139, %140 : vector<150x64xf32>
    %142 = vector.broadcast %136 : vector<1x64xf32> to vector<150x64xf32>
    %143 = arith.subf %141, %142 : vector<150x64xf32>
    %cst_80 = arith.constant dense<0xFF800000> : vector<150xf32>
    %144 = vector.multi_reduction <maximumf>, %143, %cst_80 [1] : vector<150x64xf32> to vector<150xf32>
    %145 = vector.shape_cast %144 : vector<150xf32> to vector<150x1xf32>
    %146 = vector.broadcast %145 : vector<150x1xf32> to vector<150x64xf32>
    %147 = arith.cmpf oeq, %143, %146 : vector<150x64xf32>
    %c64_i32_81 = arith.constant 64 : i32
    %148 = vector.broadcast %c64_i32_81 : i32 to vector<150x64xi32>
    %149 = arith.select %147, %8, %148 : vector<150x64xi1>, vector<150x64xi32>
    %cst_82 = arith.constant dense<2147483647> : vector<150xi32>
    %150 = vector.multi_reduction <minsi>, %149, %cst_82 [1] : vector<150x64xi32> to vector<150xi32>
    %151 = vector.shape_cast %150 : vector<150xi32> to vector<150x1xi32>
    %152 = vector.broadcast %151 : vector<150x1xi32> to vector<150x64xi32>
    %153 = arith.cmpi eq, %8, %152 : vector<150x64xi32>
    %154 = arith.extui %153 : vector<150x64xi1> to vector<150x64xi32>
    %155 = arith.sitofp %154 : vector<150x64xi32> to vector<150x64xf32>
    %cst_83 = arith.constant dense<0.000000e+00> : vector<150x32xf32>
    %156 = tpu.matmul %155, %135, %cst_83 {dimension_numbers = #tpu.dot_dimension_numbers<[1], [0], [0], [1], [0, 0, 1, 1], [], []>} : vector<150x64xf32>, vector<64x32xf32>, vector<150x32xf32> -> vector<150x32xf32>
    %cst_84 = arith.constant dense<0.000000e+00> : vector<32x150xf32>
    %157 = tpu.matmul %135, %155, %cst_84 {dimension_numbers = #tpu.dot_dimension_numbers<[0], [1], [1], [0], [0, 1, 1, 0], [], []>} : vector<64x32xf32>, vector<150x64xf32>, vector<32x150xf32> -> vector<32x150xf32>
    %158 = arith.subf %118, %156 : vector<150x32xf32>
    %159 = arith.mulf %158, %158 : vector<150x32xf32>
    %cst_85 = arith.constant dense<0.000000e+00> : vector<150xf32>
    %160 = vector.multi_reduction <add>, %159, %cst_85 [1] : vector<150x32xf32> to vector<150xf32>
    %161 = vector.shape_cast %160 : vector<150xf32> to vector<150x1xf32>
    %162 = arith.addf %122, %161 : vector<150x1xf32>
    %163 = arith.addf %123, %156 : vector<150x32xf32>
    %164 = vector.shape_cast %151 : vector<150x1xi32> to vector<150xi32>
    %c0_86 = arith.constant 0 : index
    %c3_87 = arith.constant 3 : index
    %c0_88 = arith.constant 0 : index
    %165 = vector.load %arg6[%c0_86, %c3_87, %c0_88] : memref<1x4x150xi32, #tpu.memory_space<vmem>>, vector<1x1x150xi32>
    %166 = vector.shape_cast %165 : vector<1x1x150xi32> to vector<150xi32>
    %167 = vector.shape_cast %164 : vector<150xi32> to vector<1x1x150xi32>
    tpu.vector_store %arg6[%c0_86, %c3_87, %c0_88], %167 {strides = array<i32>} : memref<1x4x150xi32, #tpu.memory_space<vmem>>, vector<1x1x150xi32>,
    %c3_89 = arith.constant 3 : index
    %c0_90 = arith.constant 0 : index
    %c0_91 = arith.constant 0 : index
    %c0_92 = arith.constant 0 : index
    %168 = vector.load %arg7[%c3_89, %c0_90, %c0_91, %c0_92] : memref<4x1x32x150xf32, #tpu.memory_space<vmem>>, vector<1x1x32x150xf32>
    %169 = vector.shape_cast %168 : vector<1x1x32x150xf32> to vector<32x150xf32>
    %170 = vector.shape_cast %157 : vector<32x150xf32> to vector<1x1x32x150xf32>
    tpu.vector_store %arg7[%c3_89, %c0_90, %c0_91, %c0_92], %170 {strides = array<i32>} : memref<4x1x32x150xf32, #tpu.memory_space<vmem>>, vector<1x1x32x150xf32>,
    %c3_93 = arith.constant 3 : index
    %c0_94 = arith.constant 0 : index
    %c0_95 = arith.constant 0 : index
    %c0_96 = arith.constant 0 : index
    %171 = vector.load %arg8[%c3_93, %c0_94, %c0_95, %c0_96] : memref<4x1x150x64xf32, #tpu.memory_space<vmem>>, vector<1x1x150x64xf32>
    %172 = vector.shape_cast %171 : vector<1x1x150x64xf32> to vector<150x64xf32>
    %173 = vector.shape_cast %143 : vector<150x64xf32> to vector<1x1x150x64xf32>
    tpu.vector_store %arg8[%c3_93, %c0_94, %c0_95, %c0_96], %173 {strides = array<i32>} : memref<4x1x150x64xf32, #tpu.memory_space<vmem>>, vector<1x1x150x64xf32>,
    %c0_97 = arith.constant 0 : index
    %c0_98 = arith.constant 0 : index
    %c0_99 = arith.constant 0 : index
    %174 = vector.load %arg5[%c0_97, %c0_98, %c0_99] : memref<1x150x32xf32, #tpu.memory_space<vmem>>, vector<1x150x32xf32>
    %175 = vector.shape_cast %174 : vector<1x150x32xf32> to vector<150x32xf32>
    %176 = vector.shape_cast %163 : vector<150x32xf32> to vector<1x150x32xf32>
    tpu.vector_store %arg5[%c0_97, %c0_98, %c0_99], %176 {strides = array<i32>} : memref<1x150x32xf32, #tpu.memory_space<vmem>>, vector<1x150x32xf32>,
    %cst_100 = arith.constant 0.000000e+00 : f32
    %177 = vector.broadcast %cst_100 : f32 to vector<150x1xf32>
    %178 = arith.select %7, %162, %177 : vector<150x1xi1>, vector<150x1xf32>
    %179 = vector.shape_cast %178 : vector<150x1xf32> to vector<1x150x1xf32>
    %cst_101 = arith.constant dense<0.000000e+00> : vector<1xf32>
    %180 = vector.multi_reduction <add>, %179, %cst_101 [1, 2] : vector<1x150x1xf32> to vector<1xf32>
    %181 = vector.shape_cast %180 : vector<1xf32> to vector<1x1x1xf32>
    %182 = vector.extract %181[0, 0, 0] : f32 from vector<1x1x1xf32>
    %183 = vector.broadcast %182 : f32 to vector<8x128xf32>
    %c0_102 = arith.constant 0 : index
    %c0_103 = arith.constant 0 : index
    %c0_104 = arith.constant 0 : index
    %c0_105 = arith.constant 0 : index
    %184 = vector.load %arg9[%c0_102, %c0_103, %c0_104, %c0_105] : memref<1x1x8x128xf32, #tpu.memory_space<vmem>>, vector<1x1x8x128xf32>
    %185 = vector.shape_cast %184 : vector<1x1x8x128xf32> to vector<8x128xf32>
    %186 = vector.shape_cast %183 : vector<8x128xf32> to vector<1x1x8x128xf32>
    tpu.vector_store %arg9[%c0_102, %c0_103, %c0_104, %c0_105], %186 {strides = array<i32>} : memref<1x1x8x128xf32, #tpu.memory_space<vmem>>, vector<1x1x8x128xf32>,
    return
  }
  func.func @transform_0(%arg0: i32, %arg1: i32) -> (i32, i32, i32) {
    %c0_i32 = arith.constant 0 : i32
    %c0_i32_0 = arith.constant 0 : i32
    return %arg0, %arg1, %c0_i32 : i32, i32, i32
  }
  func.func @transform_1(%arg0: i32, %arg1: i32) -> (i32, i32, i32) {
    %c0_i32 = arith.constant 0 : i32
    %c0_i32_0 = arith.constant 0 : i32
    %c0_i32_1 = arith.constant 0 : i32
    %c0_i32_2 = arith.constant 0 : i32
    return %c0_i32, %c0_i32_0, %c0_i32_1 : i32, i32, i32
  }
  func.func @transform_2(%arg0: i32, %arg1: i32) -> (i32, i32) {
    %c0_i32 = arith.constant 0 : i32
    %c0_i32_0 = arith.constant 0 : i32
    %c0_i32_1 = arith.constant 0 : i32
    return %c0_i32, %c0_i32_0 : i32, i32
  }
  func.func @transform_3(%arg0: i32, %arg1: i32) -> (i32, i32, i32) {
    %c0_i32 = arith.constant 0 : i32
    %c0_i32_0 = arith.constant 0 : i32
    return %arg0, %arg1, %c0_i32 : i32, i32, i32
  }
  func.func @transform_4(%arg0: i32, %arg1: i32) -> (i32, i32, i32) {
    %c0_i32 = arith.constant 0 : i32
    %c0_i32_0 = arith.constant 0 : i32
    return %arg0, %c0_i32, %arg1 : i32, i32, i32
  }
  func.func @transform_5(%arg0: i32, %arg1: i32) -> (i32, i32, i32, i32) {
    %c0_i32 = arith.constant 0 : i32
    %c0_i32_0 = arith.constant 0 : i32
    %c0_i32_1 = arith.constant 0 : i32
    return %c0_i32, %arg0, %c0_i32_0, %arg1 : i32, i32, i32, i32
  }
  func.func @transform_6(%arg0: i32, %arg1: i32) -> (i32, i32, i32, i32) {
    %c0_i32 = arith.constant 0 : i32
    %c0_i32_0 = arith.constant 0 : i32
    %c0_i32_1 = arith.constant 0 : i32
    return %c0_i32, %arg0, %arg1, %c0_i32_0 : i32, i32, i32, i32
  }
  func.func @transform_7(%arg0: i32, %arg1: i32) -> (i32, i32, i32, i32) {
    %c0_i32 = arith.constant 0 : i32
    %c0_i32_0 = arith.constant 0 : i32
    %c0_i32_1 = arith.constant 0 : i32
    return %arg0, %arg1, %c0_i32, %c0_i32_0 : i32, i32, i32, i32
  }
}

</mosaic_0001>

<bundles_post_ra>
// kernel: tpu_custom_call.1
= control target key start
LH: loop header
LB: loop body
LE: loop exit
PB: predicated region body
PF: predicated region fallthrough
CT: control target
= control target key end

     0   :  { %s22359_s0 = inlined_call_operand.vmem [shape: f32[2,150,32], index: 0, kind: input, shape index: {}]   ;;  %s22360_s1 = inlined_call_operand.vmem [shape: f32[4,64,32], index: 1, kind: input, shape index: {}]   ;;  %s22361_s2 = inlined_call_operand.vmem [shape: f32[4,64], index: 2, kind: input, shape index: {}]   ;;  %s22362_s3 = inlined_call_operand.vmem [shape: f32[2,150,32], index: 3, kind: output, shape index: {0}]   ;;  %s22363_s4 = inlined_call_operand.hbm [shape: s32[2,4,150], index: 4, kind: output, shape index: {1}]   ;;  %s22364_s5 = inlined_call_operand.hbm [shape: f32[4,2,32,150], index: 5, kind: output, shape index: {2}]   ;;  %s22365_s6 = inlined_call_operand.vmem [shape: f32[4,2,150,64], index: 6, kind: output, shape index: {3}]   ;;  %s22366_s7 = inlined_call_operand.hbm [shape: f32[2,1,8,128], index: 7, kind: output, shape index: {4}]  }
   0x1   :  { %22722 = sst [smem:[#allocation181_spill]] %s22359_s0 }
   0x2   :  { %22723 = sst [smem:[#allocation182_spill]] %s22360_s1 }
   0x3   :  { %13 = vsyncpa [#allocation3], 0 }
   0x4   :  { %15 = vsyncpa [#allocation3 + $0x1], 0 }
   0x5   :  { %16 = vsyncpa [#allocation5], 0 }
   0x6   :  { %18 = vsyncpa [#allocation5 + $0x1], 0  ;;  %s14967_s24 = smov 0   ;;  %s14969_s25 = smov 0  }
   0x7   :  { %s14971_s26 = smov 0   ;;  %s14973_s27 = smov 0  }
   0x8   :  { %s14975_s28 = smov 0   ;;  %s14977_s29 = smov 0  }
   0x9 LB: > { %s22368_s30 = sadd.s32 4294967295, %s14911_s29   ;;  %s22367_s8 = sadd.s32 4294967294, %s14911_s29   ;;  %s14911_s29 = sphi %s14977_s29, %s24_s29   ;;  %s14907_s28 = sphi %s14975_s28, %s23373_s28   ;;  %s14903_s27 = sphi %s14973_s27, %s23372_s27   ;;  %s14899_s26 = sphi %s14971_s26, %s23371_s26   ;;  %s14895_s25 = sphi %s14969_s25, %s23370_s25   ;;  %s14891_s24 = sphi %s14967_s24, %s23369_s24  }
   0xa   : > { %s36_s9 = sadd.s32 1, %s14907_s28  ;;  %s143_s10 = sadd.s32 1, %s14899_s26 }
   0xb   : > { %p38_p0 = scmp.ge.s32.totalorder %s36_s9, 2  ;;  %p153_p1 = scmp.ne.s32.totalorder %s14899_s26, %s14895_s25 }
   0xc   : > { %p154_p2 = scmp.eq.s32.totalorder %s22368_s30, 1  ;;  %p159_p3 = scmp.ne.s32.totalorder %s14895_s25, %s14891_s24 }
   0xd   : > { %s23375_s9 = smov (%p38_p0, %s36_s9), 0  ;;  %p160_p5 = scmp.eq.s32.totalorder %s22367_s8, 1 }
   0xe   : > { %p15009_p4 = por %p154_p2, %p153_p1  ;;  %s138_s12 = ssub.s32 %s14907_s28, %s23375_s9 }
   0xf   : > { %p13101_p6 = scmp.ge.s32.totalorder %s14911_s29, 1  ;;  %p141_p7 = scmp.eq.s32.totalorder %s138_s12, 0 }
  0x10   : > { %p15018_p8 = por %p160_p5, %p159_p3  ;;  %p281_p9 = scmp.lt.s32.totalorder %s14911_s29, 3 }
  0x11   : > { %s15024_s14 = scalar_select %p141_p7, %s14899_s26, %s143_s10  }
  0x12   : > { %p282_p10 = pnand %p13101_p6, %p281_p9 }
  0x14   : > { %285 = sbr.rel (%p282_p10) target bundleno = 4265 (0x10a9), region = 32 }
  0x1b   : > { %vm463_vm0 = vcmask 261120   ;;  %s22726_s1 = sld [smem:[#allocation182_spill]]  ;;  %v22371_v2 = vmov 0.0|0.0   ;;  %p341_p11 = scmp.lt.s32.totalorder %s14903_s27, 1  ;;  %vm14914_vm2 = vmmov 0   ;;  %v22395_v7 = vmov 0.0  }
  0x1c   : > { %14384 = vmatprep.subr.bf16.mxu0 %v22371_v2  ;;  %vm15035_vm1 = vmpackc.low %vm463_vm0, %vm463_vm0  ;;  %14400 = vmatprep.subr.bf16.mxu1 %v22371_v2  ;;  %s22729_s0 = sld [smem:[#allocation181_spill]]  ;;  %vm518_vm3 = vcmask 259072   ;;  %s15246_s16 = sand.u32 1, %s14895_s25   ;;  %vm833_vm4 = vcmask 523264   ;;  %vm888_vm5 = vcmask 521216  }
  0x1d   : > { %13816 = vmatprep.mubr.msk.f32.mxu0 %vm14914_vm2, %v22395_v7  ;;  %13889 = vmatprep.mubr.msk.f32.mxu1 %vm14914_vm2, %v22395_v7  ;;  %s15054_s23 = scalar_select %p341_p11, %s14903_s27, 1 }
  0x1e   : > { %s14660_s17 = smul.u32 608, %s15246_s16  ;;  %s22721_s12 = sshll.u32 %s14903_s27, 7 }
  0x1f   : > { %s22460_s10 = smul.u32 152, %s15054_s23  ;;  %s22094_s18 = scalar_lea.hbm %s22363_s4, %s22721_s12 }
  0x20   : > { %s15257_s21 = scalar_lea.vmem [#allocation6], %s14660_s17  ;;  %s13103_s17 = sshll.u32 %s15246_s16, 8 }
  0x21   : > { %v522_v0 = vld [vmem:[%s22726_s1] sm:$0xff]  ;;  %v523_v1 = vld [vmem:[%s22726_s1 + $0x8] sm:$0xff]  ;;  %v524_v5 = vld [vmem:[%s22726_s1 + $0x10] sm:$0xff]  ;;  %s17010_s30 = scalar_lea.vmem [#allocation4], %s13103_s17  ;;  %s23182_s8 = smul.u32 152, %s15054_s23 }
  0x22   : > { %v14385_v3 = vpack.c.bf16 %v523_v1, %v522_v0  ;;  %v525_v6 = vld [vmem:[%s22726_s1 + $0x18] sm:$0xff]  ;;  %v526_v9 = vld [vmem:[%s22726_s1 + $0x20] sm:$0xff]  ;;  %v527_v10 = vld [vmem:[%s22726_s1 + $0x28] sm:$0xff]  ;;  %s15070_s20 = scalar_lea.vmem %s22729_s0, %s22460_s10  ;;  %s22720_s0 = sshll.u32 %s15246_s16, 3 }
  0x23   : > { %v14389_v8 = vpack.c.bf16 %v525_v6, %v524_v5  ;;  %v15073_v11 = vld [vmem:[%s15070_s20] sm:$0xff]  ;;  %v15076_v12 = vld [vmem:[%s15070_s20 + $0x8] sm:$0xff]  ;;  %v15079_v13 = vld [vmem:[%s15070_s20 + $0x10] sm:$0xff]  ;;  %v14393_v14 = vpack.c.bf16 %v527_v10, %v526_v9  ;;  %s20295_s17 = scalar_lea.vmem [#allocation2], %s22720_s0  ;;  %s20671_s19 = scalar_lea.vmem %s22362_s3, %s23182_s8 }
  0x24   : > { %14387 = vmatpush3.bf16.xpose.msk.msra.mxu0 %vm15035_vm1, %v14385_v3  ;;  %14402 = vmatpush3.bf16.msra.mxu1 %v14385_v3  ;;  %v15083_v15 = vld [vmem:[%s15070_s20 + $0x18] sm:$0xff]  ;;  %v444_v16 = vmul.f32 %v15073_v11, %v15073_v11  ;;  %v445_v17 = vmul.f32 %v15076_v12, %v15076_v12  ;;  %v446_v18 = vmul.f32 %v15079_v13, %v15079_v13  ;;  %v528_v19 = vld [vmem:[%s22726_s1 + $0x30] sm:$0xff]  ;;  %v15105_v24 = vld [vmem:[%s15070_s20 + $0x20] sm:$0xff]  ;;  %s23360_s23 = sadd.s32 4294967295, %s14911_s29   ;;  %s12487_s22 = sshll.u32 %s20295_s17, 4  ;;  %s22087_s22 = int_to_ptr.vmem [resolvable:$true] %s12487_s22 }
  0x25   : > { %14388 = vmatprep.subr.bf16.mxu0 %v22371_v2  ;;  %14403 = vmatprep.subr.bf16.mxu1 %v22371_v2  ;;  %v529_v20 = vld [vmem:[%s22726_s1 + $0x38] sm:$0xff]  ;;  %v447_v21 = vmul.f32 %v15083_v15, %v15083_v15  ;;  %v15108_v26 = vld [vmem:[%s15070_s20 + $0x28] sm:$0xff]  ;;  %v448_v28 = vmul.f32 %v15105_v24, %v15105_v24  ;;  %v15118_v31 = vld [vmem:[%s15070_s20 + $0x30] sm:$0xff]  ;;  %s12453_s10 = scalar_lea.sflag [#allocation3], %s15246_s16 }
  0x26   : > { %v464_v22 = vsel %vm463_vm0, %v444_v16, 0.0  ;;  %v470_v23 = vsel %vm463_vm0, %v446_v18, 0.0  ;;  %v14397_v25 = vpack.c.bf16 %v529_v20, %v528_v19  ;;  %v467_v27 = vsel %vm463_vm0, %v445_v17, 0.0  ;;  %v15122_v32 = vld [vmem:[%s15070_s20 + $0x38] sm:$0xff]  ;;  %v15134_v37 = vld [vmem:[%s15070_s20 + $0x40] sm:$0xff]  ;;  %v15137_v38 = vld [vmem:[%s15070_s20 + $0x48] sm:$0xff] }
  0x27   : > { %465 = vadd.xlane.f32.xlu0 %v464_v22  ;;  %471 = vadd.xlane.f32.xlu1 %v470_v23  ;;  %v473_v29 = vsel %vm463_vm0, %v447_v21, 0.0  ;;  %v449_v30 = vmul.f32 %v15108_v26, %v15108_v26  ;;  %v476_v33 = vsel %vm463_vm0, %v448_v28, 0.0  ;;  %v450_v34 = vmul.f32 %v15118_v31, %v15118_v31  ;;  %v15146_v43 = vld [vmem:[%s15070_s20 + $0x50] sm:$0xff]  ;;  %v15149_v44 = vld [vmem:[%s15070_s20 + $0x58] sm:$0xff]  ;;  %v375_v49 = vld [vmem:[%s15070_s20 + $0x60] sm:$0xff] }
  0x28   : > { %14405 = vmatpush3.bf16.msra.mxu1 %v14389_v8  ;;  %v451_v36 = vmul.f32 %v15122_v32, %v15122_v32  ;;  %v452_v40 = vmul.f32 %v15134_v37, %v15134_v37  ;;  %v453_v42 = vmul.f32 %v15137_v38, %v15137_v38  ;;  %v454_v46 = vmul.f32 %v15146_v43, %v15146_v43  ;;  %v376_v50 = vld [vmem:[%s15070_s20 + $0x68] sm:$0xff]  ;;  %v377_v55 = vld [vmem:[%s15070_s20 + $0x70] sm:$0xff]  ;;  %v378_v56 = vld [vmem:[%s15070_s20 + $0x78] sm:$0xff] }
  0x29   : > { %14406 = vmatprep.subr.bf16.mxu1 %v22371_v2  ;;  %v479_v35 = vsel %vm463_vm0, %v449_v30, 0.0  ;;  %v482_v39 = vsel %vm463_vm0, %v450_v34, 0.0  ;;  %v455_v48 = vmul.f32 %v15149_v44, %v15149_v44  ;;  %v456_v52 = vmul.f32 %v375_v49, %v375_v49  ;;  %v379_v61 = vld [vmem:[%s15070_s20 + $0x80] sm:$0xff]  ;;  %v380_v62 = vld [vmem:[%s15070_s20 + $0x88] sm:$0xff]  ;;  %v381_v5 = vld [vmem:[%s15070_s20 + $0x90] sm:$0x3f] }
  0x2a   : > { %v485_v41 = vsel %vm463_vm0, %v451_v36, 0.0  ;;  %v488_v45 = vsel %vm463_vm0, %v452_v40, 0.0  ;;  %v491_v47 = vsel %vm463_vm0, %v453_v42, 0.0  ;;  %v494_v51 = vsel %vm463_vm0, %v454_v46, 0.0 }
  0x2b   : > { %468 = vadd.xlane.f32.xlu0 %v467_v27  ;;  %474 = vadd.xlane.f32.xlu1 %v473_v29  ;;  %v497_v53 = vsel %vm463_vm0, %v455_v48, 0.0  ;;  %v457_v54 = vmul.f32 %v376_v50, %v376_v50  ;;  %v500_v57 = vsel %vm463_vm0, %v456_v52, 0.0  ;;  %v458_v58 = vmul.f32 %v377_v55, %v377_v55 }
  0x2c   : > { %14391 = vmatpush3.bf16.xpose.msk.msra.mxu0 %vm15035_vm1, %v14389_v8  ;;  %14408 = vmatpush3.bf16.msra.mxu1 %v14393_v14  ;;  %v459_v60 = vmul.f32 %v378_v56, %v378_v56  ;;  %v460_v0 = vmul.f32 %v379_v61, %v379_v61  ;;  %v461_v3 = vmul.f32 %v380_v62, %v380_v62 }
  0x2d   : > { %14392 = vmatprep.subr.bf16.mxu0 %v22371_v2  ;;  %14409 = vmatprep.subr.bf16.mxu1 %v22371_v2  ;;  %v503_v59 = vsel %vm463_vm0, %v457_v54, 0.0  ;;  %v506_v63 = vsel %vm463_vm0, %v458_v58, 0.0  ;;  %v462_v8 = vmul.f32 %v381_v5, %v381_v5 }
  0x2e   : > { %v509_v1 = vsel %vm463_vm0, %v459_v60, 0.0  ;;  %v512_v6 = vsel %vm463_vm0, %v460_v0, 0.0  ;;  %v515_v9 = vsel %vm463_vm0, %v461_v3, 0.0 }
  0x2f   : > { %477 = vadd.xlane.f32.xlu0 %v476_v33  ;;  %480 = vadd.xlane.f32.xlu1 %v479_v35  ;;  %v519_v10 = vsel %vm518_vm3, %v462_v8, 0.0 }
  0x30   : > { %14411 = vmatpush3.bf16.msra.mxu1 %v14397_v25 }
  0x31   : > { %14412 = vmatprep.subr.bf16.mxu1 %v22371_v2 }
  0x33   : > { %483 = vadd.xlane.f32.xlu0 %v482_v39  ;;  %486 = vadd.xlane.f32.xlu1 %v485_v41 }
  0x34   : > { %14395 = vmatpush3.bf16.xpose.msk.msra.mxu0 %vm15035_vm1, %v14393_v14 }
  0x35   : > { %14396 = vmatprep.subr.bf16.mxu0 %v22371_v2 }
  0x37   : > { %489 = vadd.xlane.f32.xlu0 %v488_v45  ;;  %492 = vadd.xlane.f32.xlu1 %v491_v47 }
  0x3b   : > { %495 = vadd.xlane.f32.xlu0 %v494_v51  ;;  %498 = vadd.xlane.f32.xlu1 %v497_v53 }
  0x3c   : > { %14399 = vmatpush3.bf16.xpose.msk.msra.mxu0 %vm15035_vm1, %v14397_v25 }
  0x3d   : > { %14448 = vmatprep.subr.bf16.mxu0 %v22371_v2 }
  0x3f   : > { %501 = vadd.xlane.f32.xlu0 %v500_v57  ;;  %504 = vadd.xlane.f32.xlu1 %v503_v59 }
  0x43   : > { %13817 = vmatmul.mubr.msk.f32.vlgmr.msra.gmra.mrb[0].mxu0 %vm463_vm0, %v15073_v11  ;;  %507 = vadd.xlane.f32.xlu0 %v506_v63 }
  0x44   : > { %13819 = vmatprep.mubr.msk.f32.mxu0 %vm14914_vm2, %v22395_v7  ;;  %510 = vadd.xlane.f32.xlu1 %v509_v1 }
  0x47   : > { %13820 = vmatmul.mubr.msk.f32.gmra.mrb[2].mxu0 %vm463_vm0, %v15076_v12  ;;  %513 = vadd.xlane.f32.xlu0 %v512_v6 }
  0x48   : > { %13822 = vmatprep.mubr.msk.f32.mxu0 %vm14914_vm2, %v22395_v7  ;;  %516 = vadd.xlane.f32.xlu1 %v515_v9 }
  0x4b   : > { %13823 = vmatmul.mubr.msk.f32.gmra.mrb[4].mxu0 %vm463_vm0, %v15079_v13  ;;  %520 = vadd.xlane.f32.xlu0 %v519_v10 }
  0x4c   : > { %13825 = vmatprep.mubr.msk.f32.mxu0 %vm14914_vm2, %v22395_v7 }
  0x4f   : > { %13826 = vmatmul.mubr.msk.f32.gmra.mrb[6].mxu0 %vm463_vm0, %v15083_v15  ;;  %v15252_v15 = vld [vmem:[%s22361_s2] ss:$0 sm:$0xff] }
  0x50   : > { %13828 = vmatprep.mubr.msk.f32.mxu0 %vm14914_vm2, %v22395_v7 }
  0x53   : > { %13829 = vmatmul.mubr.msk.f32.gmra.mrb[8].mxu0 %vm463_vm0, %v15105_v24 }
  0x54   : > { %13831 = vmatprep.mubr.msk.f32.mxu0 %vm14914_vm2, %v22395_v7 }
  0x57   : > { %13832 = vmatmul.mubr.msk.f32.gmra.mrb[10].mxu0 %vm463_vm0, %v15108_v26 }
  0x58   : > { %13834 = vmatprep.mubr.msk.f32.mxu0 %vm14914_vm2, %v22395_v7 }
  0x5b   : > { %13835 = vmatmul.mubr.msk.f32.gmra.mrb[12].mxu0 %vm463_vm0, %v15118_v31 }
  0x5c   : > { %13837 = vmatprep.mubr.msk.f32.mxu0 %vm14914_vm2, %v22395_v7 }
  0x5f   : > { %13838 = vmatmul.mubr.msk.f32.gmra.mrb[14].mxu0 %vm463_vm0, %v15122_v32 }
  0x60   : > { %13840 = vmatprep.mubr.msk.f32.mxu0 %vm14914_vm2, %v22395_v7 }
  0x63   : > { %13841 = vmatmul.mubr.msk.f32.gmra.mrb[16].mxu0 %vm463_vm0, %v15134_v37 }
  0x64   : > { %13843 = vmatprep.mubr.msk.f32.mxu0 %vm14914_vm2, %v22395_v7 }
  0x67   : > { %13844 = vmatmul.mubr.msk.f32.gmra.mrb[18].mxu0 %vm463_vm0, %v15137_v38 }
  0x68   : > { %13846 = vmatprep.mubr.msk.f32.mxu0 %vm14914_vm2, %v22395_v7 }
  0x6b   : > { %13847 = vmatmul.mubr.msk.f32.gmra.mrb[20].mxu0 %vm463_vm0, %v15146_v43 }
  0x6c   : > { %13849 = vmatprep.mubr.msk.f32.mxu0 %vm14914_vm2, %v22395_v7 }
  0x6f   : > { %13850 = vmatmul.mubr.msk.f32.gmra.mrb[22].mxu0 %vm463_vm0, %v15149_v44 }
  0x70   : > { %13852 = vmatprep.mubr.msk.f32.mxu0 %vm14914_vm2, %v22395_v7 }
  0x73   : > { %13853 = vmatmul.mubr.msk.f32.gmra.mrb[24].mxu0 %vm463_vm0, %v375_v49 }
  0x74   : > { %13855 = vmatprep.mubr.msk.f32.mxu0 %vm14914_vm2, %v22395_v7 }
  0x77   : > { %13856 = vmatmul.mubr.msk.f32.gmra.mrb[26].mxu0 %vm463_vm0, %v376_v50 }
  0x78   : > { %13858 = vmatprep.mubr.msk.f32.mxu0 %vm14914_vm2, %v22395_v7 }
  0x7b   : > { %13859 = vmatmul.mubr.msk.f32.gmra.mrb[28].mxu0 %vm463_vm0, %v377_v55 }
  0x7c   : > { %13861 = vmatprep.mubr.msk.f32.mxu0 %vm14914_vm2, %v22395_v7 }
  0x7f   : > { %13862 = vmatmul.mubr.msk.f32.gmra.mrb[30].mxu0 %vm463_vm0, %v378_v56 }
  0x80   : > { %13864 = vmatprep.mubr.msk.f32.mxu0 %vm14914_vm2, %v22395_v7 }
  0x83   : > { %13865 = vmatmul.mubr.msk.f32.gmra.mrb[32].mxu0 %vm463_vm0, %v379_v61 }
  0x84   : > { %13867 = vmatprep.mubr.msk.f32.mxu0 %vm14914_vm2, %v22395_v7 }
  0x87   : > { %13868 = vmatmul.mubr.msk.f32.gmra.mrb[34].mxu0 %vm463_vm0, %v380_v62 }
  0x88   : > { %13870 = vmatprep.mubr.msk.f32.mxu0 %vm14914_vm2, %v22395_v7 }
  0x8b   : > { %13871 = vmatmul.mubr.msk.f32.gmra.mrb[36].mxu0 %vm463_vm0, %v381_v5 }
  0x8c   : > { %13962 = vmatprep.mubr.msk.f32.mxu0 %vm14914_vm2, %v22395_v7 }
  0xb4   : > { %v466_v11 = vpop.xlane.xlu0 %465  ;;  %v472_v22 = vpop.xlane.xlu1 %471 }
  0xb8   : > { %v469_v18 = vpop.xlane.xlu0 %468  ;;  %v475_v32 = vpop.xlane.xlu1 %474 }
  0xbc   : > { %v478_v39 = vpop.xlane.xlu0 %477  ;;  %v481_v46 = vpop.xlane.xlu1 %480 }
  0xc0   : > { %v484_v53 = vpop.xlane.xlu0 %483  ;;  %v487_v60 = vpop.xlane.xlu1 %486 }
  0xc4   : > { %v490_v5 = vpop.xlane.xlu0 %489 }
 0x116   : > { %v678_v12 = vpop.f32.mrb[0].mxu0 }
 0x117   : > { %v772_v13 = vmul.f32 2.0, %v678_v12  ;;  %v13818_v14 = vpop.f32.mrb[1].mxu0 }
 0x119   : > { %v791_v16 = vsub.f32 %v772_v13, %v466_v11  ;;  %v493_v13 = vpop.xlane.xlu1 %492 }
 0x11a   : > { %v683_v17 = vpop.f32.mrb[2].mxu0 }
 0x11b   : > { %v15255_v19 = vsub.f32 %v791_v16, %v15252_v15  ;;  %v773_v20 = vmul.f32 2.0, %v683_v17  ;;  %v13821_v21 = vpop.f32.mrb[3].mxu0 }
 0x11d   : > { %3486 = vst.msk [vmem:[%s15257_s21] sm:$0xff] %vm833_vm4, %v15255_v19  ;;  %v792_v23 = vsub.f32 %v773_v20, %v469_v18  ;;  %v834_v24 = vsel %vm833_vm4, %v15255_v19, -inf }
 0x11e   : > { %v688_v25 = vpop.f32.mrb[4].mxu0  ;;  %835 = vmax.xlane.f32.xlu1 %v834_v24 }
 0x11f   : > { %v15265_v26 = vsub.f32 %v792_v23, %v15252_v15  ;;  %v774_v27 = vmul.f32 2.0, %v688_v25  ;;  %v13824_v28 = vpop.f32.mrb[5].mxu0 }
 0x121   : > { %3487 = vst.msk [vmem:[%s15257_s21 + $0x8] sm:$0xff] %vm833_vm4, %v15265_v26  ;;  %v793_v29 = vsub.f32 %v774_v27, %v472_v22  ;;  %v837_v30 = vsel %vm833_vm4, %v15265_v26, -inf  ;;  %v496_v22 = vpop.xlane.xlu0 %495 }
 0x122   : > { %v693_v31 = vpop.f32.mrb[6].mxu0  ;;  %838 = vmax.xlane.f32.xlu0 %v837_v30  ;;  %v499_v30 = vpop.xlane.xlu1 %498 }
 0x123   : > { %v15273_v33 = vsub.f32 %v793_v29, %v15252_v15  ;;  %v775_v34 = vmul.f32 2.0, %v693_v31  ;;  %v13827_v35 = vpop.f32.mrb[7].mxu0 }
 0x125   : > { %3488 = vst.msk [vmem:[%s15257_s21 + $0x10] sm:$0xff] %vm833_vm4, %v15273_v33  ;;  %v794_v36 = vsub.f32 %v775_v34, %v475_v32  ;;  %v840_v37 = vsel %vm833_vm4, %v15273_v33, -inf }
 0x126   : > { %v698_v38 = vpop.f32.mrb[8].mxu0  ;;  %841 = vmax.xlane.f32.xlu1 %v840_v37 }
 0x127   : > { %v15281_v40 = vsub.f32 %v794_v36, %v15252_v15  ;;  %v776_v41 = vmul.f32 2.0, %v698_v38  ;;  %v13830_v42 = vpop.f32.mrb[9].mxu0  ;;  %v502_v38 = vpop.xlane.xlu0 %501 }
 0x129   : > { %3489 = vst.msk [vmem:[%s15257_s21 + $0x18] sm:$0xff] %vm833_vm4, %v15281_v40  ;;  %v795_v43 = vsub.f32 %v776_v41, %v478_v39  ;;  %v843_v44 = vsel %vm833_vm4, %v15281_v40, -inf }
 0x12a   : > { %v703_v45 = vpop.f32.mrb[10].mxu0  ;;  %844 = vmax.xlane.f32.xlu0 %v843_v44 }
 0x12b   : > { %v15289_v47 = vsub.f32 %v795_v43, %v15252_v15  ;;  %v777_v48 = vmul.f32 2.0, %v703_v45  ;;  %v13833_v49 = vpop.f32.mrb[11].mxu0 }
 0x12d   : > { %3490 = vst.msk [vmem:[%s15257_s21 + $0x20] sm:$0xff] %vm833_vm4, %v15289_v47  ;;  %v796_v50 = vsub.f32 %v777_v48, %v481_v46  ;;  %v846_v51 = vsel %vm833_vm4, %v15289_v47, -inf  ;;  %v505_v46 = vpop.xlane.xlu1 %504 }
 0x12e   : > { %v708_v52 = vpop.f32.mrb[12].mxu0  ;;  %847 = vmax.xlane.f32.xlu1 %v846_v51 }
 0x12f   : > { %v15297_v54 = vsub.f32 %v796_v50, %v15252_v15  ;;  %v778_v55 = vmul.f32 2.0, %v708_v52  ;;  %v13836_v56 = vpop.f32.mrb[13].mxu0 }
 0x131   : > { %3491 = vst.msk [vmem:[%s15257_s21 + $0x28] sm:$0xff] %vm833_vm4, %v15297_v54  ;;  %v797_v57 = vsub.f32 %v778_v55, %v484_v53  ;;  %v849_v58 = vsel %vm833_vm4, %v15297_v54, -inf  ;;  %v508_v55 = vpop.xlane.xlu0 %507 }
 0x132   : > { %v713_v59 = vpop.f32.mrb[14].mxu0  ;;  %850 = vmax.xlane.f32.xlu0 %v849_v58 }
 0x133   : > { %v15305_v61 = vsub.f32 %v797_v57, %v15252_v15  ;;  %v779_v62 = vmul.f32 2.0, %v713_v59  ;;  %v13839_v63 = vpop.f32.mrb[15].mxu0 }
 0x134   : > { %v511_v63 = vpop.xlane.xlu1 %510 }
 0x135   : > { %3492 = vst.msk [vmem:[%s15257_s21 + $0x30] sm:$0xff] %vm833_vm4, %v15305_v61  ;;  %v798_v0 = vsub.f32 %v779_v62, %v487_v60  ;;  %v852_v1 = vsel %vm833_vm4, %v15305_v61, -inf }
 0x136   : > { %v718_v3 = vpop.f32.mrb[16].mxu0  ;;  %853 = vmax.xlane.f32.xlu1 %v852_v1 }
 0x137   : > { %v15313_v6 = vsub.f32 %v798_v0, %v15252_v15  ;;  %v780_v8 = vmul.f32 2.0, %v718_v3  ;;  %v13842_v9 = vpop.f32.mrb[17].mxu0 }
 0x139   : > { %3493 = vst.msk [vmem:[%s15257_s21 + $0x38] sm:$0xff] %vm833_vm4, %v15313_v6  ;;  %v799_v10 = vsub.f32 %v780_v8, %v490_v5  ;;  %v855_v11 = vsel %vm833_vm4, %v15313_v6, -inf }
 0x13a   : > { %v723_v12 = vpop.f32.mrb[18].mxu0  ;;  %856 = vmax.xlane.f32.xlu0 %v855_v11 }
 0x13b   : > { %v15321_v14 = vsub.f32 %v799_v10, %v15252_v15  ;;  %v781_v16 = vmul.f32 2.0, %v723_v12  ;;  %v13845_v17 = vpop.f32.mrb[19].mxu0  ;;  %v514_v10 = vpop.xlane.xlu0 %513 }
 0x13d   : > { %3494 = vst.msk [vmem:[%s15257_s21 + $0x40] sm:$0xff] %vm833_vm4, %v15321_v14  ;;  %v800_v18 = vsub.f32 %v781_v16, %v493_v13  ;;  %v858_v20 = vsel %vm833_vm4, %v15321_v14, -inf }
 0x13e   : > { %v728_v21 = vpop.f32.mrb[20].mxu0  ;;  %859 = vmax.xlane.f32.xlu1 %v858_v20  ;;  %v517_v20 = vpop.xlane.xlu1 %516 }
 0x13f   : > { %v15329_v23 = vsub.f32 %v800_v18, %v15252_v15  ;;  %v782_v24 = vmul.f32 2.0, %v728_v21  ;;  %v13848_v25 = vpop.f32.mrb[21].mxu0 }
 0x141   : > { %3495 = vst.msk [vmem:[%s15257_s21 + $0x48] sm:$0xff] %vm833_vm4, %v15329_v23  ;;  %v801_v27 = vsub.f32 %v782_v24, %v496_v22  ;;  %v861_v28 = vsel %vm833_vm4, %v15329_v23, -inf }
 0x142   : > { %v733_v29 = vpop.f32.mrb[22].mxu0  ;;  %862 = vmax.xlane.f32.xlu0 %v861_v28 }
 0x143   : > { %v15337_v31 = vsub.f32 %v801_v27, %v15252_v15  ;;  %v783_v32 = vmul.f32 2.0, %v733_v29  ;;  %v13851_v34 = vpop.f32.mrb[23].mxu0  ;;  %v521_v29 = vpop.xlane.xlu0 %520 }
 0x145   : > { %3496 = vst.msk [vmem:[%s15257_s21 + $0x50] sm:$0xff] %vm833_vm4, %v15337_v31  ;;  %v802_v35 = vsub.f32 %v783_v32, %v499_v30  ;;  %v864_v36 = vsel %vm833_vm4, %v15337_v31, -inf }
 0x146   : > { %v738_v37 = vpop.f32.mrb[24].mxu0  ;;  %865 = vmax.xlane.f32.xlu1 %v864_v36 }
 0x147   : > { %v15345_v39 = vsub.f32 %v802_v35, %v15252_v15  ;;  %v784_v41 = vmul.f32 2.0, %v738_v37  ;;  %v13854_v42 = vpop.f32.mrb[25].mxu0 }
 0x149   : > { %3497 = vst.msk [vmem:[%s15257_s21 + $0x58] sm:$0xff] %vm833_vm4, %v15345_v39  ;;  %v803_v43 = vsub.f32 %v784_v41, %v502_v38  ;;  %v867_v44 = vsel %vm833_vm4, %v15345_v39, -inf  ;;  %v22369_v41 = vlaneseq }
 0x14a   : > { %v743_v45 = vpop.f32.mrb[26].mxu0  ;;  %868 = vmax.xlane.f32.xlu0 %v867_v44 }
 0x14b   : > { %v15353_v48 = vsub.f32 %v803_v43, %v15252_v15  ;;  %v785_v49 = vmul.f32 2.0, %v743_v45  ;;  %v13857_v50 = vpop.f32.mrb[27].mxu0  ;;  %v15409_v42 = vand.u32 127, %v22369_v41 }
 0x14d   : > { %3498 = vst.msk [vmem:[%s15257_s21 + $0x60] sm:$0xff] %vm833_vm4, %v15353_v48  ;;  %v804_v51 = vsub.f32 %v785_v49, %v505_v46  ;;  %v870_v52 = vsel %vm833_vm4, %v15353_v48, -inf  ;;  %22730 = vst [vmem:[#allocation12_spill] sm:$0xff] %v15409_v42 }
 0x14e   : > { %v748_v53 = vpop.f32.mrb[28].mxu0  ;;  %871 = vmax.xlane.f32.xlu1 %v870_v52 }
 0x14f   : > { %v15361_v56 = vsub.f32 %v804_v51, %v15252_v15  ;;  %v786_v57 = vmul.f32 2.0, %v748_v53  ;;  %v13860_v58 = vpop.f32.mrb[29].mxu0 }
 0x151   : > { %3499 = vst.msk [vmem:[%s15257_s21 + $0x68] sm:$0xff] %vm833_vm4, %v15361_v56  ;;  %v805_v59 = vsub.f32 %v786_v57, %v508_v55  ;;  %v873_v60 = vsel %vm833_vm4, %v15361_v56, -inf }
 0x152   : > { %v753_v62 = vpop.f32.mrb[30].mxu0  ;;  %874 = vmax.xlane.f32.xlu0 %v873_v60 }
 0x153   : > { %v15369_v0 = vsub.f32 %v805_v59, %v15252_v15  ;;  %v787_v1 = vmul.f32 2.0, %v753_v62  ;;  %v13863_v3 = vpop.f32.mrb[31].mxu0 }
 0x155   : > { %3500 = vst.msk [vmem:[%s15257_s21 + $0x70] sm:$0xff] %vm833_vm4, %v15369_v0  ;;  %v806_v5 = vsub.f32 %v787_v1, %v511_v63  ;;  %v876_v8 = vsel %vm833_vm4, %v15369_v0, -inf }
 0x156   : > { %v758_v9 = vpop.f32.mrb[32].mxu0  ;;  %877 = vmax.xlane.f32.xlu1 %v876_v8 }
 0x157   : > { %v15377_v11 = vsub.f32 %v806_v5, %v15252_v15  ;;  %v788_v12 = vmul.f32 2.0, %v758_v9  ;;  %v13866_v13 = vpop.f32.mrb[33].mxu0 }
 0x159   : > { %3501 = vst.msk [vmem:[%s15257_s21 + $0x78] sm:$0xff] %vm833_vm4, %v15377_v11  ;;  %v807_v16 = vsub.f32 %v788_v12, %v514_v10  ;;  %v879_v17 = vsel %vm833_vm4, %v15377_v11, -inf }
 0x15a   : > { %v763_v18 = vpop.f32.mrb[34].mxu0  ;;  %880 = vmax.xlane.f32.xlu0 %v879_v17 }
 0x15b   : > { %v15385_v21 = vsub.f32 %v807_v16, %v15252_v15  ;;  %v789_v22 = vmul.f32 2.0, %v763_v18  ;;  %v13869_v24 = vpop.f32.mrb[35].mxu0 }
 0x15d   : > { %3502 = vst.msk [vmem:[%s15257_s21 + $0x80] sm:$0xff] %vm833_vm4, %v15385_v21  ;;  %v808_v25 = vsub.f32 %v789_v22, %v517_v20  ;;  %v882_v27 = vsel %vm833_vm4, %v15385_v21, -inf }
 0x15e   : > { %v768_v28 = vpop.f32.mrb[36].mxu0  ;;  %883 = vmax.xlane.f32.xlu1 %v882_v27 }
 0x15f   : > { %v15393_v30 = vsub.f32 %v808_v25, %v15252_v15  ;;  %v790_v32 = vmul.f32 2.0, %v768_v28  ;;  %v13872_v34 = vpop.f32.mrb[37].mxu0 }
 0x161   : > { %3503 = vst.msk [vmem:[%s15257_s21 + $0x88] sm:$0xff] %vm833_vm4, %v15393_v30  ;;  %v809_v35 = vsub.f32 %v790_v32, %v521_v29  ;;  %v885_v36 = vsel %vm833_vm4, %v15393_v30, -inf }
 0x162   : > { %886 = vmax.xlane.f32.xlu0 %v885_v36 }
 0x163   : > { %v15401_v37 = vsub.f32 %v809_v35, %v15252_v15 }
 0x165   : > { %3504 = vst.msk [vmem:[%s15257_s21 + $0x90] sm:$0x3f] %vm888_vm5, %v15401_v37  ;;  %v889_v38 = vsel %vm888_vm5, %v15401_v37, -inf }
 0x166   : > { %890 = vmax.xlane.f32.xlu1 %v889_v38 }
 0x1ab   : > { %v836_v43 = vpop.xlane.xlu1 %835 }
 0x1ac   : > { %vm892_vm6 = vcmp.eq.f32.partialorder %v15255_v19, %v836_v43 }
 0x1ad   : > { %v911_v44 = vsel %vm892_vm6, %v15409_v42, 64 }
 0x1ae   : > { %v15414_v45 = vsel %vm833_vm4, %v911_v44, 2147483647 }
 0x1af   : > { %v839_v15 = vpop.xlane.xlu0 %838  ;;  %v932_v46 = vshra.s32 %v15414_v45, 16 }
 0x1b0   : > { %vm893_vm7 = vcmp.eq.f32.partialorder %v15265_v26, %v839_v15 }
 0x1b1   : > { %v912_v49 = vsel %vm893_vm7, %v15409_v42, 64  ;;  %v15419_v50 = vcvt.s32.f32 %v932_v46 }
 0x1b2   : > { %v15422_v51 = vsel %vm833_vm4, %v912_v49, 2147483647 }
 0x1b3   : > { %v842_v52 = vpop.xlane.xlu1 %841  ;;  %935 = vmin.xlane.f32.xlu0 %v15419_v50  ;;  %v947_v19 = vshra.s32 %v15422_v51, 16 }
 0x1b4   : > { %vm894_vm8 = vcmp.eq.f32.partialorder %v15273_v33, %v842_v52 }
 0x1b5   : > { %v913_v53 = vsel %vm894_vm8, %v15409_v42, 64  ;;  %v15428_v55 = vcvt.s32.f32 %v947_v19 }
 0x1b6   : > { %v15431_v26 = vsel %vm833_vm4, %v913_v53, 2147483647 }
 0x1b7   : > { %950 = vmin.xlane.f32.xlu1 %v15428_v55  ;;  %v845_v57 = vpop.xlane.xlu0 %844  ;;  %v962_v58 = vshra.s32 %v15431_v26, 16 }
 0x1b8   : > { %vm895_vm9 = vcmp.eq.f32.partialorder %v15281_v40, %v845_v57 }
 0x1b9   : > { %v914_v59 = vsel %vm895_vm9, %v15409_v42, 64  ;;  %v15437_v60 = vcvt.s32.f32 %v962_v58 }
 0x1ba   : > { %v15440_v33 = vsel %vm833_vm4, %v914_v59, 2147483647 }
 0x1bb   : > { %965 = vmin.xlane.f32.xlu0 %v15437_v60  ;;  %v848_v62 = vpop.xlane.xlu1 %847  ;;  %v977_v63 = vshra.s32 %v15440_v33, 16 }
 0x1bc   : > { %vm896_vm10 = vcmp.eq.f32.partialorder %v15289_v47, %v848_v62 }
 0x1bd   : > { %v915_v1 = vsel %vm896_vm10, %v15409_v42, 64  ;;  %v15446_v3 = vcvt.s32.f32 %v977_v63 }
 0x1be   : > { %v15449_v40 = vsel %vm833_vm4, %v915_v1, 2147483647 }
 0x1bf   : > { %980 = vmin.xlane.f32.xlu1 %v15446_v3  ;;  %v851_v5 = vpop.xlane.xlu0 %850  ;;  %v992_v8 = vshra.s32 %v15449_v40, 16 }
 0x1c0   : > { %vm897_vm11 = vcmp.eq.f32.partialorder %v15297_v54, %v851_v5 }
 0x1c1   : > { %v916_v9 = vsel %vm897_vm11, %v15409_v42, 64  ;;  %v15455_v10 = vcvt.s32.f32 %v992_v8 }
 0x1c2   : > { %v15458_v47 = vsel %vm833_vm4, %v916_v9, 2147483647 }
 0x1c3   : > { %995 = vmin.xlane.f32.xlu0 %v15455_v10  ;;  %v854_v12 = vpop.xlane.xlu1 %853  ;;  %v1007_v13 = vshra.s32 %v15458_v47, 16 }
 0x1c4   : > { %vm898_vm12 = vcmp.eq.f32.partialorder %v15305_v61, %v854_v12 }
 0x1c5   : > { %v917_v16 = vsel %vm898_vm12, %v15409_v42, 64  ;;  %v15464_v17 = vcvt.s32.f32 %v1007_v13 }
 0x1c6   : > { %v15467_v54 = vsel %vm833_vm4, %v917_v16, 2147483647 }
 0x1c7   : > { %1010 = vmin.xlane.f32.xlu1 %v15464_v17  ;;  %v857_v18 = vpop.xlane.xlu0 %856  ;;  %v1022_v20 = vshra.s32 %v15467_v54, 16 }
 0x1c8   : > { %vm899_vm13 = vcmp.eq.f32.partialorder %v15313_v6, %v857_v18 }
 0x1c9   : > { %v918_v22 = vsel %vm899_vm13, %v15409_v42, 64  ;;  %v15473_v24 = vcvt.s32.f32 %v1022_v20 }
 0x1ca   : > { %v15476_v61 = vsel %vm833_vm4, %v918_v22, 2147483647 }
 0x1cb   : > { %1025 = vmin.xlane.f32.xlu0 %v15473_v24  ;;  %v860_v25 = vpop.xlane.xlu1 %859  ;;  %v1037_v27 = vshra.s32 %v15476_v61, 16 }
 0x1cc   : > { %vm900_vm14 = vcmp.eq.f32.partialorder %v15321_v14, %v860_v25 }
 0x1cd   : > { %v919_v28 = vsel %vm900_vm14, %v15409_v42, 64  ;;  %v15482_v29 = vcvt.s32.f32 %v1037_v27 }
 0x1ce   : > { %v15485_v6 = vsel %vm833_vm4, %v919_v28, 2147483647 }
 0x1cf   : > { %1040 = vmin.xlane.f32.xlu1 %v15482_v29  ;;  %v863_v32 = vpop.xlane.xlu0 %862  ;;  %v1052_v34 = vshra.s32 %v15485_v6, 16 }
 0x1d0   : > { %vm901_vm15 = vcmp.eq.f32.partialorder %v15329_v23, %v863_v32 }
 0x1d1   : > { %v920_v35 = vsel %vm901_vm15, %v15409_v42, 64  ;;  %v15491_v36 = vcvt.s32.f32 %v1052_v34 }
 0x1d2   : > { %v15494_v14 = vsel %vm833_vm4, %v920_v35, 2147483647 }
 0x1d3   : > { %1055 = vmin.xlane.f32.xlu0 %v15491_v36  ;;  %v866_v38 = vpop.xlane.xlu1 %865  ;;  %v1067_v43 = vshra.s32 %v15494_v14, 16 }
 0x1d4   : > { %vm902_vm6 = vcmp.eq.f32.partialorder %v15337_v31, %v866_v38 }
 0x1d5   : > { %v921_v44 = vsel %vm902_vm6, %v15409_v42, 64  ;;  %v15500_v15 = vcvt.s32.f32 %v1067_v43 }
 0x1d6   : > { %v15503_v23 = vsel %vm833_vm4, %v921_v44, 2147483647 }
 0x1d7   : > { %1070 = vmin.xlane.f32.xlu1 %v15500_v15  ;;  %v869_v46 = vpop.xlane.xlu0 %868  ;;  %v1082_v49 = vshra.s32 %v15503_v23, 16 }
 0x1d8   : > { %vm903_vm7 = vcmp.eq.f32.partialorder %v15345_v39, %v869_v46 }
 0x1d9   : > { %v922_v52 = vsel %vm903_vm7, %v15409_v42, 64  ;;  %v15509_v19 = vcvt.s32.f32 %v1082_v49 }
 0x1da   : > { %v15512_v31 = vsel %vm833_vm4, %v922_v52, 2147483647 }
 0x1db   : > { %1085 = vmin.xlane.f32.xlu0 %v15509_v19  ;;  %v872_v53 = vpop.xlane.xlu1 %871  ;;  %v1097_v57 = vshra.s32 %v15512_v31, 16 }
 0x1dc   : > { %vm904_vm8 = vcmp.eq.f32.partialorder %v15353_v48, %v872_v53 }
 0x1dd   : > { %v923_v58 = vsel %vm904_vm8, %v15409_v42, 64  ;;  %v15518_v59 = vcvt.s32.f32 %v1097_v57 }
 0x1de   : > { %v15521_v39 = vsel %vm833_vm4, %v923_v58, 2147483647  ;;  %v931_v58 = vand.u32 65535, %v15414_v45 }
 0x1df   : > { %1100 = vmin.xlane.f32.xlu1 %v15518_v59  ;;  %v875_v62 = vpop.xlane.xlu0 %874  ;;  %v1112_v63 = vshra.s32 %v15521_v39, 16 }
 0x1e0   : > { %vm905_vm9 = vcmp.eq.f32.partialorder %v15361_v56, %v875_v62 }
 0x1e1   : > { %v924_v1 = vsel %vm905_vm9, %v15409_v42, 64  ;;  %v15527_v5 = vcvt.s32.f32 %v1112_v63  ;;  %v946_v63 = vand.u32 65535, %v15422_v51  ;;  %v976_v51 = vand.u32 65535, %v15440_v33 }
 0x1e2   : > { %v15530_v48 = vsel %vm833_vm4, %v924_v1, 2147483647  ;;  %v1006_v33 = vand.u32 65535, %v15458_v47  ;;  %v1036_v47 = vand.u32 65535, %v15476_v61  ;;  %v1066_v61 = vand.u32 65535, %v15494_v14 }
 0x1e3   : > { %1115 = vmin.xlane.f32.xlu0 %v15527_v5  ;;  %v878_v8 = vpop.xlane.xlu1 %877  ;;  %v1127_v9 = vshra.s32 %v15530_v48, 16  ;;  %v1096_v14 = vand.u32 65535, %v15512_v31  ;;  %v1126_v31 = vand.u32 65535, %v15530_v48 }
 0x1e4   : > { %vm906_vm10 = vcmp.eq.f32.partialorder %v15369_v0, %v878_v8 }
 0x1e5   : > { %v925_v12 = vsel %vm906_vm10, %v15409_v42, 64  ;;  %v15536_v13 = vcvt.s32.f32 %v1127_v9  ;;  %v948_v9 = vcvt.s32.f32 %v946_v63  ;;  %v1068_v63 = vcvt.s32.f32 %v1066_v61  ;;  %v13202_v61 = vld [vmem:[%s22726_s1 + $0x70] sm:$0xff] }
 0x1e6   : > { %v15539_v56 = vsel %vm833_vm4, %v925_v12, 2147483647  ;;  %v961_v12 = vand.u32 65535, %v15431_v26  ;;  %v991_v26 = vand.u32 65535, %v15449_v40  ;;  %v1021_v40 = vand.u32 65535, %v15467_v54 }
 0x1e7   : > { %1130 = vmin.xlane.f32.xlu1 %v15536_v13  ;;  %v881_v16 = vpop.xlane.xlu0 %880  ;;  %v1142_v18 = vshra.s32 %v15539_v56, 16  ;;  %v1051_v54 = vand.u32 65535, %v15485_v6  ;;  %v1081_v6 = vand.u32 65535, %v15503_v23  ;;  %v1111_v23 = vand.u32 65535, %v15521_v39 }
 0x1e8   : > { %vm907_vm11 = vcmp.eq.f32.partialorder %v15377_v11, %v881_v16  ;;  %v1141_v39 = vand.u32 65535, %v15539_v56 }
 0x1e9   : > { %v926_v20 = vsel %vm907_vm11, %v15409_v42, 64  ;;  %v15545_v22 = vcvt.s32.f32 %v1142_v18  ;;  %v963_v18 = vcvt.s32.f32 %v961_v12 }
 0x1ea   : > { %v15548_v0 = vsel %vm833_vm4, %v926_v20, 2147483647 }
 0x1eb   : > { %1145 = vmin.xlane.f32.xlu0 %v15545_v22  ;;  %v884_v25 = vpop.xlane.xlu1 %883  ;;  %v1157_v27 = vshra.s32 %v15548_v0, 16  ;;  %v1156_v48 = vand.u32 65535, %v15548_v0 }
 0x1ec   : > { %vm908_vm12 = vcmp.eq.f32.partialorder %v15385_v21, %v884_v25  ;;  %v978_v25 = vcvt.s32.f32 %v976_v51  ;;  %v1113_v51 = vcvt.s32.f32 %v1111_v23 }
 0x1ed   : > { %v927_v28 = vsel %vm908_vm12, %v15409_v42, 64  ;;  %v15554_v32 = vcvt.s32.f32 %v1157_v27 }
 0x1ee   : > { %v15557_v11 = vsel %vm833_vm4, %v927_v28, 2147483647  ;;  %v993_v28 = vcvt.s32.f32 %v991_v26 }
 0x1ef   : > { %1160 = vmin.xlane.f32.xlu1 %v15554_v32  ;;  %v887_v34 = vpop.xlane.xlu0 %886  ;;  %v1172_v35 = vshra.s32 %v15557_v11, 16  ;;  %v1171_v56 = vand.u32 65535, %v15557_v11 }
 0x1f0   : > { %vm909_vm13 = vcmp.eq.f32.partialorder %v15393_v30, %v887_v34 }
 0x1f1   : > { %v928_v38 = vsel %vm909_vm13, %v15409_v42, 64  ;;  %v15563_v43 = vcvt.s32.f32 %v1172_v35  ;;  %v1008_v35 = vcvt.s32.f32 %v1006_v33  ;;  %v1158_v33 = vcvt.s32.f32 %v1156_v48 }
 0x1f2   : > { %v15566_v21 = vsel %vm833_vm4, %v928_v38, 2147483647 }
 0x1f3   : > { %1175 = vmin.xlane.f32.xlu0 %v15563_v43  ;;  %v891_v44 = vpop.xlane.xlu1 %890  ;;  %v1187_v46 = vshra.s32 %v15566_v21, 16  ;;  %v1186_v0 = vand.u32 65535, %v15566_v21 }
 0x1f4   : > { %vm910_vm14 = vcmp.eq.f32.partialorder %v15401_v37, %v891_v44  ;;  %v933_v37 = vcvt.s32.f32 %v931_v58  ;;  %v1023_v44 = vcvt.s32.f32 %v1021_v40  ;;  %v1053_v58 = vcvt.s32.f32 %v1051_v54  ;;  %v13200_v54 = vld [vmem:[%s22726_s1 + $0x60] sm:$0xff] }
 0x1f5   : > { %v929_v49 = vsel %vm910_vm14, %v15409_v42, 64  ;;  %v15572_v52 = vcvt.s32.f32 %v1187_v46 }
 0x1f6   : > { %v15575_v30 = vsel %vm888_vm5, %v929_v49, 2147483647  ;;  %v1038_v49 = vcvt.s32.f32 %v1036_v47 }
 0x1f7   : > { %1190 = vmin.xlane.f32.xlu1 %v15572_v52  ;;  %v1202_v53 = vshra.s32 %v15575_v30, 16  ;;  %v1201_v11 = vand.u32 65535, %v15575_v30  ;;  %v13197_v30 = vld [vmem:[%s22726_s1 + $0x48] sm:$0xff] }
 0x1f9   : > { %v15579_v57 = vcvt.s32.f32 %v1202_v53  ;;  %v1203_v47 = vcvt.s32.f32 %v1201_v11 }
 0x1fb   : > { %1205 = vmin.xlane.f32.xlu0 %v15579_v57 }
 0x240   : > { %v15583_v62 = vpop.xlane.xlu0 %935 }
 0x241   : > { %vm937_vm15 = vcmp.eq.f32.partialorder %v15419_v50, %v15583_v62 }
 0x242   : > { %v938_v1 = vsel %vm937_vm15, %v933_v37, inf }
 0x243   : > { %939 = vmin.xlane.f32.xlu1 %v938_v1 }
 0x244   : > { %v15588_v8 = vpop.xlane.xlu1 %950 }
 0x245   : > { %vm952_vm6 = vcmp.eq.f32.partialorder %v15428_v55, %v15588_v8 }
 0x246   : > { %v953_v16 = vsel %vm952_vm6, %v948_v9, inf  ;;  %v1083_v9 = vcvt.s32.f32 %v1081_v6  ;;  %v942_v6 = vcvt.f32.s32 %v15583_v62 }
 0x247   : > { %954 = vmin.xlane.f32.xlu0 %v953_v16  ;;  %v1098_v16 = vcvt.s32.f32 %v1096_v14  ;;  %v957_v14 = vcvt.f32.s32 %v15588_v8 }
 0x248   : > { %v15593_v45 = vpop.xlane.xlu0 %965 }
 0x249   : > { %vm967_vm7 = vcmp.eq.f32.partialorder %v15437_v60, %v15593_v45 }
 0x24a   : > { %v968_v50 = vsel %vm967_vm7, %v963_v18, inf }
 0x24b   : > { %969 = vmin.xlane.f32.xlu1 %v968_v50 }
 0x24c   : > { %v15598_v20 = vpop.xlane.xlu1 %980 }
 0x24d   : > { %vm982_vm8 = vcmp.eq.f32.partialorder %v15446_v3, %v15598_v20 }
 0x24e   : > { %v983_v55 = vsel %vm982_vm8, %v978_v25, inf  ;;  %v1128_v25 = vcvt.s32.f32 %v1126_v31 }
 0x24f   : > { %984 = vmin.xlane.f32.xlu0 %v983_v55  ;;  %v1143_v55 = vcvt.s32.f32 %v1141_v39  ;;  %v987_v39 = vcvt.f32.s32 %v15598_v20 }
 0x250   : > { %v15603_v27 = vpop.xlane.xlu0 %995 }
 0x251   : > { %vm997_vm9 = vcmp.eq.f32.partialorder %v15455_v10, %v15603_v27  ;;  %v988_v20 = vshll.u32 %v987_v39, 16 }
 0x252   : > { %v998_v60 = vsel %vm997_vm9, %v993_v28, inf }
 0x253   : > { %999 = vmin.xlane.f32.xlu1 %v998_v60 }
 0x254   : > { %v15608_v34 = vpop.xlane.xlu1 %1010 }
 0x255   : > { %vm1012_vm10 = vcmp.eq.f32.partialorder %v15464_v17, %v15608_v34 }
 0x256   : > { %v1013_v3 = vsel %vm1012_vm10, %v1008_v35, inf  ;;  %v1173_v35 = vcvt.s32.f32 %v1171_v56  ;;  %v1002_v56 = vcvt.f32.s32 %v15603_v27 }
 0x257   : > { %1014 = vmin.xlane.f32.xlu0 %v1013_v3  ;;  %v1188_v3 = vcvt.s32.f32 %v1186_v0 }
 0x258   : > { %v15613_v38 = vpop.xlane.xlu0 %1025  ;;  %v1003_v27 = vshll.u32 %v1002_v56, 16 }
 0x259   : > { %vm1027_vm11 = vcmp.eq.f32.partialorder %v15473_v24, %v15613_v38 }
 0x25a   : > { %v1028_v10 = vsel %vm1027_vm11, %v1023_v44, inf }
 0x25b   : > { %1029 = vmin.xlane.f32.xlu1 %v1028_v10 }
 0x25c   : > { %v15618_v46 = vpop.xlane.xlu1 %1040 }
 0x25d   : > { %vm1042_vm12 = vcmp.eq.f32.partialorder %v15482_v29, %v15618_v46 }
 0x25e   : > { %v1043_v17 = vsel %vm1042_vm12, %v1038_v49, inf }
 0x25f   : > { %1044 = vmin.xlane.f32.xlu0 %v1043_v17  ;;  %v13201_v17 = vld [vmem:[%s22726_s1 + $0x68] sm:$0xff] }
 0x260   : > { %v15623_v53 = vpop.xlane.xlu0 %1055 }
 0x261   : > { %vm1057_vm13 = vcmp.eq.f32.partialorder %v15491_v36, %v15623_v53 }
 0x262   : > { %v1058_v24 = vsel %vm1057_vm13, %v1053_v58, inf  ;;  %v15707_v58 = vpack.c.bf16 %v13201_v17, %v13200_v54 }
 0x263   : > { %1059 = vmin.xlane.f32.xlu1 %v1058_v24  ;;  %v13203_v24 = vld [vmem:[%s22726_s1 + $0x78] sm:$0xff] }
 0x264   : > { %v15628_v37 = vpop.xlane.xlu1 %1070 }
 0x265   : > { %vm1072_vm14 = vcmp.eq.f32.partialorder %v15500_v15, %v15628_v37 }
 0x266   : > { %v1073_v29 = vsel %vm1072_vm14, %v1068_v63, inf  ;;  %v15719_v63 = vpack.c.bf16 %v13203_v24, %v13202_v61  ;;  %v1047_v61 = vcvt.f32.s32 %v15618_v46 }
 0x267   : > { %1074 = vmin.xlane.f32.xlu0 %v1073_v29 }
 0x268   : > { %v15633_v1 = vpop.xlane.xlu0 %1085 }
 0x269   : > { %vm1087_vm15 = vcmp.eq.f32.partialorder %v15509_v19, %v15633_v1 }
 0x26a   : > { %v1088_v36 = vsel %vm1087_vm15, %v1083_v9, inf  ;;  %v943_v9 = vshll.u32 %v942_v6, 16 }
 0x26b   : > { %1089 = vmin.xlane.f32.xlu1 %v1088_v36 }
 0x26c   : > { %v15638_v12 = vpop.xlane.xlu1 %1100 }
 0x26d   : > { %vm1102_vm6 = vcmp.eq.f32.partialorder %v15518_v59, %v15638_v12 }
 0x26e   : > { %v1103_v15 = vsel %vm1102_vm6, %v1098_v16, inf  ;;  %vm15744_vm6 = vmpackc.low %vm833_vm4, %vm833_vm4 }
 0x26f   : > { %1104 = vmin.xlane.f32.xlu0 %v1103_v15  ;;  %v958_v15 = vshll.u32 %v957_v14, 16 }
 0x270   : > { %v15643_v18 = vpop.xlane.xlu0 %1115 }
 0x271   : > { %vm1117_vm7 = vcmp.eq.f32.partialorder %v15527_v5, %v15643_v18 }
 0x272   : > { %v1118_v19 = vsel %vm1117_vm7, %v1113_v51, inf  ;;  %v972_v51 = vcvt.f32.s32 %v15593_v45 }
 0x273   : > { %1119 = vmin.xlane.f32.xlu1 %v1118_v19 }
 0x274   : > { %v15648_v50 = vpop.xlane.xlu1 %1130  ;;  %v973_v8 = vshll.u32 %v972_v51, 16 }
 0x275   : > { %vm1132_vm8 = vcmp.eq.f32.partialorder %v15536_v13, %v15648_v50 }
 0x276   : > { %v1133_v59 = vsel %vm1132_vm8, %v1128_v25, inf }
 0x277   : > { %1134 = vmin.xlane.f32.xlu0 %v1133_v59 }
 0x278   : > { %v15653_v26 = vpop.xlane.xlu0 %1145 }
 0x279   : > { %vm1147_vm9 = vcmp.eq.f32.partialorder %v15545_v22, %v15653_v26 }
 0x27a   : > { %v1148_v5 = vsel %vm1147_vm9, %v1143_v55, inf  ;;  %v22733_v55 = vmov 0 }
 0x27b   : > { %1149 = vmin.xlane.f32.xlu1 %v1148_v5  ;;  %v22734_v55 = vsel %vm15744_vm6, 4294967295, %v22733_v55 }
 0x27c   : > { %v15658_v28 = vpop.xlane.xlu1 %1160  ;;  %22735 = vst [vmem:[#allocation15_spill] sm:$0xff] %v22734_v55 }
 0x27d   : > { %vm1162_vm10 = vcmp.eq.f32.partialorder %v15554_v32, %v15658_v28 }
 0x27e   : > { %v1163_v13 = vsel %vm1162_vm10, %v1158_v33, inf }
 0x27f   : > { %1164 = vmin.xlane.f32.xlu0 %v1163_v13 }
 0x280   : > { %v15663_v60 = vpop.xlane.xlu0 %1175 }
 0x281   : > { %vm1177_vm11 = vcmp.eq.f32.partialorder %v15563_v43, %v15663_v60  ;;  %v13196_v43 = vld [vmem:[%s22726_s1 + $0x40] sm:$0xff] }
 0x282   : > { %v1178_v22 = vsel %vm1177_vm11, %v1173_v35, inf  ;;  %v15683_v10 = vpack.c.bf16 %v13197_v30, %v13196_v43 }
 0x283   : > { %1179 = vmin.xlane.f32.xlu1 %v1178_v22 }
 0x284   : > { %v15668_v40 = vpop.xlane.xlu1 %1190  ;;  %14451 = vmatpush3.bf16.xpose.msk.msra.mxu0 %vm15035_vm1, %v15683_v10 }
 0x285   : > { %vm1192_vm12 = vcmp.eq.f32.partialorder %v15572_v52, %v15668_v40  ;;  %14452 = vmatprep.subr.bf16.mxu0 %v22371_v2  ;;  %v13198_v52 = vld [vmem:[%s22726_s1 + $0x50] sm:$0xff] }
 0x286   : > { %v1193_v32 = vsel %vm1192_vm12, %v1188_v3, inf  ;;  %v1017_v3 = vcvt.f32.s32 %v15608_v34 }
 0x287   : > { %1194 = vmin.xlane.f32.xlu0 %v1193_v32 }
 0x288   : > { %v15673_v44 = vpop.xlane.xlu0 %1205  ;;  %v1018_v30 = vshll.u32 %v1017_v3, 16 }
 0x289   : > { %vm1207_vm13 = vcmp.eq.f32.partialorder %v15579_v57, %v15673_v44  ;;  %v13199_v57 = vld [vmem:[%s22726_s1 + $0x58] sm:$0xff] }
 0x28a   : > { %v1208_v21 = vsel %vm1207_vm13, %v1203_v47, inf  ;;  %v15695_v49 = vpack.c.bf16 %v13199_v57, %v13198_v52  ;;  %v1032_v52 = vcvt.f32.s32 %v15613_v38 }
 0x28b   : > { %1209 = vmin.xlane.f32.xlu1 %v1208_v21 }
 0x28c   : > { %14455 = vmatpush3.bf16.xpose.msk.msra.mxu0 %vm15035_vm1, %v15695_v49  ;;  %v1033_v38 = vshll.u32 %v1032_v52, 16 }
 0x28d   : > { %14456 = vmatprep.subr.bf16.mxu0 %v22371_v2 }
 0x294   : > { %14459 = vmatpush3.bf16.xpose.msk.msra.mxu0 %vm15035_vm1, %v15707_v58 }
 0x295   : > { %14460 = vmatprep.subr.bf16.mxu0 %v22371_v2 }
 0x29c   : > { %14463 = vmatpush3.bf16.xpose.msk.msra.mxu0 %vm15035_vm1, %v15719_v63 }
 0x29d   : > { %14476 = vmatprep.subr.bf16.mxu0 %v22371_v2 }
 0x2d0   : > { %v940_v29 = vpop.xlane.xlu1 %939 }
 0x2d1   : > { %v941_v36 = vcvt.f32.s32 %v940_v29 }
 0x2d3   : > { %v15727_v16 = vadd.s32 %v943_v9, %v941_v36  ;;  %v1048_v36 = vshll.u32 %v1047_v61, 16 }
 0x2d4   : > { %v955_v23 = vpop.xlane.xlu0 %954 }
 0x2d5   : > { %22731 = vst [vmem:[#allocation13_spill] sm:$0xff] %v15727_v16  ;;  %v956_v31 = vcvt.f32.s32 %v955_v23  ;;  %vm1215_vm14 = vcmp.eq.s32.totalorder %v15409_v42, %v15727_v16  ;;  %v1062_v23 = vcvt.f32.s32 %v15623_v53 }
 0x2d6   : > { %v13135_v19 = vsel %vm1215_vm14, 1.0, %v22395_v7 }
 0x2d7   : > { %v15733_v25 = vadd.s32 %v958_v15, %v956_v31  ;;  %13890 = vmatmul.mubr.msk.f32.vlgmr.msra.gmra.mrb[0].mxu1 %vm833_vm4, %v13135_v19  ;;  %v1063_v53 = vshll.u32 %v1062_v23, 16 }
 0x2d8   : > { %v970_v62 = vpop.xlane.xlu1 %969  ;;  %13892 = vmatprep.mubr.msk.f32.mxu1 %vm14914_vm2, %v22395_v7 }
 0x2d9   : > { %22732 = vst [vmem:[#allocation14_spill] sm:$0xff] %v15733_v25  ;;  %v971_v59 = vcvt.f32.s32 %v970_v62  ;;  %vm1216_vm15 = vcmp.eq.s32.totalorder %v15409_v42, %v15733_v25 }
 0x2da   : > { %v13136_v45 = vsel %vm1216_vm15, 1.0, %v22395_v7 }
 0x2db   : > { %v15748_v48 = vadd.s32 %v973_v8, %v971_v59  ;;  %13893 = vmatmul.mubr.msk.f32.gmra.mrb[2].mxu1 %vm833_vm4, %v13136_v45  ;;  %v14413_v5 = vpack.c.bf16 %v13136_v45, %v13135_v19  ;;  %v1077_v19 = vcvt.f32.s32 %v15628_v37 }
 0x2dc   : > { %v985_v33 = vpop.xlane.xlu0 %984  ;;  %13895 = vmatprep.mubr.msk.f32.mxu1 %vm14914_vm2, %v22395_v7 }
 0x2dd   : > { %22736 = vst [vmem:[#allocation16_spill] sm:$0xff] %v15748_v48  ;;  %v986_v13 = vcvt.f32.s32 %v985_v33  ;;  %14415 = vmatpush1.bf16.xpose.msk.msra.mxu1 %vm15744_vm6, %v14413_v5  ;;  %vm1217_vm7 = vcmp.eq.s32.totalorder %v15409_v42, %v15748_v48  ;;  %v1078_v5 = vshll.u32 %v1077_v19, 16  ;;  %v1092_v33 = vcvt.f32.s32 %v15633_v1 }
 0x2de   : > { %v13137_v35 = vsel %vm1217_vm7, 1.0, %v22395_v7  ;;  %14416 = vmatprep.subr.bf16.mxu1 %v22371_v2 }
 0x2df   : > { %v15760_v0 = vadd.s32 %v988_v20, %v986_v13  ;;  %13896 = vmatmul.mubr.msk.f32.gmra.mrb[4].mxu1 %vm833_vm4, %v13137_v35  ;;  %v1093_v1 = vshll.u32 %v1092_v33, 16 }
 0x2e0   : > { %v1000_v22 = vpop.xlane.xlu1 %999  ;;  %13898 = vmatprep.mubr.msk.f32.mxu1 %vm14914_vm2, %v22395_v7 }
 0x2e1   : > { %22737 = vst [vmem:[#allocation17_spill] sm:$0xff] %v15760_v0  ;;  %v1001_v11 = vcvt.f32.s32 %v1000_v22  ;;  %vm1218_vm8 = vcmp.eq.s32.totalorder %v15409_v42, %v15760_v0 }
 0x2e2   : > { %v13138_v32 = vsel %vm1218_vm8, 1.0, %v22395_v7 }
 0x2e3   : > { %v15769_v47 = vadd.s32 %v1003_v27, %v1001_v11  ;;  %13899 = vmatmul.mubr.msk.f32.gmra.mrb[6].mxu1 %vm833_vm4, %v13138_v32  ;;  %v14417_v21 = vpack.c.bf16 %v13138_v32, %v13137_v35  ;;  %v1107_v35 = vcvt.f32.s32 %v15638_v12 }
 0x2e4   : > { %v1015_v43 = vpop.xlane.xlu0 %1014  ;;  %13901 = vmatprep.mubr.msk.f32.mxu1 %vm14914_vm2, %v22395_v7 }
 0x2e5   : > { %22738 = vst [vmem:[#allocation18_spill] sm:$0xff] %v15769_v47  ;;  %v1016_v57 = vcvt.f32.s32 %v1015_v43  ;;  %14419 = vmatpush1.bf16.xpose.msk.msra.mxu1 %vm15744_vm6, %v14417_v21  ;;  %vm1219_vm9 = vcmp.eq.s32.totalorder %v15409_v42, %v15769_v47  ;;  %v1108_v21 = vshll.u32 %v1107_v35, 16  ;;  %v1122_v43 = vcvt.f32.s32 %v15643_v18 }
 0x2e6   : > { %v13139_v34 = vsel %vm1219_vm9, 1.0, %v22395_v7  ;;  %14420 = vmatprep.subr.bf16.mxu1 %v22371_v2 }
 0x2e7   : > { %v15781_v54 = vadd.s32 %v1018_v30, %v1016_v57  ;;  %13902 = vmatmul.mubr.msk.f32.gmra.mrb[8].mxu1 %vm833_vm4, %v13139_v34  ;;  %v1123_v18 = vshll.u32 %v1122_v43, 16 }
 0x2e8   : > { %v1030_v17 = vpop.xlane.xlu1 %1029  ;;  %13904 = vmatprep.mubr.msk.f32.mxu1 %vm14914_vm2, %v22395_v7 }
 0x2e9   : > { %22739 = vst [vmem:[#allocation19_spill] sm:$0xff] %v15781_v54  ;;  %v1031_v24 = vcvt.f32.s32 %v1030_v17  ;;  %vm1220_vm10 = vcmp.eq.s32.totalorder %v15409_v42, %v15781_v54 }
 0x2ea   : > { %v13140_v6 = vsel %vm1220_vm10, 1.0, %v22395_v7 }
 0x2eb   : > { %v15790_v29 = vadd.s32 %v1033_v38, %v1031_v24  ;;  %13905 = vmatmul.mubr.msk.f32.gmra.mrb[10].mxu1 %vm833_vm4, %v13140_v6  ;;  %v14421_v9 = vpack.c.bf16 %v13140_v6, %v13139_v34  ;;  %v1137_v34 = vcvt.f32.s32 %v15648_v50 }
 0x2ec   : > { %v1045_v14 = vpop.xlane.xlu0 %1044  ;;  %13907 = vmatprep.mubr.msk.f32.mxu1 %vm14914_vm2, %v22395_v7 }
 0x2ed   : > { %22740 = vst [vmem:[#allocation20_spill] sm:$0xff] %v15790_v29  ;;  %v1046_v15 = vcvt.f32.s32 %v1045_v14  ;;  %14423 = vmatpush1.bf16.xpose.msk.msra.mxu1 %vm15744_vm6, %v14421_v9  ;;  %vm1221_vm11 = vcmp.eq.s32.totalorder %v15409_v42, %v15790_v29  ;;  %v1138_v9 = vshll.u32 %v1137_v34, 16  ;;  %v1152_v14 = vcvt.f32.s32 %v15653_v26 }
 0x2ee   : > { %v13141_v46 = vsel %vm1221_vm11, 1.0, %v22395_v7  ;;  %14424 = vmatprep.subr.bf16.mxu1 %v22371_v2 }
 0x2ef   : > { %v15802_v51 = vadd.s32 %v1048_v36, %v1046_v15  ;;  %13908 = vmatmul.mubr.msk.f32.gmra.mrb[12].mxu1 %vm833_vm4, %v13141_v46  ;;  %v1153_v26 = vshll.u32 %v1152_v14, 16 }
 0x2f0   : > { %v1060_v31 = vpop.xlane.xlu1 %1059  ;;  %13910 = vmatprep.mubr.msk.f32.mxu1 %vm14914_vm2, %v22395_v7 }
 0x2f1   : > { %22741 = vst [vmem:[#allocation21_spill] sm:$0xff] %v15802_v51  ;;  %v1061_v62 = vcvt.f32.s32 %v1060_v31  ;;  %vm1222_vm12 = vcmp.eq.s32.totalorder %v15409_v42, %v15802_v51 }
 0x2f2   : > { %v13142_v8 = vsel %vm1222_vm12, 1.0, %v22395_v7 }
 0x2f3   : > { %v15811_v39 = vadd.s32 %v1063_v53, %v1061_v62  ;;  %13911 = vmatmul.mubr.msk.f32.gmra.mrb[14].mxu1 %vm833_vm4, %v13142_v8  ;;  %v14425_v59 = vpack.c.bf16 %v13142_v8, %v13141_v46  ;;  %v1167_v46 = vcvt.f32.s32 %v15658_v28 }
 0x2f4   : > { %v1075_v45 = vpop.xlane.xlu0 %1074  ;;  %13913 = vmatprep.mubr.msk.f32.mxu1 %vm14914_vm2, %v22395_v7 }
 0x2f5   : > { %22742 = vst [vmem:[#allocation22_spill] sm:$0xff] %v15811_v39  ;;  %v1076_v20 = vcvt.f32.s32 %v1075_v45  ;;  %14427 = vmatpush1.bf16.xpose.msk.msra.mxu1 %vm15744_vm6, %v14425_v59  ;;  %vm1223_vm13 = vcmp.eq.s32.totalorder %v15409_v42, %v15811_v39  ;;  %v1168_v59 = vshll.u32 %v1167_v46, 16  ;;  %v1182_v45 = vcvt.f32.s32 %v15663_v60  ;;  %v14768_v39 = vld [vmem:[%s15070_s20 + $0x90] sm:$0x3f] }
 0x2f6   : > { %v13143_v37 = vsel %vm1223_vm13, 1.0, %v22395_v7  ;;  %14428 = vmatprep.subr.bf16.mxu1 %v22371_v2 }
 0x2f7   : > { %v15823_v56 = vadd.s32 %v1078_v5, %v1076_v20  ;;  %13914 = vmatmul.mubr.msk.f32.gmra.mrb[16].mxu1 %vm833_vm4, %v13143_v37  ;;  %v1183_v60 = vshll.u32 %v1182_v45, 16 }
 0x2f8   : > { %v1090_v13 = vpop.xlane.xlu1 %1089  ;;  %13916 = vmatprep.mubr.msk.f32.mxu1 %vm14914_vm2, %v22395_v7 }
 0x2f9   : > { %22743 = vst [vmem:[#allocation23_spill] sm:$0xff] %v15823_v56  ;;  %v1091_v22 = vcvt.f32.s32 %v1090_v13  ;;  %vm1224_vm14 = vcmp.eq.s32.totalorder %v15409_v42, %v15823_v56 }
 0x2fa   : > { %v13144_v27 = vsel %vm1224_vm14, 1.0, %v22395_v7 }
 0x2fb   : > { %v15832_v3 = vadd.s32 %v1093_v1, %v1091_v22  ;;  %13917 = vmatmul.mubr.msk.f32.gmra.mrb[18].mxu1 %vm833_vm4, %v13144_v27  ;;  %v14429_v11 = vpack.c.bf16 %v13144_v27, %v13143_v37  ;;  %v1197_v37 = vcvt.f32.s32 %v15668_v40 }
 0x2fc   : > { %v1105_v32 = vpop.xlane.xlu0 %1104  ;;  %13919 = vmatprep.mubr.msk.f32.mxu1 %vm14914_vm2, %v22395_v7 }
 0x2fd   : > { %22744 = vst [vmem:[#allocation24_spill] sm:$0xff] %v15832_v3  ;;  %v1106_v30 = vcvt.f32.s32 %v1105_v32  ;;  %14431 = vmatpush1.bf16.xpose.msk.msra.mxu1 %vm15744_vm6, %v14429_v11  ;;  %vm1225_vm15 = vcmp.eq.s32.totalorder %v15409_v42, %v15832_v3  ;;  %v1198_v11 = vshll.u32 %v1197_v37, 16  ;;  %v1212_v32 = vcvt.f32.s32 %v15673_v44 }
 0x2fe   : > { %v13145_v12 = vsel %vm1225_vm15, 1.0, %v22395_v7  ;;  %14432 = vmatprep.subr.bf16.mxu1 %v22371_v2 }
 0x2ff   : > { %v15844_v52 = vadd.s32 %v1108_v21, %v1106_v30  ;;  %13920 = vmatmul.mubr.msk.f32.gmra.mrb[20].mxu1 %vm833_vm4, %v13145_v12  ;;  %v1213_v44 = vshll.u32 %v1212_v32, 16 }
 0x300   : > { %v1120_v57 = vpop.xlane.xlu1 %1119  ;;  %13922 = vmatprep.mubr.msk.f32.mxu1 %vm14914_vm2, %v22395_v7 }
 0x301   : > { %22745 = vst [vmem:[#allocation25_spill] sm:$0xff] %v15844_v52  ;;  %v1121_v17 = vcvt.f32.s32 %v1120_v57  ;;  %vm1226_vm7 = vcmp.eq.s32.totalorder %v15409_v42, %v15844_v52 }
 0x302   : > { %v13146_v38 = vsel %vm1226_vm7, 1.0, %v22395_v7 }
 0x303   : > { %v15853_v61 = vadd.s32 %v1123_v18, %v1121_v17  ;;  %13923 = vmatmul.mubr.msk.f32.gmra.mrb[22].mxu1 %vm833_vm4, %v13146_v38  ;;  %v14433_v24 = vpack.c.bf16 %v13146_v38, %v13145_v12 }
 0x304   : > { %v1135_v6 = vpop.xlane.xlu0 %1134  ;;  %13925 = vmatprep.mubr.msk.f32.mxu1 %vm14914_vm2, %v22395_v7 }
 0x305   : > { %22746 = vst [vmem:[#allocation26_spill] sm:$0xff] %v15853_v61  ;;  %v1136_v36 = vcvt.f32.s32 %v1135_v6  ;;  %14435 = vmatpush1.bf16.xpose.msk.msra.mxu1 %vm15744_vm6, %v14433_v24  ;;  %vm1227_vm8 = vcmp.eq.s32.totalorder %v15409_v42, %v15853_v61  ;;  %v14750_v24 = vld [vmem:[%s15070_s20] sm:$0xff]  ;;  %v14767_v61 = vld [vmem:[%s15070_s20 + $0x88] sm:$0xff] }
 0x306   : > { %v13147_v50 = vsel %vm1227_vm8, 1.0, %v22395_v7  ;;  %14436 = vmatprep.subr.bf16.mxu1 %v22371_v2 }
 0x307   : > { %v15865_v23 = vadd.s32 %v1138_v9, %v1136_v36  ;;  %13926 = vmatmul.mubr.msk.f32.gmra.mrb[24].mxu1 %vm833_vm4, %v13147_v50 }
 0x308   : > { %v1150_v15 = vpop.xlane.xlu1 %1149  ;;  %13928 = vmatprep.mubr.msk.f32.mxu1 %vm14914_vm2, %v22395_v7 }
 0x309   : > { %22747 = vst [vmem:[#allocation27_spill] sm:$0xff] %v15865_v23  ;;  %v1151_v31 = vcvt.f32.s32 %v1150_v15  ;;  %vm1228_vm9 = vcmp.eq.s32.totalorder %v15409_v42, %v15865_v23 }
 0x30a   : > { %v13148_v53 = vsel %vm1228_vm9, 1.0, %v22395_v7 }
 0x30b   : > { %v15874_v19 = vadd.s32 %v1153_v26, %v1151_v31  ;;  %13929 = vmatmul.mubr.msk.f32.gmra.mrb[26].mxu1 %vm833_vm4, %v13148_v53  ;;  %v14437_v62 = vpack.c.bf16 %v13148_v53, %v13147_v50  ;;  %v14751_v50 = vld [vmem:[%s15070_s20 + $0x8] sm:$0xff] }
 0x30c   : > { %v1165_v8 = vpop.xlane.xlu0 %1164  ;;  %13931 = vmatprep.mubr.msk.f32.mxu1 %vm14914_vm2, %v22395_v7 }
 0x30d   : > { %22748 = vst [vmem:[#allocation28_spill] sm:$0xff] %v15874_v19  ;;  %v1166_v5 = vcvt.f32.s32 %v1165_v8  ;;  %14439 = vmatpush1.bf16.xpose.msk.msra.mxu1 %vm15744_vm6, %v14437_v62  ;;  %vm1229_vm10 = vcmp.eq.s32.totalorder %v15409_v42, %v15874_v19  ;;  %v14752_v62 = vld [vmem:[%s15070_s20 + $0x10] sm:$0xff] }
 0x30e   : > { %v13149_v28 = vsel %vm1229_vm10, 1.0, %v22395_v7  ;;  %14440 = vmatprep.subr.bf16.mxu1 %v22371_v2 }
 0x30f   : > { %v15886_v33 = vadd.s32 %v1168_v59, %v1166_v5  ;;  %13932 = vmatmul.mubr.msk.f32.gmra.mrb[28].mxu1 %vm833_vm4, %v13149_v28 }
 0x310   : > { %v1180_v20 = vpop.xlane.xlu1 %1179  ;;  %13934 = vmatprep.mubr.msk.f32.mxu1 %vm14914_vm2, %v22395_v7 }
 0x311   : > { %22749 = vst [vmem:[#allocation29_spill] sm:$0xff] %v15886_v33  ;;  %v1181_v13 = vcvt.f32.s32 %v1180_v20  ;;  %vm1230_vm11 = vcmp.eq.s32.totalorder %v15409_v42, %v15886_v33  ;;  %v14753_v20 = vld [vmem:[%s15070_s20 + $0x18] sm:$0xff] }
 0x312   : > { %v13150_v1 = vsel %vm1230_vm11, 1.0, %v22395_v7 }
 0x313   : > { %v15895_v35 = vadd.s32 %v1183_v60, %v1181_v13  ;;  %13935 = vmatmul.mubr.msk.f32.gmra.mrb[30].mxu1 %vm833_vm4, %v13150_v1  ;;  %v14441_v22 = vpack.c.bf16 %v13150_v1, %v13149_v28 }
 0x314   : > { %v1195_v27 = vpop.xlane.xlu0 %1194  ;;  %13937 = vmatprep.mubr.msk.f32.mxu1 %vm14914_vm2, %v22395_v7 }
 0x315   : > { %22750 = vst [vmem:[#allocation30_spill] sm:$0xff] %v15895_v35  ;;  %v1196_v21 = vcvt.f32.s32 %v1195_v27  ;;  %14443 = vmatpush1.bf16.xpose.msk.msra.mxu1 %vm15744_vm6, %v14441_v22  ;;  %vm1231_vm12 = vcmp.eq.s32.totalorder %v15409_v42, %v15895_v35  ;;  %v14754_v27 = vld [vmem:[%s15070_s20 + $0x20] sm:$0xff] }
 0x316   : > { %v13151_v40 = vsel %vm1231_vm12, 1.0, %v22395_v7  ;;  %14444 = vmatprep.subr.bf16.mxu1 %v22371_v2  ;;  %v14766_v35 = vld [vmem:[%s15070_s20 + $0x80] sm:$0xff] }
 0x317   : > { %v15907_v43 = vadd.s32 %v1198_v11, %v1196_v21  ;;  %13938 = vmatmul.mubr.msk.f32.gmra.mrb[32].mxu1 %vm833_vm4, %v13151_v40 }
 0x318   : > { %v1210_v30 = vpop.xlane.xlu1 %1209  ;;  %13940 = vmatprep.mubr.msk.f32.mxu1 %vm14914_vm2, %v22395_v7 }
 0x319   : > { %22751 = vst [vmem:[#allocation31_spill] sm:$0xff] %v15907_v43  ;;  %v1211_v12 = vcvt.f32.s32 %v1210_v30  ;;  %vm1232_vm13 = vcmp.eq.s32.totalorder %v15409_v42, %v15907_v43 }
 0x31a   : > { %v13152_v57 = vsel %vm1232_vm13, 1.0, %v22395_v7 }
 0x31b   : > { %v15915_v18 = vadd.s32 %v1213_v44, %v1211_v12  ;;  %13941 = vmatmul.mubr.msk.f32.gmra.mrb[34].mxu1 %vm833_vm4, %v13152_v57  ;;  %v14445_v34 = vpack.c.bf16 %v13152_v57, %v13151_v40  ;;  %v14755_v44 = vld [vmem:[%s15070_s20 + $0x28] sm:$0xff] }
 0x31c   : > { %13943 = vmatprep.mubr.msk.f32.mxu1 %vm14914_vm2, %v22395_v7 }
 0x31d   : > { %22752 = vst [vmem:[#allocation32_spill] sm:$0xff] %v15915_v18  ;;  %14447 = vmatpush1.bf16.xpose.msk.msra.mxu1 %vm15744_vm6, %v14445_v34  ;;  %vm1233_vm14 = vcmp.eq.s32.totalorder %v15409_v42, %v15915_v18 }
 0x31e   : > { %v13153_v17 = vsel %vm1233_vm14, 1.0, %v22395_v7  ;;  %1569 = vmatprep.subr.mxu1 %v22395_v7 }
 0x31f   : > { %13944 = vmatmul.mubr.msk.f32.gmra.mrb[36].mxu1 %vm833_vm4, %v13153_v17 }
 0x320   : > { %1597 = vmatprep.mubr.f32.mxu1 %v22395_v7 }
 0x325   : > { %13191 = vmatpush1.xpose.msk.msra.mxu1 %vm833_vm4, %v13153_v17 }
 0x326   : > { %14464 = vmatprep.subr.bf16.mxu1 %v22371_v2  ;;  %v14765_v2 = vld [vmem:[%s15070_s20 + $0x78] sm:$0xff] }
 0x3aa   : > { %v15930_v38 = vpop.f32.mrb[0].mxu1 }
 0x3ab   : > { %v15934_v6 = vsub.f32 %v14750_v24, %v15930_v38  ;;  %v13891_v9 = vpop.f32.mrb[1].mxu1 }
 0x3ac   : > { %v14756_v9 = vld [vmem:[%s15070_s20 + $0x30] sm:$0xff] }
 0x3ad   : > { %13963 = vmatmul.mubr.msk.f32.vlgmr.msra.gmra.mrb[38].mxu0 %vm463_vm0, %v15934_v6  ;;  %v1641_v14 = vmul.f32 %v15934_v6, %v15934_v6 }
 0x3ae   : > { %v15940_v36 = vpop.f32.mrb[2].mxu1  ;;  %13965 = vmatprep.mubr.msk.f32.mxu0 %vm14914_vm2, %v22395_v7 }
 0x3af   : > { %v15946_v15 = vsub.f32 %v14751_v50, %v15940_v36  ;;  %v13894_v26 = vpop.f32.mrb[3].mxu1  ;;  %v1660_v46 = vsel %vm463_vm0, %v1641_v14, 0.0 }
 0x3b0   : > { %1661 = vadd.xlane.f32.xlu0 %v1660_v46 }
 0x3b1   : > { %13966 = vmatmul.mubr.msk.f32.gmra.mrb[40].mxu0 %vm463_vm0, %v15946_v15  ;;  %v1642_v31 = vmul.f32 %v15946_v15, %v15946_v15 }
 0x3b2   : > { %v15953_v53 = vpop.f32.mrb[4].mxu1  ;;  %13968 = vmatprep.mubr.msk.f32.mxu0 %vm14914_vm2, %v22395_v7 }
 0x3b3   : > { %v15959_v8 = vsub.f32 %v14752_v62, %v15953_v53  ;;  %v13897_v59 = vpop.f32.mrb[5].mxu1  ;;  %v1663_v45 = vsel %vm463_vm0, %v1642_v31, 0.0  ;;  %v14757_v62 = vld [vmem:[%s15070_s20 + $0x38] sm:$0xff] }
 0x3b4   : > { %1664 = vadd.xlane.f32.xlu1 %v1663_v45 }
 0x3b5   : > { %13969 = vmatmul.mubr.msk.f32.gmra.mrb[42].mxu0 %vm463_vm0, %v15959_v8  ;;  %v1643_v5 = vmul.f32 %v15959_v8, %v15959_v8 }
 0x3b6   : > { %v15966_v28 = vpop.f32.mrb[6].mxu1  ;;  %13971 = vmatprep.mubr.msk.f32.mxu0 %vm14914_vm2, %v22395_v7 }
 0x3b7   : > { %v15972_v60 = vsub.f32 %v14753_v20, %v15966_v28  ;;  %v13900_v37 = vpop.f32.mrb[7].mxu1  ;;  %v1666_v13 = vsel %vm463_vm0, %v1643_v5, 0.0 }
 0x3b8   : > { %1667 = vadd.xlane.f32.xlu0 %v1666_v13  ;;  %v14758_v13 = vld [vmem:[%s15070_s20 + $0x40] sm:$0xff] }
 0x3b9   : > { %13972 = vmatmul.mubr.msk.f32.gmra.mrb[44].mxu0 %vm463_vm0, %v15972_v60  ;;  %v1644_v1 = vmul.f32 %v15972_v60, %v15972_v60 }
 0x3ba   : > { %v15979_v22 = vpop.f32.mrb[8].mxu1  ;;  %13974 = vmatprep.mubr.msk.f32.mxu0 %vm14914_vm2, %v22395_v7 }
 0x3bb   : > { %v15985_v11 = vsub.f32 %v14754_v27, %v15979_v22  ;;  %v13903_v32 = vpop.f32.mrb[9].mxu1  ;;  %v1669_v21 = vsel %vm463_vm0, %v1644_v1, 0.0 }
 0x3bc   : > { %1670 = vadd.xlane.f32.xlu1 %v1669_v21 }
 0x3bd   : > { %13975 = vmatmul.mubr.msk.f32.gmra.mrb[46].mxu0 %vm463_vm0, %v15985_v11  ;;  %v1645_v40 = vmul.f32 %v15985_v11, %v15985_v11 }
 0x3be   : > { %v15992_v30 = vpop.f32.mrb[10].mxu1  ;;  %13977 = vmatprep.mubr.msk.f32.mxu0 %vm14914_vm2, %v22395_v7 }
 0x3bf   : > { %22753 = vst [vmem:[#allocation33_spill] sm:$0xff] %v15992_v30  ;;  %v15998_v12 = vsub.f32 %v14755_v44, %v15992_v30  ;;  %v13906_v57 = vpop.f32.mrb[11].mxu1  ;;  %v1672_v34 = vsel %vm463_vm0, %v1645_v40, 0.0  ;;  %v14759_v44 = vld [vmem:[%s15070_s20 + $0x48] sm:$0xff] }
 0x3c0   : > { %1673 = vadd.xlane.f32.xlu0 %v1672_v34 }
 0x3c1   : > { %22754 = vst [vmem:[#allocation34_spill] sm:$0xff] %v15998_v12  ;;  %13978 = vmatmul.mubr.msk.f32.gmra.mrb[48].mxu0 %vm463_vm0, %v15998_v12  ;;  %v1646_v17 = vmul.f32 %v15998_v12, %v15998_v12 }
 0x3c2   : > { %v16005_v24 = vpop.f32.mrb[12].mxu1  ;;  %13980 = vmatprep.mubr.msk.f32.mxu0 %vm14914_vm2, %v22395_v7 }
 0x3c3   : > { %22755 = vst [vmem:[#allocation35_spill] sm:$0xff] %v16005_v24  ;;  %v16011_v14 = vsub.f32 %v14756_v9, %v16005_v24  ;;  %v13909_v50 = vpop.f32.mrb[13].mxu1  ;;  %v1675_v26 = vsel %vm463_vm0, %v1646_v17, 0.0 }
 0x3c4   : > { %1676 = vadd.xlane.f32.xlu1 %v1675_v26  ;;  %v14760_v26 = vld [vmem:[%s15070_s20 + $0x50] sm:$0xff] }
 0x3c5   : > { %22756 = vst [vmem:[#allocation36_spill] sm:$0xff] %v16011_v14  ;;  %13981 = vmatmul.mubr.msk.f32.gmra.mrb[50].mxu0 %vm463_vm0, %v16011_v14  ;;  %v1647_v46 = vmul.f32 %v16011_v14, %v16011_v14 }
 0x3c6   : > { %v16018_v31 = vpop.f32.mrb[14].mxu1  ;;  %13983 = vmatprep.mubr.msk.f32.mxu0 %vm14914_vm2, %v22395_v7 }
 0x3c7   : > { %22757 = vst [vmem:[#allocation37_spill] sm:$0xff] %v16018_v31  ;;  %v16024_v59 = vsub.f32 %v14757_v62, %v16018_v31  ;;  %v13912_v45 = vpop.f32.mrb[15].mxu1  ;;  %v1678_v5 = vsel %vm463_vm0, %v1647_v46, 0.0 }
 0x3c8   : > { %1679 = vadd.xlane.f32.xlu0 %v1678_v5 }
 0x3c9   : > { %22758 = vst [vmem:[#allocation38_spill] sm:$0xff] %v16024_v59  ;;  %13984 = vmatmul.mubr.msk.f32.gmra.mrb[52].mxu0 %vm463_vm0, %v16024_v59  ;;  %v1648_v20 = vmul.f32 %v16024_v59, %v16024_v59 }
 0x3ca   : > { %v16031_v37 = vpop.f32.mrb[16].mxu1  ;;  %13986 = vmatprep.mubr.msk.f32.mxu0 %vm14914_vm2, %v22395_v7 }
 0x3cb   : > { %22759 = vst [vmem:[#allocation39_spill] sm:$0xff] %v16031_v37  ;;  %v16037_v1 = vsub.f32 %v14758_v13, %v16031_v37  ;;  %v13915_v27 = vpop.f32.mrb[17].mxu1  ;;  %v1681_v32 = vsel %vm463_vm0, %v1648_v20, 0.0  ;;  %v14761_v13 = vld [vmem:[%s15070_s20 + $0x58] sm:$0xff] }
 0x3cc   : > { %1682 = vadd.xlane.f32.xlu1 %v1681_v32 }
 0x3cd   : > { %22760 = vst [vmem:[#allocation40_spill] sm:$0xff] %v16037_v1  ;;  %13987 = vmatmul.mubr.msk.f32.gmra.mrb[54].mxu0 %vm463_vm0, %v16037_v1  ;;  %v1649_v21 = vmul.f32 %v16037_v1, %v16037_v1 }
 0x3ce   : > { %v16044_v40 = vpop.f32.mrb[18].mxu1  ;;  %13989 = vmatprep.mubr.msk.f32.mxu0 %vm14914_vm2, %v22395_v7 }
 0x3cf   : > { %22761 = vst [vmem:[#allocation41_spill] sm:$0xff] %v16044_v40  ;;  %v16050_v57 = vsub.f32 %v14759_v44, %v16044_v40  ;;  %v13918_v34 = vpop.f32.mrb[19].mxu1  ;;  %v1684_v17 = vsel %vm463_vm0, %v1649_v21, 0.0 }
 0x3d0   : > { %1685 = vadd.xlane.f32.xlu0 %v1684_v17  ;;  %v14762_v17 = vld [vmem:[%s15070_s20 + $0x60] sm:$0xff] }
 0x3d1   : > { %22762 = vst [vmem:[#allocation42_spill] sm:$0xff] %v16050_v57  ;;  %13990 = vmatmul.mubr.msk.f32.gmra.mrb[56].mxu0 %vm463_vm0, %v16050_v57  ;;  %v1650_v9 = vmul.f32 %v16050_v57, %v16050_v57 }
 0x3d2   : > { %v16057_v50 = vpop.f32.mrb[20].mxu1  ;;  %13992 = vmatprep.mubr.msk.f32.mxu0 %vm14914_vm2, %v22395_v7 }
 0x3d3   : > { %22763 = vst [vmem:[#allocation43_spill] sm:$0xff] %v16057_v50  ;;  %v16063_v46 = vsub.f32 %v14760_v26, %v16057_v50  ;;  %v13921_v62 = vpop.f32.mrb[21].mxu1  ;;  %v1687_v45 = vsel %vm463_vm0, %v1650_v9, 0.0 }
 0x3d4   : > { %1688 = vadd.xlane.f32.xlu1 %v1687_v45 }
 0x3d5   : > { %22764 = vst [vmem:[#allocation44_spill] sm:$0xff] %v16063_v46  ;;  %13993 = vmatmul.mubr.msk.f32.gmra.mrb[58].mxu0 %vm463_vm0, %v16063_v46  ;;  %v1651_v5 = vmul.f32 %v16063_v46, %v16063_v46 }
 0x3d6   : > { %v16070_v20 = vpop.f32.mrb[22].mxu1  ;;  %13995 = vmatprep.mubr.msk.f32.mxu0 %vm14914_vm2, %v22395_v7 }
 0x3d7   : > { %22765 = vst [vmem:[#allocation45_spill] sm:$0xff] %v16070_v20  ;;  %v16076_v27 = vsub.f32 %v14761_v13, %v16070_v20  ;;  %v13924_v32 = vpop.f32.mrb[23].mxu1  ;;  %v1690_v21 = vsel %vm463_vm0, %v1651_v5, 0.0  ;;  %v14763_v13 = vld [vmem:[%s15070_s20 + $0x68] sm:$0xff] }
 0x3d8   : > { %1691 = vadd.xlane.f32.xlu0 %v1690_v21 }
 0x3d9   : > { %22766 = vst [vmem:[#allocation46_spill] sm:$0xff] %v16076_v27  ;;  %13996 = vmatmul.mubr.msk.f32.gmra.mrb[60].mxu0 %vm463_vm0, %v16076_v27  ;;  %v1652_v44 = vmul.f32 %v16076_v27, %v16076_v27 }
 0x3da   : > { %v16083_v34 = vpop.f32.mrb[24].mxu1  ;;  %13998 = vmatprep.mubr.msk.f32.mxu0 %vm14914_vm2, %v22395_v7 }
 0x3db   : > { %22767 = vst [vmem:[#allocation47_spill] sm:$0xff] %v16083_v34  ;;  %v16089_v9 = vsub.f32 %v14762_v17, %v16083_v34  ;;  %v13927_v26 = vpop.f32.mrb[25].mxu1  ;;  %v1693_v62 = vsel %vm463_vm0, %v1652_v44, 0.0 }
 0x3dc   : > { %1694 = vadd.xlane.f32.xlu1 %v1693_v62  ;;  %v14764_v62 = vld [vmem:[%s15070_s20 + $0x70] sm:$0xff]  ;;  %s22019_s20 = sand.u32 1, %s23360_s23   ;;  %s14918_s23 = smov [#allocation2]  }
 0x3dd   : > { %22768 = vst [vmem:[#allocation48_spill] sm:$0xff] %v16089_v9  ;;  %13999 = vmatmul.mubr.msk.f32.gmra.mrb[62].mxu0 %vm463_vm0, %v16089_v9  ;;  %v1653_v45 = vmul.f32 %v16089_v9, %v16089_v9  ;;  %s14805_s0 = sshll.u32 %s14918_s23, 4  ;;  %s14806_s0 = int_to_ptr.vmem [resolvable:$false] %s14805_s0 }
 0x3de   : > { %v16096_v5 = vpop.f32.mrb[26].mxu1  ;;  %14001 = vmatprep.mubr.msk.f32.mxu0 %vm14914_vm2, %v22395_v7  ;;  %p14808_p1 = scmp.lt.s32.totalorder %s22087_s22, %s14806_s0 }
 0x3df   : > { %22769 = vst [vmem:[#allocation49_spill] sm:$0xff] %v16096_v5  ;;  %v16102_v32 = vsub.f32 %v14763_v13, %v16096_v5  ;;  %v13930_v21 = vpop.f32.mrb[27].mxu1  ;;  %v1696_v44 = vsel %vm463_vm0, %v1653_v45, 0.0 }
 0x3e0   : > { %1697 = vadd.xlane.f32.xlu0 %v1696_v44 }
 0x3e1   : > { %22770 = vst [vmem:[#allocation50_spill] sm:$0xff] %v16102_v32  ;;  %14002 = vmatmul.mubr.msk.f32.gmra.mrb[64].mxu0 %vm463_vm0, %v16102_v32  ;;  %v1654_v17 = vmul.f32 %v16102_v32, %v16102_v32 }
 0x3e2   : > { %v16109_v26 = vpop.f32.mrb[28].mxu1  ;;  %14004 = vmatprep.mubr.msk.f32.mxu0 %vm14914_vm2, %v22395_v7 }
 0x3e3   : > { %22771 = vst [vmem:[#allocation51_spill] sm:$0xff] %v16109_v26  ;;  %v16115_v13 = vsub.f32 %v14764_v62, %v16109_v26  ;;  %v13933_v21 = vpop.f32.mrb[29].mxu1  ;;  %v1699_v45 = vsel %vm463_vm0, %v1654_v17, 0.0 }
 0x3e4   : > { %1700 = vadd.xlane.f32.xlu1 %v1699_v45 }
 0x3e5   : > { %22772 = vst [vmem:[#allocation52_spill] sm:$0xff] %v16115_v13  ;;  %14005 = vmatmul.mubr.msk.f32.gmra.mrb[66].mxu0 %vm463_vm0, %v16115_v13  ;;  %v1655_v44 = vmul.f32 %v16115_v13, %v16115_v13 }
 0x3e6   : > { %v16122_v41 = vpop.f32.mrb[30].mxu1  ;;  %14007 = vmatprep.mubr.msk.f32.mxu0 %vm14914_vm2, %v22395_v7 }
 0x3e7   : > { %22773 = vst [vmem:[#allocation53_spill] sm:$0xff] %v16122_v41  ;;  %v16128_v62 = vsub.f32 %v14765_v2, %v16122_v41  ;;  %v13936_v21 = vpop.f32.mrb[31].mxu1  ;;  %v1702_v17 = vsel %vm463_vm0, %v1655_v44, 0.0 }
 0x3e8   : > { %1703 = vadd.xlane.f32.xlu0 %v1702_v17 }
 0x3e9   : > { %22774 = vst [vmem:[#allocation54_spill] sm:$0xff] %v16128_v62  ;;  %14008 = vmatmul.mubr.msk.f32.gmra.mrb[68].mxu0 %vm463_vm0, %v16128_v62  ;;  %v1656_v45 = vmul.f32 %v16128_v62, %v16128_v62 }
 0x3ea   : > { %v16135_v18 = vpop.f32.mrb[32].mxu1  ;;  %14010 = vmatprep.mubr.msk.f32.mxu0 %vm14914_vm2, %v22395_v7 }
 0x3eb   : > { %22775 = vst [vmem:[#allocation55_spill] sm:$0xff] %v16135_v18  ;;  %v16141_v2 = vsub.f32 %v14766_v35, %v16135_v18  ;;  %v13939_v21 = vpop.f32.mrb[33].mxu1  ;;  %v1705_v44 = vsel %vm463_vm0, %v1656_v45, 0.0 }
 0x3ec   : > { %1706 = vadd.xlane.f32.xlu1 %v1705_v44 }
 0x3ed   : > { %22776 = vst [vmem:[#allocation56_spill] sm:$0xff] %v16141_v2  ;;  %14011 = vmatmul.mubr.msk.f32.gmra.mrb[70].mxu0 %vm463_vm0, %v16141_v2  ;;  %v1657_v17 = vmul.f32 %v16141_v2, %v16141_v2 }
 0x3ee   : > { %v16148_v19 = vpop.f32.mrb[34].mxu1  ;;  %14013 = vmatprep.mubr.msk.f32.mxu0 %vm14914_vm2, %v22395_v7 }
 0x3ef   : > { %22777 = vst [vmem:[#allocation57_spill] sm:$0xff] %v16148_v19  ;;  %v16154_v35 = vsub.f32 %v14767_v61, %v16148_v19  ;;  %v13942_v21 = vpop.f32.mrb[35].mxu1  ;;  %v1708_v3 = vsel %vm463_vm0, %v1657_v17, 0.0 }
 0x3f0   : > { %1709 = vadd.xlane.f32.xlu0 %v1708_v3 }
 0x3f1   : > { %22778 = vst [vmem:[#allocation58_spill] sm:$0xff] %v16154_v35  ;;  %14014 = vmatmul.mubr.msk.f32.gmra.mrb[72].mxu0 %vm463_vm0, %v16154_v35  ;;  %v1658_v45 = vmul.f32 %v16154_v35, %v16154_v35 }
 0x3f2   : > { %v16161_v44 = vpop.f32.mrb[36].mxu1  ;;  %14016 = vmatprep.mubr.msk.f32.mxu0 %vm14914_vm2, %v22395_v7 }
 0x3f3   : > { %22779 = vst [vmem:[#allocation59_spill] sm:$0xff] %v16161_v44  ;;  %v16167_v29 = vsub.f32 %v14768_v39, %v16161_v44  ;;  %v13945_v61 = vpop.f32.mrb[37].mxu1  ;;  %v1711_v21 = vsel %vm463_vm0, %v1658_v45, 0.0  ;;  %v16181_v45 = vld [vmem:[%s22361_s2 + $0x1] ss:$0 sm:$0xff] }
 0x3f4   : > { %1712 = vadd.xlane.f32.xlu1 %v1711_v21 }
 0x3f5   : > { %22780 = vst [vmem:[#allocation60_spill] sm:$0xff] %v16167_v29  ;;  %14017 = vmatmul.mubr.msk.f32.gmra.mrb[74].mxu0 %vm463_vm0, %v16167_v29  ;;  %v1659_v3 = vmul.f32 %v16167_v29, %v16167_v29 }
 0x3f6   : > { %4579 = vmatprep.mubr.f32.mxu0 %v22395_v7 }
 0x3f7   : > { %v1714_v17 = vsel %vm518_vm3, %v1659_v3, 0.0 }
 0x3f8   : > { %1715 = vadd.xlane.f32.xlu0 %v1714_v17 }
 0x43d   : > { %v16176_v33 = vpop.xlane.xlu0 %1661 }
 0x43e   : > { %22781 = vst [vmem:[#allocation61_spill] sm:$0xff] %v16176_v33 }
 0x441   : > { %v16187_v17 = vpop.xlane.xlu1 %1664 }
 0x442   : > { %22782 = vst [vmem:[#allocation62_spill] sm:$0xff] %v16187_v17 }
 0x480   : > { %v3662_v54 = vpop.f32.mrb[38].mxu0 }
 0x481   : > { %v3756_v43 = vmul.f32 2.0, %v3662_v54  ;;  %v13964_v39 = vpop.f32.mrb[39].mxu0 }
 0x483   : > { %v3775_v61 = vsub.f32 %v3756_v43, %v16176_v33 }
 0x484   : > { %v3667_v21 = vpop.f32.mrb[40].mxu0 }
 0x485   : > { %v16185_v23 = vsub.f32 %v3775_v61, %v16181_v45  ;;  %v3757_v7 = vmul.f32 2.0, %v3667_v21  ;;  %v13967_v3 = vpop.f32.mrb[41].mxu0  ;;  %v16198_v21 = vpop.xlane.xlu0 %1667 }
 0x486   : > { %22783 = vst [vmem:[#allocation63_spill] sm:$0xff] %v16198_v21 }
 0x487   : > { %13302 = vst.msk [vmem:[%s15257_s21 + $0x98] sm:$0xff] %vm833_vm4, %v16185_v23  ;;  %v3776_v54 = vsub.f32 %v3757_v7, %v16187_v17  ;;  %v3817_v39 = vsel %vm833_vm4, %v16185_v23, -inf }
 0x488   : > { %v3672_v47 = vpop.f32.mrb[42].mxu0  ;;  %3818 = vmax.xlane.f32.xlu1 %v3817_v39 }
 0x489   : > { %v16196_v43 = vsub.f32 %v3776_v54, %v16181_v45  ;;  %v3758_v61 = vmul.f32 2.0, %v3672_v47  ;;  %v13970_v33 = vpop.f32.mrb[43].mxu0  ;;  %v16209_v47 = vpop.xlane.xlu1 %1670 }
 0x48a   : > { %22784 = vst [vmem:[#allocation64_spill] sm:$0xff] %v16209_v47 }
 0x48b   : > { %13303 = vst.msk [vmem:[%s15257_s21 + $0xa0] sm:$0xff] %vm833_vm4, %v16196_v43  ;;  %v3777_v3 = vsub.f32 %v3758_v61, %v16198_v21  ;;  %v3820_v7 = vsel %vm833_vm4, %v16196_v43, -inf }
 0x48c   : > { %v3677_v17 = vpop.f32.mrb[44].mxu0  ;;  %3821 = vmax.xlane.f32.xlu0 %v3820_v7 }
 0x48d   : > { %v16207_v39 = vsub.f32 %v3777_v3, %v16181_v45  ;;  %v3759_v54 = vmul.f32 2.0, %v3677_v17  ;;  %v13973_v52 = vpop.f32.mrb[45].mxu0  ;;  %v16220_v17 = vpop.xlane.xlu0 %1673 }
 0x48e   : > { %22785 = vst [vmem:[#allocation65_spill] sm:$0xff] %v16220_v17 }
 0x48f   : > { %13304 = vst.msk [vmem:[%s15257_s21 + $0xa8] sm:$0xff] %vm833_vm4, %v16207_v39  ;;  %v3778_v33 = vsub.f32 %v3759_v54, %v16209_v47  ;;  %v3823_v61 = vsel %vm833_vm4, %v16207_v39, -inf }
 0x490   : > { %v3682_v21 = vpop.f32.mrb[46].mxu0  ;;  %3824 = vmax.xlane.f32.xlu1 %v3823_v61 }
 0x491   : > { %v16218_v7 = vsub.f32 %v3778_v33, %v16181_v45  ;;  %v3760_v3 = vmul.f32 2.0, %v3682_v21  ;;  %v13976_v56 = vpop.f32.mrb[47].mxu0  ;;  %v16231_v21 = vpop.xlane.xlu1 %1676 }
 0x492   : > { %22786 = vst [vmem:[#allocation66_spill] sm:$0xff] %v16231_v21 }
 0x493   : > { %13305 = vst.msk [vmem:[%s15257_s21 + $0xb0] sm:$0xff] %vm833_vm4, %v16218_v7  ;;  %v3779_v52 = vsub.f32 %v3760_v3, %v16220_v17  ;;  %v3826_v54 = vsel %vm833_vm4, %v16218_v7, -inf }
 0x494   : > { %v3687_v47 = vpop.f32.mrb[48].mxu0  ;;  %3827 = vmax.xlane.f32.xlu0 %v3826_v54 }
 0x495   : > { %v16229_v61 = vsub.f32 %v3779_v52, %v16181_v45  ;;  %v3761_v33 = vmul.f32 2.0, %v3687_v47  ;;  %v13979_v51 = vpop.f32.mrb[49].mxu0  ;;  %v16242_v47 = vpop.xlane.xlu0 %1679 }
 0x496   : > { %22787 = vst [vmem:[#allocation67_spill] sm:$0xff] %v16242_v47 }
 0x497   : > { %13306 = vst.msk [vmem:[%s15257_s21 + $0xb8] sm:$0xff] %vm833_vm4, %v16229_v61  ;;  %v3780_v56 = vsub.f32 %v3761_v33, %v16231_v21  ;;  %v3829_v3 = vsel %vm833_vm4, %v16229_v61, -inf }
 0x498   : > { %v3692_v17 = vpop.f32.mrb[50].mxu0  ;;  %3830 = vmax.xlane.f32.xlu1 %v3829_v3 }
 0x499   : > { %v16240_v54 = vsub.f32 %v3780_v56, %v16181_v45  ;;  %v3762_v52 = vmul.f32 2.0, %v3692_v17  ;;  %v13982_v48 = vpop.f32.mrb[51].mxu0  ;;  %v16253_v17 = vpop.xlane.xlu1 %1682 }
 0x49a   : > { %22788 = vst [vmem:[#allocation68_spill] sm:$0xff] %v16253_v17 }
 0x49b   : > { %13307 = vst.msk [vmem:[%s15257_s21 + $0xc0] sm:$0xff] %vm833_vm4, %v16240_v54  ;;  %v3781_v51 = vsub.f32 %v3762_v52, %v16242_v47  ;;  %v3832_v33 = vsel %vm833_vm4, %v16240_v54, -inf }
 0x49c   : > { %v3697_v21 = vpop.f32.mrb[52].mxu0  ;;  %3833 = vmax.xlane.f32.xlu0 %v3832_v33 }
 0x49d   : > { %v16251_v3 = vsub.f32 %v3781_v51, %v16181_v45  ;;  %v3763_v56 = vmul.f32 2.0, %v3697_v21  ;;  %v13985_v0 = vpop.f32.mrb[53].mxu0  ;;  %v16264_v21 = vpop.xlane.xlu0 %1685 }
 0x49e   : > { %22789 = vst [vmem:[#allocation69_spill] sm:$0xff] %v16264_v21 }
 0x49f   : > { %13308 = vst.msk [vmem:[%s15257_s21 + $0xc8] sm:$0xff] %vm833_vm4, %v16251_v3  ;;  %v3782_v48 = vsub.f32 %v3763_v56, %v16253_v17  ;;  %v3835_v52 = vsel %vm833_vm4, %v16251_v3, -inf }
 0x4a0   : > { %v3702_v47 = vpop.f32.mrb[54].mxu0  ;;  %3836 = vmax.xlane.f32.xlu1 %v3835_v52 }
 0x4a1   : > { %v16262_v33 = vsub.f32 %v3782_v48, %v16181_v45  ;;  %v3764_v51 = vmul.f32 2.0, %v3702_v47  ;;  %v13988_v25 = vpop.f32.mrb[55].mxu0  ;;  %v16275_v47 = vpop.xlane.xlu1 %1688 }
 0x4a2   : > { %22790 = vst [vmem:[#allocation70_spill] sm:$0xff] %v16275_v47 }
 0x4a3   : > { %13309 = vst.msk [vmem:[%s15257_s21 + $0xd0] sm:$0xff] %vm833_vm4, %v16262_v33  ;;  %v3783_v0 = vsub.f32 %v3764_v51, %v16264_v21  ;;  %v3838_v56 = vsel %vm833_vm4, %v16262_v33, -inf }
 0x4a4   : > { %v3707_v17 = vpop.f32.mrb[56].mxu0  ;;  %3839 = vmax.xlane.f32.xlu0 %v3838_v56 }
 0x4a5   : > { %v16273_v52 = vsub.f32 %v3783_v0, %v16181_v45  ;;  %v3765_v48 = vmul.f32 2.0, %v3707_v17  ;;  %v13991_v16 = vpop.f32.mrb[57].mxu0  ;;  %v16286_v17 = vpop.xlane.xlu0 %1691 }
 0x4a6   : > { %22791 = vst [vmem:[#allocation71_spill] sm:$0xff] %v16286_v17 }
 0x4a7   : > { %13310 = vst.msk [vmem:[%s15257_s21 + $0xd8] sm:$0xff] %vm833_vm4, %v16273_v52  ;;  %v3784_v25 = vsub.f32 %v3765_v48, %v16275_v47  ;;  %v3841_v51 = vsel %vm833_vm4, %v16273_v52, -inf }
 0x4a8   : > { %v3712_v21 = vpop.f32.mrb[58].mxu0  ;;  %3842 = vmax.xlane.f32.xlu1 %v3841_v51 }
 0x4a9   : > { %v16284_v56 = vsub.f32 %v3784_v25, %v16181_v45  ;;  %v3766_v0 = vmul.f32 2.0, %v3712_v21  ;;  %v13994_v44 = vpop.f32.mrb[59].mxu0  ;;  %v16297_v21 = vpop.xlane.xlu1 %1694 }
 0x4aa   : > { %22792 = vst [vmem:[#allocation72_spill] sm:$0xff] %v16297_v21 }
 0x4ab   : > { %13311 = vst.msk [vmem:[%s15257_s21 + $0xe0] sm:$0xff] %vm833_vm4, %v16284_v56  ;;  %v3785_v16 = vsub.f32 %v3766_v0, %v16286_v17  ;;  %v3844_v48 = vsel %vm833_vm4, %v16284_v56, -inf }
 0x4ac   : > { %v3717_v47 = vpop.f32.mrb[60].mxu0  ;;  %3845 = vmax.xlane.f32.xlu0 %v3844_v48 }
 0x4ad   : > { %v16295_v51 = vsub.f32 %v3785_v16, %v16181_v45  ;;  %v3767_v25 = vmul.f32 2.0, %v3717_v47  ;;  %v13997_v29 = vpop.f32.mrb[61].mxu0  ;;  %v16308_v47 = vpop.xlane.xlu0 %1697 }
 0x4ae   : > { %22793 = vst [vmem:[#allocation73_spill] sm:$0xff] %v16308_v47 }
 0x4af   : > { %13312 = vst.msk [vmem:[%s15257_s21 + $0xe8] sm:$0xff] %vm833_vm4, %v16295_v51  ;;  %v3786_v44 = vsub.f32 %v3767_v25, %v16297_v21  ;;  %v3847_v0 = vsel %vm833_vm4, %v16295_v51, -inf }
 0x4b0   : > { %v3722_v17 = vpop.f32.mrb[62].mxu0  ;;  %3848 = vmax.xlane.f32.xlu1 %v3847_v0 }
 0x4b1   : > { %v16306_v48 = vsub.f32 %v3786_v44, %v16181_v45  ;;  %v3768_v16 = vmul.f32 2.0, %v3722_v17  ;;  %v14000_v19 = vpop.f32.mrb[63].mxu0  ;;  %v16319_v17 = vpop.xlane.xlu1 %1700 }
 0x4b2   : > { %22794 = vst [vmem:[#allocation74_spill] sm:$0xff] %v16319_v17 }
 0x4b3   : > { %13313 = vst.msk [vmem:[%s15257_s21 + $0xf0] sm:$0xff] %vm833_vm4, %v16306_v48  ;;  %v3787_v29 = vsub.f32 %v3768_v16, %v16308_v47  ;;  %v3850_v25 = vsel %vm833_vm4, %v16306_v48, -inf }
 0x4b4   : > { %v3727_v21 = vpop.f32.mrb[64].mxu0  ;;  %3851 = vmax.xlane.f32.xlu0 %v3850_v25 }
 0x4b5   : > { %v16317_v0 = vsub.f32 %v3787_v29, %v16181_v45  ;;  %v3769_v44 = vmul.f32 2.0, %v3727_v21  ;;  %v14003_v35 = vpop.f32.mrb[65].mxu0  ;;  %v16330_v21 = vpop.xlane.xlu0 %1703 }
 0x4b6   : > { %22795 = vst [vmem:[#allocation75_spill] sm:$0xff] %v16330_v21 }
 0x4b7   : > { %13314 = vst.msk [vmem:[%s15257_s21 + $0xf8] sm:$0xff] %vm833_vm4, %v16317_v0  ;;  %v3788_v19 = vsub.f32 %v3769_v44, %v16319_v17  ;;  %v3853_v16 = vsel %vm833_vm4, %v16317_v0, -inf }
 0x4b8   : > { %v3732_v47 = vpop.f32.mrb[66].mxu0  ;;  %3854 = vmax.xlane.f32.xlu1 %v3853_v16 }
 0x4b9   : > { %v16328_v25 = vsub.f32 %v3788_v19, %v16181_v45  ;;  %v3770_v29 = vmul.f32 2.0, %v3732_v47  ;;  %v14006_v18 = vpop.f32.mrb[67].mxu0  ;;  %v16341_v47 = vpop.xlane.xlu1 %1706 }
 0x4ba   : > { %22796 = vst [vmem:[#allocation76_spill] sm:$0xff] %v16341_v47 }
 0x4bb   : > { %13315 = vst.msk [vmem:[%s15257_s21 + $0x100] sm:$0xff] %vm833_vm4, %v16328_v25  ;;  %v3789_v35 = vsub.f32 %v3770_v29, %v16330_v21  ;;  %v3856_v44 = vsel %vm833_vm4, %v16328_v25, -inf }
 0x4bc   : > { %v3737_v17 = vpop.f32.mrb[68].mxu0  ;;  %3857 = vmax.xlane.f32.xlu0 %v3856_v44 }
 0x4bd   : > { %v16339_v16 = vsub.f32 %v3789_v35, %v16181_v45  ;;  %v3771_v19 = vmul.f32 2.0, %v3737_v17  ;;  %v14009_v2 = vpop.f32.mrb[69].mxu0  ;;  %v16352_v17 = vpop.xlane.xlu0 %1709 }
 0x4be   : > { %22797 = vst [vmem:[#allocation77_spill] sm:$0xff] %v16352_v17 }
 0x4bf   : > { %13316 = vst.msk [vmem:[%s15257_s21 + $0x108] sm:$0xff] %vm833_vm4, %v16339_v16  ;;  %v3790_v18 = vsub.f32 %v3771_v19, %v16341_v47  ;;  %v3859_v29 = vsel %vm833_vm4, %v16339_v16, -inf }
 0x4c0   : > { %v3742_v21 = vpop.f32.mrb[70].mxu0  ;;  %3860 = vmax.xlane.f32.xlu1 %v3859_v29 }
 0x4c1   : > { %v16350_v44 = vsub.f32 %v3790_v18, %v16181_v45  ;;  %v3772_v35 = vmul.f32 2.0, %v3742_v21  ;;  %v14012_v41 = vpop.f32.mrb[71].mxu0 }
 0x4c2   : > { %v16363_v41 = vpop.xlane.xlu1 %1712 }
 0x4c3   : > { %13317 = vst.msk [vmem:[%s15257_s21 + $0x110] sm:$0xff] %vm833_vm4, %v16350_v44  ;;  %v3791_v2 = vsub.f32 %v3772_v35, %v16352_v17  ;;  %v3862_v19 = vsel %vm833_vm4, %v16350_v44, -inf  ;;  %22798 = vst [vmem:[#allocation78_spill] sm:$0xff] %v16363_v41 }
 0x4c4   : > { %v3747_v47 = vpop.f32.mrb[72].mxu0  ;;  %3863 = vmax.xlane.f32.xlu0 %v3862_v19 }
 0x4c5   : > { %v16361_v29 = vsub.f32 %v3791_v2, %v16181_v45  ;;  %v3773_v18 = vmul.f32 2.0, %v3747_v47  ;;  %v14015_v62 = vpop.f32.mrb[73].mxu0  ;;  %v16374_v47 = vpop.xlane.xlu0 %1715 }
 0x4c6   : > { %22799 = vst [vmem:[#allocation79_spill] sm:$0xff] %v16374_v47 }
 0x4c7   : > { %13318 = vst.msk [vmem:[%s15257_s21 + $0x118] sm:$0xff] %vm833_vm4, %v16361_v29  ;;  %v3792_v21 = vsub.f32 %v3773_v18, %v16363_v41  ;;  %v3865_v35 = vsel %vm833_vm4, %v16361_v29, -inf }
 0x4c8   : > { %v3752_v17 = vpop.f32.mrb[74].mxu0  ;;  %3866 = vmax.xlane.f32.xlu1 %v3865_v35 }
 0x4c9   : > { %v16372_v19 = vsub.f32 %v3792_v21, %v16181_v45  ;;  %v3774_v2 = vmul.f32 2.0, %v3752_v17  ;;  %v14018_v26 = vpop.f32.mrb[75].mxu0 }
 0x4cb   : > { %13319 = vst.msk [vmem:[%s15257_s21 + $0x120] sm:$0xff] %vm833_vm4, %v16372_v19  ;;  %v3793_v62 = vsub.f32 %v3774_v2, %v16374_v47  ;;  %v3868_v18 = vsel %vm833_vm4, %v16372_v19, -inf }
 0x4cc   : > { %3869 = vmax.xlane.f32.xlu0 %v3868_v18 }
 0x4cd   : > { %v16383_v41 = vsub.f32 %v3793_v62, %v16181_v45 }
 0x4cf   : > { %13320 = vst.msk [vmem:[%s15257_s21 + $0x128] sm:$0x3f] %vm888_vm5, %v16383_v41  ;;  %v3871_v26 = vsel %vm888_vm5, %v16383_v41, -inf }
 0x4d0   : > { %3872 = vmax.xlane.f32.xlu1 %v3871_v26 }
 0x515   : > { %v3819_v17 = vpop.xlane.xlu1 %3818 }
 0x516   : > { %vm3874_vm15 = vcmp.eq.f32.partialorder %v16185_v23, %v3819_v17 }
 0x517   : > { %v3893_v21 = vsel %vm3874_vm15, %v15409_v42, 64 }
 0x518   : > { %v16393_v35 = vsel %vm833_vm4, %v3893_v21, 2147483647 }
 0x519   : > { %v3822_v2 = vpop.xlane.xlu0 %3821  ;;  %v3914_v18 = vshra.s32 %v16393_v35, 16 }
 0x51a   : > { %vm3875_vm7 = vcmp.eq.f32.partialorder %v16196_v43, %v3822_v2 }
 0x51b   : > { %v3894_v45 = vsel %vm3875_vm7, %v15409_v42, 64  ;;  %v16398_v62 = vcvt.s32.f32 %v3914_v18 }
 0x51c   : > { %v16401_v47 = vsel %vm833_vm4, %v3894_v45, 2147483647 }
 0x51d   : > { %3917 = vmin.xlane.f32.xlu0 %v16398_v62  ;;  %v3825_v23 = vpop.xlane.xlu1 %3824  ;;  %v3929_v26 = vshra.s32 %v16401_v47, 16 }
 0x51e   : > { %vm3876_vm8 = vcmp.eq.f32.partialorder %v16207_v39, %v3825_v23 }
 0x51f   : > { %v3895_v17 = vsel %vm3876_vm8, %v15409_v42, 64  ;;  %v16407_v21 = vcvt.s32.f32 %v3929_v26 }
 0x520   : > { %v16410_v43 = vsel %vm833_vm4, %v3895_v17, 2147483647 }
 0x521   : > { %3932 = vmin.xlane.f32.xlu1 %v16407_v21  ;;  %v3828_v2 = vpop.xlane.xlu0 %3827  ;;  %v3944_v18 = vshra.s32 %v16410_v43, 16 }
 0x522   : > { %vm3877_vm9 = vcmp.eq.f32.partialorder %v16218_v7, %v3828_v2 }
 0x523   : > { %v3896_v45 = vsel %vm3877_vm9, %v15409_v42, 64  ;;  %v16416_v13 = vcvt.s32.f32 %v3944_v18 }
 0x524   : > { %v16419_v39 = vsel %vm833_vm4, %v3896_v45, 2147483647 }
 0x525   : > { %3947 = vmin.xlane.f32.xlu0 %v16416_v13  ;;  %v3831_v23 = vpop.xlane.xlu1 %3830  ;;  %v3959_v26 = vshra.s32 %v16419_v39, 16 }
 0x526   : > { %vm3878_vm10 = vcmp.eq.f32.partialorder %v16229_v61, %v3831_v23 }
 0x527   : > { %v3897_v17 = vsel %vm3878_vm10, %v15409_v42, 64  ;;  %v16425_v5 = vcvt.s32.f32 %v3959_v26 }
 0x528   : > { %v16428_v7 = vsel %vm833_vm4, %v3897_v17, 2147483647 }
 0x529   : > { %3962 = vmin.xlane.f32.xlu1 %v16425_v5  ;;  %v3834_v2 = vpop.xlane.xlu0 %3833  ;;  %v3974_v18 = vshra.s32 %v16428_v7, 16 }
 0x52a   : > { %vm3879_vm11 = vcmp.eq.f32.partialorder %v16240_v54, %v3834_v2 }
 0x52b   : > { %v3898_v45 = vsel %vm3879_vm11, %v15409_v42, 64  ;;  %v16434_v32 = vcvt.s32.f32 %v3974_v18 }
 0x52c   : > { %v16437_v61 = vsel %vm833_vm4, %v3898_v45, 2147483647 }
 0x52d   : > { %3977 = vmin.xlane.f32.xlu0 %v16434_v32  ;;  %v3837_v23 = vpop.xlane.xlu1 %3836  ;;  %v3989_v26 = vshra.s32 %v16437_v61, 16 }
 0x52e   : > { %vm3880_vm12 = vcmp.eq.f32.partialorder %v16251_v3, %v3837_v23 }
 0x52f   : > { %v3899_v17 = vsel %vm3880_vm12, %v15409_v42, 64  ;;  %v16443_v34 = vcvt.s32.f32 %v3989_v26 }
 0x530   : > { %v16446_v54 = vsel %vm833_vm4, %v3899_v17, 2147483647 }
 0x531   : > { %3992 = vmin.xlane.f32.xlu1 %v16443_v34  ;;  %v3840_v2 = vpop.xlane.xlu0 %3839  ;;  %v4004_v18 = vshra.s32 %v16446_v54, 16 }
 0x532   : > { %vm3881_vm13 = vcmp.eq.f32.partialorder %v16262_v33, %v3840_v2 }
 0x533   : > { %v3900_v45 = vsel %vm3881_vm13, %v15409_v42, 64  ;;  %v16452_v9 = vcvt.s32.f32 %v4004_v18 }
 0x534   : > { %v16455_v3 = vsel %vm833_vm4, %v3900_v45, 2147483647 }
 0x535   : > { %4007 = vmin.xlane.f32.xlu0 %v16452_v9  ;;  %v3843_v23 = vpop.xlane.xlu1 %3842  ;;  %v4019_v26 = vshra.s32 %v16455_v3, 16 }
 0x536   : > { %vm3882_vm14 = vcmp.eq.f32.partialorder %v16273_v52, %v3843_v23 }
 0x537   : > { %v3901_v17 = vsel %vm3882_vm14, %v15409_v42, 64  ;;  %v16461_v20 = vcvt.s32.f32 %v4019_v26 }
 0x538   : > { %v16464_v33 = vsel %vm833_vm4, %v3901_v17, 2147483647 }
 0x539   : > { %4022 = vmin.xlane.f32.xlu1 %v16461_v20  ;;  %v3846_v2 = vpop.xlane.xlu0 %3845  ;;  %v4034_v18 = vshra.s32 %v16464_v33, 16 }
 0x53a   : > { %vm3883_vm15 = vcmp.eq.f32.partialorder %v16284_v56, %v3846_v2 }
 0x53b   : > { %v3902_v45 = vsel %vm3883_vm15, %v15409_v42, 64  ;;  %v16470_v27 = vcvt.s32.f32 %v4034_v18 }
 0x53c   : > { %v16473_v52 = vsel %vm833_vm4, %v3902_v45, 2147483647 }
 0x53d   : > { %4037 = vmin.xlane.f32.xlu0 %v16470_v27  ;;  %v3849_v23 = vpop.xlane.xlu1 %3848  ;;  %v4049_v26 = vshra.s32 %v16473_v52, 16 }
 0x53e   : > { %vm3884_vm7 = vcmp.eq.f32.partialorder %v16295_v51, %v3849_v23 }
 0x53f   : > { %v3903_v17 = vsel %vm3884_vm7, %v15409_v42, 64  ;;  %v16479_v50 = vcvt.s32.f32 %v4049_v26 }
 0x540   : > { %v16482_v56 = vsel %vm833_vm4, %v3903_v17, 2147483647 }
 0x541   : > { %4052 = vmin.xlane.f32.xlu1 %v16479_v50  ;;  %v3852_v2 = vpop.xlane.xlu0 %3851  ;;  %v4064_v18 = vshra.s32 %v16482_v56, 16 }
 0x542   : > { %vm3885_vm8 = vcmp.eq.f32.partialorder %v16306_v48, %v3852_v2 }
 0x543   : > { %v3904_v45 = vsel %vm3885_vm8, %v15409_v42, 64  ;;  %v16488_v46 = vcvt.s32.f32 %v4064_v18 }
 0x544   : > { %v16491_v51 = vsel %vm833_vm4, %v3904_v45, 2147483647 }
 0x545   : > { %4067 = vmin.xlane.f32.xlu0 %v16488_v46  ;;  %v3855_v23 = vpop.xlane.xlu1 %3854  ;;  %v4079_v26 = vshra.s32 %v16491_v51, 16 }
 0x546   : > { %vm3886_vm9 = vcmp.eq.f32.partialorder %v16317_v0, %v3855_v23 }
 0x547   : > { %v3905_v17 = vsel %vm3886_vm9, %v15409_v42, 64  ;;  %v16497_v40 = vcvt.s32.f32 %v4079_v26 }
 0x548   : > { %v16500_v48 = vsel %vm833_vm4, %v3905_v17, 2147483647 }
 0x549   : > { %4082 = vmin.xlane.f32.xlu1 %v16497_v40  ;;  %v3858_v2 = vpop.xlane.xlu0 %3857  ;;  %v4094_v18 = vshra.s32 %v16500_v48, 16 }
 0x54a   : > { %vm3887_vm10 = vcmp.eq.f32.partialorder %v16328_v25, %v3858_v2 }
 0x54b   : > { %v3906_v45 = vsel %vm3887_vm10, %v15409_v42, 64  ;;  %v16506_v57 = vcvt.s32.f32 %v4094_v18 }
 0x54c   : > { %v16509_v0 = vsel %vm833_vm4, %v3906_v45, 2147483647 }
 0x54d   : > { %4097 = vmin.xlane.f32.xlu0 %v16506_v57  ;;  %v3861_v23 = vpop.xlane.xlu1 %3860  ;;  %v4109_v26 = vshra.s32 %v16509_v0, 16 }
 0x54e   : > { %vm3888_vm11 = vcmp.eq.f32.partialorder %v16339_v16, %v3861_v23 }
 0x54f   : > { %v3907_v17 = vsel %vm3888_vm11, %v15409_v42, 64  ;;  %v16515_v37 = vcvt.s32.f32 %v4109_v26 }
 0x550   : > { %v16518_v25 = vsel %vm833_vm4, %v3907_v17, 2147483647 }
 0x551   : > { %4112 = vmin.xlane.f32.xlu1 %v16515_v37  ;;  %v3864_v2 = vpop.xlane.xlu0 %3863  ;;  %v4124_v18 = vshra.s32 %v16518_v25, 16 }
 0x552   : > { %vm3889_vm12 = vcmp.eq.f32.partialorder %v16350_v44, %v3864_v2 }
 0x553   : > { %v3908_v45 = vsel %vm3889_vm12, %v15409_v42, 64  ;;  %v16524_v1 = vcvt.s32.f32 %v4124_v18 }
 0x554   : > { %v16527_v16 = vsel %vm833_vm4, %v3908_v45, 2147483647 }
 0x555   : > { %4127 = vmin.xlane.f32.xlu0 %v16524_v1  ;;  %v3867_v23 = vpop.xlane.xlu1 %3866  ;;  %v4139_v26 = vshra.s32 %v16527_v16, 16 }
 0x556   : > { %vm3890_vm13 = vcmp.eq.f32.partialorder %v16361_v29, %v3867_v23 }
 0x557   : > { %v3909_v17 = vsel %vm3890_vm13, %v15409_v42, 64  ;;  %v16533_v31 = vcvt.s32.f32 %v4139_v26 }
 0x558   : > { %v16536_v44 = vsel %vm833_vm4, %v3909_v17, 2147483647 }
 0x559   : > { %4142 = vmin.xlane.f32.xlu1 %v16533_v31  ;;  %v3870_v2 = vpop.xlane.xlu0 %3869  ;;  %v4154_v18 = vshra.s32 %v16536_v44, 16 }
 0x55a   : > { %vm3891_vm14 = vcmp.eq.f32.partialorder %v16372_v19, %v3870_v2 }
 0x55b   : > { %v3910_v45 = vsel %vm3891_vm14, %v15409_v42, 64  ;;  %v16542_v59 = vcvt.s32.f32 %v4154_v18 }
 0x55c   : > { %v16545_v29 = vsel %vm833_vm4, %v3910_v45, 2147483647  ;;  %v3913_v45 = vand.u32 65535, %v16393_v35 }
 0x55d   : > { %4157 = vmin.xlane.f32.xlu0 %v16542_v59  ;;  %v3873_v23 = vpop.xlane.xlu1 %3872  ;;  %v4169_v26 = vshra.s32 %v16545_v29, 16 }
 0x55e   : > { %vm3892_vm15 = vcmp.eq.f32.partialorder %v16383_v41, %v3873_v23  ;;  %v3915_v41 = vcvt.s32.f32 %v3913_v45  ;;  %v3928_v23 = vand.u32 65535, %v16401_v47  ;;  %v3958_v47 = vand.u32 65535, %v16419_v39 }
 0x55f   : > { %v3911_v17 = vsel %vm3892_vm15, %v15409_v42, 64  ;;  %v16551_v24 = vcvt.s32.f32 %v4169_v26  ;;  %v3988_v39 = vand.u32 65535, %v16437_v61  ;;  %v4018_v61 = vand.u32 65535, %v16455_v3 }
 0x560   : > { %v16554_v19 = vsel %vm888_vm5, %v3911_v17, 2147483647  ;;  %v3930_v30 = vcvt.s32.f32 %v3928_v23  ;;  %v3960_v23 = vcvt.s32.f32 %v3958_v47  ;;  %v4048_v3 = vand.u32 65535, %v16473_v52 }
 0x561   : > { %4172 = vmin.xlane.f32.xlu1 %v16551_v24  ;;  %v4184_v2 = vshra.s32 %v16554_v19, 16  ;;  %v4078_v52 = vand.u32 65535, %v16491_v51  ;;  %v4108_v51 = vand.u32 65535, %v16509_v0  ;;  %v4138_v0 = vand.u32 65535, %v16527_v16 }
 0x562   : > { %v4168_v16 = vand.u32 65535, %v16545_v29 }
 0x563   : > { %v16558_v18 = vcvt.s32.f32 %v4184_v2  ;;  %v3943_v2 = vand.u32 65535, %v16410_v43  ;;  %v3973_v43 = vand.u32 65535, %v16428_v7  ;;  %v4003_v7 = vand.u32 65535, %v16446_v54 }
 0x564   : > { %v4033_v54 = vand.u32 65535, %v16464_v33  ;;  %v4063_v33 = vand.u32 65535, %v16482_v56  ;;  %v4093_v56 = vand.u32 65535, %v16500_v48  ;;  %v4123_v48 = vand.u32 65535, %v16518_v25 }
 0x565   : > { %4187 = vmin.xlane.f32.xlu0 %v16558_v18  ;;  %v3945_v45 = vcvt.s32.f32 %v3943_v2  ;;  %v3990_v2 = vcvt.s32.f32 %v3988_v39  ;;  %v4005_v47 = vcvt.s32.f32 %v4003_v7  ;;  %v4050_v39 = vcvt.s32.f32 %v4048_v3 }
 0x566   : > { %v4140_v3 = vcvt.s32.f32 %v4138_v0  ;;  %v4153_v25 = vand.u32 65535, %v16536_v44 }
 0x5aa   : > { %v16562_v14 = vpop.xlane.xlu0 %3917 }
 0x5ab   : > { %vm3919_vm7 = vcmp.eq.f32.partialorder %v16398_v62, %v16562_v14 }
 0x5ac   : > { %v3920_v26 = vsel %vm3919_vm7, %v3915_v41, inf }
 0x5ad   : > { %3921 = vmin.xlane.f32.xlu1 %v3920_v26 }
 0x5ae   : > { %v16567_v17 = vpop.xlane.xlu1 %3932 }
 0x5af   : > { %vm3934_vm8 = vcmp.eq.f32.partialorder %v16407_v21, %v16567_v17  ;;  %v3975_v21 = vcvt.s32.f32 %v3973_v43 }
 0x5b0   : > { %v3935_v12 = vsel %vm3934_vm8, %v3930_v30, inf }
 0x5b1   : > { %3936 = vmin.xlane.f32.xlu0 %v3935_v12 }
 0x5b2   : > { %v16572_v35 = vpop.xlane.xlu0 %3947 }
 0x5b3   : > { %vm3949_vm9 = vcmp.eq.f32.partialorder %v16416_v13, %v16572_v35 }
 0x5b4   : > { %v3950_v62 = vsel %vm3949_vm9, %v3945_v45, inf }
 0x5b5   : > { %3951 = vmin.xlane.f32.xlu1 %v3950_v62 }
 0x5b6   : > { %v16577_v41 = vpop.xlane.xlu1 %3962 }
 0x5b7   : > { %vm3964_vm10 = vcmp.eq.f32.partialorder %v16425_v5, %v16577_v41 }
 0x5b8   : > { %v3965_v30 = vsel %vm3964_vm10, %v3960_v23, inf  ;;  %v4020_v23 = vcvt.s32.f32 %v4018_v61  ;;  %v4095_v61 = vcvt.s32.f32 %v4093_v56  ;;  %v14775_v56 = vld [vmem:[%s22726_s1 + $0x30] sm:$0xff] }
 0x5b9   : > { %3966 = vmin.xlane.f32.xlu0 %v3965_v30  ;;  %v4035_v30 = vcvt.s32.f32 %v4033_v54 }
 0x5ba   : > { %v16582_v12 = vpop.xlane.xlu0 %3977 }
 0x5bb   : > { %vm3979_vm11 = vcmp.eq.f32.partialorder %v16434_v32, %v16582_v12 }
 0x5bc   : > { %v3980_v13 = vsel %vm3979_vm11, %v3975_v21, inf }
 0x5bd   : > { %3981 = vmin.xlane.f32.xlu1 %v3980_v13 }
 0x5be   : > { %v16587_v26 = vpop.xlane.xlu1 %3992 }
 0x5bf   : > { %vm3994_vm12 = vcmp.eq.f32.partialorder %v16443_v34, %v16587_v26 }
 0x5c0   : > { %v3995_v5 = vsel %vm3994_vm12, %v3990_v2, inf  ;;  %v4065_v2 = vcvt.s32.f32 %v4063_v33  ;;  %v14769_v33 = vld [vmem:[%s22726_s1] sm:$0xff] }
 0x5c1   : > { %3996 = vmin.xlane.f32.xlu0 %v3995_v5  ;;  %v4080_v5 = vcvt.s32.f32 %v4078_v52 }
 0x5c2   : > { %v16592_v45 = vpop.xlane.xlu0 %4007 }
 0x5c3   : > { %vm4009_vm13 = vcmp.eq.f32.partialorder %v16452_v9, %v16592_v45 }
 0x5c4   : > { %v4010_v32 = vsel %vm4009_vm13, %v4005_v47, inf }
 0x5c5   : > { %4011 = vmin.xlane.f32.xlu1 %v4010_v32 }
 0x5c6   : > { %v16597_v62 = vpop.xlane.xlu1 %4022 }
 0x5c7   : > { %vm4024_vm14 = vcmp.eq.f32.partialorder %v16461_v20, %v16597_v62 }
 0x5c8   : > { %v4025_v34 = vsel %vm4024_vm14, %v4020_v23, inf  ;;  %v4110_v23 = vcvt.s32.f32 %v4108_v51 }
 0x5c9   : > { %4026 = vmin.xlane.f32.xlu1 %v4025_v34  ;;  %v4125_v34 = vcvt.s32.f32 %v4123_v48 }
 0x5ca   : > { %v16602_v43 = vpop.xlane.xlu0 %4037 }
 0x5cb   : > { %vm4039_vm15 = vcmp.eq.f32.partialorder %v16470_v27, %v16602_v43 }
 0x5cc   : > { %v4040_v9 = vsel %vm4039_vm15, %v4035_v30, inf }
 0x5cd   : > { %4041 = vmin.xlane.f32.xlu1 %v4040_v9 }
 0x5ce   : > { %v16607_v21 = vpop.xlane.xlu1 %4052 }
 0x5cf   : > { %vm4054_vm7 = vcmp.eq.f32.partialorder %v16479_v50, %v16607_v21 }
 0x5d0   : > { %v4055_v20 = vsel %vm4054_vm7, %v4050_v39, inf  ;;  %v4155_v39 = vcvt.s32.f32 %v4153_v25 }
 0x5d1   : > { %4056 = vmin.xlane.f32.xlu1 %v4055_v20  ;;  %v4183_v20 = vand.u32 65535, %v16554_v19  ;;  %v14771_v19 = vld [vmem:[%s22726_s1 + $0x10] sm:$0xff] }
 0x5d2   : > { %v16612_v13 = vpop.xlane.xlu0 %4067 }
 0x5d3   : > { %vm4069_vm8 = vcmp.eq.f32.partialorder %v16488_v46, %v16612_v13  ;;  %v4185_v52 = vcvt.s32.f32 %v4183_v20 }
 0x5d4   : > { %v4070_v27 = vsel %vm4069_vm8, %v4065_v2, inf }
 0x5d5   : > { %4071 = vmin.xlane.f32.xlu1 %v4070_v27 }
 0x5d6   : > { %v16617_v7 = vpop.xlane.xlu1 %4082 }
 0x5d7   : > { %vm4084_vm9 = vcmp.eq.f32.partialorder %v16497_v40, %v16617_v7 }
 0x5d8   : > { %v4085_v50 = vsel %vm4084_vm9, %v4080_v5, inf  ;;  %v14773_v5 = vld [vmem:[%s22726_s1 + $0x20] sm:$0xff] }
 0x5d9   : > { %4086 = vmin.xlane.f32.xlu1 %v4085_v50  ;;  %v14776_v50 = vld [vmem:[%s22726_s1 + $0x38] sm:$0xff] }
 0x5da   : > { %v16622_v47 = vpop.xlane.xlu0 %4097 }
 0x5db   : > { %vm4099_vm10 = vcmp.eq.f32.partialorder %v16506_v57, %v16622_v47 }
 0x5dc   : > { %v4100_v46 = vsel %vm4099_vm10, %v4095_v61, inf  ;;  %v3924_v61 = vcvt.f32.s32 %v16562_v14  ;;  %v3969_v14 = vcvt.f32.s32 %v16577_v41 }
 0x5dd   : > { %4101 = vmin.xlane.f32.xlu1 %v4100_v46 }
 0x5de   : > { %v16627_v32 = vpop.xlane.xlu1 %4112  ;;  %v3925_v46 = vshll.u32 %v3924_v61, 16 }
 0x5df   : > { %vm4114_vm11 = vcmp.eq.f32.partialorder %v16515_v37, %v16627_v32 }
 0x5e0   : > { %v4115_v40 = vsel %vm4114_vm11, %v4110_v23, inf  ;;  %v3939_v23 = vcvt.f32.s32 %v16567_v17  ;;  %v22802_v17 = vmov 0.0  }
 0x5e1   : > { %4116 = vmin.xlane.f32.xlu1 %v4115_v40 }
 0x5e2   : > { %v16632_v54 = vpop.xlane.xlu0 %4127  ;;  %v3940_v0 = vshll.u32 %v3939_v23, 16  ;;  %v4014_v23 = vcvt.f32.s32 %v16592_v45 }
 0x5e3   : > { %vm4129_vm12 = vcmp.eq.f32.partialorder %v16524_v1, %v16632_v54 }
 0x5e4   : > { %v4130_v57 = vsel %vm4129_vm12, %v4125_v34, inf }
 0x5e5   : > { %4131 = vmin.xlane.f32.xlu1 %v4130_v57  ;;  %v3954_v57 = vcvt.f32.s32 %v16572_v35 }
 0x5e6   : > { %v16637_v30 = vpop.xlane.xlu1 %4142 }
 0x5e7   : > { %vm4144_vm13 = vcmp.eq.f32.partialorder %v16533_v31, %v16637_v30  ;;  %v4170_v31 = vcvt.s32.f32 %v4168_v16 }
 0x5e8   : > { %v4145_v37 = vsel %vm4144_vm13, %v4140_v3, inf }
 0x5e9   : > { %4146 = vmin.xlane.f32.xlu1 %v4145_v37 }
 0x5ea   : > { %v16642_v9 = vpop.xlane.xlu0 %4157 }
 0x5eb   : > { %vm4159_vm14 = vcmp.eq.f32.partialorder %v16542_v59, %v16642_v9  ;;  %v14770_v59 = vld [vmem:[%s22726_s1 + $0x8] sm:$0xff] }
 0x5ec   : > { %v4160_v1 = vsel %vm4159_vm14, %v4155_v39, inf  ;;  %v3955_v39 = vshll.u32 %v3954_v57, 16  ;;  %v4029_v57 = vcvt.f32.s32 %v16597_v62 }
 0x5ed   : > { %4161 = vmin.xlane.f32.xlu1 %v4160_v1 }
 0x5ee   : > { %1489 = vxpose.xlu0.b32.start [1/8] (short) (narrow) %v14769_v33, 32  ;;  %v16650_v44 = vpop.xlane.xlu1 %4172 }
 0x5ef   : > { %vm4174_vm15 = vcmp.eq.f32.partialorder %v16551_v24, %v16650_v44  ;;  %v14772_v24 = vld [vmem:[%s22726_s1 + $0x18] sm:$0xff] }
 0x5f0   : > { %v4175_v2 = vsel %vm4174_vm15, %v4170_v31, inf }
 0x5f1   : > { %4176 = vmin.xlane.f32.xlu1 %v4175_v2  ;;  %v3970_v2 = vshll.u32 %v3969_v14, 16 }
 0x5f2   : > { %1490 = vxpose.xlu0.b32.cont [2/8] (short) (narrow) %v14770_v59, 32  ;;  %v16658_v29 = vpop.xlane.xlu0 %4187  ;;  %v3984_v59 = vcvt.f32.s32 %v16582_v12 }
 0x5f3   : > { %vm4189_vm7 = vcmp.eq.f32.partialorder %v16558_v18, %v16658_v29  ;;  %v14774_v18 = vld [vmem:[%s22726_s1 + $0x28] sm:$0xff] }
 0x5f4   : > { %v4190_v27 = vsel %vm4189_vm7, %v4185_v52, inf  ;;  %v22804_v52 = vmov 0.0|0.0  }
 0x5f5   : > { %4191 = vmin.xlane.f32.xlu1 %v4190_v27 }
 0x5f6   : > { %1491 = vxpose.xlu0.b32.cont [3/8] (short) (narrow) %v14771_v19, 32 }
 0x5fa   : > { %1492 = vxpose.xlu0.b32.cont [4/8] (short) (narrow) %v14772_v24, 32  ;;  %v3985_v24 = vshll.u32 %v3984_v59, 16 }
 0x5fe   : > { %1493 = vxpose.xlu0.b32.cont [5/8] (short) (narrow) %v14773_v5, 32  ;;  %v3999_v5 = vcvt.f32.s32 %v16587_v26 }
 0x602   : > { %1494 = vxpose.xlu0.b32.cont [6/8] (short) (narrow) %v14774_v18, 32 }
 0x606   : > { %1495 = vxpose.xlu0.b32.cont [7/8] (short) (narrow) %v14775_v56, 32 }
 0x60a   : > { %1496 = vxpose.xlu0.b32.end [8/8] (short) (narrow) %v14776_v50, 32 }
 0x63a   : > { %v3922_v51 = vpop.xlane.xlu1 %3921 }
 0x63b   : > { %v3923_v48 = vcvt.f32.s32 %v3922_v51 }
 0x63d   : > { %v16682_v40 = vadd.s32 %v3925_v46, %v3923_v48  ;;  %v4000_v46 = vshll.u32 %v3999_v5, 16 }
 0x63e   : > { %v3937_v34 = vpop.xlane.xlu0 %3936 }
 0x63f   : > { %22800 = vst [vmem:[#allocation80_spill] sm:$0xff] %v16682_v40  ;;  %v3938_v3 = vcvt.f32.s32 %v3937_v34  ;;  %vm4197_vm8 = vcmp.eq.s32.totalorder %v15409_v42, %v16682_v40 }
 0x640   : > { %v16693_v1 = vsel %vm4197_vm8, 1.0, %v22802_v17 }
 0x641   : > { %v16685_v25 = vadd.s32 %v3940_v0, %v3938_v3  ;;  %v4015_v0 = vshll.u32 %v4014_v23, 16  ;;  %v4074_v23 = vcvt.f32.s32 %v16612_v13 }
 0x642   : > { %v3952_v37 = vpop.xlane.xlu1 %3951 }
 0x643   : > { %22801 = vst [vmem:[#allocation81_spill] sm:$0xff] %v16685_v25  ;;  %v3953_v16 = vcvt.f32.s32 %v3952_v37  ;;  %vm4198_vm9 = vcmp.eq.s32.totalorder %v15409_v42, %v16685_v25 }
 0x644   : > { %v16696_v33 = vsel %vm4198_vm9, 1.0, %v22802_v17 }
 0x645   : > { %v16698_v35 = vadd.s32 %v3955_v39, %v3953_v16  ;;  %v14477_v31 = vpack.c.bf16 %v16696_v33, %v16693_v1 }
 0x646   : > { %v3967_v20 = vpop.xlane.xlu0 %3966 }
 0x647   : > { %22803 = vst [vmem:[#allocation82_spill] sm:$0xff] %v16698_v35  ;;  %v3968_v41 = vcvt.f32.s32 %v3967_v20  ;;  %14479 = vmatpush1.bf16.xpose.msk.msra.mxu0 %vm15744_vm6, %v14477_v31  ;;  %vm4199_vm10 = vcmp.eq.s32.totalorder %v15409_v42, %v16698_v35  ;;  %v4030_v31 = vshll.u32 %v4029_v57, 16  ;;  %v4044_v20 = vcvt.f32.s32 %v16602_v43 }
 0x648   : > { %14480 = vmatprep.subr.bf16.mxu0 %v22804_v52  ;;  %v16714_v12 = vsel %vm4199_vm10, 1.0, %v22802_v17  ;;  %v4089_v57 = vcvt.f32.s32 %v16617_v7 }
 0x649   : > { %v16706_v27 = vadd.s32 %v3970_v2, %v3968_v41  ;;  %v4045_v41 = vshll.u32 %v4044_v20, 16 }
 0x64a   : > { %v3982_v19 = vpop.xlane.xlu1 %3981 }
 0x64b   : > { %22805 = vst [vmem:[#allocation83_spill] sm:$0xff] %v16706_v27  ;;  %v3983_v18 = vcvt.f32.s32 %v3982_v19  ;;  %vm4200_vm11 = vcmp.eq.s32.totalorder %v15409_v42, %v16706_v27  ;;  %v4059_v19 = vcvt.f32.s32 %v16607_v21  ;;  %v22877_v27 = vld [vmem:[#allocation59_spill] sm:$0xff] }
 0x64c   : > { %v16717_v56 = vsel %vm4200_vm11, 1.0, %v22802_v17 }
 0x64d   : > { %v16719_v50 = vadd.s32 %v3985_v24, %v3983_v18  ;;  %v14481_v61 = vpack.c.bf16 %v16717_v56, %v16714_v12 }
 0x64e   : > { %v3997_v51 = vpop.xlane.xlu0 %3996 }
 0x64f   : > { %22806 = vst [vmem:[#allocation84_spill] sm:$0xff] %v16719_v50  ;;  %v3998_v26 = vcvt.f32.s32 %v3997_v51  ;;  %14483 = vmatpush1.bf16.xpose.msk.msra.mxu0 %vm15744_vm6, %v14481_v61  ;;  %vm4201_vm12 = vcmp.eq.s32.totalorder %v15409_v42, %v16719_v50 }
 0x650   : > { %14484 = vmatprep.subr.bf16.mxu0 %v22804_v52  ;;  %v16735_v45 = vsel %vm4201_vm12, 1.0, %v22802_v17 }
 0x651   : > { %v16727_v48 = vadd.s32 %v4000_v46, %v3998_v26  ;;  %v4060_v46 = vshll.u32 %v4059_v19, 16 }
 0x652   : > { %v4012_v34 = vpop.xlane.xlu1 %4011 }
 0x653   : > { %22807 = vst [vmem:[#allocation85_spill] sm:$0xff] %v16727_v48  ;;  %v4013_v3 = vcvt.f32.s32 %v4012_v34  ;;  %vm4202_vm13 = vcmp.eq.s32.totalorder %v15409_v42, %v16727_v48  ;;  %v22875_v48 = vld [vmem:[#allocation60_spill] sm:$0xff] }
 0x654   : > { %v16738_v37 = vsel %vm4202_vm13, 1.0, %v22802_v17 }
 0x655   : > { %v16740_v39 = vadd.s32 %v4015_v0, %v4013_v3  ;;  %v14485_v14 = vpack.c.bf16 %v16738_v37, %v16735_v45  ;;  %v4075_v0 = vshll.u32 %v4074_v23, 16 }
 0x656   : > { %v4027_v16 = vpop.xlane.xlu1 %4026 }
 0x657   : > { %22808 = vst [vmem:[#allocation86_spill] sm:$0xff] %v16740_v39  ;;  %v4028_v62 = vcvt.f32.s32 %v4027_v16  ;;  %14487 = vmatpush1.bf16.xpose.msk.msra.mxu0 %vm15744_vm6, %v14485_v14  ;;  %vm4203_vm14 = vcmp.eq.s32.totalorder %v15409_v42, %v16740_v39 }
 0x658   : > { %14488 = vmatprep.subr.bf16.mxu0 %v22804_v52  ;;  %v16756_v43 = vsel %vm4203_vm14, 1.0, %v22802_v17 }
 0x659   : > { %v16748_v2 = vadd.s32 %v4030_v31, %v4028_v62  ;;  %v4090_v62 = vshll.u32 %v4089_v57, 16 }
 0x65a   : > { %v4042_v59 = vpop.xlane.xlu1 %4041 }
 0x65b   : > { %22809 = vst [vmem:[#allocation87_spill] sm:$0xff] %v16748_v2  ;;  %v4043_v24 = vcvt.f32.s32 %v4042_v59  ;;  %vm4204_vm15 = vcmp.eq.s32.totalorder %v15409_v42, %v16748_v2  ;;  %v4104_v59 = vcvt.f32.s32 %v16622_v47  ;;  %v22873_v2 = vld [vmem:[#allocation57_spill] sm:$0xff] }
 0x65c   : > { %v16759_v5 = vsel %vm4204_vm15, 1.0, %v22802_v17 }
 0x65d   : > { %v16761_v18 = vadd.s32 %v4045_v41, %v4043_v24  ;;  %v14489_v61 = vpack.c.bf16 %v16759_v5, %v16756_v43  ;;  %v4105_v24 = vshll.u32 %v4104_v59, 16  ;;  %v4149_v59 = vcvt.f32.s32 %v16637_v30 }
 0x65e   : > { %v4057_v51 = vpop.xlane.xlu1 %4056 }
 0x65f   : > { %22810 = vst [vmem:[#allocation88_spill] sm:$0xff] %v16761_v18  ;;  %v4058_v21 = vcvt.f32.s32 %v4057_v51  ;;  %14491 = vmatpush1.bf16.xpose.msk.msra.mxu0 %vm15744_vm6, %v14489_v61  ;;  %vm4205_vm7 = vcmp.eq.s32.totalorder %v15409_v42, %v16761_v18  ;;  %v4119_v61 = vcvt.f32.s32 %v16627_v32  ;;  %v4134_v32 = vcvt.f32.s32 %v16632_v54 }
 0x660   : > { %14492 = vmatprep.subr.bf16.mxu0 %v22804_v52  ;;  %v16777_v13 = vsel %vm4205_vm7, 1.0, %v22802_v17 }
 0x661   : > { %v16769_v26 = vadd.s32 %v4060_v46, %v4058_v21  ;;  %v4120_v57 = vshll.u32 %v4119_v61, 16 }
 0x662   : > { %v4072_v34 = vpop.xlane.xlu1 %4071 }
 0x663   : > { %22811 = vst [vmem:[#allocation89_spill] sm:$0xff] %v16769_v26  ;;  %v4073_v3 = vcvt.f32.s32 %v4072_v34  ;;  %vm4206_vm8 = vcmp.eq.s32.totalorder %v15409_v42, %v16769_v26  ;;  %v22871_v26 = vld [vmem:[#allocation58_spill] sm:$0xff] }
 0x664   : > { %v16780_v14 = vsel %vm4206_vm8, 1.0, %v22802_v17 }
 0x665   : > { %v16782_v16 = vadd.s32 %v4075_v0, %v4073_v3  ;;  %v14493_v31 = vpack.c.bf16 %v16780_v14, %v16777_v13 }
 0x666   : > { %v4087_v20 = vpop.xlane.xlu1 %4086 }
 0x667   : > { %22812 = vst [vmem:[#allocation90_spill] sm:$0xff] %v16782_v16  ;;  %v4088_v7 = vcvt.f32.s32 %v4087_v20  ;;  %14495 = vmatpush1.bf16.xpose.msk.msra.mxu0 %vm15744_vm6, %v14493_v31  ;;  %vm4207_vm9 = vcmp.eq.s32.totalorder %v15409_v42, %v16782_v16 }
 0x668   : > { %14496 = vmatprep.subr.bf16.mxu0 %v22804_v52  ;;  %v16798_v47 = vsel %vm4207_vm9, 1.0, %v22802_v17  ;;  %vm3478_vm9 = vcmask 179200  }
 0x669   : > { %v16790_v41 = vadd.s32 %v4090_v62, %v4088_v7  ;;  %v4135_v62 = vshll.u32 %v4134_v32, 16 }
 0x66a   : > { %v4102_v19 = vpop.xlane.xlu1 %4101 }
 0x66b   : > { %22813 = vst [vmem:[#allocation91_spill] sm:$0xff] %v16790_v41  ;;  %v4103_v51 = vcvt.f32.s32 %v4102_v19  ;;  %vm4208_vm10 = vcmp.eq.s32.totalorder %v15409_v42, %v16790_v41  ;;  %v22869_v41 = vld [vmem:[#allocation55_spill] sm:$0xff] }
 0x66c   : > { %v16801_v46 = vsel %vm4208_vm10, 1.0, %v22802_v17 }
 0x66d   : > { %v16803_v23 = vadd.s32 %v4105_v24, %v4103_v51  ;;  %v14497_v21 = vpack.c.bf16 %v16801_v46, %v16798_v47 }
 0x66e   : > { %v4117_v34 = vpop.xlane.xlu1 %4116  ;;  %v1505_v0 = vpop.trf.xlu0 }
 0x66f   : > { %22814 = vst [vmem:[#allocation92_spill] sm:$0xff] %v16803_v23  ;;  %v4118_v3 = vcvt.f32.s32 %v4117_v34  ;;  %13192 = vmatmul.mubr.msk.f32.vlgmr.msra.gmra.mrb[38].mxu1 %vm833_vm4, %v1505_v0  ;;  %14499 = vmatpush1.bf16.xpose.msk.msra.mxu0 %vm15744_vm6, %v14497_v21  ;;  %vm4209_vm11 = vcmp.eq.s32.totalorder %v15409_v42, %v16803_v23  ;;  %v4150_v21 = vshll.u32 %v4149_v59, 16  ;;  %v17283_v23 = vld [vmem:[%s22361_s2 + $0x2] ss:$0 sm:$0xff] }
 0x670   : > { %14466 = vmatpush3.bf16.msra.mxu1 %v15683_v10  ;;  %1603 = vmatprep.mubr.f32.mxu1 %v22802_v17  ;;  %v16826_v10 = vsel %vm4209_vm11, 1.0, %v22802_v17 }
 0x671   : > { %v16813_v31 = vadd.s32 %v4120_v57, %v4118_v3  ;;  %14467 = vmatprep.subr.bf16.mxu1 %v22804_v52  ;;  %14500 = vmatprep.subr.bf16.mxu0 %v22804_v52  ;;  %v4179_v3 = vcvt.f32.s32 %v16650_v44 }
 0x672   : > { %v4132_v54 = vpop.xlane.xlu1 %4131  ;;  %v1506_v20 = vpop.trf.xlu0 }
 0x673   : > { %22815 = vst [vmem:[#allocation93_spill] sm:$0xff] %v16813_v31  ;;  %v4133_v7 = vcvt.f32.s32 %v4132_v54  ;;  %13193 = vmatmul.mubr.msk.f32.gmra.mrb[40].mxu1 %vm833_vm4, %v1506_v20  ;;  %vm4210_vm12 = vcmp.eq.s32.totalorder %v15409_v42, %v16813_v31  ;;  %v22867_v31 = vld [vmem:[#allocation56_spill] sm:$0xff] }
 0x674   : > { %14469 = vmatpush3.bf16.msra.mxu1 %v15695_v49  ;;  %1609 = vmatprep.mubr.f32.mxu1 %v22802_v17  ;;  %v16829_v19 = vsel %vm4210_vm12, 1.0, %v22802_v17  ;;  %v4164_v49 = vcvt.f32.s32 %v16642_v9 }
 0x675   : > { %v16831_v24 = vadd.s32 %v4135_v62, %v4133_v7  ;;  %14470 = vmatprep.subr.bf16.mxu1 %v22804_v52  ;;  %v14501_v30 = vpack.c.bf16 %v16829_v19, %v16826_v10  ;;  %v13322_v7 = vld [vmem:[%s22726_s1 + $0x88] sm:$0xff] }
 0x676   : > { %v4147_v61 = vpop.xlane.xlu1 %4146  ;;  %v1507_v51 = vpop.trf.xlu0  ;;  %v4165_v32 = vshll.u32 %v4164_v49, 16 }
 0x677   : > { %22816 = vst [vmem:[#allocation94_spill] sm:$0xff] %v16831_v24  ;;  %v4148_v34 = vcvt.f32.s32 %v4147_v61  ;;  %13194 = vmatmul.mubr.msk.f32.gmra.mrb[42].mxu1 %vm833_vm4, %v1507_v51  ;;  %14503 = vmatpush1.bf16.xpose.msk.msra.mxu0 %vm15744_vm6, %v14501_v30  ;;  %vm4211_vm13 = vcmp.eq.s32.totalorder %v15409_v42, %v16831_v24  ;;  %v4180_v30 = vshll.u32 %v4179_v3, 16  ;;  %v4194_v51 = vcvt.f32.s32 %v16658_v29  ;;  %v13324_v3 = vld [vmem:[%s22726_s1 + $0x98] sm:$0xff] }
 0x678   : > { %14472 = vmatpush3.bf16.msra.mxu1 %v15707_v58  ;;  %1615 = vmatprep.mubr.f32.mxu1 %v22802_v17  ;;  %v16856_v58 = vsel %vm4211_vm13, 1.0, %v22802_v17 }
 0x679   : > { %v16842_v0 = vadd.s32 %v4150_v21, %v4148_v34  ;;  %14473 = vmatprep.subr.bf16.mxu1 %v22804_v52  ;;  %14504 = vmatprep.subr.bf16.mxu0 %v22804_v52 }
 0x67a   : > { %v4162_v9 = vpop.xlane.xlu1 %4161  ;;  %v1508_v57 = vpop.trf.xlu0 }
 0x67b   : > { %22817 = vst [vmem:[#allocation95_spill] sm:$0xff] %v16842_v0  ;;  %v4163_v54 = vcvt.f32.s32 %v4162_v9  ;;  %13195 = vmatmul.mubr.msk.f32.gmra.mrb[44].mxu1 %vm833_vm4, %v1508_v57  ;;  %vm4212_vm14 = vcmp.eq.s32.totalorder %v15409_v42, %v16842_v0  ;;  %v4195_v57 = vshll.u32 %v4194_v51, 16  ;;  %v22865_v0 = vld [vmem:[#allocation53_spill] sm:$0xff] }
 0x67c   : > { %14475 = vmatpush3.bf16.msra.mxu1 %v15719_v63  ;;  %14035 = vmatprep.mubr.msk.f32.mxu1 %vm14914_vm2, %v22802_v17  ;;  %v16859_v20 = vsel %vm4212_vm14, 1.0, %v22802_v17  ;;  %v13321_v63 = vld [vmem:[%s22726_s1 + $0x80] sm:$0xff] }
 0x67d   : > { %v16861_v62 = vadd.s32 %v4165_v32, %v4163_v54  ;;  %v14505_v44 = vpack.c.bf16 %v16859_v20, %v16856_v58  ;;  %14512 = vmatprep.subr.bf16.mxu1 %v22804_v52  ;;  %v16884_v49 = vpack.c.bf16 %v13322_v7, %v13321_v63 }
 0x67e   : > { %v4177_v59 = vpop.xlane.xlu1 %4176 }
 0x67f   : > { %22818 = vst [vmem:[#allocation96_spill] sm:$0xff] %v16861_v62  ;;  %v4178_v61 = vcvt.f32.s32 %v4177_v59  ;;  %14036 = vmatmul.mubr.msk.f32.vlgmr.msra.gmra.mrb[46].mxu1 %vm833_vm4, %v16693_v1  ;;  %14507 = vmatpush1.bf16.xpose.msk.msra.mxu0 %vm15744_vm6, %v14505_v44  ;;  %vm4213_vm15 = vcmp.eq.s32.totalorder %v15409_v42, %v16861_v62  ;;  %v13325_v59 = vld [vmem:[%s22726_s1 + $0xa0] sm:$0xff]  ;;  %v22861_v62 = vld [vmem:[#allocation51_spill] sm:$0xff] }
 0x680   : > { %14038 = vmatprep.mubr.msk.f32.mxu1 %vm14914_vm2, %v22802_v17  ;;  %14508 = vmatprep.subr.bf16.mxu0 %v22804_v52  ;;  %v13248_v29 = vsel %vm4213_vm15, 1.0, %v22802_v17 }
 0x681   : > { %v16880_v21 = vadd.s32 %v4180_v30, %v4178_v61 }
 0x682   : > { %v4192_v34 = vpop.xlane.xlu1 %4191 }
 0x683   : > { %22819 = vst [vmem:[#allocation97_spill] sm:$0xff] %v16880_v21  ;;  %v4193_v9 = vcvt.f32.s32 %v4192_v34  ;;  %14039 = vmatmul.mubr.msk.f32.gmra.mrb[48].mxu1 %vm833_vm4, %v16696_v33  ;;  %vm4214_vm7 = vcmp.eq.s32.totalorder %v15409_v42, %v16880_v21  ;;  %v13323_v33 = vld [vmem:[%s22726_s1 + $0x90] sm:$0xff] }
 0x684   : > { %14041 = vmatprep.mubr.msk.f32.mxu1 %vm14914_vm2, %v22802_v17  ;;  %v13249_v1 = vsel %vm4214_vm7, 1.0, %v22802_v17  ;;  %v16913_v44 = vpack.c.bf16 %v13324_v3, %v13323_v33  ;;  %v22863_v21 = vld [vmem:[#allocation54_spill] sm:$0xff] }
 0x685   : > { %v14509_v32 = vpack.c.bf16 %v13249_v1, %v13248_v29  ;;  %14515 = vmatpush3.bf16.xpose.msk.msra.mxu1 %vm15035_vm1, %v16884_v49  ;;  %v16904_v54 = vadd.s32 %v4195_v57, %v4193_v9 }
 0x686   : > { %14516 = vmatprep.subr.bf16.mxu1 %v22804_v52 }
 0x687   : > { %22820 = vst [vmem:[#allocation98_spill] sm:$0xff] %v16904_v54  ;;  %14042 = vmatmul.mubr.msk.f32.gmra.mrb[50].mxu1 %vm833_vm4, %v16714_v12  ;;  %14511 = vmatpush1.bf16.xpose.msk.msra.mxu0 %vm15744_vm6, %v14509_v32  ;;  %vm4215_vm8 = vcmp.eq.s32.totalorder %v15409_v42, %v16904_v54  ;;  %v22859_v54 = vld [vmem:[#allocation52_spill] sm:$0xff] }
 0x688   : > { %14044 = vmatprep.mubr.msk.f32.mxu1 %vm14914_vm2, %v22802_v17  ;;  %4551 = vmatprep.subr.mxu0 %v22802_v17  ;;  %v13250_v12 = vsel %vm4215_vm8, 1.0, %v22802_v17 }
 0x68b   : > { %14045 = vmatmul.mubr.msk.f32.gmra.mrb[52].mxu1 %vm833_vm4, %v16717_v56  ;;  %v13326_v56 = vld [vmem:[%s22726_s1 + $0xa8] sm:$0xff] }
 0x68c   : > { %14047 = vmatprep.mubr.msk.f32.mxu1 %vm14914_vm2, %v22802_v17  ;;  %v16938_v63 = vpack.c.bf16 %v13326_v56, %v13325_v59 }
 0x68d   : > { %14519 = vmatpush3.bf16.xpose.msk.msra.mxu1 %vm15035_vm1, %v16913_v44 }
 0x68e   : > { %14520 = vmatprep.subr.bf16.mxu1 %v22804_v52 }
 0x68f   : > { %14048 = vmatmul.mubr.msk.f32.gmra.mrb[54].mxu1 %vm833_vm4, %v16735_v45  ;;  %13288 = vmatpush1.xpose.msk.msra.mxu0 %vm833_vm4, %v13250_v12  ;;  %v13327_v45 = vld [vmem:[%s22726_s1 + $0xb0] sm:$0xff] }
 0x690   : > { %14050 = vmatprep.mubr.msk.f32.mxu1 %vm14914_vm2, %v22802_v17  ;;  %14528 = vmatprep.subr.bf16.mxu0 %v22804_v52 }
 0x693   : > { %14051 = vmatmul.mubr.msk.f32.gmra.mrb[56].mxu1 %vm833_vm4, %v16738_v37  ;;  %v13328_v37 = vld [vmem:[%s22726_s1 + $0xb8] sm:$0xff] }
 0x694   : > { %14053 = vmatprep.mubr.msk.f32.mxu1 %vm14914_vm2, %v22802_v17 }
 0x695   : > { %14523 = vmatpush3.bf16.xpose.msk.msra.mxu1 %vm15035_vm1, %v16938_v63 }
 0x696   : > { %14524 = vmatprep.subr.bf16.mxu1 %v22804_v52 }
 0x697   : > { %14054 = vmatmul.mubr.msk.f32.gmra.mrb[58].mxu1 %vm833_vm4, %v16756_v43  ;;  %v17000_v43 = vpack.c.bf16 %v13328_v37, %v13327_v45 }
 0x698   : > { %14056 = vmatprep.mubr.msk.f32.mxu1 %vm14914_vm2, %v22802_v17 }
 0x69b   : > { %14057 = vmatmul.mubr.msk.f32.gmra.mrb[60].mxu1 %vm833_vm4, %v16759_v5 }
 0x69c   : > { %14059 = vmatprep.mubr.msk.f32.mxu1 %vm14914_vm2, %v22802_v17 }
 0x69d   : > { %14527 = vmatpush3.bf16.xpose.msk.msra.mxu1 %vm15035_vm1, %v17000_v43 }
 0x69e   : > { %14540 = vmatprep.subr.bf16.mxu1 %v22804_v52 }
 0x69f   : > { %14060 = vmatmul.mubr.msk.f32.gmra.mrb[62].mxu1 %vm833_vm4, %v16777_v13 }
 0x6a0   : > { %14062 = vmatprep.mubr.msk.f32.mxu1 %vm14914_vm2, %v22802_v17 }
 0x6a3   : > { %14063 = vmatmul.mubr.msk.f32.gmra.mrb[64].mxu1 %vm833_vm4, %v16780_v14 }
 0x6a4   : > { %14065 = vmatprep.mubr.msk.f32.mxu1 %vm14914_vm2, %v22802_v17 }
 0x6a7   : > { %14066 = vmatmul.mubr.msk.f32.gmra.mrb[66].mxu1 %vm833_vm4, %v16798_v47 }
 0x6a8   : > { %14068 = vmatprep.mubr.msk.f32.mxu1 %vm14914_vm2, %v22802_v17 }
 0x6ab   : > { %14069 = vmatmul.mubr.msk.f32.gmra.mrb[68].mxu1 %vm833_vm4, %v16801_v46 }
 0x6ac   : > { %14071 = vmatprep.mubr.msk.f32.mxu1 %vm14914_vm2, %v22802_v17 }
 0x6af   : > { %14072 = vmatmul.mubr.msk.f32.gmra.mrb[70].mxu1 %vm833_vm4, %v16826_v10 }
 0x6b0   : > { %14074 = vmatprep.mubr.msk.f32.mxu1 %vm14914_vm2, %v22802_v17 }
 0x6b3   : > { %14075 = vmatmul.mubr.msk.f32.gmra.mrb[72].mxu1 %vm833_vm4, %v16829_v19 }
 0x6b4   : > { %14077 = vmatprep.mubr.msk.f32.mxu1 %vm14914_vm2, %v22802_v17 }
 0x6b7   : > { %14078 = vmatmul.mubr.msk.f32.gmra.mrb[74].mxu1 %vm833_vm4, %v16856_v58 }
 0x6b8   : > { %14080 = vmatprep.mubr.msk.f32.mxu1 %vm14914_vm2, %v22802_v17 }
 0x6bb   : > { %14081 = vmatmul.mubr.msk.f32.gmra.mrb[76].mxu1 %vm833_vm4, %v16859_v20 }
 0x6bc   : > { %14083 = vmatprep.mubr.msk.f32.mxu1 %vm14914_vm2, %v22802_v17 }
 0x6bf   : > { %14084 = vmatmul.mubr.msk.f32.gmra.mrb[78].mxu1 %vm833_vm4, %v13248_v29 }
 0x6c0   : > { %14086 = vmatprep.mubr.msk.f32.mxu1 %vm14914_vm2, %v22802_v17 }
 0x6c3   : > { %14087 = vmatmul.mubr.msk.f32.gmra.mrb[80].mxu1 %vm833_vm4, %v13249_v1 }
 0x6c4   : > { %14089 = vmatprep.mubr.msk.f32.mxu1 %vm14914_vm2, %v22802_v17 }
 0x6c7   : > { %14090 = vmatmul.mubr.msk.f32.gmra.mrb[82].mxu1 %vm833_vm4, %v13250_v12 }
 0x6c8   : > { %14108 = vmatprep.mubr.msk.f32.mxu1 %vm14914_vm2, %v22802_v17 }
 0x742   : > { %v1599_v5 = vpop.f32.mrb[38].mxu1 }
 0x743   : > { %3477 = vst [vmem:[%s17010_s30] sm:$0xff] %v1599_v5  ;;  %v1601_v13 = vpop.f32.mrb[39].mxu1 }
 0x744   : > { %3479 = vst.msk [vmem:[%s17010_s30 + $0x8] sm:$0xff] %vm3478_vm9, %v1601_v13 }
 0x746   : > { %v1605_v14 = vpop.f32.mrb[40].mxu1 }
 0x747   : > { %3480 = vst [vmem:[%s17010_s30 + $0x10] sm:$0xff] %v1605_v14  ;;  %v1607_v47 = vpop.f32.mrb[41].mxu1 }
 0x748   : > { %3481 = vst.msk [vmem:[%s17010_s30 + $0x18] sm:$0xff] %vm3478_vm9, %v1607_v47 }
 0x74a   : > { %v1611_v46 = vpop.f32.mrb[42].mxu1 }
 0x74b   : > { %3482 = vst [vmem:[%s17010_s30 + $0x20] sm:$0xff] %v1611_v46  ;;  %v1613_v10 = vpop.f32.mrb[43].mxu1  ;;  %v22823_v46 = vld [vmem:[#allocation34_spill] sm:$0xff] }
 0x74c   : > { %3483 = vst.msk [vmem:[%s17010_s30 + $0x28] sm:$0xff] %vm3478_vm9, %v1613_v10  ;;  %v22825_v10 = vld [vmem:[#allocation33_spill] sm:$0xff] }
 0x74e   : > { %v1617_v19 = vpop.f32.mrb[44].mxu1 }
 0x74f   : > { %3484 = vst [vmem:[%s17010_s30 + $0x30] sm:$0xff] %v1617_v19  ;;  %v1619_v58 = vpop.f32.mrb[45].mxu1 }
 0x750   : > { %3485 = vst.msk [vmem:[%s17010_s30 + $0x38] sm:$0xff] %vm3478_vm9, %v1619_v58 }
 0x752   : > { %v4377_v20 = vpop.f32.mrb[46].mxu1 }
 0x753   : > { %v17025_v7 = vsub.f32 %v15934_v6, %v4377_v20  ;;  %v17028_v30 = vadd.f32 %v4377_v20, %v15930_v38  ;;  %v14037_v61 = vpop.f32.mrb[47].mxu1 }
 0x755   : > { %14109 = vmatmul.mubr.msk.f32.vlgmr.msra.gmra.mrb[84].mxu1 %vm463_vm0, %v17025_v7  ;;  %v4623_v51 = vmul.f32 %v17025_v7, %v17025_v7 }
 0x756   : > { %v4382_v34 = vpop.f32.mrb[48].mxu1  ;;  %14111 = vmatprep.mubr.msk.f32.mxu1 %vm14914_vm2, %v22802_v17 }
 0x757   : > { %v17037_v9 = vsub.f32 %v15946_v15, %v4382_v34  ;;  %v17040_v6 = vadd.f32 %v4382_v34, %v15940_v36  ;;  %v14040_v29 = vpop.f32.mrb[49].mxu1  ;;  %v4642_v38 = vsel %vm463_vm0, %v4623_v51, 0.0  ;;  %v22827_v51 = vld [vmem:[#allocation36_spill] sm:$0xff] }
 0x758   : > { %4643 = vadd.xlane.f32.xlu1 %v4642_v38  ;;  %v22829_v29 = vld [vmem:[#allocation35_spill] sm:$0xff] }
 0x759   : > { %14112 = vmatmul.mubr.msk.f32.gmra.mrb[86].mxu1 %vm463_vm0, %v17037_v9  ;;  %v4624_v1 = vmul.f32 %v17037_v9, %v17037_v9 }
 0x75a   : > { %v4387_v57 = vpop.f32.mrb[50].mxu1  ;;  %14114 = vmatprep.mubr.msk.f32.mxu1 %vm14914_vm2, %v22802_v17 }
 0x75b   : > { %v17050_v15 = vsub.f32 %v15959_v8, %v4387_v57  ;;  %v17053_v36 = vadd.f32 %v4387_v57, %v15953_v53  ;;  %v14043_v32 = vpop.f32.mrb[51].mxu1  ;;  %v4645_v33 = vsel %vm463_vm0, %v4624_v1, 0.0 }
 0x75c   : > { %4646 = vadd.xlane.f32.xlu1 %v4645_v33 }
 0x75d   : > { %14115 = vmatmul.mubr.msk.f32.gmra.mrb[88].mxu1 %vm463_vm0, %v17050_v15  ;;  %v4625_v3 = vmul.f32 %v17050_v15, %v17050_v15 }
 0x75e   : > { %v4392_v12 = vpop.f32.mrb[52].mxu1  ;;  %14117 = vmatprep.mubr.msk.f32.mxu1 %vm14914_vm2, %v22802_v17 }
 0x75f   : > { %v17063_v8 = vsub.f32 %v15972_v60, %v4392_v12  ;;  %v17066_v53 = vadd.f32 %v4392_v12, %v15966_v28  ;;  %v14046_v59 = vpop.f32.mrb[53].mxu1  ;;  %v4648_v56 = vsel %vm463_vm0, %v4625_v3, 0.0  ;;  %v22831_v3 = vld [vmem:[#allocation38_spill] sm:$0xff] }
 0x760   : > { %4649 = vadd.xlane.f32.xlu1 %v4648_v56  ;;  %v22833_v59 = vld [vmem:[#allocation37_spill] sm:$0xff] }
 0x761   : > { %14118 = vmatmul.mubr.msk.f32.gmra.mrb[90].mxu1 %vm463_vm0, %v17063_v8  ;;  %v4626_v45 = vmul.f32 %v17063_v8, %v17063_v8 }
 0x762   : > { %v4397_v37 = vpop.f32.mrb[54].mxu1  ;;  %14120 = vmatprep.mubr.msk.f32.mxu1 %vm14914_vm2, %v22802_v17 }
 0x763   : > { %v17076_v60 = vsub.f32 %v15985_v11, %v4397_v37  ;;  %v17079_v28 = vadd.f32 %v4397_v37, %v15979_v22  ;;  %v14049_v5 = vpop.f32.mrb[55].mxu1  ;;  %v4651_v13 = vsel %vm463_vm0, %v4626_v45, 0.0 }
 0x764   : > { %4652 = vadd.xlane.f32.xlu1 %v4651_v13 }
 0x765   : > { %22821 = vst [vmem:[#allocation99_spill] sm:$0xff] %v17076_v60  ;;  %22822 = vst [vmem:[#allocation100_spill] sm:$0xff] %v17079_v28  ;;  %14121 = vmatmul.mubr.msk.f32.gmra.mrb[92].mxu1 %vm463_vm0, %v17076_v60  ;;  %v4627_v14 = vmul.f32 %v17076_v60, %v17076_v60 }
 0x766   : > { %v4402_v47 = vpop.f32.mrb[56].mxu1  ;;  %14123 = vmatprep.mubr.msk.f32.mxu1 %vm14914_vm2, %v22802_v17 }
 0x767   : > { %v17089_v11 = vsub.f32 %v22823_v46, %v4402_v47  ;;  %v17092_v22 = vadd.f32 %v4402_v47, %v22825_v10  ;;  %v14052_v19 = vpop.f32.mrb[57].mxu1  ;;  %v4654_v58 = vsel %vm463_vm0, %v4627_v14, 0.0  ;;  %v22835_v14 = vld [vmem:[#allocation40_spill] sm:$0xff]  ;;  %v22837_v46 = vld [vmem:[#allocation39_spill] sm:$0xff] }
 0x768   : > { %4655 = vadd.xlane.f32.xlu1 %v4654_v58 }
 0x769   : > { %22824 = vst [vmem:[#allocation34_spill] sm:$0xff] %v17089_v11  ;;  %22826 = vst [vmem:[#allocation33_spill] sm:$0xff] %v17092_v22  ;;  %14124 = vmatmul.mubr.msk.f32.gmra.mrb[94].mxu1 %vm463_vm0, %v17089_v11  ;;  %v4628_v20 = vmul.f32 %v17089_v11, %v17089_v11 }
 0x76a   : > { %v4407_v61 = vpop.f32.mrb[58].mxu1  ;;  %14126 = vmatprep.mubr.msk.f32.mxu1 %vm14914_vm2, %v22802_v17 }
 0x76b   : > { %v17102_v34 = vsub.f32 %v22827_v51, %v4407_v61  ;;  %v17105_v38 = vadd.f32 %v4407_v61, %v22829_v29  ;;  %v14055_v1 = vpop.f32.mrb[59].mxu1  ;;  %v4657_v57 = vsel %vm463_vm0, %v4628_v20, 0.0  ;;  %v22839_v51 = vld [vmem:[#allocation42_spill] sm:$0xff] }
 0x76c   : > { %4658 = vadd.xlane.f32.xlu1 %v4657_v57  ;;  %v22841_v1 = vld [vmem:[#allocation41_spill] sm:$0xff] }
 0x76d   : > { %22828 = vst [vmem:[#allocation36_spill] sm:$0xff] %v17102_v34  ;;  %22830 = vst [vmem:[#allocation35_spill] sm:$0xff] %v17105_v38  ;;  %14127 = vmatmul.mubr.msk.f32.gmra.mrb[96].mxu1 %vm463_vm0, %v17102_v34  ;;  %v4629_v32 = vmul.f32 %v17102_v34, %v17102_v34 }
 0x76e   : > { %v4412_v33 = vpop.f32.mrb[60].mxu1  ;;  %14129 = vmatprep.mubr.msk.f32.mxu1 %vm14914_vm2, %v22802_v17 }
 0x76f   : > { %v17115_v12 = vsub.f32 %v22831_v3, %v4412_v33  ;;  %v17118_v56 = vadd.f32 %v4412_v33, %v22833_v59  ;;  %v14058_v45 = vpop.f32.mrb[61].mxu1  ;;  %v4660_v37 = vsel %vm463_vm0, %v4629_v32, 0.0 }
 0x770   : > { %4661 = vadd.xlane.f32.xlu1 %v4660_v37  ;;  %v22843_v45 = vld [vmem:[#allocation44_spill] sm:$0xff] }
 0x771   : > { %22832 = vst [vmem:[#allocation38_spill] sm:$0xff] %v17115_v12  ;;  %22834 = vst [vmem:[#allocation37_spill] sm:$0xff] %v17118_v56  ;;  %14130 = vmatmul.mubr.msk.f32.gmra.mrb[98].mxu1 %vm463_vm0, %v17115_v12  ;;  %v4630_v5 = vmul.f32 %v17115_v12, %v17115_v12 }
 0x772   : > { %v4417_v13 = vpop.f32.mrb[62].mxu1  ;;  %14132 = vmatprep.mubr.msk.f32.mxu1 %vm14914_vm2, %v22802_v17 }
 0x773   : > { %v17128_v47 = vsub.f32 %v22835_v14, %v4417_v13  ;;  %v17131_v10 = vadd.f32 %v4417_v13, %v22837_v46  ;;  %v14061_v19 = vpop.f32.mrb[63].mxu1  ;;  %v4663_v58 = vsel %vm463_vm0, %v4630_v5, 0.0  ;;  %v22845_v5 = vld [vmem:[#allocation43_spill] sm:$0xff] }
 0x774   : > { %4664 = vadd.xlane.f32.xlu0 %v4663_v58 }
 0x775   : > { %22836 = vst [vmem:[#allocation40_spill] sm:$0xff] %v17128_v47  ;;  %22838 = vst [vmem:[#allocation39_spill] sm:$0xff] %v17131_v10  ;;  %14133 = vmatmul.mubr.msk.f32.gmra.mrb[100].mxu1 %vm463_vm0, %v17128_v47  ;;  %v4631_v20 = vmul.f32 %v17128_v47, %v17128_v47 }
 0x776   : > { %v4422_v61 = vpop.f32.mrb[64].mxu1  ;;  %14135 = vmatprep.mubr.msk.f32.mxu1 %vm14914_vm2, %v22802_v17 }
 0x777   : > { %v17141_v29 = vsub.f32 %v22839_v51, %v4422_v61  ;;  %v17144_v57 = vadd.f32 %v4422_v61, %v22841_v1  ;;  %v14064_v32 = vpop.f32.mrb[65].mxu1  ;;  %v4666_v33 = vsel %vm463_vm0, %v4631_v20, 0.0  ;;  %v22847_v20 = vld [vmem:[#allocation46_spill] sm:$0xff]  ;;  %v22849_v51 = vld [vmem:[#allocation45_spill] sm:$0xff] }
 0x778   : > { %4667 = vadd.xlane.f32.xlu1 %v4666_v33 }
 0x779   : > { %22840 = vst [vmem:[#allocation42_spill] sm:$0xff] %v17141_v29  ;;  %22842 = vst [vmem:[#allocation41_spill] sm:$0xff] %v17144_v57  ;;  %14136 = vmatmul.mubr.msk.f32.gmra.mrb[102].mxu1 %vm463_vm0, %v17141_v29  ;;  %v4632_v3 = vmul.f32 %v17141_v29, %v17141_v29 }
 0x77a   : > { %v4427_v59 = vpop.f32.mrb[66].mxu1  ;;  %14138 = vmatprep.mubr.msk.f32.mxu1 %vm14914_vm2, %v22802_v17 }
 0x77b   : > { %v17154_v37 = vsub.f32 %v22843_v45, %v4427_v59  ;;  %v17157_v13 = vadd.f32 %v4427_v59, %v22845_v5  ;;  %v14067_v14 = vpop.f32.mrb[67].mxu1  ;;  %v4669_v46 = vsel %vm463_vm0, %v4632_v3, 0.0  ;;  %v22851_v45 = vld [vmem:[#allocation48_spill] sm:$0xff] }
 0x77c   : > { %4670 = vadd.xlane.f32.xlu1 %v4669_v46  ;;  %v22853_v14 = vld [vmem:[#allocation47_spill] sm:$0xff] }
 0x77d   : > { %22844 = vst [vmem:[#allocation44_spill] sm:$0xff] %v17154_v37  ;;  %22846 = vst [vmem:[#allocation43_spill] sm:$0xff] %v17157_v13  ;;  %14139 = vmatmul.mubr.msk.f32.gmra.mrb[104].mxu1 %vm463_vm0, %v17154_v37  ;;  %v4633_v19 = vmul.f32 %v17154_v37, %v17154_v37 }
 0x77e   : > { %v4432_v58 = vpop.f32.mrb[68].mxu1  ;;  %14141 = vmatprep.mubr.msk.f32.mxu1 %vm14914_vm2, %v22802_v17 }
 0x77f   : > { %v17167_v61 = vsub.f32 %v22847_v20, %v4432_v58  ;;  %v17170_v1 = vadd.f32 %v4432_v58, %v22849_v51  ;;  %v14070_v32 = vpop.f32.mrb[69].mxu1  ;;  %v4672_v33 = vsel %vm463_vm0, %v4633_v19, 0.0 }
 0x780   : > { %4673 = vadd.xlane.f32.xlu1 %v4672_v33  ;;  %v22855_v32 = vld [vmem:[#allocation50_spill] sm:$0xff] }
 0x781   : > { %22848 = vst [vmem:[#allocation46_spill] sm:$0xff] %v17167_v61  ;;  %22850 = vst [vmem:[#allocation45_spill] sm:$0xff] %v17170_v1  ;;  %14142 = vmatmul.mubr.msk.f32.gmra.mrb[106].mxu1 %vm463_vm0, %v17167_v61  ;;  %v4634_v3 = vmul.f32 %v17167_v61, %v17167_v61 }
 0x782   : > { %v4437_v59 = vpop.f32.mrb[70].mxu1  ;;  %14144 = vmatprep.mubr.msk.f32.mxu1 %vm14914_vm2, %v22802_v17 }
 0x783   : > { %v17180_v5 = vsub.f32 %v22851_v45, %v4437_v59  ;;  %v17183_v46 = vadd.f32 %v4437_v59, %v22853_v14  ;;  %v14073_v58 = vpop.f32.mrb[71].mxu1  ;;  %v4675_v19 = vsel %vm463_vm0, %v4634_v3, 0.0  ;;  %v22857_v45 = vld [vmem:[#allocation49_spill] sm:$0xff] }
 0x784   : > { %4676 = vadd.xlane.f32.xlu1 %v4675_v19 }
 0x785   : > { %22852 = vst [vmem:[#allocation48_spill] sm:$0xff] %v17180_v5  ;;  %22854 = vst [vmem:[#allocation47_spill] sm:$0xff] %v17183_v46  ;;  %14145 = vmatmul.mubr.msk.f32.gmra.mrb[108].mxu1 %vm463_vm0, %v17180_v5  ;;  %v4635_v20 = vmul.f32 %v17180_v5, %v17180_v5 }
 0x786   : > { %v4442_v51 = vpop.f32.mrb[72].mxu1  ;;  %14147 = vmatprep.mubr.msk.f32.mxu1 %vm14914_vm2, %v22802_v17 }
 0x787   : > { %v17193_v33 = vsub.f32 %v22855_v32, %v4442_v51  ;;  %v17196_v59 = vadd.f32 %v4442_v51, %v22857_v45  ;;  %v14076_v14 = vpop.f32.mrb[73].mxu1  ;;  %v4678_v3 = vsel %vm463_vm0, %v4635_v20, 0.0 }
 0x788   : > { %4679 = vadd.xlane.f32.xlu1 %v4678_v3 }
 0x789   : > { %22856 = vst [vmem:[#allocation50_spill] sm:$0xff] %v17193_v33  ;;  %22858 = vst [vmem:[#allocation49_spill] sm:$0xff] %v17196_v59  ;;  %14148 = vmatmul.mubr.msk.f32.gmra.mrb[110].mxu1 %vm463_vm0, %v17193_v33  ;;  %v4636_v58 = vmul.f32 %v17193_v33, %v17193_v33 }
 0x78a   : > { %v4447_v19 = vpop.f32.mrb[74].mxu1  ;;  %14150 = vmatprep.mubr.msk.f32.mxu1 %vm14914_vm2, %v22802_v17 }
 0x78b   : > { %v17206_v32 = vsub.f32 %v22859_v54, %v4447_v19  ;;  %v17209_v51 = vadd.f32 %v4447_v19, %v22861_v62  ;;  %v14079_v45 = vpop.f32.mrb[75].mxu1  ;;  %v4681_v20 = vsel %vm463_vm0, %v4636_v58, 0.0 }
 0x78c   : > { %4682 = vadd.xlane.f32.xlu1 %v4681_v20 }
 0x78d   : > { %22860 = vst [vmem:[#allocation52_spill] sm:$0xff] %v17206_v32  ;;  %22862 = vst [vmem:[#allocation51_spill] sm:$0xff] %v17209_v51  ;;  %14151 = vmatmul.mubr.msk.f32.gmra.mrb[112].mxu1 %vm463_vm0, %v17206_v32  ;;  %v4637_v14 = vmul.f32 %v17206_v32, %v17206_v32 }
 0x78e   : > { %v4452_v3 = vpop.f32.mrb[76].mxu1  ;;  %14153 = vmatprep.mubr.msk.f32.mxu1 %vm14914_vm2, %v22802_v17 }
 0x78f   : > { %v17219_v54 = vsub.f32 %v22863_v21, %v4452_v3  ;;  %v17222_v62 = vadd.f32 %v4452_v3, %v22865_v0  ;;  %v14082_v19 = vpop.f32.mrb[77].mxu1  ;;  %v4684_v58 = vsel %vm463_vm0, %v4637_v14, 0.0 }
 0x790   : > { %4685 = vadd.xlane.f32.xlu1 %v4684_v58 }
 0x791   : > { %22864 = vst [vmem:[#allocation54_spill] sm:$0xff] %v17219_v54  ;;  %22866 = vst [vmem:[#allocation53_spill] sm:$0xff] %v17222_v62  ;;  %14154 = vmatmul.mubr.msk.f32.gmra.mrb[114].mxu1 %vm463_vm0, %v17219_v54  ;;  %v4638_v45 = vmul.f32 %v17219_v54, %v17219_v54 }
 0x792   : > { %v4457_v20 = vpop.f32.mrb[78].mxu1  ;;  %14156 = vmatprep.mubr.msk.f32.mxu1 %vm14914_vm2, %v22802_v17 }
 0x793   : > { %v17232_v21 = vsub.f32 %v22867_v31, %v4457_v20  ;;  %v17235_v0 = vadd.f32 %v4457_v20, %v22869_v41  ;;  %v14085_v3 = vpop.f32.mrb[79].mxu1  ;;  %v4687_v14 = vsel %vm463_vm0, %v4638_v45, 0.0 }
 0x794   : > { %4688 = vadd.xlane.f32.xlu1 %v4687_v14 }
 0x795   : > { %22868 = vst [vmem:[#allocation56_spill] sm:$0xff] %v17232_v21  ;;  %22870 = vst [vmem:[#allocation55_spill] sm:$0xff] %v17235_v0  ;;  %14157 = vmatmul.mubr.msk.f32.gmra.mrb[116].mxu1 %vm463_vm0, %v17232_v21  ;;  %v4639_v19 = vmul.f32 %v17232_v21, %v17232_v21 }
 0x796   : > { %v4462_v58 = vpop.f32.mrb[80].mxu1  ;;  %14159 = vmatprep.mubr.msk.f32.mxu1 %vm14914_vm2, %v22802_v17 }
 0x797   : > { %v17245_v31 = vsub.f32 %v22871_v26, %v4462_v58  ;;  %v17248_v41 = vadd.f32 %v4462_v58, %v22873_v2  ;;  %v14088_v20 = vpop.f32.mrb[81].mxu1  ;;  %v4690_v45 = vsel %vm463_vm0, %v4639_v19, 0.0 }
 0x798   : > { %4691 = vadd.xlane.f32.xlu1 %v4690_v45 }
 0x799   : > { %22872 = vst [vmem:[#allocation58_spill] sm:$0xff] %v17245_v31  ;;  %22874 = vst [vmem:[#allocation57_spill] sm:$0xff] %v17248_v41  ;;  %14160 = vmatmul.mubr.msk.f32.gmra.mrb[118].mxu1 %vm463_vm0, %v17245_v31  ;;  %v4640_v3 = vmul.f32 %v17245_v31, %v17245_v31 }
 0x79a   : > { %v4467_v14 = vpop.f32.mrb[82].mxu1  ;;  %14162 = vmatprep.mubr.msk.f32.mxu1 %vm14914_vm2, %v22802_v17 }
 0x79b   : > { %v17258_v26 = vsub.f32 %v22875_v48, %v4467_v14  ;;  %v17261_v2 = vadd.f32 %v4467_v14, %v22877_v27  ;;  %v14091_v58 = vpop.f32.mrb[83].mxu1  ;;  %v4693_v19 = vsel %vm463_vm0, %v4640_v3, 0.0 }
 0x79c   : > { %4694 = vadd.xlane.f32.xlu1 %v4693_v19 }
 0x79d   : > { %22876 = vst [vmem:[#allocation60_spill] sm:$0xff] %v17258_v26  ;;  %22878 = vst [vmem:[#allocation59_spill] sm:$0xff] %v17261_v2  ;;  %14163 = vmatmul.mubr.msk.f32.gmra.mrb[120].mxu1 %vm463_vm0, %v17258_v26  ;;  %v4641_v20 = vmul.f32 %v17258_v26, %v17258_v26 }
 0x79e   : > { %7529 = vmatprep.mubr.f32.mxu1 %v22802_v17 }
 0x79f   : > { %v4696_v45 = vsel %vm518_vm3, %v4641_v20, 0.0 }
 0x7a0   : > { %4697 = vadd.xlane.f32.xlu1 %v4696_v45 }
 0x7e5   : > { %v17270_v48 = vpop.xlane.xlu1 %4643 }
 0x7e6   : > { %22879 = vst [vmem:[#allocation101_spill] sm:$0xff] %v17270_v48 }
 0x7e9   : > { %v17272_v27 = vpop.xlane.xlu1 %4646 }
 0x7ea   : > { %22880 = vst [vmem:[#allocation102_spill] sm:$0xff] %v17272_v27 }
 0x7ed   : > { %v17274_v14 = vpop.xlane.xlu1 %4649 }
 0x7ee   : > { %22881 = vst [vmem:[#allocation103_spill] sm:$0xff] %v17274_v14 }
 0x7f1   : > { %v17276_v3 = vpop.xlane.xlu1 %4652 }
 0x7f2   : > { %22882 = vst [vmem:[#allocation104_spill] sm:$0xff] %v17276_v3 }
 0x7f5   : > { %v17278_v58 = vpop.xlane.xlu1 %4655 }
 0x7f6   : > { %22883 = vst [vmem:[#allocation105_spill] sm:$0xff] %v17278_v58 }
 0x7f9   : > { %v17286_v45 = vpop.xlane.xlu1 %4658 }
 0x7fa   : > { %22884 = vst [vmem:[#allocation106_spill] sm:$0xff] %v17286_v45 }
 0x828   : > { %v6612_v19 = vpop.f32.mrb[84].mxu1 }
 0x829   : > { %v6706_v25 = vmul.f32 2.0, %v6612_v19  ;;  %v14110_v24 = vpop.f32.mrb[85].mxu1 }
 0x82b   : > { %v6725_v20 = vsub.f32 %v6706_v25, %v17270_v48 }
 0x82c   : > { %v6617_v16 = vpop.f32.mrb[86].mxu1 }
 0x82d   : > { %v17289_v18 = vsub.f32 %v6725_v20, %v17283_v23  ;;  %v6707_v39 = vmul.f32 2.0, %v6617_v16  ;;  %v14113_v50 = vpop.f32.mrb[87].mxu1  ;;  %v17300_v20 = vpop.xlane.xlu1 %4661 }
 0x82e   : > { %22885 = vst [vmem:[#allocation107_spill] sm:$0xff] %v17300_v20 }
 0x82f   : > { %13427 = vst.msk [vmem:[%s15257_s21 + $0x130] sm:$0xff] %vm833_vm4, %v17289_v18  ;;  %v6726_v24 = vsub.f32 %v6707_v39, %v17272_v27  ;;  %v6767_v19 = vsel %vm833_vm4, %v17289_v18, -inf }
 0x830   : > { %6768 = vmax.xlane.f32.xlu0 %v6767_v19  ;;  %v6622_v35 = vpop.f32.mrb[88].mxu1 }
 0x831   : > { %v17298_v25 = vsub.f32 %v6726_v24, %v17283_v23  ;;  %v6708_v48 = vmul.f32 2.0, %v6622_v35  ;;  %v14116_v40 = vpop.f32.mrb[89].mxu1  ;;  %v17311_v35 = vpop.xlane.xlu1 %4667 }
 0x832   : > { %22886 = vst [vmem:[#allocation108_spill] sm:$0xff] %v17311_v35 }
 0x833   : > { %13428 = vst.msk [vmem:[%s15257_s21 + $0x138] sm:$0xff] %vm833_vm4, %v17298_v25  ;;  %v6727_v50 = vsub.f32 %v6708_v48, %v17274_v14  ;;  %v6770_v39 = vsel %vm833_vm4, %v17298_v25, -inf }
 0x834   : > { %6771 = vmax.xlane.f32.xlu1 %v6770_v39  ;;  %v6627_v16 = vpop.f32.mrb[90].mxu1 }
 0x835   : > { %v17309_v19 = vsub.f32 %v6727_v50, %v17283_v23  ;;  %v6709_v24 = vmul.f32 2.0, %v6627_v16  ;;  %v14119_v27 = vpop.f32.mrb[91].mxu1 }
 0x837   : > { %13429 = vst.msk [vmem:[%s15257_s21 + $0x140] sm:$0xff] %vm833_vm4, %v17309_v19  ;;  %v6728_v40 = vsub.f32 %v6709_v24, %v17276_v3  ;;  %v6773_v48 = vsel %vm833_vm4, %v17309_v19, -inf  ;;  %v17328_v24 = vpop.xlane.xlu1 %4670 }
 0x838   : > { %6774 = vmax.xlane.f32.xlu0 %v6773_v48  ;;  %v6632_v14 = vpop.f32.mrb[92].mxu1  ;;  %22887 = vst [vmem:[#allocation109_spill] sm:$0xff] %v17328_v24 }
 0x839   : > { %v17320_v39 = vsub.f32 %v6728_v40, %v17283_v23  ;;  %v6710_v50 = vmul.f32 2.0, %v6632_v14  ;;  %v14122_v2 = vpop.f32.mrb[93].mxu1 }
 0x83b   : > { %13430 = vst.msk [vmem:[%s15257_s21 + $0x148] sm:$0xff] %vm833_vm4, %v17320_v39  ;;  %v6729_v27 = vsub.f32 %v6710_v50, %v17278_v58  ;;  %v6776_v16 = vsel %vm833_vm4, %v17320_v39, -inf }
 0x83c   : > { %6777 = vmax.xlane.f32.xlu1 %v6776_v16  ;;  %v6637_v3 = vpop.f32.mrb[94].mxu1 }
 0x83d   : > { %v17331_v48 = vsub.f32 %v6729_v27, %v17283_v23  ;;  %v6711_v40 = vmul.f32 2.0, %v6637_v3  ;;  %v14125_v26 = vpop.f32.mrb[95].mxu1  ;;  %v17342_v27 = vpop.xlane.xlu1 %4673 }
 0x83e   : > { %22888 = vst [vmem:[#allocation110_spill] sm:$0xff] %v17342_v27 }
 0x83f   : > { %13431 = vst.msk [vmem:[%s15257_s21 + $0x150] sm:$0xff] %vm833_vm4, %v17331_v48  ;;  %v6730_v2 = vsub.f32 %v6711_v40, %v17286_v45  ;;  %v6779_v14 = vsel %vm833_vm4, %v17331_v48, -inf }
 0x840   : > { %6780 = vmax.xlane.f32.xlu0 %v6779_v14  ;;  %v6642_v50 = vpop.f32.mrb[96].mxu1 }
 0x841   : > { %v17340_v58 = vsub.f32 %v6730_v2, %v17283_v23  ;;  %v6712_v16 = vmul.f32 2.0, %v6642_v50  ;;  %v14128_v41 = vpop.f32.mrb[97].mxu1  ;;  %v17353_v50 = vpop.xlane.xlu0 %4664 }
 0x842   : > { %22889 = vst [vmem:[#allocation111_spill] sm:$0xff] %v17353_v50 }
 0x843   : > { %13432 = vst.msk [vmem:[%s15257_s21 + $0x158] sm:$0xff] %vm833_vm4, %v17340_v58  ;;  %v6731_v26 = vsub.f32 %v6712_v16, %v17300_v20  ;;  %v6782_v3 = vsel %vm833_vm4, %v17340_v58, -inf  ;;  %v17361_v20 = vpop.xlane.xlu1 %4676 }
 0x844   : > { %6783 = vmax.xlane.f32.xlu1 %v6782_v3  ;;  %v6647_v40 = vpop.f32.mrb[98].mxu1  ;;  %22890 = vst [vmem:[#allocation112_spill] sm:$0xff] %v17361_v20 }
 0x845   : > { %v17351_v14 = vsub.f32 %v6731_v26, %v17283_v23  ;;  %v6713_v2 = vmul.f32 2.0, %v6647_v40  ;;  %v14131_v45 = vpop.f32.mrb[99].mxu1 }
 0x847   : > { %13433 = vst.msk [vmem:[%s15257_s21 + $0x160] sm:$0xff] %vm833_vm4, %v17351_v14  ;;  %v6732_v41 = vsub.f32 %v6713_v2, %v17353_v50  ;;  %v6785_v16 = vsel %vm833_vm4, %v17351_v14, -inf }
 0x848   : > { %6786 = vmax.xlane.f32.xlu0 %v6785_v16  ;;  %v6652_v3 = vpop.f32.mrb[100].mxu1 }
 0x849   : > { %v17364_v26 = vsub.f32 %v6732_v41, %v17283_v23  ;;  %v6714_v40 = vmul.f32 2.0, %v6652_v3  ;;  %v14134_v45 = vpop.f32.mrb[101].mxu1  ;;  %v17375_v41 = vpop.xlane.xlu1 %4679 }
 0x84a   : > { %22891 = vst [vmem:[#allocation113_spill] sm:$0xff] %v17375_v41 }
 0x84b   : > { %13434 = vst.msk [vmem:[%s15257_s21 + $0x168] sm:$0xff] %vm833_vm4, %v17364_v26  ;;  %v6733_v31 = vsub.f32 %v6714_v40, %v17311_v35  ;;  %v6788_v2 = vsel %vm833_vm4, %v17364_v26, -inf }
 0x84c   : > { %6789 = vmax.xlane.f32.xlu1 %v6788_v2  ;;  %v6657_v50 = vpop.f32.mrb[102].mxu1 }
 0x84d   : > { %v17373_v0 = vsub.f32 %v6733_v31, %v17283_v23  ;;  %v6715_v16 = vmul.f32 2.0, %v6657_v50  ;;  %v14137_v21 = vpop.f32.mrb[103].mxu1 }
 0x84f   : > { %13435 = vst.msk [vmem:[%s15257_s21 + $0x170] sm:$0xff] %vm833_vm4, %v17373_v0  ;;  %v6734_v3 = vsub.f32 %v6715_v16, %v17328_v24  ;;  %v6791_v40 = vsel %vm833_vm4, %v17373_v0, -inf  ;;  %v17392_v16 = vpop.xlane.xlu1 %4682 }
 0x850   : > { %6792 = vmax.xlane.f32.xlu0 %v6791_v40  ;;  %v6662_v45 = vpop.f32.mrb[104].mxu1  ;;  %22892 = vst [vmem:[#allocation114_spill] sm:$0xff] %v17392_v16 }
 0x851   : > { %v17384_v2 = vsub.f32 %v6734_v3, %v17283_v23  ;;  %v6716_v31 = vmul.f32 2.0, %v6662_v45  ;;  %v14140_v35 = vpop.f32.mrb[105].mxu1 }
 0x853   : > { %13436 = vst.msk [vmem:[%s15257_s21 + $0x178] sm:$0xff] %vm833_vm4, %v17384_v2  ;;  %v6735_v21 = vsub.f32 %v6716_v31, %v17342_v27  ;;  %v6794_v50 = vsel %vm833_vm4, %v17384_v2, -inf }
 0x854   : > { %6795 = vmax.xlane.f32.xlu1 %v6794_v50  ;;  %v6667_v24 = vpop.f32.mrb[106].mxu1 }
 0x855   : > { %v17395_v40 = vsub.f32 %v6735_v21, %v17283_v23  ;;  %v6717_v3 = vmul.f32 2.0, %v6667_v24  ;;  %v14143_v62 = vpop.f32.mrb[107].mxu1  ;;  %v17406_v21 = vpop.xlane.xlu1 %4685 }
 0x856   : > { %22893 = vst [vmem:[#allocation115_spill] sm:$0xff] %v17406_v21 }
 0x857   : > { %13437 = vst.msk [vmem:[%s15257_s21 + $0x180] sm:$0xff] %vm833_vm4, %v17395_v40  ;;  %v6736_v35 = vsub.f32 %v6717_v3, %v17361_v20  ;;  %v6797_v45 = vsel %vm833_vm4, %v17395_v40, -inf }
 0x858   : > { %6798 = vmax.xlane.f32.xlu0 %v6797_v45  ;;  %v6672_v31 = vpop.f32.mrb[108].mxu1 }
 0x859   : > { %v17404_v27 = vsub.f32 %v6736_v35, %v17283_v23  ;;  %v6718_v50 = vmul.f32 2.0, %v6672_v31  ;;  %v14146_v54 = vpop.f32.mrb[109].mxu1 }
 0x85b   : > { %13438 = vst.msk [vmem:[%s15257_s21 + $0x188] sm:$0xff] %vm833_vm4, %v17404_v27  ;;  %v6737_v62 = vsub.f32 %v6718_v50, %v17375_v41  ;;  %v6800_v24 = vsel %vm833_vm4, %v17404_v27, -inf  ;;  %v17423_v50 = vpop.xlane.xlu1 %4688 }
 0x85c   : > { %6801 = vmax.xlane.f32.xlu1 %v6800_v24  ;;  %v6677_v3 = vpop.f32.mrb[110].mxu1  ;;  %22894 = vst [vmem:[#allocation116_spill] sm:$0xff] %v17423_v50 }
 0x85d   : > { %v17415_v45 = vsub.f32 %v6737_v62, %v17283_v23  ;;  %v6719_v35 = vmul.f32 2.0, %v6677_v3  ;;  %v14149_v20 = vpop.f32.mrb[111].mxu1 }
 0x85f   : > { %13439 = vst.msk [vmem:[%s15257_s21 + $0x190] sm:$0xff] %vm833_vm4, %v17415_v45  ;;  %v6738_v54 = vsub.f32 %v6719_v35, %v17392_v16  ;;  %v6803_v31 = vsel %vm833_vm4, %v17415_v45, -inf }
 0x860   : > { %6804 = vmax.xlane.f32.xlu0 %v6803_v31  ;;  %v6682_v41 = vpop.f32.mrb[112].mxu1 }
 0x861   : > { %v17426_v24 = vsub.f32 %v6738_v54, %v17283_v23  ;;  %v6720_v62 = vmul.f32 2.0, %v6682_v41  ;;  %v14152_v51 = vpop.f32.mrb[113].mxu1  ;;  %v17437_v54 = vpop.xlane.xlu1 %4691 }
 0x862   : > { %22895 = vst [vmem:[#allocation117_spill] sm:$0xff] %v17437_v54 }
 0x863   : > { %13440 = vst.msk [vmem:[%s15257_s21 + $0x198] sm:$0xff] %vm833_vm4, %v17426_v24  ;;  %v6739_v20 = vsub.f32 %v6720_v62, %v17406_v21  ;;  %v6806_v3 = vsel %vm833_vm4, %v17426_v24, -inf }
 0x864   : > { %6807 = vmax.xlane.f32.xlu1 %v6806_v3  ;;  %v6687_v35 = vpop.f32.mrb[114].mxu1 }
 0x865   : > { %v17435_v16 = vsub.f32 %v6739_v20, %v17283_v23  ;;  %v6721_v31 = vmul.f32 2.0, %v6687_v35  ;;  %v14155_v32 = vpop.f32.mrb[115].mxu1 }
 0x867   : > { %13441 = vst.msk [vmem:[%s15257_s21 + $0x1a0] sm:$0xff] %vm833_vm4, %v17435_v16  ;;  %v6740_v51 = vsub.f32 %v6721_v31, %v17423_v50  ;;  %v6809_v41 = vsel %vm833_vm4, %v17435_v16, -inf  ;;  %v17454_v31 = vpop.xlane.xlu1 %4694 }
 0x868   : > { %6810 = vmax.xlane.f32.xlu0 %v6809_v41  ;;  %v6692_v62 = vpop.f32.mrb[116].mxu1  ;;  %22896 = vst [vmem:[#allocation118_spill] sm:$0xff] %v17454_v31 }
 0x869   : > { %v17446_v3 = vsub.f32 %v6740_v51, %v17283_v23  ;;  %v6722_v20 = vmul.f32 2.0, %v6692_v62  ;;  %v14158_v21 = vpop.f32.mrb[117].mxu1 }
 0x86b   : > { %13442 = vst.msk [vmem:[%s15257_s21 + $0x1a8] sm:$0xff] %vm833_vm4, %v17446_v3  ;;  %v6741_v32 = vsub.f32 %v6722_v20, %v17437_v54  ;;  %v6812_v35 = vsel %vm833_vm4, %v17446_v3, -inf }
 0x86c   : > { %6813 = vmax.xlane.f32.xlu1 %v6812_v35  ;;  %v6697_v50 = vpop.f32.mrb[118].mxu1 }
 0x86d   : > { %v17457_v41 = vsub.f32 %v6741_v32, %v17283_v23  ;;  %v6723_v51 = vmul.f32 2.0, %v6697_v50  ;;  %v14161_v62 = vpop.f32.mrb[119].mxu1  ;;  %v17468_v32 = vpop.xlane.xlu1 %4697 }
 0x86e   : > { %22897 = vst [vmem:[#allocation119_spill] sm:$0xff] %v17468_v32 }
 0x86f   : > { %13443 = vst.msk [vmem:[%s15257_s21 + $0x1b0] sm:$0xff] %vm833_vm4, %v17457_v41  ;;  %v6742_v21 = vsub.f32 %v6723_v51, %v17454_v31  ;;  %v6815_v20 = vsel %vm833_vm4, %v17457_v41, -inf }
 0x870   : > { %6816 = vmax.xlane.f32.xlu0 %v6815_v20  ;;  %v6702_v54 = vpop.f32.mrb[120].mxu1 }
 0x871   : > { %v17466_v59 = vsub.f32 %v6742_v21, %v17283_v23  ;;  %v6724_v35 = vmul.f32 2.0, %v6702_v54  ;;  %v14164_v33 = vpop.f32.mrb[121].mxu1 }
 0x873   : > { %13444 = vst.msk [vmem:[%s15257_s21 + $0x1b8] sm:$0xff] %vm833_vm4, %v17466_v59  ;;  %v6743_v50 = vsub.f32 %v6724_v35, %v17468_v32  ;;  %v6818_v51 = vsel %vm833_vm4, %v17466_v59, -inf }
 0x874   : > { %6819 = vmax.xlane.f32.xlu1 %v6818_v51 }
 0x875   : > { %v17477_v62 = vsub.f32 %v6743_v50, %v17283_v23 }
 0x877   : > { %13445 = vst.msk [vmem:[%s15257_s21 + $0x1c0] sm:$0x3f] %vm888_vm5, %v17477_v62  ;;  %v6821_v33 = vsel %vm888_vm5, %v17477_v62, -inf }
 0x878   : > { %6822 = vmax.xlane.f32.xlu0 %v6821_v33 }
 0x8bd   : > { %v6769_v54 = vpop.xlane.xlu0 %6768 }
 0x8be   : > { %vm6824_vm10 = vcmp.eq.f32.partialorder %v17289_v18, %v6769_v54 }
 0x8bf   : > { %v6843_v21 = vsel %vm6824_vm10, %v15409_v42, 64 }
 0x8c0   : > { %v17487_v20 = vsel %vm833_vm4, %v6843_v21, 2147483647 }
 0x8c1   : > { %v6772_v35 = vpop.xlane.xlu1 %6771  ;;  %v6864_v51 = vshra.s32 %v17487_v20, 16 }
 0x8c2   : > { %vm6825_vm11 = vcmp.eq.f32.partialorder %v17298_v25, %v6772_v35 }
 0x8c3   : > { %v6844_v23 = vsel %vm6825_vm11, %v15409_v42, 64  ;;  %v17492_v50 = vcvt.s32.f32 %v6864_v51 }
 0x8c4   : > { %v17495_v32 = vsel %vm833_vm4, %v6844_v23, 2147483647 }
 0x8c5   : > { %v6879_v33 = vshra.s32 %v17495_v32, 16  ;;  %v6775_v18 = vpop.xlane.xlu0 %6774  ;;  %6867 = vmin.xlane.f32.xlu1 %v17492_v50  ;;  %v6878_v11 = vand.u32 65535, %v17495_v32 }
 0x8c6   : > { %vm6826_vm12 = vcmp.eq.f32.partialorder %v17309_v19, %v6775_v18 }
 0x8c7   : > { %v6845_v54 = vsel %vm6826_vm12, %v15409_v42, 64  ;;  %v17501_v21 = vcvt.s32.f32 %v6879_v33  ;;  %v6880_v28 = vcvt.s32.f32 %v6878_v11 }
 0x8c8   : > { %v17504_v25 = vsel %vm833_vm4, %v6845_v54, 2147483647 }
 0x8c9   : > { %v6778_v35 = vpop.xlane.xlu1 %6777  ;;  %6882 = vmin.xlane.f32.xlu0 %v17501_v21  ;;  %v6894_v51 = vshra.s32 %v17504_v25, 16 }
 0x8ca   : > { %vm6827_vm13 = vcmp.eq.f32.partialorder %v17320_v39, %v6778_v35 }
 0x8cb   : > { %v6846_v23 = vsel %vm6827_vm13, %v15409_v42, 64  ;;  %v17510_v31 = vcvt.s32.f32 %v6894_v51 }
 0x8cc   : > { %v17513_v19 = vsel %vm833_vm4, %v6846_v23, 2147483647 }
 0x8cd   : > { %v6909_v33 = vshra.s32 %v17513_v19, 16  ;;  %v6781_v18 = vpop.xlane.xlu0 %6780  ;;  %6897 = vmin.xlane.f32.xlu1 %v17510_v31  ;;  %v6908_v32 = vand.u32 65535, %v17513_v19 }
 0x8ce   : > { %vm6828_vm14 = vcmp.eq.f32.partialorder %v17331_v48, %v6781_v18 }
 0x8cf   : > { %v6847_v54 = vsel %vm6828_vm14, %v15409_v42, 64  ;;  %v17519_v46 = vcvt.s32.f32 %v6909_v33  ;;  %v6910_v11 = vcvt.s32.f32 %v6908_v32 }
 0x8d0   : > { %v17522_v39 = vsel %vm833_vm4, %v6847_v54, 2147483647 }
 0x8d1   : > { %v6784_v35 = vpop.xlane.xlu1 %6783  ;;  %6912 = vmin.xlane.f32.xlu0 %v17519_v46  ;;  %v6924_v51 = vshra.s32 %v17522_v39, 16 }
 0x8d2   : > { %vm6829_vm15 = vcmp.eq.f32.partialorder %v17340_v58, %v6784_v35 }
 0x8d3   : > { %v6848_v23 = vsel %vm6829_vm15, %v15409_v42, 64  ;;  %v17528_v5 = vcvt.s32.f32 %v6924_v51 }
 0x8d4   : > { %v17531_v48 = vsel %vm833_vm4, %v6848_v23, 2147483647 }
 0x8d5   : > { %v6939_v33 = vshra.s32 %v17531_v48, 16  ;;  %v6787_v18 = vpop.xlane.xlu0 %6786  ;;  %6927 = vmin.xlane.f32.xlu1 %v17528_v5 }
 0x8d6   : > { %vm6830_vm7 = vcmp.eq.f32.partialorder %v17351_v14, %v6787_v18 }
 0x8d7   : > { %v6849_v54 = vsel %vm6830_vm7, %v15409_v42, 64  ;;  %v17537_v1 = vcvt.s32.f32 %v6939_v33 }
 0x8d8   : > { %v17540_v58 = vsel %vm833_vm4, %v6849_v54, 2147483647 }
 0x8d9   : > { %v6790_v35 = vpop.xlane.xlu1 %6789  ;;  %6942 = vmin.xlane.f32.xlu0 %v17537_v1  ;;  %v6954_v51 = vshra.s32 %v17540_v58, 16 }
 0x8da   : > { %vm6831_vm8 = vcmp.eq.f32.partialorder %v17364_v26, %v6790_v35 }
 0x8db   : > { %v6850_v23 = vsel %vm6831_vm8, %v15409_v42, 64  ;;  %v17546_v61 = vcvt.s32.f32 %v6954_v51 }
 0x8dc   : > { %v17549_v14 = vsel %vm833_vm4, %v6850_v23, 2147483647 }
 0x8dd   : > { %v6793_v18 = vpop.xlane.xlu0 %6792  ;;  %6957 = vmin.xlane.f32.xlu1 %v17546_v61  ;;  %v6969_v33 = vshra.s32 %v17549_v14, 16 }
 0x8de   : > { %vm6832_vm10 = vcmp.eq.f32.partialorder %v17373_v0, %v6793_v18 }
 0x8df   : > { %v6851_v54 = vsel %vm6832_vm10, %v15409_v42, 64  ;;  %v17555_v13 = vcvt.s32.f32 %v6969_v33 }
 0x8e0   : > { %v17558_v26 = vsel %vm833_vm4, %v6851_v54, 2147483647 }
 0x8e1   : > { %v6796_v35 = vpop.xlane.xlu1 %6795  ;;  %6972 = vmin.xlane.f32.xlu0 %v17555_v13  ;;  %v6984_v51 = vshra.s32 %v17558_v26, 16 }
 0x8e2   : > { %vm6833_vm11 = vcmp.eq.f32.partialorder %v17384_v2, %v6796_v35 }
 0x8e3   : > { %v6852_v23 = vsel %vm6833_vm11, %v15409_v42, 64  ;;  %v17564_v37 = vcvt.s32.f32 %v6984_v51 }
 0x8e4   : > { %v17567_v0 = vsel %vm833_vm4, %v6852_v23, 2147483647 }
 0x8e5   : > { %v6799_v18 = vpop.xlane.xlu0 %6798  ;;  %6987 = vmin.xlane.f32.xlu1 %v17564_v37  ;;  %v6999_v33 = vshra.s32 %v17567_v0, 16 }
 0x8e6   : > { %vm6834_vm12 = vcmp.eq.f32.partialorder %v17395_v40, %v6799_v18 }
 0x8e7   : > { %v6853_v54 = vsel %vm6834_vm12, %v15409_v42, 64  ;;  %v17573_v57 = vcvt.s32.f32 %v6999_v33 }
 0x8e8   : > { %v17576_v2 = vsel %vm833_vm4, %v6853_v54, 2147483647 }
 0x8e9   : > { %v6802_v35 = vpop.xlane.xlu1 %6801  ;;  %7002 = vmin.xlane.f32.xlu0 %v17573_v57  ;;  %v7014_v51 = vshra.s32 %v17576_v2, 16 }
 0x8ea   : > { %vm6835_vm13 = vcmp.eq.f32.partialorder %v17404_v27, %v6802_v35 }
 0x8eb   : > { %v6854_v23 = vsel %vm6835_vm13, %v15409_v42, 64  ;;  %v17582_v29 = vcvt.s32.f32 %v7014_v51 }
 0x8ec   : > { %v17585_v40 = vsel %vm833_vm4, %v6854_v23, 2147483647 }
 0x8ed   : > { %v6805_v18 = vpop.xlane.xlu0 %6804  ;;  %7017 = vmin.xlane.f32.xlu1 %v17582_v29  ;;  %v7029_v33 = vshra.s32 %v17585_v40, 16 }
 0x8ee   : > { %vm6836_vm14 = vcmp.eq.f32.partialorder %v17415_v45, %v6805_v18 }
 0x8ef   : > { %v6855_v54 = vsel %vm6836_vm14, %v15409_v42, 64  ;;  %v17591_v10 = vcvt.s32.f32 %v7029_v33 }
 0x8f0   : > { %v17594_v27 = vsel %vm833_vm4, %v6855_v54, 2147483647 }
 0x8f1   : > { %v6808_v35 = vpop.xlane.xlu1 %6807  ;;  %7032 = vmin.xlane.f32.xlu0 %v17591_v10  ;;  %v7044_v51 = vshra.s32 %v17594_v27, 16 }
 0x8f2   : > { %vm6837_vm15 = vcmp.eq.f32.partialorder %v17426_v24, %v6808_v35 }
 0x8f3   : > { %v6856_v23 = vsel %vm6837_vm15, %v15409_v42, 64  ;;  %v17600_v47 = vcvt.s32.f32 %v7044_v51 }
 0x8f4   : > { %v17603_v45 = vsel %vm833_vm4, %v6856_v23, 2147483647 }
 0x8f5   : > { %v6811_v18 = vpop.xlane.xlu0 %6810  ;;  %7047 = vmin.xlane.f32.xlu1 %v17600_v47  ;;  %v7059_v33 = vshra.s32 %v17603_v45, 16 }
 0x8f6   : > { %vm6838_vm7 = vcmp.eq.f32.partialorder %v17435_v16, %v6811_v18 }
 0x8f7   : > { %v6857_v54 = vsel %vm6838_vm7, %v15409_v42, 64  ;;  %v17609_v56 = vcvt.s32.f32 %v7059_v33 }
 0x8f8   : > { %v17612_v24 = vsel %vm833_vm4, %v6857_v54, 2147483647 }
 0x8f9   : > { %v6814_v35 = vpop.xlane.xlu1 %6813  ;;  %7062 = vmin.xlane.f32.xlu0 %v17609_v56  ;;  %v7074_v51 = vshra.s32 %v17612_v24, 16 }
 0x8fa   : > { %vm6839_vm8 = vcmp.eq.f32.partialorder %v17446_v3, %v6814_v35 }
 0x8fb   : > { %v6858_v23 = vsel %vm6839_vm8, %v15409_v42, 64  ;;  %v17618_v12 = vcvt.s32.f32 %v7074_v51 }
 0x8fc   : > { %v17621_v16 = vsel %vm833_vm4, %v6858_v23, 2147483647 }
 0x8fd   : > { %v6817_v18 = vpop.xlane.xlu0 %6816  ;;  %7077 = vmin.xlane.f32.xlu1 %v17618_v12  ;;  %v7089_v33 = vshra.s32 %v17621_v16, 16 }
 0x8fe   : > { %vm6840_vm10 = vcmp.eq.f32.partialorder %v17457_v41, %v6817_v18 }
 0x8ff   : > { %v6859_v54 = vsel %vm6840_vm10, %v15409_v42, 64  ;;  %v17627_v38 = vcvt.s32.f32 %v7089_v33 }
 0x900   : > { %v17630_v3 = vsel %vm833_vm4, %v6859_v54, 2147483647 }
 0x901   : > { %v6820_v35 = vpop.xlane.xlu1 %6819  ;;  %7092 = vmin.xlane.f32.xlu0 %v17627_v38  ;;  %v7104_v51 = vshra.s32 %v17630_v3, 16 }
 0x902   : > { %vm6841_vm11 = vcmp.eq.f32.partialorder %v17466_v59, %v6820_v35 }
 0x903   : > { %v6860_v23 = vsel %vm6841_vm11, %v15409_v42, 64  ;;  %v17636_v34 = vcvt.s32.f32 %v7104_v51 }
 0x904   : > { %v17639_v41 = vsel %vm833_vm4, %v6860_v23, 2147483647  ;;  %v6863_v23 = vand.u32 65535, %v17487_v20 }
 0x905   : > { %7107 = vmin.xlane.f32.xlu1 %v17636_v34  ;;  %v6823_v18 = vpop.xlane.xlu0 %6822  ;;  %v7119_v33 = vshra.s32 %v17639_v41, 16 }
 0x906   : > { %vm6842_vm12 = vcmp.eq.f32.partialorder %v17477_v62, %v6823_v18  ;;  %v6865_v18 = vcvt.s32.f32 %v6863_v23 }
 0x907   : > { %v6861_v54 = vsel %vm6842_vm12, %v15409_v42, 64  ;;  %v17645_v22 = vcvt.s32.f32 %v7119_v33 }
 0x908   : > { %v17648_v59 = vsel %vm888_vm5, %v6861_v54, 2147483647 }
 0x909   : > { %7122 = vmin.xlane.f32.xlu0 %v17645_v22  ;;  %v7134_v35 = vshra.s32 %v17648_v59, 16 }
 0x90b   : > { %v17652_v51 = vcvt.s32.f32 %v7134_v35  ;;  %v6893_v35 = vand.u32 65535, %v17504_v25  ;;  %v6923_v25 = vand.u32 65535, %v17522_v39  ;;  %v6953_v39 = vand.u32 65535, %v17540_v58 }
 0x90c   : > { %v6983_v58 = vand.u32 65535, %v17558_v26  ;;  %v7013_v26 = vand.u32 65535, %v17576_v2  ;;  %v7043_v2 = vand.u32 65535, %v17594_v27  ;;  %v7073_v27 = vand.u32 65535, %v17612_v24 }
 0x90d   : > { %7137 = vmin.xlane.f32.xlu1 %v17652_v51  ;;  %v6895_v23 = vcvt.s32.f32 %v6893_v35  ;;  %v6925_v19 = vcvt.s32.f32 %v6923_v25  ;;  %v7103_v24 = vand.u32 65535, %v17630_v3  ;;  %v7133_v3 = vand.u32 65535, %v17648_v59  ;;  %v14778_v59 = vld [vmem:[%s22726_s1 + $0x48] sm:$0xff] }
 0x952   : > { %v17657_v62 = vpop.xlane.xlu1 %6867 }
 0x953   : > { %vm6869_vm13 = vcmp.eq.f32.partialorder %v17492_v50, %v17657_v62 }
 0x954   : > { %v6870_v33 = vsel %vm6869_vm13, %v6865_v18, inf }
 0x955   : > { %6871 = vmin.xlane.f32.xlu0 %v6870_v33 }
 0x956   : > { %v17661_v54 = vpop.xlane.xlu0 %6882 }
 0x957   : > { %vm6884_vm14 = vcmp.eq.f32.partialorder %v17501_v21, %v17661_v54 }
 0x958   : > { %v6885_v60 = vsel %vm6884_vm14, %v6880_v28, inf }
 0x959   : > { %6886 = vmin.xlane.f32.xlu1 %v6885_v60  ;;  %v6938_v60 = vand.u32 65535, %v17531_v48  ;;  %v6955_v48 = vcvt.s32.f32 %v6953_v39 }
 0x95a   : > { %v17667_v20 = vpop.xlane.xlu1 %6897 }
 0x95b   : > { %vm6899_vm15 = vcmp.eq.f32.partialorder %v17510_v31, %v17667_v20  ;;  %v6940_v35 = vcvt.s32.f32 %v6938_v60 }
 0x95c   : > { %v6900_v50 = vsel %vm6899_vm15, %v6895_v23, inf  ;;  %v6968_v23 = vand.u32 65535, %v17549_v14  ;;  %v6998_v14 = vand.u32 65535, %v17567_v0  ;;  %v7028_v0 = vand.u32 65535, %v17585_v40 }
 0x95d   : > { %6901 = vmin.xlane.f32.xlu0 %v6900_v50  ;;  %v7058_v40 = vand.u32 65535, %v17603_v45  ;;  %v7088_v45 = vand.u32 65535, %v17621_v16  ;;  %v7118_v16 = vand.u32 65535, %v17639_v41 }
 0x95e   : > { %v17671_v18 = vpop.xlane.xlu0 %6912 }
 0x95f   : > { %vm6914_vm7 = vcmp.eq.f32.partialorder %v17519_v46, %v17671_v18 }
 0x960   : > { %v6915_v28 = vsel %vm6914_vm7, %v6910_v11, inf  ;;  %v6970_v11 = vcvt.s32.f32 %v6968_v23  ;;  %v7045_v23 = vcvt.s32.f32 %v7043_v2  ;;  %v14783_v2 = vld [vmem:[%s22726_s1 + $0x70] sm:$0xff] }
 0x961   : > { %6916 = vmin.xlane.f32.xlu1 %v6915_v28  ;;  %v6985_v28 = vcvt.s32.f32 %v6983_v58 }
 0x962   : > { %v17677_v21 = vpop.xlane.xlu1 %6927 }
 0x963   : > { %vm6929_vm8 = vcmp.eq.f32.partialorder %v17528_v5, %v17677_v21 }
 0x964   : > { %v6930_v31 = vsel %vm6929_vm8, %v6925_v19, inf  ;;  %v7000_v19 = vcvt.s32.f32 %v6998_v14  ;;  %v7090_v14 = vcvt.s32.f32 %v7088_v45 }
 0x965   : > { %6931 = vmin.xlane.f32.xlu0 %v6930_v31 }
 0x966   : > { %v17681_v33 = vpop.xlane.xlu0 %6942 }
 0x967   : > { %vm6944_vm10 = vcmp.eq.f32.partialorder %v17537_v1, %v17681_v33 }
 0x968   : > { %v6945_v46 = vsel %vm6944_vm10, %v6940_v35, inf  ;;  %v7015_v35 = vcvt.s32.f32 %v7013_v26 }
 0x969   : > { %6946 = vmin.xlane.f32.xlu1 %v6945_v46  ;;  %v7030_v46 = vcvt.s32.f32 %v7028_v0  ;;  %v7135_v0 = vcvt.s32.f32 %v7133_v3 }
 0x96a   : > { %v17686_v32 = vpop.xlane.xlu1 %6957 }
 0x96b   : > { %vm6959_vm11 = vcmp.eq.f32.partialorder %v17546_v61, %v17686_v32 }
 0x96c   : > { %v6960_v5 = vsel %vm6959_vm11, %v6955_v48, inf }
 0x96d   : > { %6961 = vmin.xlane.f32.xlu0 %v6960_v5 }
 0x96e   : > { %v17691_v50 = vpop.xlane.xlu0 %6972 }
 0x96f   : > { %vm6974_vm12 = vcmp.eq.f32.partialorder %v17555_v13, %v17691_v50 }
 0x970   : > { %v6975_v1 = vsel %vm6974_vm12, %v6970_v11, inf  ;;  %v7060_v11 = vcvt.s32.f32 %v7058_v40 }
 0x971   : > { %6976 = vmin.xlane.f32.xlu0 %v6975_v1  ;;  %v7075_v1 = vcvt.s32.f32 %v7073_v27 }
 0x972   : > { %v17696_v25 = vpop.xlane.xlu1 %6987 }
 0x973   : > { %vm6989_vm13 = vcmp.eq.f32.partialorder %v17564_v37, %v17696_v25 }
 0x974   : > { %v6990_v61 = vsel %vm6989_vm13, %v6985_v28, inf }
 0x975   : > { %6991 = vmin.xlane.f32.xlu0 %v6990_v61 }
 0x976   : > { %v17701_v60 = vpop.xlane.xlu0 %7002 }
 0x977   : > { %vm7004_vm14 = vcmp.eq.f32.partialorder %v17573_v57, %v17701_v60 }
 0x978   : > { %v7005_v13 = vsel %vm7004_vm14, %v7000_v19, inf  ;;  %v7105_v19 = vcvt.s32.f32 %v7103_v24 }
 0x979   : > { %7006 = vmin.xlane.f32.xlu0 %v7005_v13  ;;  %v7120_v13 = vcvt.s32.f32 %v7118_v16 }
 0x97a   : > { %v17706_v31 = vpop.xlane.xlu1 %7017 }
 0x97b   : > { %vm7019_vm15 = vcmp.eq.f32.partialorder %v17582_v29, %v17706_v31 }
 0x97c   : > { %v7020_v37 = vsel %vm7019_vm15, %v7015_v35, inf }
 0x97d   : > { %7021 = vmin.xlane.f32.xlu0 %v7020_v37  ;;  %v14781_v37 = vld [vmem:[%s22726_s1 + $0x60] sm:$0xff] }
 0x97e   : > { %v17711_v39 = vpop.xlane.xlu0 %7032 }
 0x97f   : > { %vm7034_vm7 = vcmp.eq.f32.partialorder %v17591_v10, %v17711_v39 }
 0x980   : > { %v7035_v57 = vsel %vm7034_vm7, %v7030_v46, inf  ;;  %v14782_v46 = vld [vmem:[%s22726_s1 + $0x68] sm:$0xff] }
 0x981   : > { %7036 = vmin.xlane.f32.xlu0 %v7035_v57  ;;  %v14784_v57 = vld [vmem:[%s22726_s1 + $0x78] sm:$0xff] }
 0x982   : > { %v17716_v48 = vpop.xlane.xlu1 %7047 }
 0x983   : > { %vm7049_vm8 = vcmp.eq.f32.partialorder %v17600_v47, %v17716_v48 }
 0x984   : > { %v7050_v29 = vsel %vm7049_vm8, %v7045_v23, inf  ;;  %v6874_v23 = vcvt.f32.s32 %v17657_v62  ;;  %v6919_v62 = vcvt.f32.s32 %v17671_v18 }
 0x985   : > { %7051 = vmin.xlane.f32.xlu0 %v7050_v29 }
 0x986   : > { %v17721_v5 = vpop.xlane.xlu0 %7062  ;;  %v6875_v29 = vshll.u32 %v6874_v23, 16 }
 0x987   : > { %vm7064_vm10 = vcmp.eq.f32.partialorder %v17609_v56, %v17721_v5 }
 0x988   : > { %v7065_v10 = vsel %vm7064_vm10, %v7060_v11, inf  ;;  %v6889_v11 = vcvt.f32.s32 %v17661_v54 }
 0x989   : > { %7066 = vmin.xlane.f32.xlu0 %v7065_v10 }
 0x98a   : > { %v17726_v58 = vpop.xlane.xlu1 %7077  ;;  %v6890_v45 = vshll.u32 %v6889_v11, 16 }
 0x98b   : > { %vm7079_vm11 = vcmp.eq.f32.partialorder %v17618_v12, %v17726_v58 }
 0x98c   : > { %v7080_v47 = vsel %vm7079_vm11, %v7075_v1, inf }
 0x98d   : > { %7081 = vmin.xlane.f32.xlu0 %v7080_v47  ;;  %v6904_v47 = vcvt.f32.s32 %v17667_v20 }
 0x98e   : > { %v17731_v28 = vpop.xlane.xlu0 %7092 }
 0x98f   : > { %vm7094_vm12 = vcmp.eq.f32.partialorder %v17627_v38, %v17731_v28 }
 0x990   : > { %v7095_v56 = vsel %vm7094_vm12, %v7090_v14, inf }
 0x991   : > { %7096 = vmin.xlane.f32.xlu0 %v7095_v56 }
 0x992   : > { %v17736_v61 = vpop.xlane.xlu1 %7107 }
 0x993   : > { %vm7109_vm13 = vcmp.eq.f32.partialorder %v17636_v34, %v17736_v61  ;;  %v14777_v34 = vld [vmem:[%s22726_s1 + $0x40] sm:$0xff] }
 0x994   : > { %v7110_v12 = vsel %vm7109_vm13, %v7105_v19, inf  ;;  %v6905_v19 = vshll.u32 %v6904_v47, 16 }
 0x995   : > { %7111 = vmin.xlane.f32.xlu0 %v7110_v12 }
 0x996   : > { %v17741_v26 = vpop.xlane.xlu0 %7122 }
 0x997   : > { %vm7124_vm14 = vcmp.eq.f32.partialorder %v17645_v22, %v17741_v26  ;;  %v14779_v22 = vld [vmem:[%s22726_s1 + $0x50] sm:$0xff] }
 0x998   : > { %v7125_v38 = vsel %vm7124_vm14, %v7120_v13, inf }
 0x999   : > { %7126 = vmin.xlane.f32.xlu0 %v7125_v38  ;;  %v6920_v38 = vshll.u32 %v6919_v62, 16 }
 0x99a   : > { %v17746_v35 = vpop.xlane.xlu1 %7137 }
 0x99b   : > { %vm7139_vm15 = vcmp.eq.f32.partialorder %v17652_v51, %v17746_v35  ;;  %v14780_v51 = vld [vmem:[%s22726_s1 + $0x58] sm:$0xff] }
 0x99c   : > { %4471 = vxpose.xlu1.b32.start [1/8] (short) (narrow) %v14777_v34, 32  ;;  %v7140_v41 = vsel %vm7139_vm15, %v7135_v0, inf  ;;  %v6934_v0 = vcvt.f32.s32 %v17677_v21 }
 0x99d   : > { %7141 = vmin.xlane.f32.xlu0 %v7140_v41 }
 0x9a0   : > { %4472 = vxpose.xlu1.b32.cont [2/8] (short) (narrow) %v14778_v59, 32  ;;  %v6935_v59 = vshll.u32 %v6934_v0, 16  ;;  %v7009_v0 = vcvt.f32.s32 %v17701_v60 }
 0x9a4   : > { %4473 = vxpose.xlu1.b32.cont [3/8] (short) (narrow) %v14779_v22, 32  ;;  %v6949_v22 = vcvt.f32.s32 %v17681_v33 }
 0x9a6   : > { %v6950_v23 = vshll.u32 %v6949_v22, 16 }
 0x9a8   : > { %4474 = vxpose.xlu1.b32.cont [4/8] (short) (narrow) %v14780_v51, 32 }
 0x9ac   : > { %4475 = vxpose.xlu1.b32.cont [5/8] (short) (narrow) %v14781_v37, 32 }
 0x9b0   : > { %4476 = vxpose.xlu1.b32.cont [6/8] (short) (narrow) %v14782_v46, 32 }
 0x9b4   : > { %4477 = vxpose.xlu1.b32.cont [7/8] (short) (narrow) %v14783_v2, 32 }
 0x9b8   : > { %4478 = vxpose.xlu1.b32.end [8/8] (short) (narrow) %v14784_v57, 32 }
 0x9e2   : > { %v6872_v40 = vpop.xlane.xlu0 %6871 }
 0x9e3   : > { %v6873_v27 = vcvt.f32.s32 %v6872_v40  ;;  %v6964_v40 = vcvt.f32.s32 %v17686_v32 }
 0x9e5   : > { %v17776_v10 = vadd.s32 %v6875_v29, %v6873_v27  ;;  %v6965_v27 = vshll.u32 %v6964_v40, 16 }
 0x9e6   : > { %v6887_v1 = vpop.xlane.xlu1 %6886 }
 0x9e7   : > { %22898 = vst [vmem:[#allocation120_spill] sm:$0xff] %v17776_v10  ;;  %v6888_v14 = vcvt.f32.s32 %v6887_v1  ;;  %vm7147_vm7 = vcmp.eq.s32.totalorder %v15409_v42, %v17776_v10  ;;  %v6979_v1 = vcvt.f32.s32 %v17691_v50 }
 0x9e8   : > { %v17787_v54 = vsel %vm7147_vm7, 1.0, %v22802_v17 }
 0x9e9   : > { %v17779_v24 = vadd.s32 %v6890_v45, %v6888_v14  ;;  %v6980_v62 = vshll.u32 %v6979_v1, 16 }
 0x9ea   : > { %v6902_v56 = vpop.xlane.xlu0 %6901 }
 0x9eb   : > { %22899 = vst [vmem:[#allocation121_spill] sm:$0xff] %v17779_v24  ;;  %v6903_v16 = vcvt.f32.s32 %v6902_v56  ;;  %vm7148_vm8 = vcmp.eq.s32.totalorder %v15409_v42, %v17779_v24 }
 0x9ec   : > { %v17790_v12 = vsel %vm7148_vm8, 1.0, %v22802_v17 }
 0x9ed   : > { %v17792_v20 = vadd.s32 %v6905_v19, %v6903_v16  ;;  %v14541_v13 = vpack.c.bf16 %v17790_v12, %v17787_v54  ;;  %v6994_v16 = vcvt.f32.s32 %v17696_v25 }
 0x9ee   : > { %v6917_v3 = vpop.xlane.xlu1 %6916 }
 0x9ef   : > { %22900 = vst [vmem:[#allocation122_spill] sm:$0xff] %v17792_v20  ;;  %v6918_v18 = vcvt.f32.s32 %v6917_v3  ;;  %14543 = vmatpush1.bf16.xpose.msk.msra.mxu1 %vm15744_vm6, %v14541_v13  ;;  %vm7149_vm10 = vcmp.eq.s32.totalorder %v15409_v42, %v17792_v20 }
 0x9f0   : > { %14544 = vmatprep.subr.bf16.mxu1 %v22804_v52  ;;  %v17808_v21 = vsel %vm7149_vm10, 1.0, %v22802_v17 }
 0x9f1   : > { %v17800_v34 = vadd.s32 %v6920_v38, %v6918_v18  ;;  %v6995_v38 = vshll.u32 %v6994_v16, 16  ;;  %v7054_v16 = vcvt.f32.s32 %v17716_v48 }
 0x9f2   : > { %v6932_v41 = vpop.xlane.xlu0 %6931 }
 0x9f3   : > { %22901 = vst [vmem:[#allocation123_spill] sm:$0xff] %v17800_v34  ;;  %v6933_v51 = vcvt.f32.s32 %v6932_v41  ;;  %vm7150_vm11 = vcmp.eq.s32.totalorder %v15409_v42, %v17800_v34 }
 0x9f4   : > { %v17811_v37 = vsel %vm7150_vm11, 1.0, %v22802_v17 }
 0x9f5   : > { %v17813_v46 = vadd.s32 %v6935_v59, %v6933_v51  ;;  %v14545_v2 = vpack.c.bf16 %v17811_v37, %v17808_v21 }
 0x9f6   : > { %v6947_v57 = vpop.xlane.xlu1 %6946 }
 0x9f7   : > { %22902 = vst [vmem:[#allocation124_spill] sm:$0xff] %v17813_v46  ;;  %v6948_v33 = vcvt.f32.s32 %v6947_v57  ;;  %14547 = vmatpush1.bf16.xpose.msk.msra.mxu1 %vm15744_vm6, %v14545_v2  ;;  %vm7151_vm12 = vcmp.eq.s32.totalorder %v15409_v42, %v17813_v46  ;;  %v7010_v2 = vshll.u32 %v7009_v0, 16  ;;  %v7024_v57 = vcvt.f32.s32 %v17706_v31 }
 0x9f8   : > { %14548 = vmatprep.subr.bf16.mxu1 %v22804_v52  ;;  %v17829_v32 = vsel %vm7151_vm12, 1.0, %v22802_v17  ;;  %v7069_v0 = vcvt.f32.s32 %v17721_v5 }
 0x9f9   : > { %v17821_v29 = vadd.s32 %v6950_v23, %v6948_v33  ;;  %v7025_v33 = vshll.u32 %v7024_v57, 16 }
 0x9fa   : > { %v6962_v11 = vpop.xlane.xlu0 %6961 }
 0x9fb   : > { %22903 = vst [vmem:[#allocation125_spill] sm:$0xff] %v17821_v29  ;;  %v6963_v45 = vcvt.f32.s32 %v6962_v11  ;;  %vm7152_vm13 = vcmp.eq.s32.totalorder %v15409_v42, %v17821_v29  ;;  %v7039_v11 = vcvt.f32.s32 %v17711_v39 }
 0x9fc   : > { %v17832_v47 = vsel %vm7152_vm13, 1.0, %v22802_v17 }
 0x9fd   : > { %v17834_v14 = vadd.s32 %v6965_v27, %v6963_v45  ;;  %v14549_v56 = vpack.c.bf16 %v17832_v47, %v17829_v32 }
 0x9fe   : > { %v6977_v19 = vpop.xlane.xlu0 %6976 }
 0x9ff   : > { %22904 = vst [vmem:[#allocation126_spill] sm:$0xff] %v17834_v14  ;;  %v6978_v50 = vcvt.f32.s32 %v6977_v19  ;;  %14551 = vmatpush1.bf16.xpose.msk.msra.mxu1 %vm15744_vm6, %v14549_v56  ;;  %vm7153_vm14 = vcmp.eq.s32.totalorder %v15409_v42, %v17834_v14  ;;  %v23015_v14 = vld [vmem:[#allocation13_spill] sm:$0xff] }
 0xa00   : > { %14552 = vmatprep.subr.bf16.mxu1 %v22804_v52  ;;  %v17850_v25 = vsel %vm7153_vm14, 1.0, %v22802_v17 }
 0xa01   : > { %v17842_v13 = vadd.s32 %v6980_v62, %v6978_v50  ;;  %v7040_v62 = vshll.u32 %v7039_v11, 16 }
 0xa02   : > { %v6992_v3 = vpop.xlane.xlu0 %6991 }
 0xa03   : > { %22905 = vst [vmem:[#allocation127_spill] sm:$0xff] %v17842_v13  ;;  %v6993_v18 = vcvt.f32.s32 %v6992_v3  ;;  %vm7154_vm15 = vcmp.eq.s32.totalorder %v15409_v42, %v17842_v13 }
 0xa04   : > { %v17853_v41 = vsel %vm7154_vm15, 1.0, %v22802_v17 }
 0xa05   : > { %v17855_v59 = vadd.s32 %v6995_v38, %v6993_v18  ;;  %v14553_v22 = vpack.c.bf16 %v17853_v41, %v17850_v25  ;;  %v7055_v38 = vshll.u32 %v7054_v16, 16 }
 0xa06   : > { %v7007_v51 = vpop.xlane.xlu0 %7006 }
 0xa07   : > { %22906 = vst [vmem:[#allocation128_spill] sm:$0xff] %v17855_v59  ;;  %v7008_v60 = vcvt.f32.s32 %v7007_v51  ;;  %14555 = vmatpush1.bf16.xpose.msk.msra.mxu1 %vm15744_vm6, %v14553_v22  ;;  %vm7155_vm7 = vcmp.eq.s32.totalorder %v15409_v42, %v17855_v59 }
 0xa08   : > { %14556 = vmatprep.subr.bf16.mxu1 %v22804_v52  ;;  %v17871_v31 = vsel %vm7155_vm7, 1.0, %v22802_v17 }
 0xa09   : > { %v17863_v23 = vadd.s32 %v7010_v2, %v7008_v60  ;;  %v7070_v60 = vshll.u32 %v7069_v0, 16  ;;  %v7114_v0 = vcvt.f32.s32 %v17736_v61 }
 0xa0a   : > { %v7022_v40 = vpop.xlane.xlu0 %7021 }
 0xa0b   : > { %22907 = vst [vmem:[#allocation129_spill] sm:$0xff] %v17863_v23  ;;  %v7023_v27 = vcvt.f32.s32 %v7022_v40  ;;  %vm7156_vm8 = vcmp.eq.s32.totalorder %v15409_v42, %v17863_v23  ;;  %v7084_v40 = vcvt.f32.s32 %v17726_v58  ;;  %v7115_v61 = vshll.u32 %v7114_v0, 16  ;;  %v22983_v23 = vld [vmem:[#allocation57_spill] sm:$0xff] }
 0xa0c   : > { %v17874_v1 = vsel %vm7156_vm8, 1.0, %v22802_v17 }
 0xa0d   : > { %v17876_v45 = vadd.s32 %v7025_v33, %v7023_v27  ;;  %v14557_v56 = vpack.c.bf16 %v17874_v1, %v17871_v31  ;;  %v7085_v27 = vshll.u32 %v7084_v40, 16 }
 0xa0e   : > { %v7037_v19 = vpop.xlane.xlu0 %7036 }
 0xa0f   : > { %22908 = vst [vmem:[#allocation130_spill] sm:$0xff] %v17876_v45  ;;  %v7038_v39 = vcvt.f32.s32 %v7037_v19  ;;  %14559 = vmatpush1.bf16.xpose.msk.msra.mxu1 %vm15744_vm6, %v14557_v56  ;;  %vm7157_vm10 = vcmp.eq.s32.totalorder %v15409_v42, %v17876_v45  ;;  %v7099_v56 = vcvt.f32.s32 %v17731_v28 }
 0xa10   : > { %14560 = vmatprep.subr.bf16.mxu1 %v22804_v52  ;;  %v17892_v48 = vsel %vm7157_vm10, 1.0, %v22802_v17 }
 0xa11   : > { %v17884_v50 = vadd.s32 %v7040_v62, %v7038_v39 }
 0xa12   : > { %v7052_v3 = vpop.xlane.xlu0 %7051 }
 0xa13   : > { %22909 = vst [vmem:[#allocation131_spill] sm:$0xff] %v17884_v50  ;;  %v7053_v18 = vcvt.f32.s32 %v7052_v3  ;;  %vm7158_vm11 = vcmp.eq.s32.totalorder %v15409_v42, %v17884_v50  ;;  %v22979_v50 = vld [vmem:[#allocation55_spill] sm:$0xff] }
 0xa14   : > { %v17895_v22 = vsel %vm7158_vm11, 1.0, %v22802_v17 }
 0xa15   : > { %v17897_v51 = vadd.s32 %v7055_v38, %v7053_v18  ;;  %v14561_v2 = vpack.c.bf16 %v17895_v22, %v17892_v48  ;;  %v7100_v38 = vshll.u32 %v7099_v56, 16 }
 0xa16   : > { %v7067_v57 = vpop.xlane.xlu0 %7066 }
 0xa17   : > { %22910 = vst [vmem:[#allocation132_spill] sm:$0xff] %v17897_v51  ;;  %v7068_v5 = vcvt.f32.s32 %v7067_v57  ;;  %14563 = vmatpush1.bf16.xpose.msk.msra.mxu1 %vm15744_vm6, %v14561_v2  ;;  %vm7159_vm12 = vcmp.eq.s32.totalorder %v15409_v42, %v17897_v51  ;;  %v22971_v51 = vld [vmem:[#allocation51_spill] sm:$0xff] }
 0xa18   : > { %14564 = vmatprep.subr.bf16.mxu1 %v22804_v52  ;;  %v17913_v62 = vsel %vm7159_vm12, 1.0, %v22802_v17 }
 0xa19   : > { %v17905_v33 = vadd.s32 %v7070_v60, %v7068_v5  ;;  %v7129_v60 = vcvt.f32.s32 %v17741_v26 }
 0xa1a   : > { %v7082_v11 = vpop.xlane.xlu0 %7081 }
 0xa1b   : > { %22911 = vst [vmem:[#allocation133_spill] sm:$0xff] %v17905_v33  ;;  %v7083_v19 = vcvt.f32.s32 %v7082_v11  ;;  %vm7160_vm13 = vcmp.eq.s32.totalorder %v15409_v42, %v17905_v33 }
 0xa1c   : > { %v4487_v58 = vpop.trf.xlu1  ;;  %v17916_v16 = vsel %vm7160_vm13, 1.0, %v22802_v17 }
 0xa1d   : > { %v17918_v39 = vadd.s32 %v7085_v27, %v7083_v19  ;;  %13289 = vmatmul.mubr.msk.f32.vlgmr.msra.gmra.mrb[76].mxu0 %vm833_vm4, %v4487_v58  ;;  %v14565_v3 = vpack.c.bf16 %v17916_v16, %v17913_v62  ;;  %v7130_v19 = vshll.u32 %v7129_v60, 16 }
 0xa1e   : > { %14530 = vmatpush3.bf16.msra.mxu0 %v16884_v49  ;;  %v7097_v28 = vpop.xlane.xlu0 %7096  ;;  %4585 = vmatprep.mubr.f32.mxu0 %v22802_v17 }
 0xa1f   : > { %22912 = vst [vmem:[#allocation134_spill] sm:$0xff] %v17918_v39  ;;  %v7098_v18 = vcvt.f32.s32 %v7097_v28  ;;  %14567 = vmatpush1.bf16.xpose.msk.msra.mxu1 %vm15744_vm6, %v14565_v3  ;;  %14531 = vmatprep.subr.bf16.mxu0 %v22804_v52  ;;  %vm7161_vm14 = vcmp.eq.s32.totalorder %v15409_v42, %v17918_v39  ;;  %v7144_v28 = vcvt.f32.s32 %v17746_v35 }
 0xa20   : > { %v4488_v2 = vpop.trf.xlu1  ;;  %14568 = vmatprep.subr.bf16.mxu1 %v22804_v52  ;;  %v17942_v11 = vsel %vm7161_vm14, 1.0, %v22802_v17 }
 0xa21   : > { %v17930_v57 = vadd.s32 %v7100_v38, %v7098_v18  ;;  %13290 = vmatmul.mubr.msk.f32.gmra.mrb[78].mxu0 %vm833_vm4, %v4488_v2  ;;  %v13446_v2 = vld [vmem:[%s22726_s1 + $0xc0] sm:$0xff] }
 0xa22   : > { %14533 = vmatpush3.bf16.msra.mxu0 %v16913_v44  ;;  %v7112_v49 = vpop.xlane.xlu0 %7111  ;;  %4591 = vmatprep.mubr.f32.mxu0 %v22802_v17 }
 0xa23   : > { %22913 = vst [vmem:[#allocation135_spill] sm:$0xff] %v17930_v57  ;;  %v7113_v40 = vcvt.f32.s32 %v7112_v49  ;;  %14534 = vmatprep.subr.bf16.mxu0 %v22804_v52  ;;  %vm7162_vm15 = vcmp.eq.s32.totalorder %v15409_v42, %v17930_v57  ;;  %v7145_v49 = vshll.u32 %v7144_v28, 16  ;;  %v22981_v57 = vld [vmem:[#allocation58_spill] sm:$0xff] }
 0xa24   : > { %v4489_v5 = vpop.trf.xlu1  ;;  %v17945_v27 = vsel %vm7162_vm15, 1.0, %v22802_v17 }
 0xa25   : > { %v17947_v44 = vadd.s32 %v7115_v61, %v7113_v40  ;;  %13291 = vmatmul.mubr.msk.f32.gmra.mrb[80].mxu0 %vm833_vm4, %v4489_v5  ;;  %v14569_v26 = vpack.c.bf16 %v17945_v27, %v17942_v11 }
 0xa26   : > { %14536 = vmatpush3.bf16.msra.mxu0 %v16938_v63  ;;  %v7127_v56 = vpop.xlane.xlu0 %7126  ;;  %4597 = vmatprep.mubr.f32.mxu0 %v22802_v17 }
 0xa27   : > { %22914 = vst [vmem:[#allocation136_spill] sm:$0xff] %v17947_v44  ;;  %v7128_v58 = vcvt.f32.s32 %v7127_v56  ;;  %14571 = vmatpush1.bf16.xpose.msk.msra.mxu1 %vm15744_vm6, %v14569_v26  ;;  %14537 = vmatprep.subr.bf16.mxu0 %v22804_v52  ;;  %vm7163_vm7 = vcmp.eq.s32.totalorder %v15409_v42, %v17947_v44  ;;  %v13451_v56 = vld [vmem:[%s22726_s1 + $0xe8] sm:$0xff]  ;;  %v22977_v44 = vld [vmem:[#allocation56_spill] sm:$0xff] }
 0xa28   : > { %v4490_v3 = vpop.trf.xlu1  ;;  %14572 = vmatprep.subr.bf16.mxu1 %v22804_v52  ;;  %v13373_v35 = vsel %vm7163_vm7, 1.0, %v22802_v17 }
 0xa29   : > { %v17959_v38 = vadd.s32 %v7130_v19, %v7128_v58  ;;  %13292 = vmatmul.mubr.msk.f32.gmra.mrb[82].mxu0 %vm833_vm4, %v4490_v3 }
 0xa2a   : > { %14539 = vmatpush3.bf16.msra.mxu0 %v17000_v43  ;;  %v7142_v63 = vpop.xlane.xlu0 %7141  ;;  %14181 = vmatprep.mubr.msk.f32.mxu0 %vm14914_vm2, %v22802_v17  ;;  %v13447_v43 = vld [vmem:[%s22726_s1 + $0xc8] sm:$0xff] }
 0xa2b   : > { %22915 = vst [vmem:[#allocation137_spill] sm:$0xff] %v17959_v38  ;;  %v7143_v0 = vcvt.f32.s32 %v7142_v63  ;;  %vm7164_vm8 = vcmp.eq.s32.totalorder %v15409_v42, %v17959_v38  ;;  %14576 = vmatprep.subr.bf16.mxu0 %v22804_v52  ;;  %v17986_v40 = vpack.c.bf16 %v13447_v43, %v13446_v2  ;;  %v22975_v38 = vld [vmem:[#allocation53_spill] sm:$0xff] }
 0xa2c   : > { %v13374_v18 = vsel %vm7164_vm8, 1.0, %v22802_v17 }
 0xa2d   : > { %14182 = vmatmul.mubr.msk.f32.vlgmr.msra.gmra.mrb[84].mxu0 %vm833_vm4, %v17787_v54  ;;  %v14573_v61 = vpack.c.bf16 %v13374_v18, %v13373_v35  ;;  %v17982_v60 = vadd.s32 %v7145_v49, %v7143_v0  ;;  %22917 = vst [vmem:[#allocation139_spill] sm:$0xff] %v17986_v40  ;;  %v13448_v54 = vld [vmem:[%s22726_s1 + $0xd0] sm:$0xff] }
 0xa2e   : > { %14184 = vmatprep.mubr.msk.f32.mxu0 %vm14914_vm2, %v22802_v17 }
 0xa2f   : > { %22916 = vst [vmem:[#allocation138_spill] sm:$0xff] %v17982_v60  ;;  %14575 = vmatpush1.bf16.xpose.msk.msra.mxu1 %vm15744_vm6, %v14573_v61  ;;  %vm7165_vm10 = vcmp.eq.s32.totalorder %v15409_v42, %v17982_v60  ;;  %v22973_v60 = vld [vmem:[#allocation54_spill] sm:$0xff] }
 0xa30   : > { %7501 = vmatprep.subr.mxu1 %v22802_v17  ;;  %v13375_v5 = vsel %vm7165_vm10, 1.0, %v22802_v17 }
 0xa31   : > { %14185 = vmatmul.mubr.msk.f32.gmra.mrb[86].mxu0 %vm833_vm4, %v17790_v12  ;;  %v13449_v12 = vld [vmem:[%s22726_s1 + $0xd8] sm:$0xff] }
 0xa32   : > { %14187 = vmatprep.mubr.msk.f32.mxu0 %vm14914_vm2, %v22802_v17  ;;  %v18011_v26 = vpack.c.bf16 %v13449_v12, %v13448_v54 }
 0xa33   : > { %14579 = vmatpush3.bf16.xpose.msk.msra.mxu0 %vm15035_vm1, %v17986_v40 }
 0xa34   : > { %14580 = vmatprep.subr.bf16.mxu0 %v22804_v52  ;;  %22918 = vst [vmem:[#allocation140_spill] sm:$0xff] %v18011_v26 }
 0xa35   : > { %14188 = vmatmul.mubr.msk.f32.gmra.mrb[88].mxu0 %vm833_vm4, %v17808_v21  ;;  %v13450_v21 = vld [vmem:[%s22726_s1 + $0xe0] sm:$0xff] }
 0xa36   : > { %14190 = vmatprep.mubr.msk.f32.mxu0 %vm14914_vm2, %v22802_v17 }
 0xa37   : > { %13413 = vmatpush1.xpose.msk.msra.mxu1 %vm833_vm4, %v13375_v5 }
 0xa38   : > { %14592 = vmatprep.subr.bf16.mxu1 %v22804_v52 }
 0xa39   : > { %14191 = vmatmul.mubr.msk.f32.gmra.mrb[90].mxu0 %vm833_vm4, %v17811_v37  ;;  %v18032_v37 = vpack.c.bf16 %v13451_v56, %v13450_v21  ;;  %v22929_v56 = vld [vmem:[#allocation99_spill] sm:$0xff] }
 0xa3a   : > { %14193 = vmatprep.mubr.msk.f32.mxu0 %vm14914_vm2, %v22802_v17 }
 0xa3b   : > { %14583 = vmatpush3.bf16.xpose.msk.msra.mxu0 %vm15035_vm1, %v18011_v26  ;;  %22919 = vst [vmem:[#allocation141_spill] sm:$0xff] %v18032_v37 }
 0xa3c   : > { %14584 = vmatprep.subr.bf16.mxu0 %v22804_v52 }
 0xa3d   : > { %14194 = vmatmul.mubr.msk.f32.gmra.mrb[92].mxu0 %vm833_vm4, %v17829_v32  ;;  %v13452_v32 = vld [vmem:[%s22726_s1 + $0xf0] sm:$0xff] }
 0xa3e   : > { %14196 = vmatprep.mubr.msk.f32.mxu0 %vm14914_vm2, %v22802_v17 }
 0xa41   : > { %14197 = vmatmul.mubr.msk.f32.gmra.mrb[94].mxu0 %vm833_vm4, %v17832_v47  ;;  %v13453_v47 = vld [vmem:[%s22726_s1 + $0xf8] sm:$0xff] }
 0xa42   : > { %14199 = vmatprep.mubr.msk.f32.mxu0 %vm14914_vm2, %v22802_v17 }
 0xa43   : > { %14587 = vmatpush3.bf16.xpose.msk.msra.mxu0 %vm15035_vm1, %v18032_v37 }
 0xa44   : > { %14588 = vmatprep.subr.bf16.mxu0 %v22804_v52 }
 0xa45   : > { %14200 = vmatmul.mubr.msk.f32.gmra.mrb[96].mxu0 %vm833_vm4, %v17850_v25  ;;  %v18094_v25 = vpack.c.bf16 %v13453_v47, %v13452_v32  ;;  %v22931_v32 = vld [vmem:[#allocation100_spill] sm:$0xff] }
 0xa46   : > { %14202 = vmatprep.mubr.msk.f32.mxu0 %vm14914_vm2, %v22802_v17 }
 0xa47   : > { %22920 = vst [vmem:[#allocation142_spill] sm:$0xff] %v18094_v25 }
 0xa49   : > { %14203 = vmatmul.mubr.msk.f32.gmra.mrb[98].mxu0 %vm833_vm4, %v17853_v41 }
 0xa4a   : > { %14205 = vmatprep.mubr.msk.f32.mxu0 %vm14914_vm2, %v22802_v17 }
 0xa4b   : > { %14591 = vmatpush3.bf16.xpose.msk.msra.mxu0 %vm15035_vm1, %v18094_v25 }
 0xa4c   : > { %14604 = vmatprep.subr.bf16.mxu0 %v22804_v52 }
 0xa4d   : > { %14206 = vmatmul.mubr.msk.f32.gmra.mrb[100].mxu0 %vm833_vm4, %v17871_v31 }
 0xa4e   : > { %14208 = vmatprep.mubr.msk.f32.mxu0 %vm14914_vm2, %v22802_v17 }
 0xa51   : > { %14209 = vmatmul.mubr.msk.f32.gmra.mrb[102].mxu0 %vm833_vm4, %v17874_v1 }
 0xa52   : > { %14211 = vmatprep.mubr.msk.f32.mxu0 %vm14914_vm2, %v22802_v17 }
 0xa55   : > { %14212 = vmatmul.mubr.msk.f32.gmra.mrb[104].mxu0 %vm833_vm4, %v17892_v48 }
 0xa56   : > { %14214 = vmatprep.mubr.msk.f32.mxu0 %vm14914_vm2, %v22802_v17 }
 0xa59   : > { %14215 = vmatmul.mubr.msk.f32.gmra.mrb[106].mxu0 %vm833_vm4, %v17895_v22 }
 0xa5a   : > { %14217 = vmatprep.mubr.msk.f32.mxu0 %vm14914_vm2, %v22802_v17 }
 0xa5d   : > { %14218 = vmatmul.mubr.msk.f32.gmra.mrb[108].mxu0 %vm833_vm4, %v17913_v62 }
 0xa5e   : > { %14220 = vmatprep.mubr.msk.f32.mxu0 %vm14914_vm2, %v22802_v17 }
 0xa61   : > { %14221 = vmatmul.mubr.msk.f32.gmra.mrb[110].mxu0 %vm833_vm4, %v17916_v16 }
 0xa62   : > { %14223 = vmatprep.mubr.msk.f32.mxu0 %vm14914_vm2, %v22802_v17 }
 0xa65   : > { %14224 = vmatmul.mubr.msk.f32.gmra.mrb[112].mxu0 %vm833_vm4, %v17942_v11 }
 0xa66   : > { %14226 = vmatprep.mubr.msk.f32.mxu0 %vm14914_vm2, %v22802_v17 }
 0xa69   : > { %14227 = vmatmul.mubr.msk.f32.gmra.mrb[114].mxu0 %vm833_vm4, %v17945_v27 }
 0xa6a   : > { %14229 = vmatprep.mubr.msk.f32.mxu0 %vm14914_vm2, %v22802_v17 }
 0xa6d   : > { %14230 = vmatmul.mubr.msk.f32.gmra.mrb[116].mxu0 %vm833_vm4, %v13373_v35 }
 0xa6e   : > { %14232 = vmatprep.mubr.msk.f32.mxu0 %vm14914_vm2, %v22802_v17 }
 0xa71   : > { %14233 = vmatmul.mubr.msk.f32.gmra.mrb[118].mxu0 %vm833_vm4, %v13374_v18 }
 0xa72   : > { %14235 = vmatprep.mubr.msk.f32.mxu0 %vm14914_vm2, %v22802_v17 }
 0xa75   : > { %14236 = vmatmul.mubr.msk.f32.gmra.mrb[120].mxu0 %vm833_vm4, %v13375_v5 }
 0xa76   : > { %14254 = vmatprep.mubr.msk.f32.mxu0 %vm14914_vm2, %v22802_v17 }
 0xaf0   : > { %v4581_v41 = vpop.f32.mrb[76].mxu0 }
 0xaf1   : > { %13294 = vst [vmem:[%s17010_s30 + $0x40] sm:$0xff] %v4581_v41  ;;  %v4583_v31 = vpop.f32.mrb[77].mxu0 }
 0xaf2   : > { %13295 = vst.msk [vmem:[%s17010_s30 + $0x48] sm:$0xff] %vm3478_vm9, %v4583_v31 }
 0xaf4   : > { %v4587_v1 = vpop.f32.mrb[78].mxu0 }
 0xaf5   : > { %13296 = vst [vmem:[%s17010_s30 + $0x50] sm:$0xff] %v4587_v1  ;;  %v4589_v48 = vpop.f32.mrb[79].mxu0 }
 0xaf6   : > { %13297 = vst.msk [vmem:[%s17010_s30 + $0x58] sm:$0xff] %vm3478_vm9, %v4589_v48  ;;  %v22933_v48 = vld [vmem:[#allocation34_spill] sm:$0xff] }
 0xaf8   : > { %v4593_v4 = vpop.f32.mrb[80].mxu0 }
 0xaf9   : > { %13298 = vst [vmem:[%s17010_s30 + $0x60] sm:$0xff] %v4593_v4  ;;  %v4595_v22 = vpop.f32.mrb[81].mxu0 }
 0xafa   : > { %13299 = vst.msk [vmem:[%s17010_s30 + $0x68] sm:$0xff] %vm3478_vm9, %v4595_v22  ;;  %v22935_v22 = vld [vmem:[#allocation33_spill] sm:$0xff] }
 0xafc   : > { %v4599_v62 = vpop.f32.mrb[82].mxu0 }
 0xafd   : > { %13300 = vst [vmem:[%s17010_s30 + $0x70] sm:$0xff] %v4599_v62  ;;  %v4601_v16 = vpop.f32.mrb[83].mxu0 }
 0xafe   : > { %13301 = vst.msk [vmem:[%s17010_s30 + $0x78] sm:$0xff] %vm3478_vm9, %v4601_v16 }
 0xb00   : > { %v7327_v11 = vpop.f32.mrb[84].mxu0 }
 0xb01   : > { %v18116_v27 = vsub.f32 %v17025_v7, %v7327_v11  ;;  %v18119_v19 = vadd.f32 %v7327_v11, %v17028_v30  ;;  %v14183_v58 = vpop.f32.mrb[85].mxu0 }
 0xb03   : > { %22921 = vst [vmem:[#allocation143_spill] sm:$0xff] %v18116_v27  ;;  %22922 = vst [vmem:[#allocation144_spill] sm:$0xff] %v18119_v19  ;;  %14255 = vmatmul.mubr.msk.f32.vlgmr.msra.gmra.mrb[122].mxu0 %vm463_vm0, %v18116_v27  ;;  %v7573_v3 = vmul.f32 %v18116_v27, %v18116_v27 }
 0xb04   : > { %v7332_v28 = vpop.f32.mrb[86].mxu0  ;;  %14257 = vmatprep.mubr.msk.f32.mxu0 %vm14914_vm2, %v22802_v17 }
 0xb05   : > { %v18128_v63 = vsub.f32 %v17037_v9, %v7332_v28  ;;  %v18131_v7 = vadd.f32 %v7332_v28, %v17040_v6  ;;  %v14186_v0 = vpop.f32.mrb[87].mxu0  ;;  %v7592_v30 = vsel %vm463_vm0, %v7573_v3, 0.0  ;;  %v22937_v28 = vld [vmem:[#allocation36_spill] sm:$0xff] }
 0xb06   : > { %7593 = vadd.xlane.f32.xlu0 %v7592_v30  ;;  %v22939_v30 = vld [vmem:[#allocation35_spill] sm:$0xff] }
 0xb07   : > { %22923 = vst [vmem:[#allocation145_spill] sm:$0xff] %v18128_v63  ;;  %22924 = vst [vmem:[#allocation146_spill] sm:$0xff] %v18131_v7  ;;  %14258 = vmatmul.mubr.msk.f32.gmra.mrb[124].mxu0 %vm463_vm0, %v18128_v63  ;;  %v7574_v35 = vmul.f32 %v18128_v63, %v18128_v63 }
 0xb08   : > { %v7337_v18 = vpop.f32.mrb[88].mxu0  ;;  %14260 = vmatprep.mubr.msk.f32.mxu0 %vm14914_vm2, %v22802_v17 }
 0xb09   : > { %v18141_v9 = vsub.f32 %v17050_v15, %v7337_v18  ;;  %v18144_v6 = vadd.f32 %v7337_v18, %v17053_v36  ;;  %v14189_v2 = vpop.f32.mrb[89].mxu0  ;;  %v7595_v43 = vsel %vm463_vm0, %v7574_v35, 0.0 }
 0xb0a   : > { %7596 = vadd.xlane.f32.xlu0 %v7595_v43 }
 0xb0b   : > { %22925 = vst [vmem:[#allocation147_spill] sm:$0xff] %v18141_v9  ;;  %22926 = vst [vmem:[#allocation148_spill] sm:$0xff] %v18144_v6  ;;  %14261 = vmatmul.mubr.msk.f32.gmra.mrb[126].mxu0 %vm463_vm0, %v18141_v9  ;;  %v7575_v49 = vmul.f32 %v18141_v9, %v18141_v9 }
 0xb0c   : > { %v7342_v61 = vpop.f32.mrb[90].mxu0  ;;  %14263 = vmatprep.mubr.msk.f32.mxu0 %vm14914_vm2, %v22802_v17 }
 0xb0d   : > { %v18154_v15 = vsub.f32 %v17063_v8, %v7342_v61  ;;  %v18157_v36 = vadd.f32 %v7342_v61, %v17066_v53  ;;  %v14192_v54 = vpop.f32.mrb[91].mxu0  ;;  %v7598_v12 = vsel %vm463_vm0, %v7575_v49, 0.0  ;;  %v22941_v61 = vld [vmem:[#allocation38_spill] sm:$0xff] }
 0xb0e   : > { %7599 = vadd.xlane.f32.xlu0 %v7598_v12  ;;  %v22943_v12 = vld [vmem:[#allocation37_spill] sm:$0xff] }
 0xb0f   : > { %22927 = vst [vmem:[#allocation149_spill] sm:$0xff] %v18154_v15  ;;  %22928 = vst [vmem:[#allocation150_spill] sm:$0xff] %v18157_v36  ;;  %14264 = vmatmul.mubr.msk.f32.gmra.mrb[128].mxu0 %vm463_vm0, %v18154_v15  ;;  %v7576_v5 = vmul.f32 %v18154_v15, %v18154_v15 }
 0xb10   : > { %v7347_v21 = vpop.f32.mrb[92].mxu0  ;;  %14266 = vmatprep.mubr.msk.f32.mxu0 %vm14914_vm2, %v22802_v17 }
 0xb11   : > { %v18167_v8 = vsub.f32 %v22929_v56, %v7347_v21  ;;  %v18170_v53 = vadd.f32 %v7347_v21, %v22931_v32  ;;  %v14195_v47 = vpop.f32.mrb[93].mxu0  ;;  %v7601_v41 = vsel %vm463_vm0, %v7576_v5, 0.0 }
 0xb12   : > { %7602 = vadd.xlane.f32.xlu0 %v7601_v41  ;;  %v22945_v41 = vld [vmem:[#allocation40_spill] sm:$0xff] }
 0xb13   : > { %22930 = vst [vmem:[#allocation99_spill] sm:$0xff] %v18167_v8  ;;  %22932 = vst [vmem:[#allocation100_spill] sm:$0xff] %v18170_v53  ;;  %14267 = vmatmul.mubr.msk.f32.gmra.mrb[130].mxu0 %vm463_vm0, %v18167_v8  ;;  %v7577_v31 = vmul.f32 %v18167_v8, %v18167_v8 }
 0xb14   : > { %v7352_v1 = vpop.f32.mrb[94].mxu0  ;;  %14269 = vmatprep.mubr.msk.f32.mxu0 %vm14914_vm2, %v22802_v17 }
 0xb15   : > { %v18180_v4 = vsub.f32 %v22933_v48, %v7352_v1  ;;  %v18183_v62 = vadd.f32 %v7352_v1, %v22935_v22  ;;  %v14198_v16 = vpop.f32.mrb[95].mxu0  ;;  %v7604_v11 = vsel %vm463_vm0, %v7577_v31, 0.0  ;;  %v22947_v1 = vld [vmem:[#allocation39_spill] sm:$0xff] }
 0xb16   : > { %7605 = vadd.xlane.f32.xlu0 %v7604_v11 }
 0xb17   : > { %22934 = vst [vmem:[#allocation34_spill] sm:$0xff] %v18180_v4  ;;  %22936 = vst [vmem:[#allocation33_spill] sm:$0xff] %v18183_v62  ;;  %14270 = vmatmul.mubr.msk.f32.gmra.mrb[132].mxu0 %vm463_vm0, %v18180_v4  ;;  %v7578_v58 = vmul.f32 %v18180_v4, %v18180_v4 }
 0xb18   : > { %v7357_v3 = vpop.f32.mrb[96].mxu0  ;;  %14272 = vmatprep.mubr.msk.f32.mxu0 %vm14914_vm2, %v22802_v17 }
 0xb19   : > { %v18193_v0 = vsub.f32 %v22937_v28, %v7357_v3  ;;  %v18196_v35 = vadd.f32 %v7357_v3, %v22939_v30  ;;  %v14201_v18 = vpop.f32.mrb[97].mxu0  ;;  %v7607_v2 = vsel %vm463_vm0, %v7578_v58, 0.0  ;;  %v22949_v3 = vld [vmem:[#allocation42_spill] sm:$0xff]  ;;  %v22951_v30 = vld [vmem:[#allocation41_spill] sm:$0xff] }
 0xb1a   : > { %7608 = vadd.xlane.f32.xlu0 %v7607_v2 }
 0xb1b   : > { %22938 = vst [vmem:[#allocation36_spill] sm:$0xff] %v18193_v0  ;;  %22940 = vst [vmem:[#allocation35_spill] sm:$0xff] %v18196_v35  ;;  %14273 = vmatmul.mubr.msk.f32.gmra.mrb[134].mxu0 %vm463_vm0, %v18193_v0  ;;  %v7579_v43 = vmul.f32 %v18193_v0, %v18193_v0 }
 0xb1c   : > { %v7362_v49 = vpop.f32.mrb[98].mxu0  ;;  %14275 = vmatprep.mubr.msk.f32.mxu0 %vm14914_vm2, %v22802_v17 }
 0xb1d   : > { %v18206_v54 = vsub.f32 %v22941_v61, %v7362_v49  ;;  %v18209_v5 = vadd.f32 %v7362_v49, %v22943_v12  ;;  %v14204_v21 = vpop.f32.mrb[99].mxu0  ;;  %v7610_v56 = vsel %vm463_vm0, %v7579_v43, 0.0  ;;  %v22953_v12 = vld [vmem:[#allocation44_spill] sm:$0xff] }
 0xb1e   : > { %7611 = vadd.xlane.f32.xlu0 %v7610_v56  ;;  %v22955_v56 = vld [vmem:[#allocation43_spill] sm:$0xff] }
 0xb1f   : > { %22942 = vst [vmem:[#allocation38_spill] sm:$0xff] %v18206_v54  ;;  %22944 = vst [vmem:[#allocation37_spill] sm:$0xff] %v18209_v5  ;;  %14276 = vmatmul.mubr.msk.f32.gmra.mrb[136].mxu0 %vm463_vm0, %v18206_v54  ;;  %v7580_v32 = vmul.f32 %v18206_v54, %v18206_v54 }
 0xb20   : > { %v7367_v47 = vpop.f32.mrb[100].mxu0  ;;  %14278 = vmatprep.mubr.msk.f32.mxu0 %vm14914_vm2, %v22802_v17 }
 0xb21   : > { %v18219_v31 = vsub.f32 %v22945_v41, %v7367_v47  ;;  %v18222_v48 = vadd.f32 %v7367_v47, %v22947_v1  ;;  %v14207_v22 = vpop.f32.mrb[101].mxu0  ;;  %v7613_v16 = vsel %vm463_vm0, %v7580_v32, 0.0 }
 0xb22   : > { %7614 = vadd.xlane.f32.xlu0 %v7613_v16  ;;  %v22957_v16 = vld [vmem:[#allocation46_spill] sm:$0xff] }
 0xb23   : > { %22946 = vst [vmem:[#allocation40_spill] sm:$0xff] %v18219_v31  ;;  %22948 = vst [vmem:[#allocation39_spill] sm:$0xff] %v18222_v48  ;;  %14279 = vmatmul.mubr.msk.f32.gmra.mrb[138].mxu0 %vm463_vm0, %v18219_v31  ;;  %v7581_v11 = vmul.f32 %v18219_v31, %v18219_v31 }
 0xb24   : > { %v7372_v58 = vpop.f32.mrb[102].mxu0  ;;  %14281 = vmatprep.mubr.msk.f32.mxu0 %vm14914_vm2, %v22802_v17 }
 0xb25   : > { %v18232_v28 = vsub.f32 %v22949_v3, %v7372_v58  ;;  %v18235_v18 = vadd.f32 %v7372_v58, %v22951_v30  ;;  %v14210_v2 = vpop.f32.mrb[103].mxu0  ;;  %v7616_v43 = vsel %vm463_vm0, %v7581_v11, 0.0  ;;  %v22959_v58 = vld [vmem:[#allocation45_spill] sm:$0xff] }
 0xb26   : > { %7617 = vadd.xlane.f32.xlu1 %v7616_v43 }
 0xb27   : > { %22950 = vst [vmem:[#allocation42_spill] sm:$0xff] %v18232_v28  ;;  %22952 = vst [vmem:[#allocation41_spill] sm:$0xff] %v18235_v18  ;;  %14282 = vmatmul.mubr.msk.f32.gmra.mrb[140].mxu0 %vm463_vm0, %v18232_v28  ;;  %v7582_v49 = vmul.f32 %v18232_v28, %v18232_v28 }
 0xb28   : > { %v7377_v61 = vpop.f32.mrb[104].mxu0  ;;  %14284 = vmatprep.mubr.msk.f32.mxu0 %vm14914_vm2, %v22802_v17 }
 0xb29   : > { %v18245_v21 = vsub.f32 %v22953_v12, %v7377_v61  ;;  %v18248_v32 = vadd.f32 %v7377_v61, %v22955_v56  ;;  %v14213_v47 = vpop.f32.mrb[105].mxu0  ;;  %v7619_v41 = vsel %vm463_vm0, %v7582_v49, 0.0  ;;  %v22961_v61 = vld [vmem:[#allocation48_spill] sm:$0xff]  ;;  %v22963_v56 = vld [vmem:[#allocation47_spill] sm:$0xff] }
 0xb2a   : > { %7620 = vadd.xlane.f32.xlu0 %v7619_v41 }
 0xb2b   : > { %22954 = vst [vmem:[#allocation44_spill] sm:$0xff] %v18245_v21  ;;  %22956 = vst [vmem:[#allocation43_spill] sm:$0xff] %v18248_v32  ;;  %14285 = vmatmul.mubr.msk.f32.gmra.mrb[142].mxu0 %vm463_vm0, %v18245_v21  ;;  %v7583_v1 = vmul.f32 %v18245_v21, %v18245_v21 }
 0xb2c   : > { %v7382_v22 = vpop.f32.mrb[106].mxu0  ;;  %14287 = vmatprep.mubr.msk.f32.mxu0 %vm14914_vm2, %v22802_v17 }
 0xb2d   : > { %v18258_v11 = vsub.f32 %v22957_v16, %v7382_v22  ;;  %v18261_v3 = vadd.f32 %v7382_v22, %v22959_v58  ;;  %v14216_v30 = vpop.f32.mrb[107].mxu0  ;;  %v7622_v2 = vsel %vm463_vm0, %v7583_v1, 0.0  ;;  %v22965_v58 = vld [vmem:[#allocation50_spill] sm:$0xff] }
 0xb2e   : > { %7623 = vadd.xlane.f32.xlu0 %v7622_v2  ;;  %v22967_v2 = vld [vmem:[#allocation49_spill] sm:$0xff] }
 0xb2f   : > { %22958 = vst [vmem:[#allocation46_spill] sm:$0xff] %v18258_v11  ;;  %22960 = vst [vmem:[#allocation45_spill] sm:$0xff] %v18261_v3  ;;  %14288 = vmatmul.mubr.msk.f32.gmra.mrb[144].mxu0 %vm463_vm0, %v18258_v11  ;;  %v7584_v43 = vmul.f32 %v18258_v11, %v18258_v11 }
 0xb30   : > { %v7387_v49 = vpop.f32.mrb[108].mxu0  ;;  %14290 = vmatprep.mubr.msk.f32.mxu0 %vm14914_vm2, %v22802_v17 }
 0xb31   : > { %v18271_v12 = vsub.f32 %v22961_v61, %v7387_v49  ;;  %v18274_v47 = vadd.f32 %v7387_v49, %v22963_v56  ;;  %v14219_v41 = vpop.f32.mrb[109].mxu0  ;;  %v7625_v1 = vsel %vm463_vm0, %v7584_v43, 0.0 }
 0xb32   : > { %7626 = vadd.xlane.f32.xlu0 %v7625_v1  ;;  %v22969_v1 = vld [vmem:[#allocation52_spill] sm:$0xff] }
 0xb33   : > { %22962 = vst [vmem:[#allocation48_spill] sm:$0xff] %v18271_v12  ;;  %22964 = vst [vmem:[#allocation47_spill] sm:$0xff] %v18274_v47  ;;  %14291 = vmatmul.mubr.msk.f32.gmra.mrb[146].mxu0 %vm463_vm0, %v18271_v12  ;;  %v7585_v22 = vmul.f32 %v18271_v12, %v18271_v12 }
 0xb34   : > { %v7392_v16 = vpop.f32.mrb[110].mxu0  ;;  %14293 = vmatprep.mubr.msk.f32.mxu0 %vm14914_vm2, %v22802_v17 }
 0xb35   : > { %v18284_v30 = vsub.f32 %v22965_v58, %v7392_v16  ;;  %v18287_v49 = vadd.f32 %v7392_v16, %v22967_v2  ;;  %v14222_v61 = vpop.f32.mrb[111].mxu0  ;;  %v7628_v43 = vsel %vm463_vm0, %v7585_v22, 0.0 }
 0xb36   : > { %7629 = vadd.xlane.f32.xlu0 %v7628_v43 }
 0xb37   : > { %22966 = vst [vmem:[#allocation50_spill] sm:$0xff] %v18284_v30  ;;  %22968 = vst [vmem:[#allocation49_spill] sm:$0xff] %v18287_v49  ;;  %14294 = vmatmul.mubr.msk.f32.gmra.mrb[148].mxu0 %vm463_vm0, %v18284_v30  ;;  %v7586_v56 = vmul.f32 %v18284_v30, %v18284_v30 }
 0xb38   : > { %v7397_v41 = vpop.f32.mrb[112].mxu0  ;;  %14296 = vmatprep.mubr.msk.f32.mxu0 %vm14914_vm2, %v22802_v17 }
 0xb39   : > { %v18297_v58 = vsub.f32 %v22969_v1, %v7397_v41  ;;  %v18300_v16 = vadd.f32 %v7397_v41, %v22971_v51  ;;  %v14225_v2 = vpop.f32.mrb[113].mxu0  ;;  %v7631_v22 = vsel %vm463_vm0, %v7586_v56, 0.0 }
 0xb3a   : > { %7632 = vadd.xlane.f32.xlu0 %v7631_v22 }
 0xb3b   : > { %22970 = vst [vmem:[#allocation52_spill] sm:$0xff] %v18297_v58  ;;  %22972 = vst [vmem:[#allocation51_spill] sm:$0xff] %v18300_v16  ;;  %14297 = vmatmul.mubr.msk.f32.gmra.mrb[150].mxu0 %vm463_vm0, %v18297_v58  ;;  %v7587_v61 = vmul.f32 %v18297_v58, %v18297_v58 }
 0xb3c   : > { %v7402_v43 = vpop.f32.mrb[114].mxu0  ;;  %14299 = vmatprep.mubr.msk.f32.mxu0 %vm14914_vm2, %v22802_v17 }
 0xb3d   : > { %v18310_v1 = vsub.f32 %v22973_v60, %v7402_v43  ;;  %v18313_v51 = vadd.f32 %v7402_v43, %v22975_v38  ;;  %v14228_v41 = vpop.f32.mrb[115].mxu0  ;;  %v7634_v56 = vsel %vm463_vm0, %v7587_v61, 0.0 }
 0xb3e   : > { %7635 = vadd.xlane.f32.xlu0 %v7634_v56 }
 0xb3f   : > { %22974 = vst [vmem:[#allocation54_spill] sm:$0xff] %v18310_v1  ;;  %22976 = vst [vmem:[#allocation53_spill] sm:$0xff] %v18313_v51  ;;  %14300 = vmatmul.mubr.msk.f32.gmra.mrb[152].mxu0 %vm463_vm0, %v18310_v1  ;;  %v7588_v2 = vmul.f32 %v18310_v1, %v18310_v1 }
 0xb40   : > { %v7407_v22 = vpop.f32.mrb[116].mxu0  ;;  %14302 = vmatprep.mubr.msk.f32.mxu0 %vm14914_vm2, %v22802_v17 }
 0xb41   : > { %v18323_v60 = vsub.f32 %v22977_v44, %v7407_v22  ;;  %v18326_v38 = vadd.f32 %v7407_v22, %v22979_v50  ;;  %v14231_v43 = vpop.f32.mrb[117].mxu0  ;;  %v7637_v61 = vsel %vm463_vm0, %v7588_v2, 0.0 }
 0xb42   : > { %7638 = vadd.xlane.f32.xlu0 %v7637_v61 }
 0xb43   : > { %22978 = vst [vmem:[#allocation56_spill] sm:$0xff] %v18323_v60  ;;  %22980 = vst [vmem:[#allocation55_spill] sm:$0xff] %v18326_v38  ;;  %14303 = vmatmul.mubr.msk.f32.gmra.mrb[154].mxu0 %vm463_vm0, %v18323_v60  ;;  %v7589_v41 = vmul.f32 %v18323_v60, %v18323_v60  ;;  %v22985_v38 = vld [vmem:[#allocation60_spill] sm:$0xff]  ;;  %v22987_v60 = vld [vmem:[#allocation59_spill] sm:$0xff] }
 0xb44   : > { %v7412_v56 = vpop.f32.mrb[118].mxu0  ;;  %14305 = vmatprep.mubr.msk.f32.mxu0 %vm14914_vm2, %v22802_v17 }
 0xb45   : > { %v18336_v44 = vsub.f32 %v22981_v57, %v7412_v56  ;;  %v18339_v50 = vadd.f32 %v7412_v56, %v22983_v23  ;;  %v14234_v22 = vpop.f32.mrb[119].mxu0  ;;  %v7640_v2 = vsel %vm463_vm0, %v7589_v41, 0.0 }
 0xb46   : > { %7641 = vadd.xlane.f32.xlu0 %v7640_v2 }
 0xb47   : > { %22982 = vst [vmem:[#allocation58_spill] sm:$0xff] %v18336_v44  ;;  %22984 = vst [vmem:[#allocation57_spill] sm:$0xff] %v18339_v50  ;;  %14306 = vmatmul.mubr.msk.f32.gmra.mrb[156].mxu0 %vm463_vm0, %v18336_v44  ;;  %v7590_v43 = vmul.f32 %v18336_v44, %v18336_v44 }
 0xb48   : > { %v7417_v61 = vpop.f32.mrb[120].mxu0  ;;  %14308 = vmatprep.mubr.msk.f32.mxu0 %vm14914_vm2, %v22802_v17 }
 0xb49   : > { %v18349_v57 = vsub.f32 %v22985_v38, %v7417_v61  ;;  %v18352_v23 = vadd.f32 %v7417_v61, %v22987_v60  ;;  %v14237_v56 = vpop.f32.mrb[121].mxu0  ;;  %v7643_v41 = vsel %vm463_vm0, %v7590_v43, 0.0 }
 0xb4a   : > { %7644 = vadd.xlane.f32.xlu0 %v7643_v41 }
 0xb4b   : > { %22986 = vst [vmem:[#allocation60_spill] sm:$0xff] %v18349_v57  ;;  %22988 = vst [vmem:[#allocation59_spill] sm:$0xff] %v18352_v23  ;;  %14309 = vmatmul.mubr.msk.f32.gmra.mrb[158].mxu0 %vm463_vm0, %v18349_v57  ;;  %v7591_v22 = vmul.f32 %v18349_v57, %v18349_v57  ;;  %v18374_v57 = vld [vmem:[%s22361_s2 + $0x3] ss:$0 sm:$0xff] }
 0xb4c   : > { %10479 = vmatprep.mubr.f32.mxu0 %v22802_v17 }
 0xb4d   : > { %v7646_v2 = vsel %vm518_vm3, %v7591_v22, 0.0 }
 0xb4e   : > { %7647 = vadd.xlane.f32.xlu0 %v7646_v2 }
 0xb93   : > { %v18361_v38 = vpop.xlane.xlu0 %7593 }
 0xb94   : > { %22989 = vst [vmem:[#allocation151_spill] sm:$0xff] %v18361_v38 }
 0xb97   : > { %v18363_v60 = vpop.xlane.xlu0 %7596 }
 0xb98   : > { %22990 = vst [vmem:[#allocation152_spill] sm:$0xff] %v18363_v60 }
 0xb9b   : > { %v18365_v61 = vpop.xlane.xlu0 %7599 }
 0xb9c   : > { %22991 = vst [vmem:[#allocation153_spill] sm:$0xff] %v18365_v61 }
 0xb9f   : > { %v18367_v43 = vpop.xlane.xlu0 %7602 }
 0xba0   : > { %22992 = vst [vmem:[#allocation154_spill] sm:$0xff] %v18367_v43 }
 0xba3   : > { %v18369_v56 = vpop.xlane.xlu0 %7605 }
 0xba4   : > { %22993 = vst [vmem:[#allocation155_spill] sm:$0xff] %v18369_v56 }
 0xba7   : > { %v18377_v2 = vpop.xlane.xlu0 %7608 }
 0xba8   : > { %22994 = vst [vmem:[#allocation156_spill] sm:$0xff] %v18377_v2 }
 0xbd6   : > { %v9562_v41 = vpop.f32.mrb[122].mxu0 }
 0xbd7   : > { %v9656_v23 = vmul.f32 2.0, %v9562_v41  ;;  %v14256_v50 = vpop.f32.mrb[123].mxu0 }
 0xbd9   : > { %v9675_v22 = vsub.f32 %v9656_v23, %v18361_v38 }
 0xbda   : > { %v9567_v44 = vpop.f32.mrb[124].mxu0 }
 0xbdb   : > { %v18380_v51 = vsub.f32 %v9675_v22, %v18374_v57  ;;  %v9657_v1 = vmul.f32 2.0, %v9567_v44  ;;  %v14259_v39 = vpop.f32.mrb[125].mxu0  ;;  %v18391_v22 = vpop.xlane.xlu0 %7611 }
 0xbdc   : > { %22995 = vst [vmem:[#allocation157_spill] sm:$0xff] %v18391_v22 }
 0xbdd   : > { %13552 = vst.msk [vmem:[%s15257_s21 + $0x1c8] sm:$0xff] %vm833_vm4, %v18380_v51  ;;  %v9676_v50 = vsub.f32 %v9657_v1, %v18363_v60  ;;  %v9717_v41 = vsel %vm833_vm4, %v18380_v51, -inf }
 0xbde   : > { %v9572_v16 = vpop.f32.mrb[126].mxu0  ;;  %9718 = vmax.xlane.f32.xlu1 %v9717_v41 }
 0xbdf   : > { %v18389_v23 = vsub.f32 %v9676_v50, %v18374_v57  ;;  %v9658_v38 = vmul.f32 2.0, %v9572_v16  ;;  %v14262_v58 = vpop.f32.mrb[127].mxu0 }
 0xbe1   : > { %13553 = vst.msk [vmem:[%s15257_s21 + $0x1d0] sm:$0xff] %vm833_vm4, %v18389_v23  ;;  %v9677_v39 = vsub.f32 %v9658_v38, %v18365_v61  ;;  %v9720_v1 = vsel %vm833_vm4, %v18389_v23, -inf  ;;  %v18408_v38 = vpop.xlane.xlu0 %7614 }
 0xbe2   : > { %v9577_v44 = vpop.f32.mrb[128].mxu0  ;;  %9721 = vmax.xlane.f32.xlu0 %v9720_v1  ;;  %22996 = vst [vmem:[#allocation158_spill] sm:$0xff] %v18408_v38 }
 0xbe3   : > { %v18400_v41 = vsub.f32 %v9677_v39, %v18374_v57  ;;  %v9659_v50 = vmul.f32 2.0, %v9577_v44  ;;  %v14265_v60 = vpop.f32.mrb[129].mxu0 }
 0xbe5   : > { %13554 = vst.msk [vmem:[%s15257_s21 + $0x1d8] sm:$0xff] %vm833_vm4, %v18400_v41  ;;  %v9678_v58 = vsub.f32 %v9659_v50, %v18367_v43  ;;  %v9723_v16 = vsel %vm833_vm4, %v18400_v41, -inf  ;;  %v18419_v50 = vpop.xlane.xlu0 %7620 }
 0xbe6   : > { %v9582_v61 = vpop.f32.mrb[130].mxu0  ;;  %9724 = vmax.xlane.f32.xlu1 %v9723_v16  ;;  %22997 = vst [vmem:[#allocation159_spill] sm:$0xff] %v18419_v50 }
 0xbe7   : > { %v18411_v1 = vsub.f32 %v9678_v58, %v18374_v57  ;;  %v9660_v39 = vmul.f32 2.0, %v9582_v61  ;;  %v14268_v49 = vpop.f32.mrb[131].mxu0 }
 0xbe9   : > { %13555 = vst.msk [vmem:[%s15257_s21 + $0x1e0] sm:$0xff] %vm833_vm4, %v18411_v1  ;;  %v9679_v60 = vsub.f32 %v9660_v39, %v18369_v56  ;;  %v9726_v44 = vsel %vm833_vm4, %v18411_v1, -inf }
 0xbea   : > { %v9587_v43 = vpop.f32.mrb[132].mxu0  ;;  %9727 = vmax.xlane.f32.xlu0 %v9726_v44 }
 0xbeb   : > { %v18422_v16 = vsub.f32 %v9679_v60, %v18374_v57  ;;  %v9661_v58 = vmul.f32 2.0, %v9587_v43  ;;  %v14271_v30 = vpop.f32.mrb[133].mxu0  ;;  %v18433_v60 = vpop.xlane.xlu0 %7623 }
 0xbec   : > { %22998 = vst [vmem:[#allocation160_spill] sm:$0xff] %v18433_v60 }
 0xbed   : > { %13556 = vst.msk [vmem:[%s15257_s21 + $0x1e8] sm:$0xff] %vm833_vm4, %v18422_v16  ;;  %v9680_v49 = vsub.f32 %v9661_v58, %v18377_v2  ;;  %v9729_v61 = vsel %vm833_vm4, %v18422_v16, -inf }
 0xbee   : > { %v9592_v39 = vpop.f32.mrb[134].mxu0  ;;  %9730 = vmax.xlane.f32.xlu1 %v9729_v61 }
 0xbef   : > { %v18431_v56 = vsub.f32 %v9680_v49, %v18374_v57  ;;  %v9662_v44 = vmul.f32 2.0, %v9592_v39  ;;  %v14274_v13 = vpop.f32.mrb[135].mxu0 }
 0xbf1   : > { %13557 = vst.msk [vmem:[%s15257_s21 + $0x1f0] sm:$0xff] %vm833_vm4, %v18431_v56  ;;  %v9681_v30 = vsub.f32 %v9662_v44, %v18391_v22  ;;  %v9732_v43 = vsel %vm833_vm4, %v18431_v56, -inf  ;;  %v18450_v44 = vpop.xlane.xlu0 %7626 }
 0xbf2   : > { %v9597_v58 = vpop.f32.mrb[136].mxu0  ;;  %9733 = vmax.xlane.f32.xlu0 %v9732_v43  ;;  %22999 = vst [vmem:[#allocation161_spill] sm:$0xff] %v18450_v44 }
 0xbf3   : > { %v18442_v61 = vsub.f32 %v9681_v30, %v18374_v57  ;;  %v9663_v49 = vmul.f32 2.0, %v9597_v58  ;;  %v14277_v2 = vpop.f32.mrb[137].mxu0  ;;  %v18455_v58 = vpop.xlane.xlu1 %7617 }
 0xbf4   : > { %23000 = vst [vmem:[#allocation162_spill] sm:$0xff] %v18455_v58 }
 0xbf5   : > { %13558 = vst.msk [vmem:[%s15257_s21 + $0x1f8] sm:$0xff] %vm833_vm4, %v18442_v61  ;;  %v9682_v13 = vsub.f32 %v9663_v49, %v18408_v38  ;;  %v9735_v39 = vsel %vm833_vm4, %v18442_v61, -inf }
 0xbf6   : > { %v9602_v22 = vpop.f32.mrb[138].mxu0  ;;  %9736 = vmax.xlane.f32.xlu1 %v9735_v39 }
 0xbf7   : > { %v18453_v43 = vsub.f32 %v9682_v13, %v18374_v57  ;;  %v9664_v30 = vmul.f32 2.0, %v9602_v22  ;;  %v14280_v47 = vpop.f32.mrb[139].mxu0  ;;  %v18466_v22 = vpop.xlane.xlu0 %7629 }
 0xbf8   : > { %23001 = vst [vmem:[#allocation163_spill] sm:$0xff] %v18466_v22 }
 0xbf9   : > { %13559 = vst.msk [vmem:[%s15257_s21 + $0x200] sm:$0xff] %vm833_vm4, %v18453_v43  ;;  %v9683_v2 = vsub.f32 %v9664_v30, %v18455_v58  ;;  %v9738_v49 = vsel %vm833_vm4, %v18453_v43, -inf }
 0xbfa   : > { %v9607_v38 = vpop.f32.mrb[140].mxu0  ;;  %9739 = vmax.xlane.f32.xlu0 %v9738_v49 }
 0xbfb   : > { %v18464_v39 = vsub.f32 %v9683_v2, %v18374_v57  ;;  %v9665_v13 = vmul.f32 2.0, %v9607_v38  ;;  %v14283_v12 = vpop.f32.mrb[141].mxu0 }
 0xbfd   : > { %13560 = vst.msk [vmem:[%s15257_s21 + $0x208] sm:$0xff] %vm833_vm4, %v18464_v39  ;;  %v9684_v47 = vsub.f32 %v9665_v13, %v18419_v50  ;;  %v9741_v30 = vsel %vm833_vm4, %v18464_v39, -inf  ;;  %v18483_v13 = vpop.xlane.xlu0 %7632 }
 0xbfe   : > { %v9612_v58 = vpop.f32.mrb[142].mxu0  ;;  %9742 = vmax.xlane.f32.xlu1 %v9741_v30  ;;  %23002 = vst [vmem:[#allocation164_spill] sm:$0xff] %v18483_v13 }
 0xbff   : > { %v18475_v49 = vsub.f32 %v9684_v47, %v18374_v57  ;;  %v9666_v2 = vmul.f32 2.0, %v9612_v58  ;;  %v14286_v33 = vpop.f32.mrb[143].mxu0 }
 0xc01   : > { %13561 = vst.msk [vmem:[%s15257_s21 + $0x210] sm:$0xff] %vm833_vm4, %v18475_v49  ;;  %v9685_v12 = vsub.f32 %v9666_v2, %v18433_v60  ;;  %v9744_v38 = vsel %vm833_vm4, %v18475_v49, -inf }
 0xc02   : > { %v9617_v50 = vpop.f32.mrb[144].mxu0  ;;  %9745 = vmax.xlane.f32.xlu0 %v9744_v38 }
 0xc03   : > { %v18486_v30 = vsub.f32 %v9685_v12, %v18374_v57  ;;  %v9667_v47 = vmul.f32 2.0, %v9617_v50  ;;  %v14289_v3 = vpop.f32.mrb[145].mxu0  ;;  %v18497_v12 = vpop.xlane.xlu0 %7635 }
 0xc04   : > { %23003 = vst [vmem:[#allocation165_spill] sm:$0xff] %v18497_v12 }
 0xc05   : > { %13562 = vst.msk [vmem:[%s15257_s21 + $0x218] sm:$0xff] %vm833_vm4, %v18486_v30  ;;  %v9686_v33 = vsub.f32 %v9667_v47, %v18450_v44  ;;  %v9747_v58 = vsel %vm833_vm4, %v18486_v30, -inf }
 0xc06   : > { %v9622_v2 = vpop.f32.mrb[146].mxu0  ;;  %9748 = vmax.xlane.f32.xlu1 %v9747_v58 }
 0xc07   : > { %v18495_v60 = vsub.f32 %v9686_v33, %v18374_v57  ;;  %v9668_v38 = vmul.f32 2.0, %v9622_v2  ;;  %v14292_v11 = vpop.f32.mrb[147].mxu0 }
 0xc09   : > { %13563 = vst.msk [vmem:[%s15257_s21 + $0x220] sm:$0xff] %vm833_vm4, %v18495_v60  ;;  %v9687_v3 = vsub.f32 %v9668_v38, %v18466_v22  ;;  %v9750_v50 = vsel %vm833_vm4, %v18495_v60, -inf  ;;  %v18514_v38 = vpop.xlane.xlu0 %7638 }
 0xc0a   : > { %v9627_v47 = vpop.f32.mrb[148].mxu0  ;;  %9751 = vmax.xlane.f32.xlu0 %v9750_v50  ;;  %23004 = vst [vmem:[#allocation166_spill] sm:$0xff] %v18514_v38 }
 0xc0b   : > { %v18506_v58 = vsub.f32 %v9687_v3, %v18374_v57  ;;  %v9669_v33 = vmul.f32 2.0, %v9627_v47  ;;  %v14295_v44 = vpop.f32.mrb[149].mxu0 }
 0xc0d   : > { %13564 = vst.msk [vmem:[%s15257_s21 + $0x228] sm:$0xff] %vm833_vm4, %v18506_v58  ;;  %v9688_v11 = vsub.f32 %v9669_v33, %v18483_v13  ;;  %v9753_v2 = vsel %vm833_vm4, %v18506_v58, -inf }
 0xc0e   : > { %v9632_v22 = vpop.f32.mrb[150].mxu0  ;;  %9754 = vmax.xlane.f32.xlu1 %v9753_v2 }
 0xc0f   : > { %v18517_v50 = vsub.f32 %v9688_v11, %v18374_v57  ;;  %v9670_v3 = vmul.f32 2.0, %v9632_v22  ;;  %v14298_v32 = vpop.f32.mrb[151].mxu0  ;;  %v18528_v11 = vpop.xlane.xlu0 %7641 }
 0xc10   : > { %23005 = vst [vmem:[#allocation167_spill] sm:$0xff] %v18528_v11 }
 0xc11   : > { %13565 = vst.msk [vmem:[%s15257_s21 + $0x230] sm:$0xff] %vm833_vm4, %v18517_v50  ;;  %v9689_v44 = vsub.f32 %v9670_v3, %v18497_v12  ;;  %v9756_v47 = vsel %vm833_vm4, %v18517_v50, -inf }
 0xc12   : > { %v9637_v33 = vpop.f32.mrb[152].mxu0  ;;  %9757 = vmax.xlane.f32.xlu0 %v9756_v47 }
 0xc13   : > { %v18526_v13 = vsub.f32 %v9689_v44, %v18374_v57  ;;  %v9671_v2 = vmul.f32 2.0, %v9637_v33  ;;  %v14301_v21 = vpop.f32.mrb[153].mxu0 }
 0xc15   : > { %13566 = vst.msk [vmem:[%s15257_s21 + $0x238] sm:$0xff] %vm833_vm4, %v18526_v13  ;;  %v9690_v32 = vsub.f32 %v9671_v2, %v18514_v38  ;;  %v9759_v22 = vsel %vm833_vm4, %v18526_v13, -inf  ;;  %v18545_v2 = vpop.xlane.xlu0 %7644 }
 0xc16   : > { %v9642_v3 = vpop.f32.mrb[154].mxu0  ;;  %9760 = vmax.xlane.f32.xlu1 %v9759_v22  ;;  %23006 = vst [vmem:[#allocation168_spill] sm:$0xff] %v18545_v2 }
 0xc17   : > { %v18537_v47 = vsub.f32 %v9690_v32, %v18374_v57  ;;  %v9672_v44 = vmul.f32 2.0, %v9642_v3  ;;  %v14304_v12 = vpop.f32.mrb[155].mxu0 }
 0xc19   : > { %13567 = vst.msk [vmem:[%s15257_s21 + $0x240] sm:$0xff] %vm833_vm4, %v18537_v47  ;;  %v9691_v21 = vsub.f32 %v9672_v44, %v18528_v11  ;;  %v9762_v33 = vsel %vm833_vm4, %v18537_v47, -inf }
 0xc1a   : > { %v9647_v38 = vpop.f32.mrb[156].mxu0  ;;  %9763 = vmax.xlane.f32.xlu0 %v9762_v33 }
 0xc1b   : > { %v18548_v22 = vsub.f32 %v9691_v21, %v18374_v57  ;;  %v9673_v32 = vmul.f32 2.0, %v9647_v38  ;;  %v14307_v3 = vpop.f32.mrb[157].mxu0  ;;  %v18559_v21 = vpop.xlane.xlu0 %7647 }
 0xc1c   : > { %23007 = vst [vmem:[#allocation169_spill] sm:$0xff] %v18559_v21 }
 0xc1d   : > { %13568 = vst.msk [vmem:[%s15257_s21 + $0x248] sm:$0xff] %vm833_vm4, %v18548_v22  ;;  %v9692_v12 = vsub.f32 %v9673_v32, %v18545_v2  ;;  %v9765_v44 = vsel %vm833_vm4, %v18548_v22, -inf }
 0xc1e   : > { %v9652_v11 = vpop.f32.mrb[158].mxu0  ;;  %9766 = vmax.xlane.f32.xlu0 %v9765_v44 }
 0xc1f   : > { %v18557_v18 = vsub.f32 %v9692_v12, %v18374_v57  ;;  %v9674_v33 = vmul.f32 2.0, %v9652_v11  ;;  %v14310_v28 = vpop.f32.mrb[159].mxu0 }
 0xc21   : > { %13569 = vst.msk [vmem:[%s15257_s21 + $0x250] sm:$0xff] %vm833_vm4, %v18557_v18  ;;  %v9693_v38 = vsub.f32 %v9674_v33, %v18559_v21  ;;  %v9768_v32 = vsel %vm833_vm4, %v18557_v18, -inf }
 0xc22   : > { %9769 = vmax.xlane.f32.xlu0 %v9768_v32 }
 0xc23   : > { %v18568_v3 = vsub.f32 %v9693_v38, %v18374_v57 }
 0xc25   : > { %13570 = vst.msk [vmem:[%s15257_s21 + $0x258] sm:$0x3f] %vm888_vm5, %v18568_v3  ;;  %v9771_v28 = vsel %vm888_vm5, %v18568_v3, -inf }
 0xc26   : > { %9772 = vmax.xlane.f32.xlu0 %v9771_v28 }
 0xc6b   : > { %v9719_v11 = vpop.xlane.xlu1 %9718 }
 0xc6c   : > { %vm9774_vm1 = vcmp.eq.f32.partialorder %v18380_v51, %v9719_v11 }
 0xc6d   : > { %v9793_v12 = vsel %vm9774_vm1, %v15409_v42, 64 }
 0xc6e   : > { %v18578_v44 = vsel %vm833_vm4, %v9793_v12, 2147483647 }
 0xc6f   : > { %v9722_v33 = vpop.xlane.xlu0 %9721  ;;  %v9814_v32 = vshra.s32 %v18578_v44, 16 }
 0xc70   : > { %vm9775_vm11 = vcmp.eq.f32.partialorder %v18389_v23, %v9722_v33 }
 0xc71   : > { %v9794_v57 = vsel %vm9775_vm11, %v15409_v42, 64  ;;  %v18583_v38 = vcvt.s32.f32 %v9814_v32 }
 0xc72   : > { %v18586_v21 = vsel %vm833_vm4, %v9794_v57, 2147483647 }
 0xc73   : > { %v9725_v28 = vpop.xlane.xlu1 %9724  ;;  %9817 = vmin.xlane.f32.xlu0 %v18583_v38  ;;  %v9829_v51 = vshra.s32 %v18586_v21, 16 }
 0xc74   : > { %vm9776_vm12 = vcmp.eq.f32.partialorder %v18400_v41, %v9725_v28 }
 0xc75   : > { %v9795_v11 = vsel %vm9776_vm12, %v15409_v42, 64  ;;  %v18592_v12 = vcvt.s32.f32 %v9829_v51 }
 0xc76   : > { %v18595_v23 = vsel %vm833_vm4, %v9795_v11, 2147483647 }
 0xc77   : > { %9832 = vmin.xlane.f32.xlu1 %v18592_v12  ;;  %v9728_v33 = vpop.xlane.xlu0 %9727  ;;  %v9844_v32 = vshra.s32 %v18595_v23, 16 }
 0xc78   : > { %vm9777_vm13 = vcmp.eq.f32.partialorder %v18411_v1, %v9728_v33 }
 0xc79   : > { %v9796_v57 = vsel %vm9777_vm13, %v15409_v42, 64  ;;  %v18601_v2 = vcvt.s32.f32 %v9844_v32 }
 0xc7a   : > { %v18604_v41 = vsel %vm833_vm4, %v9796_v57, 2147483647 }
 0xc7b   : > { %v9731_v28 = vpop.xlane.xlu1 %9730  ;;  %9847 = vmin.xlane.f32.xlu0 %v18601_v2  ;;  %v9859_v51 = vshra.s32 %v18604_v41, 16 }
 0xc7c   : > { %vm9778_vm14 = vcmp.eq.f32.partialorder %v18422_v16, %v9731_v28 }
 0xc7d   : > { %v9797_v11 = vsel %vm9778_vm14, %v15409_v42, 64  ;;  %v18610_v29 = vcvt.s32.f32 %v9859_v51 }
 0xc7e   : > { %v18613_v1 = vsel %vm833_vm4, %v9797_v11, 2147483647 }
 0xc7f   : > { %9862 = vmin.xlane.f32.xlu0 %v18610_v29  ;;  %v9734_v33 = vpop.xlane.xlu0 %9733  ;;  %v9874_v32 = vshra.s32 %v18613_v1, 16 }
 0xc80   : > { %vm9779_vm15 = vcmp.eq.f32.partialorder %v18431_v56, %v9734_v33 }
 0xc81   : > { %v9798_v57 = vsel %vm9779_vm15, %v15409_v42, 64  ;;  %v18619_v48 = vcvt.s32.f32 %v9874_v32 }
 0xc82   : > { %v18622_v16 = vsel %vm833_vm4, %v9798_v57, 2147483647 }
 0xc83   : > { %v9737_v28 = vpop.xlane.xlu1 %9736  ;;  %9877 = vmin.xlane.f32.xlu0 %v18619_v48  ;;  %v9889_v51 = vshra.s32 %v18622_v16, 16 }
 0xc84   : > { %vm9780_vm7 = vcmp.eq.f32.partialorder %v18442_v61, %v9737_v28 }
 0xc85   : > { %v9799_v11 = vsel %vm9780_vm7, %v15409_v42, 64  ;;  %v18628_v31 = vcvt.s32.f32 %v9889_v51 }
 0xc86   : > { %v18631_v56 = vsel %vm833_vm4, %v9799_v11, 2147483647 }
 0xc87   : > { %9892 = vmin.xlane.f32.xlu0 %v18628_v31  ;;  %v9740_v33 = vpop.xlane.xlu0 %9739  ;;  %v9904_v32 = vshra.s32 %v18631_v56, 16 }
 0xc88   : > { %vm9781_vm8 = vcmp.eq.f32.partialorder %v18453_v43, %v9740_v33 }
 0xc89   : > { %v9800_v57 = vsel %vm9781_vm8, %v15409_v42, 64  ;;  %v18637_v45 = vcvt.s32.f32 %v9904_v32 }
 0xc8a   : > { %v18640_v61 = vsel %vm833_vm4, %v9800_v57, 2147483647 }
 0xc8b   : > { %v9743_v28 = vpop.xlane.xlu1 %9742  ;;  %9907 = vmin.xlane.f32.xlu0 %v18637_v45  ;;  %v9919_v51 = vshra.s32 %v18640_v61, 16 }
 0xc8c   : > { %vm9782_vm10 = vcmp.eq.f32.partialorder %v18464_v39, %v9743_v28 }
 0xc8d   : > { %v9801_v11 = vsel %vm9782_vm10, %v15409_v42, 64  ;;  %v18646_v5 = vcvt.s32.f32 %v9919_v51 }
 0xc8e   : > { %v18649_v43 = vsel %vm833_vm4, %v9801_v11, 2147483647 }
 0xc8f   : > { %9922 = vmin.xlane.f32.xlu0 %v18646_v5  ;;  %v9746_v33 = vpop.xlane.xlu0 %9745  ;;  %v9934_v32 = vshra.s32 %v18649_v43, 16 }
 0xc90   : > { %vm9783_vm1 = vcmp.eq.f32.partialorder %v18475_v49, %v9746_v33 }
 0xc91   : > { %v9802_v57 = vsel %vm9783_vm1, %v15409_v42, 64  ;;  %v18655_v54 = vcvt.s32.f32 %v9934_v32 }
 0xc92   : > { %v18658_v39 = vsel %vm833_vm4, %v9802_v57, 2147483647 }
 0xc93   : > { %v9749_v28 = vpop.xlane.xlu1 %9748  ;;  %9937 = vmin.xlane.f32.xlu0 %v18655_v54  ;;  %v9949_v51 = vshra.s32 %v18658_v39, 16  ;;  %v9948_v24 = vand.u32 65535, %v18658_v39 }
 0xc94   : > { %vm9784_vm11 = vcmp.eq.f32.partialorder %v18486_v30, %v9749_v28 }
 0xc95   : > { %v9803_v11 = vsel %vm9784_vm11, %v15409_v42, 64  ;;  %v18664_v35 = vcvt.s32.f32 %v9949_v51 }
 0xc96   : > { %v18667_v49 = vsel %vm833_vm4, %v9803_v11, 2147483647 }
 0xc97   : > { %9952 = vmin.xlane.f32.xlu0 %v18664_v35  ;;  %v9752_v33 = vpop.xlane.xlu0 %9751  ;;  %v9964_v32 = vshra.s32 %v18667_v49, 16  ;;  %v9963_v40 = vand.u32 65535, %v18667_v49 }
 0xc98   : > { %vm9785_vm12 = vcmp.eq.f32.partialorder %v18495_v60, %v9752_v33 }
 0xc99   : > { %v9804_v57 = vsel %vm9785_vm12, %v15409_v42, 64  ;;  %v18673_v0 = vcvt.s32.f32 %v9964_v32 }
 0xc9a   : > { %v18676_v30 = vsel %vm833_vm4, %v9804_v57, 2147483647 }
 0xc9b   : > { %v9755_v28 = vpop.xlane.xlu1 %9754  ;;  %9967 = vmin.xlane.f32.xlu0 %v18673_v0  ;;  %v9979_v51 = vshra.s32 %v18676_v30, 16 }
 0xc9c   : > { %vm9786_vm13 = vcmp.eq.f32.partialorder %v18506_v58, %v9755_v28 }
 0xc9d   : > { %v9805_v11 = vsel %vm9786_vm13, %v15409_v42, 64  ;;  %v18682_v34 = vcvt.s32.f32 %v9979_v51 }
 0xc9e   : > { %v18685_v60 = vsel %vm833_vm4, %v9805_v11, 2147483647 }
 0xc9f   : > { %9982 = vmin.xlane.f32.xlu1 %v18682_v34  ;;  %v9758_v33 = vpop.xlane.xlu0 %9757  ;;  %v9994_v32 = vshra.s32 %v18685_v60, 16 }
 0xca0   : > { %vm9787_vm14 = vcmp.eq.f32.partialorder %v18517_v50, %v9758_v33 }
 0xca1   : > { %v9806_v57 = vsel %vm9787_vm14, %v15409_v42, 64  ;;  %v18691_v62 = vcvt.s32.f32 %v9994_v32 }
 0xca2   : > { %v18694_v58 = vsel %vm833_vm4, %v9806_v57, 2147483647 }
 0xca3   : > { %v9761_v28 = vpop.xlane.xlu1 %9760  ;;  %9997 = vmin.xlane.f32.xlu0 %v18691_v62  ;;  %v10009_v51 = vshra.s32 %v18694_v58, 16 }
 0xca4   : > { %vm9788_vm15 = vcmp.eq.f32.partialorder %v18526_v13, %v9761_v28 }
 0xca5   : > { %v9807_v11 = vsel %vm9788_vm15, %v15409_v42, 64  ;;  %v18700_v4 = vcvt.s32.f32 %v10009_v51 }
 0xca6   : > { %v18703_v50 = vsel %vm833_vm4, %v9807_v11, 2147483647 }
 0xca7   : > { %10012 = vmin.xlane.f32.xlu1 %v18700_v4  ;;  %v9764_v33 = vpop.xlane.xlu0 %9763  ;;  %v10024_v32 = vshra.s32 %v18703_v50, 16 }
 0xca8   : > { %vm9789_vm7 = vcmp.eq.f32.partialorder %v18537_v47, %v9764_v33 }
 0xca9   : > { %v9808_v57 = vsel %vm9789_vm7, %v15409_v42, 64  ;;  %v18709_v53 = vcvt.s32.f32 %v10024_v32 }
 0xcaa   : > { %v18712_v13 = vsel %vm833_vm4, %v9808_v57, 2147483647 }
 0xcab   : > { %10027 = vmin.xlane.f32.xlu1 %v18709_v53  ;;  %v9767_v28 = vpop.xlane.xlu0 %9766  ;;  %v10039_v51 = vshra.s32 %v18712_v13, 16 }
 0xcac   : > { %vm9790_vm8 = vcmp.eq.f32.partialorder %v18548_v22, %v9767_v28 }
 0xcad   : > { %v9809_v11 = vsel %vm9790_vm8, %v15409_v42, 64  ;;  %v18718_v8 = vcvt.s32.f32 %v10039_v51 }
 0xcae   : > { %v18721_v47 = vsel %vm833_vm4, %v9809_v11, 2147483647 }
 0xcaf   : > { %10042 = vmin.xlane.f32.xlu1 %v18718_v8  ;;  %v9770_v33 = vpop.xlane.xlu0 %9769  ;;  %v10054_v32 = vshra.s32 %v18721_v47, 16 }
 0xcb0   : > { %vm9791_vm10 = vcmp.eq.f32.partialorder %v18557_v18, %v9770_v33 }
 0xcb1   : > { %v9810_v57 = vsel %vm9791_vm10, %v15409_v42, 64  ;;  %v18727_v59 = vcvt.s32.f32 %v10054_v32 }
 0xcb2   : > { %v18730_v22 = vsel %vm833_vm4, %v9810_v57, 2147483647  ;;  %v9813_v57 = vand.u32 65535, %v18578_v44 }
 0xcb3   : > { %10057 = vmin.xlane.f32.xlu1 %v18727_v59  ;;  %v9773_v28 = vpop.xlane.xlu0 %9772  ;;  %v10069_v51 = vshra.s32 %v18730_v22, 16 }
 0xcb4   : > { %vm9792_vm1 = vcmp.eq.f32.partialorder %v18568_v3, %v9773_v28  ;;  %v9815_v3 = vcvt.s32.f32 %v9813_v57  ;;  %v9828_v28 = vand.u32 65535, %v18586_v21  ;;  %v9858_v21 = vand.u32 65535, %v18604_v41 }
 0xcb5   : > { %v9811_v11 = vsel %vm9792_vm1, %v15409_v42, 64  ;;  %v18736_v36 = vcvt.s32.f32 %v10069_v51  ;;  %v9888_v41 = vand.u32 65535, %v18622_v16 }
 0xcb6   : > { %v18739_v18 = vsel %vm888_vm5, %v9811_v11, 2147483647  ;;  %v9830_v6 = vcvt.s32.f32 %v9828_v28  ;;  %v9860_v28 = vcvt.s32.f32 %v9858_v21 }
 0xcb7   : > { %10072 = vmin.xlane.f32.xlu1 %v18736_v36  ;;  %v10084_v33 = vshra.s32 %v18739_v18, 16 }
 0xcb9   : > { %v18743_v32 = vcvt.s32.f32 %v10084_v33  ;;  %v9843_v33 = vand.u32 65535, %v18595_v23  ;;  %v9873_v23 = vand.u32 65535, %v18613_v1  ;;  %v9903_v1 = vand.u32 65535, %v18631_v56 }
 0xcbb   : > { %10087 = vmin.xlane.f32.xlu1 %v18743_v32  ;;  %v9845_v57 = vcvt.s32.f32 %v9843_v33  ;;  %v9890_v33 = vcvt.s32.f32 %v9888_v41 }
 0xd00   : > { %v18747_v15 = vpop.xlane.xlu0 %9817 }
 0xd01   : > { %vm9819_vm11 = vcmp.eq.f32.partialorder %v18583_v38, %v18747_v15 }
 0xd02   : > { %v9820_v51 = vsel %vm9819_vm11, %v9815_v3, inf }
 0xd03   : > { %9821 = vmin.xlane.f32.xlu1 %v9820_v51 }
 0xd04   : > { %v18752_v11 = vpop.xlane.xlu1 %9832 }
 0xd05   : > { %vm9834_vm5 = vcmp.eq.f32.partialorder %v18592_v12, %v18752_v11  ;;  %v9875_v12 = vcvt.s32.f32 %v9873_v23  ;;  %v9918_v23 = vand.u32 65535, %v18640_v61 }
 0xd06   : > { %v9835_v9 = vsel %vm9834_vm5, %v9830_v6, inf }
 0xd07   : > { %9836 = vmin.xlane.f32.xlu1 %v9835_v9 }
 0xd08   : > { %v18757_v44 = vpop.xlane.xlu0 %9847 }
 0xd09   : > { %vm9849_vm12 = vcmp.eq.f32.partialorder %v18601_v2, %v18757_v44 }
 0xd0a   : > { %v9850_v38 = vsel %vm9849_vm12, %v9845_v57, inf  ;;  %v23011_v57 = vlaneseq }
 0xd0b   : > { %9851 = vmin.xlane.f32.xlu1 %v9850_v38  ;;  %v14916_v38 = vmov 1966171168  }
 0xd0c   : > { %v18762_v3 = vpop.xlane.xlu0 %9862  ;;  %v18776_v21 = vshrl.u32 %v23011_v57, 7  ;;  %v2360_v16 = vunpack.c.l.s4 %v14916_v38  ;;  %v9920_v38 = vcvt.s32.f32 %v9918_v23 }
 0xd0d   : > { %23008 = vst [vmem:[#allocation170_spill] sm:$0xff] %v18762_v3  ;;  %vm9864_vm13 = vcmp.eq.f32.partialorder %v18610_v29, %v18762_v3 }
 0xd0e   : > { %v9865_v6 = vsel %vm9864_vm13, %v9860_v28, inf  ;;  %23012 = vst [vmem:[#allocation173_spill] sm:$0xff] %v18776_v21  ;;  %v18787_v56 = vsub.s32 1, %v18776_v21  ;;  %v18795_v41 = vsub.s32 3, %v18776_v21  ;;  %v18801_v61 = vsub.s32 5, %v18776_v21 }
 0xd0f   : > { %9866 = vmin.xlane.f32.xlu1 %v9865_v6  ;;  %v18784_v6 = vsub.s32 0, %v18776_v21 }
 0xd10   : > { %v18767_v9 = vpop.xlane.xlu0 %9877  ;;  %v1778_v23 = vrot.slane %v23015_v14, %v18801_v61 }
 0xd11   : > { %23009 = vst [vmem:[#allocation171_spill] sm:$0xff] %v18767_v9  ;;  %vm9879_vm14 = vcmp.eq.f32.partialorder %v18619_v48, %v18767_v9  ;;  %v9905_v48 = vcvt.s32.f32 %v9903_v1  ;;  %v18807_v1 = vsub.s32 7, %v18776_v21  ;;  %v1758_v7 = vrot.slane %v23015_v14, %v18784_v6 }
 0xd12   : > { %v9880_v2 = vsel %vm9879_vm14, %v9875_v12, inf  ;;  %v9993_v9 = vand.u32 65535, %v18685_v60 }
 0xd13   : > { %9881 = vmin.xlane.f32.xlu1 %v9880_v2  ;;  %v18798_v2 = vsub.s32 4, %v18776_v21 }
 0xd14   : > { %v18772_v51 = vpop.xlane.xlu0 %9892 }
 0xd15   : > { %23010 = vst [vmem:[#allocation172_spill] sm:$0xff] %v18772_v51  ;;  %vm9894_vm15 = vcmp.eq.f32.partialorder %v18628_v31, %v18772_v51  ;;  %v18792_v31 = vsub.s32 2, %v18776_v21 }
 0xd16   : > { %v9895_v29 = vsel %vm9894_vm15, %v9890_v33, inf  ;;  %v18804_v33 = vsub.s32 6, %v18776_v21 }
 0xd17   : > { %9896 = vmin.xlane.f32.xlu1 %v9895_v29  ;;  %v1766_v19 = vrot.slane %v23015_v14, %v18792_v31 }
 0xd18   : > { %v18780_v28 = vpop.xlane.xlu0 %9907  ;;  %v1782_v27 = vrot.slane %v23015_v14, %v18804_v33 }
 0xd19   : > { %23013 = vst [vmem:[#allocation174_spill] sm:$0xff] %v18780_v28  ;;  %vm9909_vm7 = vcmp.eq.f32.partialorder %v18637_v45, %v18780_v28  ;;  %v2361_v45 = vunpack.c.0.s8 %v2360_v16  ;;  %v1770_v16 = vrot.slane %v23015_v14, %v18795_v41 }
 0xd1a   : > { %v9910_v12 = vsel %vm9909_vm7, %v9905_v48, inf  ;;  %v9933_v48 = vand.u32 65535, %v18649_v43  ;;  %v1774_v43 = vrot.slane %v23015_v14, %v18798_v2 }
 0xd1b   : > { %9911 = vmin.xlane.f32.xlu0 %v9910_v12  ;;  %v1762_v12 = vrot.slane %v23015_v14, %v18787_v56  ;;  %v2356_v57 = vcombine.low %v1766_v19, %v1770_v16  ;;  %v23019_v19 = vld [vmem:[#allocation17_spill] sm:$0xff] }
 0xd1c   : > { %v18809_v29 = vpop.xlane.xlu0 %9922  ;;  %v9935_v46 = vcvt.s32.f32 %v9933_v48  ;;  %v2357_v25 = vcombine.low %v1774_v43, %v1778_v23  ;;  %v1874_v16 = vrot.slane %v23019_v19, %v18801_v61  ;;  %v9965_v23 = vcvt.s32.f32 %v9963_v40 }
 0xd1d   : > { %23014 = vst [vmem:[#allocation175_spill] sm:$0xff] %v18809_v29  ;;  %vm9924_vm8 = vcmp.eq.f32.partialorder %v18646_v5, %v18809_v29  ;;  %v1786_v5 = vrot.slane %v23015_v14, %v18807_v1  ;;  %v2355_v20 = vcombine.low %v1758_v7, %v1762_v12  ;;  %v9950_v14 = vcvt.s32.f32 %v9948_v24  ;;  %v23018_v7 = vld [vmem:[#allocation14_spill] sm:$0xff] }
 0xd1e   : > { %v9925_v63 = vsel %vm9924_vm8, %v9920_v38, inf  ;;  %v1790_v39 = vrot.slane %v23018_v7, %v18784_v6  ;;  %v1806_v49 = vrot.slane %v23018_v7, %v18798_v2  ;;  %v1870_v12 = vrot.slane %v23019_v19, %v18798_v2 }
 0xd1f   : > { %9926 = vmin.xlane.f32.xlu0 %v9925_v63  ;;  %v18834_v63 = vsub.s32 %v2361_v45, %v18776_v21  ;;  %v2358_v37 = vcombine.low %v1782_v27, %v1786_v5  ;;  %v1802_v27 = vrot.slane %v23018_v7, %v18795_v41  ;;  %v1866_v45 = vrot.slane %v23019_v19, %v18795_v41 }
 0xd20   : > { %v18830_v38 = vpop.xlane.xlu0 %9937  ;;  %v9978_v5 = vand.u32 65535, %v18676_v30  ;;  %v1810_v21 = vrot.slane %v23018_v7, %v18801_v61  ;;  %v1818_v40 = vrot.slane %v23018_v7, %v18807_v1 }
 0xd21   : > { %23016 = vst [vmem:[#allocation13_spill] sm:$0xff] %v18830_v38  ;;  %vm9939_vm10 = vcmp.eq.f32.partialorder %v18655_v54, %v18830_v38  ;;  %v2365_v48 = vrot.slane %v2355_v20, %v18834_v63  ;;  %v1854_v54 = vrot.slane %v23019_v19, %v18784_v6  ;;  %v1858_v20 = vrot.slane %v23019_v19, %v18787_v56 }
 0xd22   : > { %v9940_v10 = vsel %vm9939_vm10, %v9935_v46, inf  ;;  %v1794_v46 = vrot.slane %v23018_v7, %v18787_v56  ;;  %v2372_v30 = vrot.slane %v2356_v57, %v18834_v63  ;;  %v2379_v29 = vrot.slane %v2357_v25, %v18834_v63 }
 0xd23   : > { %9941 = vmin.xlane.f32.xlu0 %v9940_v10  ;;  %v1798_v10 = vrot.slane %v23018_v7, %v18792_v31  ;;  %v2386_v28 = vrot.slane %v2358_v37, %v18834_v63  ;;  %v9980_v55 = vcvt.s32.f32 %v9978_v5  ;;  %v2406_v57 = vcombine.low %v1806_v49, %v1810_v21 }
 0xd24   : > { %v18838_v26 = vpop.xlane.xlu0 %9952 }
 0xd25   : > { %23017 = vst [vmem:[#allocation176_spill] sm:$0xff] %v18838_v26  ;;  %vm9954_vm1 = vcmp.eq.f32.partialorder %v18664_v35, %v18838_v26  ;;  %v1862_v35 = vrot.slane %v23019_v19, %v18792_v31  ;;  %v1814_v26 = vrot.slane %v23018_v7, %v18804_v33  ;;  %v2405_v3 = vcombine.low %v1798_v10, %v1802_v27 }
 0xd26   : > { %v9955_v24 = vsel %vm9954_vm1, %v9950_v14, inf  ;;  %v1878_v14 = vrot.slane %v23019_v19, %v18804_v33  ;;  %v2388_v37 = vcombine.low %v2379_v29, %v2386_v28  ;;  %v9995_v10 = vcvt.s32.f32 %v9993_v9 }
 0xd27   : > { %9956 = vmin.xlane.f32.xlu0 %v9955_v24  ;;  %v1882_v24 = vrot.slane %v23019_v19, %v18807_v1  ;;  %v2502_v19 = vcombine.low %v1854_v54, %v1858_v20  ;;  %v2503_v51 = vcombine.low %v1862_v35, %v1866_v45  ;;  %v2407_v7 = vcombine.low %v1814_v26, %v1818_v40 }
 0xd28   : > { %v18866_v43 = vpop.xlane.xlu0 %9967  ;;  %v10008_v27 = vand.u32 65535, %v18694_v58  ;;  %v2428_v26 = vrot.slane %v2406_v57, %v18834_v63  ;;  %v2402_v29 = vrot.slane %v2388_v37, %v18834_v63  ;;  %v23023_v58 = vld [vmem:[#allocation16_spill] sm:$0xff] }
 0xd29   : > { %23020 = vst [vmem:[#allocation14_spill] sm:$0xff] %v18866_v43  ;;  %vm9969_vm11 = vcmp.eq.f32.partialorder %v18673_v0, %v18866_v43  ;;  %v2504_v0 = vcombine.low %v1870_v12, %v1874_v16  ;;  %v2404_v43 = vcombine.low %v1790_v39, %v1794_v46  ;;  %v2505_v17 = vcombine.low %v1878_v14, %v1882_v24 }
 0xd2a   : > { %v9970_v38 = vsel %vm9969_vm11, %v9965_v23, inf  ;;  %v2387_v23 = vcombine.low %v2365_v48, %v2372_v30  ;;  %v2519_v39 = vrot.slane %v2503_v51, %v18834_v63  ;;  %v2435_v51 = vrot.slane %v2407_v7, %v18834_v63 }
 0xd2b   : > { %9971 = vmin.xlane.f32.xlu0 %v9970_v38  ;;  %v2512_v38 = vrot.slane %v2502_v19, %v18834_v63  ;;  %v2526_v46 = vrot.slane %v2504_v0, %v18834_v63  ;;  %v2414_v54 = vrot.slane %v2404_v43, %v18834_v63  ;;  %v1826_v45 = vrot.slane %v23023_v58, %v18787_v56 }
 0xd2c   : > { %v18884_v52 = vpop.xlane.xlu1 %9982  ;;  %v2395_v28 = vrot.slane %v2387_v23, %v18834_v63  ;;  %v18917_v35 = vcombine.low %v2428_v26, %v2435_v51  ;;  %v1830_v12 = vrot.slane %v23023_v58, %v18792_v31  ;;  %v1834_v43 = vrot.slane %v23023_v58, %v18795_v41 }
 0xd2d   : > { %23021 = vst [vmem:[#allocation17_spill] sm:$0xff] %v18884_v52  ;;  %vm9984_vm5 = vcmp.eq.f32.partialorder %v18682_v34, %v18884_v52  ;;  %v2533_v34 = vrot.slane %v2505_v17, %v18834_v63  ;;  %v18904_v9 = vcombine.low %v2512_v38, %v2519_v39  ;;  %v1822_v17 = vrot.slane %v23023_v58, %v18784_v6  ;;  %v23026_v39 = vld [vmem:[#allocation21_spill] sm:$0xff] }
 0xd2e   : > { %v9985_v25 = vsel %vm9984_vm5, %v9980_v55, inf  ;;  %v2421_v55 = vrot.slane %v2405_v3, %v18834_v63  ;;  %v10010_v3 = vcvt.s32.f32 %v10008_v27  ;;  %v1842_v5 = vrot.slane %v23023_v58, %v18801_v61 }
 0xd2f   : > { %9986 = vmin.xlane.f32.xlu0 %v9985_v25  ;;  %v18911_v20 = vcombine.low %v2526_v46, %v2533_v34  ;;  %v10038_v30 = vand.u32 65535, %v18712_v13  ;;  %v1846_v7 = vrot.slane %v23023_v58, %v18804_v33  ;;  %v1850_v25 = vrot.slane %v23023_v58, %v18807_v1 }
 0xd30   : > { %v18893_v60 = vpop.xlane.xlu0 %9997  ;;  %v18913_v49 = vcombine.low %v2414_v54, %v2421_v55  ;;  %v18948_v13 = vcombine.low %v1822_v17, %v1826_v45  ;;  %v18950_v37 = vcombine.low %v1830_v12, %v1834_v43  ;;  %v1986_v46 = vrot.slane %v23026_v39, %v18787_v56 }
 0xd31   : > { %23022 = vst [vmem:[#allocation177_spill] sm:$0xff] %v18893_v60  ;;  %vm9999_vm12 = vcmp.eq.f32.partialorder %v18691_v62, %v18893_v60  ;;  %v10023_v62 = vand.u32 65535, %v18703_v50  ;;  %v1838_v50 = vrot.slane %v23023_v58, %v18798_v2  ;;  %v2549_v19 = vrot.slane %v18911_v20, %v18834_v63  ;;  %v14792_v60 = vld [vmem:[%s22726_s1 + $0xb8] sm:$0xff] }
 0xd32   : > { %v10000_v21 = vsel %vm9999_vm12, %v9995_v10, inf  ;;  %v1990_v54 = vrot.slane %v23026_v39, %v18792_v31  ;;  %v1994_v10 = vrot.slane %v23026_v39, %v18795_v41  ;;  %v10040_v34 = vcvt.s32.f32 %v10038_v30 }
 0xd33   : > { %10001 = vmin.xlane.f32.xlu0 %v10000_v21  ;;  %v10025_v40 = vcvt.s32.f32 %v10023_v62  ;;  %v18952_v38 = vcombine.low %v1838_v50, %v1842_v5  ;;  %v10053_v55 = vand.u32 65535, %v18721_v47  ;;  %v1998_v26 = vrot.slane %v23026_v39, %v18798_v2 }
 0xd34   : > { %v18908_v48 = vpop.xlane.xlu1 %10012  ;;  %v2002_v51 = vrot.slane %v23026_v39, %v18801_v61  ;;  %v2006_v21 = vrot.slane %v23026_v39, %v18804_v33  ;;  %v10068_v5 = vand.u32 65535, %v18730_v22  ;;  %v2463_v30 = vrot.slane %v18948_v13, %v18834_v63 }
 0xd35   : > { %23024 = vst [vmem:[#allocation16_spill] sm:$0xff] %v18908_v48  ;;  %vm10014_vm13 = vcmp.eq.f32.partialorder %v18700_v4, %v18908_v48  ;;  %v18929_v4 = vcombine.low %v2395_v28, %v2402_v29  ;;  %v2010_v28 = vrot.slane %v23026_v39, %v18807_v1  ;;  %v23028_v29 = vld [vmem:[#allocation23_spill] sm:$0xff]  ;;  %v10055_v50 = vcvt.s32.f32 %v10053_v55 }
 0xd36   : > { %v10015_v16 = vsel %vm10014_vm13, %v10010_v3, inf  ;;  %v2046_v58 = vrot.slane %v23028_v29, %v18784_v6  ;;  %v2050_v47 = vrot.slane %v23028_v29, %v18787_v56  ;;  %v2054_v3 = vrot.slane %v23028_v29, %v18792_v31 }
 0xd37   : > { %10016 = vmin.xlane.f32.xlu0 %v10015_v16  ;;  %v2058_v62 = vrot.slane %v23028_v29, %v18795_v41  ;;  %v2066_v45 = vrot.slane %v23028_v29, %v18801_v61  ;;  %v2070_v12 = vrot.slane %v23028_v29, %v18804_v33  ;;  %v2074_v16 = vrot.slane %v23028_v29, %v18807_v1 }
 0xd38   : > { %v18933_v24 = vpop.xlane.xlu1 %10027  ;;  %v2700_v0 = vcombine.low %v1998_v26, %v2002_v51  ;;  %v2477_v55 = vrot.slane %v18952_v38, %v18834_v63  ;;  %v2796_v22 = vcombine.low %v2046_v58, %v2050_v47  ;;  %v10070_v14 = vcvt.s32.f32 %v10068_v5 }
 0xd39   : > { %23025 = vst [vmem:[#allocation178_spill] sm:$0xff] %v18933_v24  ;;  %vm10029_vm14 = vcmp.eq.f32.partialorder %v18709_v53, %v18933_v24  ;;  %v1982_v53 = vrot.slane %v23026_v39, %v18784_v6  ;;  %v2699_v39 = vcombine.low %v1990_v54, %v1994_v10  ;;  %v2799_v57 = vcombine.low %v2070_v12, %v2074_v16 }
 0xd3a   : > { %v10030_v23 = vsel %vm10029_vm14, %v10025_v40, inf  ;;  %v2456_v40 = vcombine.low %v1846_v7, %v1850_v25  ;;  %v2797_v7 = vcombine.low %v2054_v3, %v2058_v62  ;;  %v2722_v58 = vrot.slane %v2700_v0, %v18834_v63  ;;  %v14785_v0 = vld [vmem:[%s22726_s1 + $0x80] sm:$0xff] }
 0xd3b   : > { %10031 = vmin.xlane.f32.xlu0 %v10030_v23  ;;  %v2698_v23 = vcombine.low %v1982_v53, %v1986_v46  ;;  %v23031_v53 = vld [vmem:[#allocation25_spill] sm:$0xff]  ;;  %v2827_v16 = vrot.slane %v2799_v57, %v18834_v63  ;;  %v23034_v57 = vrot.slane %v18917_v35, %v18834_v63 }
 0xd3c   : > { %v18962_v27 = vpop.xlane.xlu1 %10042  ;;  %v2110_v46 = vrot.slane %v23031_v53, %v18784_v6  ;;  %v2118_v38 = vrot.slane %v23031_v53, %v18792_v31  ;;  %v2122_v54 = vrot.slane %v23031_v53, %v18795_v41  ;;  %v2126_v10 = vrot.slane %v23031_v53, %v18798_v2 }
 0xd3d   : > { %23027 = vst [vmem:[#allocation21_spill] sm:$0xff] %v18962_v27  ;;  %vm10044_vm15 = vcmp.eq.f32.partialorder %v18718_v8, %v18962_v27  ;;  %v2062_v8 = vrot.slane %v23028_v29, %v18798_v2  ;;  %v2701_v29 = vcombine.low %v2006_v21, %v2010_v28  ;;  %v2134_v51 = vrot.slane %v23031_v53, %v18804_v33 }
 0xd3e   : > { %v10045_v17 = vsel %vm10044_vm15, %v10040_v34, inf  ;;  %v2470_v34 = vrot.slane %v18950_v37, %v18834_v63  ;;  %v2114_v37 = vrot.slane %v23031_v53, %v18787_v56  ;;  %v2138_v21 = vrot.slane %v23031_v53, %v18807_v1 }
 0xd3f   : > { %10046 = vmin.xlane.f32.xlu0 %v10045_v17  ;;  %v2798_v25 = vcombine.low %v2062_v8, %v2066_v45  ;;  %v2715_v28 = vrot.slane %v2699_v39, %v18834_v63  ;;  %v2484_v47 = vrot.slane %v2456_v40, %v18834_v63  ;;  %v2729_v62 = vrot.slane %v2701_v29, %v18834_v63 }
 0xd40   : > { %v18991_v43 = vpop.xlane.xlu1 %10057  ;;  %v2806_v8 = vrot.slane %v2796_v22, %v18834_v63  ;;  %v2813_v45 = vrot.slane %v2797_v7, %v18834_v63  ;;  %v2895_v40 = vcombine.low %v2118_v38, %v2122_v54  ;;  %v2897_v39 = vcombine.low %v2134_v51, %v2138_v21  ;;  %v23037_v7 = vld [vmem:[#allocation18_spill] sm:$0xff]  ;;  %v14786_v38 = vld [vmem:[%s22726_s1 + $0x88] sm:$0xff] }
 0xd41   : > { %23029 = vst [vmem:[#allocation23_spill] sm:$0xff] %v18991_v43  ;;  %vm10059_vm7 = vcmp.eq.f32.partialorder %v18727_v59, %v18991_v43  ;;  %v10083_v59 = vand.u32 65535, %v18739_v18  ;;  %v2130_v18 = vrot.slane %v23031_v53, %v18801_v61  ;;  %v2820_v12 = vrot.slane %v2798_v25, %v18834_v63  ;;  %v14789_v25 = vld [vmem:[%s22726_s1 + $0xa0] sm:$0xff] }
 0xd42   : > { %v10060_v17 = vsel %vm10059_vm7, %v10055_v50, inf  ;;  %v2894_v50 = vcombine.low %v2110_v46, %v2114_v37  ;;  %v23035_v29 = vrot.slane %v18913_v49, %v18834_v63  ;;  %v19061_v53 = vcombine.low %v2463_v30, %v2470_v34 }
 0xd43   : > { %10061 = vmin.xlane.f32.xlu0 %v10060_v17  ;;  %v19069_v49 = vcombine.low %v2806_v8, %v2813_v45  ;;  %v19071_v46 = vcombine.low %v2820_v12, %v2827_v16  ;;  %v19073_v37 = vcombine.low %v2477_v55, %v2484_v47  ;;  %v2911_v34 = vrot.slane %v2895_v40, %v18834_v63  ;;  %v14787_v12 = vld [vmem:[%s22726_s1 + $0x90] sm:$0xff] }
 0xd44   : > { %v19002_v13 = vpop.xlane.xlu1 %10072  ;;  %v19053_v22 = vcombine.low %v23035_v29, %v23034_v57  ;;  %v2904_v30 = vrot.slane %v2894_v50, %v18834_v63  ;;  %v1902_v45 = vrot.slane %v23037_v7, %v18798_v2  ;;  %v1910_v35 = vrot.slane %v23037_v7, %v18804_v33 }
 0xd45   : > { %23030 = vst [vmem:[#allocation179_spill] sm:$0xff] %v19002_v13  ;;  %vm10074_vm8 = vcmp.eq.f32.partialorder %v18736_v36, %v19002_v13  ;;  %v2708_v36 = vrot.slane %v2698_v23, %v18834_v63  ;;  %v2896_v23 = vcombine.low %v2126_v10, %v2130_v18  ;;  %v2925_v10 = vrot.slane %v2897_v39, %v18834_v63 }
 0xd46   : > { %v10075_v26 = vsel %vm10074_vm8, %v10070_v14, inf  ;;  %v10085_v14 = vcvt.s32.f32 %v10083_v59  ;;  %23036 = vst [vmem:[#allocation180_spill] sm:$0xff] %v19053_v22  ;;  %v1890_v59 = vrot.slane %v23037_v7, %v18787_v56  ;;  %v19117_v40 = vcombine.low %v2904_v30, %v2911_v34 }
 0xd47   : > { %10076 = vmin.xlane.f32.xlu0 %v10075_v26  ;;  %v19059_v20 = vcombine.low %v2708_v36, %v2715_v28  ;;  %v2918_v54 = vrot.slane %v2896_v23, %v18834_v63  ;;  %v23038_v26 = vld [vmem:[#allocation27_spill] sm:$0xff] }
 0xd48   : > { %v19027_v3 = vpop.xlane.xlu1 %10087  ;;  %v2174_v18 = vrot.slane %v23038_v26, %v18784_v6  ;;  %v2178_v55 = vrot.slane %v23038_v26, %v18787_v56  ;;  %v2182_v51 = vrot.slane %v23038_v26, %v18792_v31  ;;  %v2186_v21 = vrot.slane %v23038_v26, %v18795_v41 }
 0xd49   : > { %23032 = vst [vmem:[#allocation25_spill] sm:$0xff] %v19027_v3  ;;  %vm10089_vm10 = vcmp.eq.f32.partialorder %v18743_v32, %v19027_v3  ;;  %v23033_v32 = vrot.slane %v18904_v9, %v18834_v63  ;;  %v2190_v36 = vrot.slane %v23038_v26, %v18798_v2  ;;  %v2194_v28 = vrot.slane %v23038_v26, %v18801_v61 }
 0xd4a   : > { %7421 = vxpose.xlu1.b32.start [1/8] (short) (narrow) %v14785_v0, 32  ;;  %v10090_v5 = vsel %vm10089_vm10, %v10085_v14, inf  ;;  %v2202_v47 = vrot.slane %v23038_v26, %v18807_v1  ;;  %v19119_v23 = vcombine.low %v2918_v54, %v2925_v10  ;;  %v2992_v39 = vcombine.low %v2174_v18, %v2178_v55  ;;  %v14788_v54 = vld [vmem:[%s22726_s1 + $0x98] sm:$0xff] }
 0xd4b   : > { %10091 = vmin.xlane.f32.xlu0 %v10090_v5  ;;  %v19045_v17 = vcombine.low %v23033_v32, %v2549_v19  ;;  %v19067_v19 = vcombine.low %v2722_v58, %v2729_v62  ;;  %v2198_v58 = vrot.slane %v23038_v26, %v18804_v33  ;;  %v1906_v5 = vrot.slane %v23037_v7, %v18801_v61  ;;  %v23040_v55 = vld [vmem:[#allocation31_spill] sm:$0xff] }
 0xd4c   : > { %v2993_v32 = vcombine.low %v2182_v51, %v2186_v21  ;;  %v2994_v57 = vcombine.low %v2190_v36, %v2194_v28  ;;  %v2302_v51 = vrot.slane %v23040_v55, %v18784_v6  ;;  %v2306_v21 = vrot.slane %v23040_v55, %v18787_v56 }
 0xd4d   : > { %v2995_v29 = vcombine.low %v2198_v58, %v2202_v47  ;;  %v2310_v36 = vrot.slane %v23040_v55, %v18792_v31  ;;  %v2314_v28 = vrot.slane %v23040_v55, %v18795_v41  ;;  %v2318_v58 = vrot.slane %v23040_v55, %v18798_v2 }
 0xd4e   : > { %7422 = vxpose.xlu1.b32.cont [2/8] (short) (narrow) %v14786_v38, 32  ;;  %v23039_v38 = vld [vmem:[#allocation29_spill] sm:$0xff]  ;;  %v2322_v47 = vrot.slane %v23040_v55, %v18801_v61  ;;  %v3016_v16 = vrot.slane %v2994_v57, %v18834_v63  ;;  %v2330_v57 = vrot.slane %v23040_v55, %v18807_v1 }
 0xd4f   : > { %v2238_v26 = vrot.slane %v23039_v38, %v18784_v6  ;;  %v2246_v8 = vrot.slane %v23039_v38, %v18792_v31  ;;  %v2250_v0 = vrot.slane %v23039_v38, %v18795_v41  ;;  %v2254_v30 = vrot.slane %v23039_v38, %v18798_v2 }
 0xd50   : > { %v2258_v34 = vrot.slane %v23039_v38, %v18801_v61  ;;  %v2262_v10 = vrot.slane %v23039_v38, %v18804_v33  ;;  %v2266_v18 = vrot.slane %v23039_v38, %v18807_v1  ;;  %v3023_v50 = vrot.slane %v2995_v29, %v18834_v63 }
 0xd51   : > { %v19158_v62 = vcombine.low %v2246_v8, %v2250_v0  ;;  %v1914_v8 = vrot.slane %v23037_v7, %v18807_v1  ;;  %v3188_v0 = vcombine.low %v2302_v51, %v2306_v21  ;;  %v3189_v29 = vcombine.low %v2310_v36, %v2314_v28 }
 0xd52   : > { %7423 = vxpose.xlu1.b32.cont [3/8] (short) (narrow) %v14787_v12, 32  ;;  %v2242_v12 = vrot.slane %v23039_v38, %v18787_v56  ;;  %v3002_v38 = vrot.slane %v2992_v39, %v18834_v63  ;;  %v19160_v9 = vcombine.low %v2254_v30, %v2258_v34  ;;  %v3093_v39 = vcombine.low %v2262_v10, %v2266_v18 }
 0xd53   : > { %v19185_v18 = vcombine.low %v3016_v16, %v3023_v50  ;;  %v3107_v51 = vrot.slane %v19158_v62, %v18834_v63  ;;  %v23043_v36 = vrot.slane %v23037_v7, %v18792_v31  ;;  %v14790_v16 = vld [vmem:[%s22726_s1 + $0xa8] sm:$0xff]  ;;  %v2554_v62 = vcombine.low %v1910_v35, %v1914_v8  ;;  %v14791_v8 = vld [vmem:[%s22726_s1 + $0xb0] sm:$0xff] }
 0xd54   : > { %v19156_v14 = vcombine.low %v2238_v26, %v2242_v12  ;;  %v3190_v26 = vcombine.low %v2318_v58, %v2322_v47  ;;  %v23041_v12 = vrot.slane %v23037_v7, %v18784_v6  ;;  %v3114_v21 = vrot.slane %v19160_v9, %v18834_v63 }
 0xd55   : > { %v2553_v58 = vcombine.low %v1902_v45, %v1906_v5  ;;  %v3198_v47 = vrot.slane %v3188_v0, %v18834_v63  ;;  %v3205_v9 = vrot.slane %v3189_v29, %v18834_v63  ;;  %v23045_v0 = vld [vmem:[#allocation20_spill] sm:$0xff]  ;;  %v2582_v43 = vrot.slane %v2554_v62, %v18834_v63 }
 0xd56   : > { %7424 = vxpose.xlu1.b32.cont [4/8] (short) (narrow) %v14788_v54, 32  ;;  %v3009_v54 = vrot.slane %v2993_v32, %v18834_v63  ;;  %v2326_v32 = vrot.slane %v23040_v55, %v18804_v33  ;;  %v3100_v55 = vrot.slane %v19156_v14, %v18834_v63  ;;  %v3121_v14 = vrot.slane %v3093_v39, %v18834_v63 }
 0xd57   : > { %v1950_v29 = vrot.slane %v23045_v0, %v18784_v6  ;;  %v1978_v30 = vrot.slane %v23045_v0, %v18807_v1  ;;  %v2575_v13 = vrot.slane %v2553_v58, %v18834_v63 }
 0xd58   : > { %v19183_v10 = vcombine.low %v3002_v38, %v3009_v54  ;;  %v3191_v50 = vcombine.low %v2326_v32, %v2330_v57  ;;  %v3212_v38 = vrot.slane %v3190_v26, %v18834_v63  ;;  %v1954_v26 = vrot.slane %v23045_v0, %v18787_v56 }
 0xd59   : > { %v3122_v58 = vcombine.low %v3100_v55, %v3107_v51  ;;  %v3123_v42 = vcombine.low %v3114_v21, %v3121_v14  ;;  %v23046_v55 = vld [vmem:[#allocation22_spill] sm:$0xff] }
 0xd5a   : > { %7425 = vxpose.xlu1.b32.cont [5/8] (short) (narrow) %v14789_v25, 32  ;;  %v2551_v25 = vcombine.low %v23041_v12, %v1890_v59  ;;  %v23042_v59 = vrot.slane %v23037_v7, %v18795_v41  ;;  %v23044_v7 = vld [vmem:[#allocation19_spill] sm:$0xff]  ;;  %v3219_v34 = vrot.slane %v3191_v50, %v18834_v63  ;;  %v3039_v50 = vrot.slane %v19185_v18, %v18834_v63 }
 0xd5b   : > { %v1918_v12 = vrot.slane %v23044_v7, %v18784_v6  ;;  %v1926_v39 = vrot.slane %v23044_v7, %v18792_v31  ;;  %v1930_v35 = vrot.slane %v23044_v7, %v18795_v41  ;;  %v1934_v45 = vrot.slane %v23044_v7, %v18798_v2 }
 0xd5c   : > { %v2552_v28 = vcombine.low %v23043_v36, %v23042_v59  ;;  %v2561_v54 = vrot.slane %v2551_v25, %v18834_v63  ;;  %v1922_v59 = vrot.slane %v23044_v7, %v18787_v56  ;;  %v1938_v5 = vrot.slane %v23044_v7, %v18801_v61 }
 0xd5d   : > { %v1942_v32 = vrot.slane %v23044_v7, %v18804_v33  ;;  %v1946_v57 = vrot.slane %v23044_v7, %v18807_v1  ;;  %v1958_v25 = vrot.slane %v23045_v0, %v18792_v31  ;;  %v1962_v36 = vrot.slane %v23045_v0, %v18795_v41 }
 0xd5e   : > { %7426 = vxpose.xlu1.b32.cont [6/8] (short) (narrow) %v14790_v16, 32  ;;  %v1966_v16 = vrot.slane %v23045_v0, %v18798_v2  ;;  %v1970_v7 = vrot.slane %v23045_v0, %v18801_v61  ;;  %v2568_v3 = vrot.slane %v2552_v28, %v18834_v63  ;;  %v2600_v27 = vcombine.low %v1918_v12, %v1922_v59 }
 0xd5f   : > { %v2601_v24 = vcombine.low %v1926_v39, %v1930_v35  ;;  %v2602_v48 = vcombine.low %v1934_v45, %v1938_v5  ;;  %v2603_v22 = vcombine.low %v1942_v32, %v1946_v57  ;;  %v2649_v28 = vcombine.low %v1950_v29, %v1954_v26 }
 0xd60   : > { %v2650_v52 = vcombine.low %v1958_v25, %v1962_v36  ;;  %v2651_v62 = vcombine.low %v1966_v16, %v1970_v7  ;;  %v3220_v59 = vcombine.low %v3198_v47, %v3205_v9  ;;  %v3221_v39 = vcombine.low %v3212_v38, %v3219_v34 }
 0xd61   : > { %v2583_v35 = vcombine.low %v2561_v54, %v2568_v3  ;;  %v2584_v45 = vcombine.low %v2575_v13, %v2582_v43  ;;  %v2610_v5 = vrot.slane %v2600_v27, %v18834_v63  ;;  %v2624_v32 = vrot.slane %v2602_v48, %v18834_v63 }
 0xd62   : > { %7427 = vxpose.xlu1.b32.cont [7/8] (short) (narrow) %v14791_v8, 32  ;;  %v1974_v8 = vrot.slane %v23045_v0, %v18804_v33  ;;  %v3032_v0 = vrot.slane %v19183_v10, %v18834_v63  ;;  %v2631_v10 = vrot.slane %v2603_v22, %v18834_v63  ;;  %v2659_v18 = vrot.slane %v2649_v28, %v18834_v63 }
 0xd63   : > { %v2666_v57 = vrot.slane %v2650_v52, %v18834_v63  ;;  %v2014_v51 = vrot.slane %v23046_v55, %v18784_v6  ;;  %v2673_v43 = vrot.slane %v2651_v62, %v18834_v63  ;;  %v2026_v48 = vrot.slane %v23046_v55, %v18795_v41 }
 0xd64   : > { %v2652_v12 = vcombine.low %v1974_v8, %v1978_v30  ;;  %v2018_v30 = vrot.slane %v23046_v55, %v18787_v56  ;;  %v3130_v13 = vrot.slane %v3122_v58, %v18834_v63  ;;  %v3137_v52 = vrot.slane %v3123_v42, %v18834_v63 }
 0xd65   : > { %v3228_v3 = vrot.slane %v3220_v59, %v18834_v63  ;;  %v2591_v22 = vrot.slane %v2583_v35, %v18834_v63  ;;  %v3235_v34 = vrot.slane %v3221_v39, %v18834_v63  ;;  %v2598_v21 = vrot.slane %v2584_v45, %v18834_v63 }
 0xd66   : > { %7428 = vxpose.xlu1.b32.end [8/8] (short) (narrow) %v14792_v60, 32  ;;  %v2617_v60 = vrot.slane %v2601_v24, %v18834_v63  ;;  %v2680_v27 = vrot.slane %v2652_v12, %v18834_v63  ;;  %v2022_v24 = vrot.slane %v23046_v55, %v18792_v31  ;;  %v2633_v47 = vcombine.low %v2624_v32, %v2631_v10 }
 0xd67   : > { %v2681_v9 = vcombine.low %v2659_v18, %v2666_v57  ;;  %v2030_v38 = vrot.slane %v23046_v55, %v18798_v2  ;;  %v2034_v54 = vrot.slane %v23046_v55, %v18801_v61  ;;  %v2038_v42 = vrot.slane %v23046_v55, %v18804_v33 }
 0xd68   : > { %v2632_v14 = vcombine.low %v2610_v5, %v2617_v60  ;;  %v2682_v29 = vcombine.low %v2673_v43, %v2680_v27  ;;  %v2042_v26 = vrot.slane %v23046_v55, %v18807_v1  ;;  %v2747_v25 = vcombine.low %v2014_v51, %v2018_v30 }
 0xd69   : > { %v2748_v36 = vcombine.low %v2022_v24, %v2026_v48  ;;  %v23047_v16 = vrot.slane %v19067_v19, %v18834_v63  ;;  %v23048_v7 = vrot.slane %v19059_v20, %v18834_v63  ;;  %v23049_v28 = vrot.slane %v19071_v46, %v18834_v63 }
 0xd6a   : > { %v23050_v58 = vrot.slane %v19069_v49, %v18834_v63  ;;  %v23051_v12 = vrot.slane %v19119_v23, %v18834_v63  ;;  %v23052_v59 = vrot.slane %v19117_v40, %v18834_v63  ;;  %v23053_v20 = vrot.slane %v19073_v37, %v18834_v63 }
 0xd6b   : > { %v19289_v8 = vcombine.low %v23048_v7, %v23047_v16  ;;  %v23054_v39 = vrot.slane %v19061_v53, %v18834_v63  ;;  %v19315_v35 = vcombine.low %v3032_v0, %v3039_v50  ;;  %v19317_v49 = vcombine.low %v3130_v13, %v3137_v52  ;;  %v23055_v50 = vld [vmem:[#allocation80_spill] sm:$0xff]  ;;  %v23057_v7 = vld [vmem:[#allocation82_spill] sm:$0xff] }
 0xd6c   : > { %v19297_v62 = vcombine.low %v23050_v58, %v23049_v28  ;;  %v19305_v19 = vcombine.low %v23052_v59, %v23051_v12  ;;  %v19319_v45 = vcombine.low %v3228_v3, %v3235_v34  ;;  %v19321_v23 = vcombine.low %v2591_v22, %v2598_v21  ;;  %v23056_v52 = vld [vmem:[#allocation24_spill] sm:$0xff] }
 0xd6d   : > { %v19313_v46 = vcombine.low %v23054_v39, %v23053_v20  ;;  %v2640_v40 = vrot.slane %v2632_v14, %v18834_v63  ;;  %v2647_v5 = vrot.slane %v2633_v47, %v18834_v63  ;;  %v2689_v60 = vrot.slane %v2681_v9, %v18834_v63  ;;  %v14793_v9 = vld [vmem:[%s22726_s1 + $0xc0] sm:$0xff] }
 0xd6e   : > { %v2749_v37 = vcombine.low %v2030_v38, %v2034_v54  ;;  %v2696_v32 = vrot.slane %v2682_v29, %v18834_v63  ;;  %v2750_v53 = vcombine.low %v2038_v42, %v2042_v26  ;;  %v2757_v10 = vrot.slane %v2747_v25, %v18834_v63 }
 0xd6f   : > { %v2764_v0 = vrot.slane %v2748_v36, %v18834_v63  ;;  %v4740_v18 = vrot.slane %v23055_v50, %v18784_v6  ;;  %v4744_v57 = vrot.slane %v23055_v50, %v18787_v56  ;;  %v4748_v55 = vrot.slane %v23055_v50, %v18792_v31 }
 0xd70   : > { %v4752_v51 = vrot.slane %v23055_v50, %v18795_v41  ;;  %v4756_v30 = vrot.slane %v23055_v50, %v18798_v2  ;;  %v4760_v43 = vrot.slane %v23055_v50, %v18801_v61  ;;  %v4764_v27 = vrot.slane %v23055_v50, %v18804_v33 }
 0xd71   : > { %v4768_v24 = vrot.slane %v23055_v50, %v18807_v1  ;;  %v19345_v48 = vcombine.low %v2640_v40, %v2647_v5  ;;  %v2771_v13 = vrot.slane %v2749_v37, %v18834_v63  ;;  %v2078_v3 = vrot.slane %v23056_v52, %v18784_v6 }
 0xd72   : > { %v2082_v22 = vrot.slane %v23056_v52, %v18787_v56  ;;  %v2778_v34 = vrot.slane %v2750_v53, %v18834_v63  ;;  %v19353_v21 = vcombine.low %v2757_v10, %v2764_v0  ;;  %v2086_v14 = vrot.slane %v23056_v52, %v18792_v31 }
 0xd73   : > { %v2090_v47 = vrot.slane %v23056_v52, %v18795_v41  ;;  %v5337_v38 = vcombine.low %v4740_v18, %v4744_v57  ;;  %v5338_v54 = vcombine.low %v4748_v55, %v4752_v51  ;;  %v2094_v42 = vrot.slane %v23056_v52, %v18798_v2 }
 0xd74   : > { %v2098_v29 = vrot.slane %v23056_v52, %v18801_v61  ;;  %v5339_v26 = vcombine.low %v4756_v30, %v4760_v43  ;;  %v5340_v25 = vcombine.low %v4764_v27, %v4768_v24  ;;  %v19366_v36 = vcombine.low %v2689_v60, %v2696_v32  ;;  %v14794_v60 = vld [vmem:[%s22726_s1 + $0xc8] sm:$0xff] }
 0xd75   : > { %v2102_v16 = vrot.slane %v23056_v52, %v18804_v33  ;;  %v4804_v28 = vrot.slane %v23057_v7, %v18784_v6  ;;  %v4808_v58 = vrot.slane %v23057_v7, %v18787_v56  ;;  %v4812_v12 = vrot.slane %v23057_v7, %v18792_v31 }
 0xd76   : > { %v4816_v59 = vrot.slane %v23057_v7, %v18795_v41  ;;  %v19378_v20 = vcombine.low %v2771_v13, %v2778_v34  ;;  %v2106_v40 = vrot.slane %v23056_v52, %v18807_v1  ;;  %v2845_v5 = vcombine.low %v2078_v3, %v2082_v22  ;;  %v23058_v13 = vld [vmem:[#allocation26_spill] sm:$0xff] }
 0xd77   : > { %v5347_v37 = vrot.slane %v5337_v38, %v18834_v63  ;;  %v5354_v32 = vrot.slane %v5338_v54, %v18834_v63  ;;  %v2846_v53 = vcombine.low %v2086_v14, %v2090_v47  ;;  %v19389_v10 = vcombine.low %v2094_v42, %v2098_v29  ;;  %v14795_v22 = vld [vmem:[%s22726_s1 + $0xd0] sm:$0xff] }
 0xd78   : > { %10371 = vxpose.xlu0.b32.start [1/8] (short) (narrow) %v14793_v9, 32  ;;  %v5361_v0 = vrot.slane %v5339_v26, %v18834_v63  ;;  %v5368_v50 = vrot.slane %v5340_v25, %v18834_v63  ;;  %v4820_v18 = vrot.slane %v23057_v7, %v18798_v2  ;;  %v4824_v57 = vrot.slane %v23057_v7, %v18801_v61 }
 0xd79   : > { %v4828_v55 = vrot.slane %v23057_v7, %v18804_v33  ;;  %v4832_v51 = vrot.slane %v23057_v7, %v18807_v1  ;;  %v5435_v30 = vcombine.low %v4804_v28, %v4808_v58  ;;  %v5436_v43 = vcombine.low %v4812_v12, %v4816_v59 }
 0xd7a   : > { %v2848_v27 = vcombine.low %v2102_v16, %v2106_v40  ;;  %v2855_v24 = vrot.slane %v2845_v5, %v18834_v63  ;;  %v2142_v52 = vrot.slane %v23058_v13, %v18784_v6  ;;  %v2146_v3 = vrot.slane %v23058_v13, %v18787_v56  ;;  %v23059_v16 = vld [vmem:[#allocation84_spill] sm:$0xff]  ;;  %v14796_v5 = vld [vmem:[%s22726_s1 + $0xd8] sm:$0xff] }
 0xd7b   : > { %v2862_v14 = vrot.slane %v2846_v53, %v18834_v63  ;;  %v2869_v47 = vrot.slane %v19389_v10, %v18834_v63  ;;  %v2150_v9 = vrot.slane %v23058_v13, %v18792_v31  ;;  %v5369_v38 = vcombine.low %v5347_v37, %v5354_v32 }
 0xd7c   : > { %10372 = vxpose.xlu0.b32.cont [2/8] (short) (narrow) %v14794_v60, 32  ;;  %v5370_v54 = vcombine.low %v5361_v0, %v5368_v50  ;;  %v5437_v42 = vcombine.low %v4820_v18, %v4824_v57  ;;  %v5438_v29 = vcombine.low %v4828_v55, %v4832_v51  ;;  %v5445_v26 = vrot.slane %v5435_v30, %v18834_v63 }
 0xd7d   : > { %v5452_v25 = vrot.slane %v5436_v43, %v18834_v63  ;;  %v4868_v7 = vrot.slane %v23059_v16, %v18784_v6  ;;  %v4872_v28 = vrot.slane %v23059_v16, %v18787_v56  ;;  %v4876_v58 = vrot.slane %v23059_v16, %v18792_v31 }
 0xd7e   : > { %v4880_v12 = vrot.slane %v23059_v16, %v18795_v41  ;;  %v4884_v59 = vrot.slane %v23059_v16, %v18798_v2  ;;  %v22637_v40 = vmov 0   ;;  %v4888_v60 = vrot.slane %v23059_v16, %v18801_v61 }
 0xd7f   : > { %v4892_v37 = vrot.slane %v23059_v16, %v18804_v33  ;;  %v4896_v32 = vrot.slane %v23059_v16, %v18807_v1  ;;  %v2876_v53 = vrot.slane %v2848_v27, %v18834_v63  ;;  %v2154_v10 = vrot.slane %v23058_v13, %v18795_v41 }
 0xd80   : > { %10373 = vxpose.xlu0.b32.cont [3/8] (short) (narrow) %v14795_v22, 32  ;;  %v2158_v0 = vrot.slane %v23058_v13, %v18798_v2  ;;  %v2162_v50 = vrot.slane %v23058_v13, %v18801_v61  ;;  %v5377_v18 = vrot.slane %v5369_v38, %v18834_v63  ;;  %v19447_v57 = vcombine.low %v2855_v24, %v2862_v14  ;;  %v14797_v22 = vld [vmem:[%s22726_s1 + $0xe0] sm:$0xff] }
 0xd81   : > { %v5384_v51 = vrot.slane %v5370_v54, %v18834_v63  ;;  %v5459_v30 = vrot.slane %v5437_v42, %v18834_v63  ;;  %v5466_v43 = vrot.slane %v5438_v29, %v18834_v63  ;;  %v19456_v27 = vcombine.low %v5445_v26, %v5452_v25 }
 0xd82   : > { %v5533_v24 = vcombine.low %v4868_v7, %v4872_v28  ;;  %v5534_v14 = vcombine.low %v4876_v58, %v4880_v12  ;;  %v5535_v38 = vcombine.low %v4884_v59, %v4888_v60  ;;  %v5536_v16 = vcombine.low %v4892_v37, %v4896_v32  ;;  %v14798_v37 = vld [vmem:[%s22726_s1 + $0xe8] sm:$0xff] }
 0xd83   : > { %v19478_v58 = vcombine.low %v2869_v47, %v2876_v53  ;;  %v19480_v12 = vcombine.low %v2142_v52, %v2146_v3  ;;  %v19482_v59 = vcombine.low %v2150_v9, %v2154_v10  ;;  %v19484_v60 = vcombine.low %v2158_v0, %v2162_v50 }
 0xd84   : > { %14748 = vset.pattern.permute.xlu1 %v22637_v40  ;;  %10374 = vxpose.xlu0.b32.cont [4/8] (short) (narrow) %v14796_v5, 32  ;;  %v23060_v5 = vld [vmem:[#allocation86_spill] sm:$0xff]  ;;  %v19489_v32 = vcombine.low %v5377_v18, %v5384_v51  ;;  %v5543_v47 = vrot.slane %v5533_v24, %v18834_v63  ;;  %v9824_v52 = vcvt.f32.s32 %v18747_v15  ;;  %v5550_v3 = vrot.slane %v5534_v14, %v18834_v63  ;;  %v23061_v51 = vld [vmem:[#allocation88_spill] sm:$0xff] }
 0xd85   : > { %3278 = vperm.xlu1 %14748, %v18929_v4   ;;  %v4932_v54 = vrot.slane %v23060_v5, %v18784_v6  ;;  %v4936_v42 = vrot.slane %v23060_v5, %v18787_v56  ;;  %v4940_v29 = vrot.slane %v23060_v5, %v18792_v31  ;;  %v4944_v26 = vrot.slane %v23060_v5, %v18795_v41  ;;  %v14799_v14 = vld [vmem:[%s22726_s1 + $0xf0] sm:$0xff] }
 0xd86   : > { %v4948_v25 = vrot.slane %v23060_v5, %v18798_v2  ;;  %v4952_v7 = vrot.slane %v23060_v5, %v18801_v61  ;;  %v4960_v28 = vrot.slane %v23060_v5, %v18807_v1  ;;  %v5557_v9 = vrot.slane %v5535_v38, %v18834_v63 }
 0xd87   : > { %v5564_v53 = vrot.slane %v5536_v16, %v18834_v63  ;;  %v19501_v10 = vcombine.low %v4932_v54, %v4936_v42  ;;  %v19503_v0 = vcombine.low %v4940_v29, %v4944_v26  ;;  %v5000_v15 = vrot.slane %v23061_v51, %v18787_v56 }
 0xd88   : > { %10375 = vxpose.xlu0.b32.cont [5/8] (short) (narrow) %v14797_v22, 32  ;;  %v19491_v22 = vcombine.low %v5459_v30, %v5466_v43  ;;  %v19505_v50 = vcombine.low %v4948_v25, %v4952_v7  ;;  %v4996_v30 = vrot.slane %v23061_v51, %v18784_v6  ;;  %v5008_v43 = vrot.slane %v23061_v51, %v18795_v41 }
 0xd89   : > { %3287 = vperm.xlu1 %14748, %v19045_v17   ;;  %v4956_v17 = vrot.slane %v23060_v5, %v18804_v33  ;;  %v5475_v5 = vrot.slane %v19456_v27, %v18834_v63  ;;  %v5012_v38 = vrot.slane %v23061_v51, %v18798_v2  ;;  %v5016_v16 = vrot.slane %v23061_v51, %v18801_v61 }
 0xd8a   : > { %v5020_v54 = vrot.slane %v23061_v51, %v18804_v33  ;;  %v5024_v42 = vrot.slane %v23061_v51, %v18807_v1  ;;  %v9825_v29 = vshll.u32 %v9824_v52, 16  ;;  %v9839_v26 = vcvt.f32.s32 %v18752_v11 }
 0xd8b   : > { %v19507_v18 = vcombine.low %v4956_v17, %v4960_v28  ;;  %v5482_v7 = vrot.slane %v19491_v22, %v18834_v63  ;;  %v19532_v17 = vcombine.low %v5543_v47, %v5550_v3  ;;  %v19534_v28 = vcombine.low %v5557_v9, %v5564_v53  ;;  %v14800_v47 = vld [vmem:[%s22726_s1 + $0xf8] sm:$0xff]  ;;  %s14807_s1 = scalar_lea.vmem %s14806_s0, 256 }
 0xd8c   : > { %10376 = vxpose.xlu0.b32.cont [6/8] (short) (narrow) %v14798_v37, 32  ;;  %v5641_v37 = vrot.slane %v19501_v10, %v18834_v63  ;;  %v5655_v11 = vrot.slane %v19505_v50, %v18834_v63  ;;  %v5729_v52 = vcombine.low %v4996_v30, %v5000_v15  ;;  %v5731_v9 = vcombine.low %v5012_v38, %v5016_v16  ;;  %v23063_v10 = vld [vmem:[#allocation90_spill] sm:$0xff] }
 0xd8d   : > { %3299 = vperm.xlu1 %14748, %v19289_v8   ;;  %v5004_v8 = vrot.slane %v23061_v51, %v18792_v31  ;;  %v5732_v53 = vcombine.low %v5020_v54, %v5024_v42  ;;  %v5068_v30 = vrot.slane %v23063_v10, %v18792_v31  ;;  %v5072_v15 = vrot.slane %v23063_v10, %v18795_v41 }
 0xd8e   : > { %v5088_v16 = vrot.slane %v23063_v10, %v18807_v1  ;;  %v5739_v42 = vrot.slane %v5729_v52, %v18834_v63  ;;  %v23067_v34 = vmov 0.0   ;;  %v5573_v55 = vrot.slane %v19532_v17, %v18834_v63 }
 0xd8f   : > { %v5730_v3 = vcombine.low %v5004_v8, %v5008_v43  ;;  %v5076_v8 = vrot.slane %v23063_v10, %v18798_v2  ;;  %v5080_v43 = vrot.slane %v23063_v10, %v18801_v61  ;;  %v5828_v40 = vcombine.low %v5068_v30, %v5072_v15  ;;  %v23069_v30 = vld [vmem:[#allocation171_spill] sm:$0xff] }
 0xd90   : > { %v9822_v24 = vpop.xlane.xlu1 %9821  ;;  %10377 = vxpose.xlu0.b32.cont [7/8] (short) (narrow) %v14799_v14, 32  ;;  %v5648_v14 = vrot.slane %v19503_v0, %v18834_v63  ;;  %v5060_v0 = vrot.slane %v23063_v10, %v18784_v6  ;;  %v9884_v15 = vcvt.f32.s32 %v23069_v30 }
 0xd91   : > { %v9823_v25 = vcvt.f32.s32 %v9822_v24  ;;  %3305 = vperm.xlu1 %14748, %v19297_v62   ;;  %v5662_v62 = vrot.slane %v19507_v18, %v18834_v63  ;;  %v9840_v24 = vshll.u32 %v9839_v26, 16  ;;  %v5064_v18 = vrot.slane %v23063_v10, %v18787_v56 }
 0xd92   : > { %v5746_v26 = vrot.slane %v5730_v3, %v18834_v63 }
 0xd93   : > { %v19540_v51 = vadd.s32 %v9825_v29, %v9823_v25  ;;  %v9854_v29 = vcvt.f32.s32 %v18757_v44  ;;  %v23065_v44 = vld [vmem:[#allocation12_spill] sm:$0xff]  ;;  %v5753_v25 = vrot.slane %v5731_v9, %v18834_v63  ;;  %v5827_v3 = vcombine.low %v5060_v0, %v5064_v18 }
 0xd94   : > { %v9837_v22 = vpop.xlane.xlu1 %9836  ;;  %10378 = vxpose.xlu0.b32.end [8/8] (short) (narrow) %v14800_v47, 32  ;;  %v5580_v0 = vrot.slane %v19534_v28, %v18834_v63  ;;  %v19607_v27 = vcombine.low %v5655_v11, %v5662_v62  ;;  %v23073_v62 = vld [vmem:[#allocation92_spill] sm:$0xff] }
 0xd95   : > { %23062 = vst [vmem:[#allocation18_spill] sm:$0xff] %v19540_v51  ;;  %v9838_v50 = vcvt.f32.s32 %v9837_v22  ;;  %3311 = vperm.xlu1 %14748, %v19305_v19   ;;  %vm10097_vm1 = vcmp.eq.s32.totalorder %v23065_v44, %v19540_v51  ;;  %v5084_v19 = vrot.slane %v23063_v10, %v18804_v33  ;;  %v5760_v22 = vrot.slane %v5732_v53, %v18834_v63 }
 0xd96   : > { %v9855_v47 = vshll.u32 %v9854_v29, 16  ;;  %v19580_v10 = vsel %vm10097_vm1, 1.0, %v23067_v34  ;;  %v5829_v29 = vcombine.low %v5076_v8, %v5080_v43  ;;  %v5837_v28 = vrot.slane %v5827_v3, %v18834_v63 }
 0xd97   : > { %v19563_v38 = vadd.s32 %v9840_v24, %v9838_v50  ;;  %v23066_v24 = vld [vmem:[#allocation170_spill] sm:$0xff]  ;;  %v19612_v17 = vcombine.low %v5753_v25, %v5760_v22  ;;  %v23074_v25 = vld [vmem:[#allocation172_spill] sm:$0xff]  ;;  %v5148_v30 = vrot.slane %v23073_v62, %v18804_v33  ;;  %v5678_v4 = vrot.slane %v19607_v27, %v18834_v63 }
 0xd98   : > { %v9852_v54 = vpop.xlane.xlu1 %9851  ;;  %v9869_v50 = vcvt.f32.s32 %v23066_v24  ;;  %v19594_v24 = vcombine.low %v5475_v5, %v5482_v7  ;;  %v23071_v5 = vmov 0.0|0.0   ;;  %v19610_v7 = vcombine.low %v5739_v42, %v5746_v26 }
 0xd99   : > { %23064 = vst [vmem:[#allocation27_spill] sm:$0xff] %v19563_v38  ;;  %v9853_v39 = vcvt.f32.s32 %v9852_v54  ;;  %3317 = vperm.xlu1 %14748, %v19315_v35   ;;  %vm10098_vm11 = vcmp.eq.s32.totalorder %v23065_v44, %v19563_v38  ;;  %v5830_v54 = vcombine.low %v5084_v19, %v5088_v16  ;;  %v5851_v43 = vrot.slane %v5829_v29, %v18834_v63 }
 0xd9a   : > { %v19583_v52 = vsel %vm10098_vm11, 1.0, %v23067_v34  ;;  %v9870_v18 = vshll.u32 %v9869_v50, 16  ;;  %v5124_v19 = vrot.slane %v23073_v62, %v18784_v6  ;;  %v5128_v16 = vrot.slane %v23073_v62, %v18787_v56 }
 0xd9b   : > { %v19585_v9 = vadd.s32 %v9855_v47, %v9853_v39  ;;  %v19589_v53 = vpack.c.bf16 %v19583_v52, %v19580_v10  ;;  %v19600_v39 = vcombine.low %v5641_v37, %v5648_v14  ;;  %v5844_v37 = vrot.slane %v5828_v40, %v18834_v63 }
 0xd9c   : > { %v9867_v35 = vpop.xlane.xlu1 %9866  ;;  %v5132_v42 = vrot.slane %v23073_v62, %v18792_v31  ;;  %v5136_v40 = vrot.slane %v23073_v62, %v18795_v41  ;;  %v9885_v26 = vshll.u32 %v9884_v15, 16  ;;  %v9899_v22 = vcvt.f32.s32 %v23074_v25 }
 0xd9d   : > { %23068 = vst [vmem:[#allocation29_spill] sm:$0xff] %v19585_v9  ;;  %v9868_v47 = vcvt.f32.s32 %v9867_v35  ;;  %14607 = vmatpush1.bf16.xpose.msk.msra.mxu0 %vm15744_vm6, %v19589_v53  ;;  %3323 = vperm.xlu1 %14748, %v19317_v49   ;;  %vm10099_vm5 = vcmp.eq.s32.totalorder %v23065_v44, %v19585_v9  ;;  %v5858_v49 = vrot.slane %v5830_v54, %v18834_v63 }
 0xd9e   : > { %14608 = vmatprep.subr.bf16.mxu0 %v23071_v5  ;;  %v19635_v3 = vsel %vm10099_vm5, 1.0, %v23067_v34  ;;  %v5140_v54 = vrot.slane %v23073_v62, %v18798_v2  ;;  %v5144_v35 = vrot.slane %v23073_v62, %v18801_v61  ;;  %v5152_v15 = vrot.slane %v23073_v62, %v18807_v1 }
 0xd9f   : > { %v19616_v14 = vadd.s32 %v9870_v18, %v9868_v47  ;;  %v5671_v25 = vrot.slane %v19600_v39, %v18834_v63  ;;  %v19670_v39 = vcombine.low %v5851_v43, %v5858_v49  ;;  %v5925_v27 = vcombine.low %v5124_v19, %v5128_v16  ;;  %v23080_v43 = vld [vmem:[#allocation175_spill] sm:$0xff] }
 0xda0   : > { %v9882_v11 = vpop.xlane.xlu1 %9881  ;;  %v9929_v49 = vcvt.f32.s32 %v23080_v43 }
 0xda1   : > { %23072 = vst [vmem:[#allocation31_spill] sm:$0xff] %v19616_v14  ;;  %v9883_v50 = vcvt.f32.s32 %v9882_v11  ;;  %3329 = vperm.xlu1 %14748, %v19319_v45   ;;  %vm10100_vm12 = vcmp.eq.s32.totalorder %v23065_v44, %v19616_v14  ;;  %v5581_v11 = vcombine.low %v5573_v55, %v5580_v0  ;;  %v23077_v14 = vld [vmem:[#allocation174_spill] sm:$0xff]  ;;  %v5776_v55 = vrot.slane %v19612_v17, %v18834_v63 }
 0xda2   : > { %v19638_v29 = vsel %vm10100_vm12, 1.0, %v23067_v34  ;;  %v9914_v9 = vcvt.f32.s32 %v23077_v14  ;;  %v19668_v0 = vcombine.low %v5837_v28, %v5844_v37  ;;  %v5927_v14 = vcombine.low %v5140_v54, %v5144_v35 }
 0xda3   : > { %v19644_v18 = vadd.s32 %v9885_v26, %v9883_v50  ;;  %v19648_v45 = vpack.c.bf16 %v19638_v29, %v19635_v3  ;;  %v5769_v26 = vrot.slane %v19610_v7, %v18834_v63  ;;  %v9900_v50 = vshll.u32 %v9899_v22, 16 }
 0xda4   : > { %v9897_v47 = vpop.xlane.xlu1 %9896  ;;  %v5926_v7 = vcombine.low %v5132_v42, %v5136_v40  ;;  %v5928_v22 = vcombine.low %v5148_v30, %v5152_v15  ;;  %v5949_v43 = vrot.slane %v5927_v14, %v18834_v63  ;;  %v5679_v14 = vcombine.low %v5671_v25, %v5678_v4 }
 0xda5   : > { %23075 = vst [vmem:[#allocation19_spill] sm:$0xff] %v19644_v18  ;;  %23076 = vst [vmem:[#allocation20_spill] sm:$0xff] %v19648_v45  ;;  %v9898_v38 = vcvt.f32.s32 %v9897_v47  ;;  %14611 = vmatpush1.bf16.xpose.msk.msra.mxu0 %vm15744_vm6, %v19648_v45  ;;  %6260 = vperm.xlu1 %14748, %v19489_v32   ;;  %vm10101_vm13 = vcmp.eq.s32.totalorder %v23065_v44, %v19644_v18  ;;  %v23079_v32 = vld [vmem:[#allocation94_spill] sm:$0xff]  ;;  %v5867_v45 = vrot.slane %v19668_v0, %v18834_v63 }
 0xda6   : > { %14612 = vmatprep.subr.bf16.mxu0 %v23071_v5  ;;  %v5188_v51 = vrot.slane %v23079_v32, %v18784_v6  ;;  %v5192_v17 = vrot.slane %v23079_v32, %v18787_v56  ;;  %v5196_v28 = vrot.slane %v23079_v32, %v18792_v31  ;;  %v5200_v37 = vrot.slane %v23079_v32, %v18795_v41 }
 0xda7   : > { %v19672_v62 = vadd.s32 %v9900_v50, %v9898_v38  ;;  %v9915_v38 = vshll.u32 %v9914_v9, 16  ;;  %v19689_v16 = vsel %vm10101_vm13, 1.0, %v23067_v34  ;;  %v5204_v40 = vrot.slane %v23079_v32, %v18798_v2 }
 0xda8   : > { %v9912_v47 = vpop.xlane.xlu0 %9911  ;;  %23081 = vst [vmem:[#allocation80_spill] sm:$0xff] %v19689_v16  ;;  %v5208_v9 = vrot.slane %v23079_v32, %v18801_v61  ;;  %v5212_v35 = vrot.slane %v23079_v32, %v18804_v33  ;;  %v5216_v30 = vrot.slane %v23079_v32, %v18807_v1  ;;  %v5935_v50 = vrot.slane %v5925_v27, %v18834_v63 }
 0xda9   : > { %23078 = vst [vmem:[#allocation22_spill] sm:$0xff] %v19672_v62  ;;  %v9913_v19 = vcvt.f32.s32 %v9912_v47  ;;  %6266 = vperm.xlu1 %14748, %v19594_v24   ;;  %vm10102_vm14 = vcmp.eq.s32.totalorder %v23065_v44, %v19672_v62  ;;  %v5942_v47 = vrot.slane %v5926_v7, %v18834_v63  ;;  %v23085_v62 = vld [vmem:[#allocation13_spill] sm:$0xff]  ;;  %v23086_v32 = vrot.slane %v23058_v13, %v18807_v1 }
 0xdaa   : > { %v19692_v42 = vsel %vm10102_vm14, 1.0, %v23067_v34  ;;  %v9944_v18 = vcvt.f32.s32 %v23085_v62  ;;  %v23087_v27 = vrot.slane %v23058_v13, %v18804_v33  ;;  %v6024_v62 = vcombine.low %v5196_v28, %v5200_v37 }
 0xdab   : > { %23082 = vst [vmem:[#allocation24_spill] sm:$0xff] %v19692_v42  ;;  %v19698_v54 = vadd.s32 %v9915_v38, %v9913_v19  ;;  %v19702_v24 = vpack.c.bf16 %v19692_v42, %v19689_v16  ;;  %v5956_v38 = vrot.slane %v5928_v22, %v18834_v63  ;;  %v9930_v19 = vshll.u32 %v9929_v49, 16 }
 0xdac   : > { %v9927_v15 = vpop.xlane.xlu0 %9926  ;;  %v19722_v7 = vcombine.low %v23087_v27, %v23086_v32  ;;  %v5777_v22 = vcombine.low %v5769_v26, %v5776_v55  ;;  %v6023_v49 = vcombine.low %v5188_v51, %v5192_v17  ;;  %v5874_v13 = vrot.slane %v19670_v39, %v18834_v63  ;;  %v23089_v26 = vld [vmem:[#allocation176_spill] sm:$0xff] }
 0xdad   : > { %23083 = vst [vmem:[#allocation82_spill] sm:$0xff] %v19698_v54  ;;  %23084 = vst [vmem:[#allocation26_spill] sm:$0xff] %v19702_v24  ;;  %v9928_v42 = vcvt.f32.s32 %v9927_v15  ;;  %6272 = vperm.xlu1 %14748, %v5581_v11   ;;  %14615 = vmatpush1.bf16.xpose.msk.msra.mxu0 %vm15744_vm6, %v19702_v24  ;;  %vm10103_vm15 = vcmp.eq.s32.totalorder %v23065_v44, %v19698_v54  ;;  %v6025_v11 = vcombine.low %v5204_v40, %v5208_v9 }
 0xdae   : > { %14616 = vmatprep.subr.bf16.mxu0 %v23071_v5  ;;  %v6026_v24 = vcombine.low %v5212_v35, %v5216_v30  ;;  %v5957_v4 = vcombine.low %v5935_v50, %v5942_v47  ;;  %v5958_v25 = vcombine.low %v5949_v43, %v5956_v38  ;;  %v9945_v32 = vshll.u32 %v9944_v18, 16  ;;  %v23091_v30 = vld [vmem:[#allocation28_spill] sm:$0xff]  ;;  %v23092_v38 = vld [vmem:[#allocation14_spill] sm:$0xff] }
 0xdaf   : > { %v19725_v15 = vadd.s32 %v9930_v19, %v9928_v42  ;;  %v9959_v51 = vcvt.f32.s32 %v23089_v26  ;;  %v19737_v17 = vsel %vm10103_vm15, 1.0, %v23067_v34  ;;  %v6033_v0 = vrot.slane %v6023_v49, %v18834_v63 }
 0xdb0   : > { %v9942_v16 = vpop.xlane.xlu0 %9941  ;;  %v6040_v39 = vrot.slane %v6024_v62, %v18834_v63  ;;  %v6054_v42 = vrot.slane %v6026_v24, %v18834_v63  ;;  %v2953_v9 = vrot.slane %v19480_v12, %v18834_v63  ;;  %v2960_v35 = vrot.slane %v19482_v59, %v18834_v63 }
 0xdb1   : > { %23088 = vst [vmem:[#allocation84_spill] sm:$0xff] %v19725_v15  ;;  %v9943_v55 = vcvt.f32.s32 %v9942_v16  ;;  %6278 = vperm.xlu1 %14748, %v5679_v14   ;;  %vm10104_vm7 = vcmp.eq.s32.totalorder %v23065_v44, %v19725_v15  ;;  %v6047_v16 = vrot.slane %v6025_v11, %v18834_v63  ;;  %v2206_v50 = vrot.slane %v23091_v30, %v18784_v6  ;;  %v23120_v15 = vld [vmem:[#allocation142_spill] sm:$0xff] }
 0xdb2   : > { %v19740_v28 = vsel %vm10104_vm7, 1.0, %v23067_v34  ;;  %v2210_v47 = vrot.slane %v23091_v30, %v18787_v56  ;;  %v9960_v43 = vshll.u32 %v9959_v51, 16  ;;  %v9974_v19 = vcvt.f32.s32 %v23092_v38 }
 0xdb3   : > { %v19744_v37 = vadd.s32 %v9945_v32, %v9943_v55  ;;  %v19748_v18 = vpack.c.bf16 %v19740_v28, %v19737_v17  ;;  %v2967_v12 = vrot.slane %v19484_v60, %v18834_v63  ;;  %v5875_v24 = vcombine.low %v5867_v45, %v5874_v13 }
 0xdb4   : > { %v9957_v40 = vpop.xlane.xlu0 %9956  ;;  %v5965_v59 = vrot.slane %v5957_v4, %v18834_v63  ;;  %v5972_v14 = vrot.slane %v5958_v25, %v18834_v63  ;;  %v2974_v49 = vrot.slane %v19722_v7, %v18834_v63  ;;  %v6056_v11 = vcombine.low %v6047_v16, %v6054_v42  ;;  %v23094_v4 = vld [vmem:[#allocation17_spill] sm:$0xff] }
 0xdb5   : > { %23090 = vst [vmem:[#allocation86_spill] sm:$0xff] %v19744_v37  ;;  %v9958_v27 = vcvt.f32.s32 %v9957_v40  ;;  %6284 = vperm.xlu1 %14748, %v5777_v22   ;;  %14619 = vmatpush1.bf16.xpose.msk.msra.mxu0 %vm15744_vm6, %v19748_v18  ;;  %vm10105_vm8 = vcmp.eq.s32.totalorder %v23065_v44, %v19744_v37  ;;  %v6055_v22 = vcombine.low %v6033_v0, %v6040_v39  ;;  %v9975_v7 = vshll.u32 %v9974_v19, 16 }
 0xdb6   : > { %14620 = vmatprep.subr.bf16.mxu0 %v23071_v5  ;;  %v19775_v26 = vcombine.low %v2953_v9, %v2960_v35  ;;  %v2214_v60 = vrot.slane %v23091_v30, %v18792_v31  ;;  %v2218_v45 = vrot.slane %v23091_v30, %v18795_v41  ;;  %v2222_v13 = vrot.slane %v23091_v30, %v18798_v2 }
 0xdb7   : > { %v19771_v62 = vadd.s32 %v9960_v43, %v9958_v27  ;;  %v9989_v25 = vcvt.f32.s32 %v23094_v4  ;;  %v5973_v55 = vcombine.low %v5965_v59, %v5972_v14  ;;  %v19787_v0 = vsel %vm10105_vm8, 1.0, %v23067_v34  ;;  %v23096_v14 = vld [vmem:[#allocation177_spill] sm:$0xff] }
 0xdb8   : > { %v9972_v32 = vpop.xlane.xlu0 %9971  ;;  %v2226_v16 = vrot.slane %v23091_v30, %v18801_v61  ;;  %v6063_v9 = vrot.slane %v6055_v22, %v18834_v63  ;;  %v6070_v35 = vrot.slane %v6056_v11, %v18834_v63  ;;  %v2885_v38 = vrot.slane %v19447_v57, %v18834_v63  ;;  %v23098_v57 = vld [vmem:[#allocation180_spill] sm:$0xff] }
 0xdb9   : > { %23093 = vst [vmem:[#allocation88_spill] sm:$0xff] %v19771_v62  ;;  %v9973_v51 = vcvt.f32.s32 %v9972_v32  ;;  %6290 = vperm.xlu1 %14748, %v5875_v24   ;;  %vm10106_vm10 = vcmp.eq.s32.totalorder %v23065_v44, %v19771_v62  ;;  %v2976_v19 = vcombine.low %v2967_v12, %v2974_v49  ;;  %v2230_v27 = vrot.slane %v23091_v30, %v18804_v33  ;;  %v23119_v62 = vld [vmem:[#allocation25_spill] sm:$0xff] }
 0xdba   : > { %v19790_v39 = vsel %vm10106_vm10, 1.0, %v23067_v34  ;;  %v2234_v24 = vrot.slane %v23091_v30, %v18807_v1  ;;  %v9990_v59 = vshll.u32 %v9989_v25, 16  ;;  %v10004_v32 = vcvt.f32.s32 %v23096_v14  ;;  %v23100_v14 = vld [vmem:[#allocation30_spill] sm:$0xff] }
 0xdbb   : > { %v19794_v42 = vadd.s32 %v9975_v7, %v9973_v51  ;;  %v19798_v40 = vpack.c.bf16 %v19790_v39, %v19787_v0  ;;  %v23097_v4 = vmov 0   ;;  %v2892_v22 = vrot.slane %v19478_v58, %v18834_v63 }
 0xdbc   : > { %v9987_v43 = vpop.xlane.xlu0 %9986  ;;  %v2983_v12 = vrot.slane %v19775_v26, %v18834_v63  ;;  %v3041_v30 = vcombine.low %v2206_v50, %v2210_v47  ;;  %v3042_v49 = vcombine.low %v2214_v60, %v2218_v45  ;;  %v6071_v25 = vcombine.low %v6063_v9, %v6070_v35  ;;  %v23101_v26 = vld [vmem:[#allocation16_spill] sm:$0xff] }
 0xdbd   : > { %23095 = vst [vmem:[#allocation90_spill] sm:$0xff] %v19794_v42  ;;  %v9988_v7 = vcvt.f32.s32 %v9987_v43  ;;  %6296 = vperm.xlu1 %14748, %v5973_v55   ;;  %14749 = vset.pattern.permute.xlu0 %v23097_v4  ;;  %vm10107_vm1 = vcmp.eq.s32.totalorder %v23065_v44, %v19794_v42  ;;  %v3043_v58 = vcombine.low %v2222_v13, %v2226_v16  ;;  %v10005_v47 = vshll.u32 %v10004_v32, 16 }
 0xdbe   : > { %14623 = vmatpush1.bf16.xpose.msk.msra.mxu0 %vm15744_vm6, %v19798_v40  ;;  %3281 = vperm.xlu0 %14749, %v23098_v57   ;;  %v2990_v55 = vrot.slane %v2976_v19, %v18834_v63  ;;  %v3044_v43 = vcombine.low %v2230_v27, %v2234_v24  ;;  %v2270_v4 = vrot.slane %v23100_v14, %v18784_v6  ;;  %v10019_v60 = vcvt.f32.s32 %v23101_v26 }
 0xdbf   : > { %v19818_v11 = vadd.s32 %v9990_v59, %v9988_v7  ;;  %14624 = vmatprep.subr.bf16.mxu0 %v23071_v5  ;;  %v2274_v50 = vrot.slane %v23100_v14, %v18787_v56  ;;  %v19833_v13 = vsel %vm10107_vm1, 1.0, %v23067_v34  ;;  %v3051_v9 = vrot.slane %v3041_v30, %v18834_v63 }
 0xdc0   : > { %v10002_v51 = vpop.xlane.xlu0 %10001  ;;  %v3058_v35 = vrot.slane %v3042_v49, %v18834_v63  ;;  %v2278_v24 = vrot.slane %v23100_v14, %v18792_v31  ;;  %v3065_v32 = vrot.slane %v3043_v58, %v18834_v63  ;;  %v3072_v7 = vrot.slane %v3044_v43, %v18834_v63 }
 0xdc1   : > { %23099 = vst [vmem:[#allocation12_spill] sm:$0xff] %v19818_v11  ;;  %v10003_v45 = vcvt.f32.s32 %v10002_v51  ;;  %6302 = vperm.xlu1 %14748, %v6071_v25   ;;  %vm10108_vm11 = vcmp.eq.s32.totalorder %v23065_v44, %v19818_v11  ;;  %v2286_v57 = vrot.slane %v23100_v14, %v18798_v2  ;;  %v2290_v30 = vrot.slane %v23100_v14, %v18801_v61  ;;  %v23103_v25 = vld [vmem:[#allocation178_spill] sm:$0xff] }
 0xdc2   : > { %3284 = vperm.xlu0 %14749, %v19313_v46   ;;  %v19836_v16 = vsel %vm10108_vm11, 1.0, %v23067_v34  ;;  %v2282_v46 = vrot.slane %v23100_v14, %v18795_v41  ;;  %v10020_v49 = vshll.u32 %v10019_v60, 16  ;;  %v10034_v51 = vcvt.f32.s32 %v23103_v25 }
 0xdc3   : > { %v19840_v19 = vadd.s32 %v10005_v47, %v10003_v45  ;;  %v19844_v27 = vpack.c.bf16 %v19836_v16, %v19833_v13  ;;  %v23104_v26 = vrot.slane %v19378_v20, %v18834_v63  ;;  %v23105_v45 = vrot.slane %v19353_v21, %v18834_v63 }
 0xdc4   : > { %v10017_v59 = vpop.xlane.xlu0 %10016  ;;  %v19869_v58 = vcombine.low %v2885_v38, %v2892_v22  ;;  %v2294_v43 = vrot.slane %v23100_v14, %v18804_v33  ;;  %v2298_v60 = vrot.slane %v23100_v14, %v18807_v1  ;;  %v3139_v21 = vcombine.low %v2270_v4, %v2274_v50  ;;  %v23107_v14 = vld [vmem:[#allocation21_spill] sm:$0xff]  ;;  %v23108_v50 = vld [vmem:[#allocation32_spill] sm:$0xff] }
 0xdc5   : > { %23102 = vst [vmem:[#allocation170_spill] sm:$0xff] %v19840_v19  ;;  %v10018_v47 = vcvt.f32.s32 %v10017_v59  ;;  %v19863_v11 = vcombine.low %v23105_v45, %v23104_v26  ;;  %vm10109_vm5 = vcmp.eq.s32.totalorder %v23065_v44, %v19840_v19  ;;  %v3140_v59 = vcombine.low %v2278_v24, %v2282_v46 }
 0xdc6   : > { %14627 = vmatpush1.bf16.xpose.msk.msra.mxu0 %vm15744_vm6, %v19844_v27  ;;  %3290 = vperm.xlu0 %14749, %v19321_v23   ;;  %v19880_v26 = vcombine.low %v2983_v12, %v2990_v55  ;;  %v19882_v23 = vcombine.low %v3051_v9, %v3058_v35  ;;  %v19884_v38 = vcombine.low %v3065_v32, %v3072_v7  ;;  %v10035_v45 = vshll.u32 %v10034_v51, 16  ;;  %v23110_v32 = vld [vmem:[#allocation139_spill] sm:$0xff] }
 0xdc7   : > { %v19875_v20 = vadd.s32 %v10020_v49, %v10018_v47  ;;  %14628 = vmatprep.subr.bf16.mxu0 %v23071_v5  ;;  %v19886_v22 = vcombine.low %v2286_v57, %v2290_v30  ;;  %v10049_v49 = vcvt.f32.s32 %v23107_v14  ;;  %v19893_v4 = vsel %vm10109_vm5, 1.0, %v23067_v34 }
 0xdc8   : > { %v10032_v25 = vpop.xlane.xlu0 %10031  ;;  %v19898_v55 = vcombine.low %v2294_v43, %v2298_v60  ;;  %v2334_v9 = vrot.slane %v23108_v50, %v18784_v6  ;;  %v3156_v46 = vrot.slane %v3140_v59, %v18834_v63  ;;  %v2338_v57 = vrot.slane %v23108_v50, %v18787_v56  ;;  %v23111_v43 = vld [vmem:[#allocation23_spill] sm:$0xff] }
 0xdc9   : > { %23106 = vst [vmem:[#allocation171_spill] sm:$0xff] %v19875_v20  ;;  %v10033_v47 = vcvt.f32.s32 %v10032_v25  ;;  %vm10110_vm12 = vcmp.eq.s32.totalorder %v23065_v44, %v19875_v20  ;;  %v2342_v30 = vrot.slane %v23108_v50, %v18792_v31  ;;  %v10050_v51 = vshll.u32 %v10049_v49, 16 }
 0xdca   : > { %v7437_v54 = vpop.trf.xlu1  ;;  %3293 = vperm.xlu0 %14749, %v19345_v48   ;;  %v19896_v12 = vsel %vm10110_vm12, 1.0, %v23067_v34  ;;  %v3149_v48 = vrot.slane %v3139_v21, %v18834_v63  ;;  %v10064_v60 = vcvt.f32.s32 %v23111_v43  ;;  %v3163_v14 = vrot.slane %v19886_v22, %v18834_v63 }
 0xdcb   : > { %v19902_v35 = vadd.s32 %v10035_v45, %v10033_v47  ;;  %13414 = vmatmul.mubr.msk.f32.vlgmr.msra.gmra.mrb[122].mxu1 %vm833_vm4, %v7437_v54  ;;  %v19907_v24 = vpack.c.bf16 %v19896_v12, %v19893_v4  ;;  %v2346_v54 = vrot.slane %v23108_v50, %v18795_v41  ;;  %v3088_v45 = vrot.slane %v19884_v38, %v18834_v63 }
 0xdcc   : > { %14594 = vmatpush3.bf16.msra.mxu1 %v23110_v32  ;;  %v10047_v7 = vpop.xlane.xlu0 %10046  ;;  %7535 = vmatprep.mubr.f32.mxu1 %v23067_v34  ;;  %v3170_v49 = vrot.slane %v19898_v55, %v18834_v63  ;;  %v19939_v32 = vcombine.low %v3149_v48, %v3156_v46  ;;  %v3237_v22 = vcombine.low %v2334_v9, %v2338_v57  ;;  %v23114_v55 = vld [vmem:[#allocation81_spill] sm:$0xff]  ;;  %v10065_v43 = vshll.u32 %v10064_v60, 16 }
 0xdcd   : > { %23109 = vst [vmem:[#allocation15_spill] sm:$0xff] %v19902_v35  ;;  %v10048_v21 = vcvt.f32.s32 %v10047_v7  ;;  %14595 = vmatprep.subr.bf16.mxu1 %v23071_v5  ;;  %vm10111_vm13 = vcmp.eq.s32.totalorder %v23065_v44, %v19902_v35  ;;  %v3238_v7 = vcombine.low %v2342_v30, %v2346_v54  ;;  %v4776_v57 = vrot.slane %v23114_v55, %v18787_v56 }
 0xdce   : > { %14631 = vmatpush1.bf16.xpose.msk.msra.mxu0 %vm15744_vm6, %v19907_v24  ;;  %v7438_v25 = vpop.trf.xlu1  ;;  %3296 = vperm.xlu0 %14749, %v19366_v36   ;;  %v23113_v36 = vld [vmem:[#allocation140_spill] sm:$0xff]  ;;  %v19951_v46 = vsel %vm10111_vm13, 1.0, %v23067_v34  ;;  %v4780_v30 = vrot.slane %v23114_v55, %v18792_v31  ;;  %v2350_v20 = vrot.slane %v23108_v50, %v18798_v2  ;;  %v3172_v42 = vcombine.low %v3163_v14, %v3170_v49 }
 0xdcf   : > { %v19933_v47 = vadd.s32 %v10050_v51, %v10048_v21  ;;  %13415 = vmatmul.mubr.msk.f32.gmra.mrb[124].mxu1 %vm833_vm4, %v7438_v25  ;;  %14632 = vmatprep.subr.bf16.mxu0 %v23071_v5  ;;  %v4772_v51 = vrot.slane %v23114_v55, %v18784_v6  ;;  %v23115_v21 = vld [vmem:[#allocation179_spill] sm:$0xff]  ;;  %v10094_v37 = vcvt.f32.s32 %v23119_v62  ;;  %v3179_v62 = vrot.slane %v19939_v32, %v18834_v63 }
 0xdd0   : > { %14597 = vmatpush3.bf16.msra.mxu1 %v23113_v36  ;;  %v10062_v38 = vpop.xlane.xlu0 %10061  ;;  %7541 = vmatprep.mubr.f32.mxu1 %v23067_v34  ;;  %v10079_v25 = vcvt.f32.s32 %v23115_v21  ;;  %v4788_v36 = vrot.slane %v23114_v55, %v18798_v2  ;;  %vm3364_vm10 = vcmask 326912   ;;  %vm3371_vm1 = vcmask 392512  }
 0xdd1   : > { %23112 = vst [vmem:[#allocation92_spill] sm:$0xff] %v19933_v47  ;;  %v10063_v59 = vcvt.f32.s32 %v10062_v38  ;;  %14598 = vmatprep.subr.bf16.mxu1 %v23071_v5  ;;  %vm10112_vm14 = vcmp.eq.s32.totalorder %v23065_v44, %v19933_v47  ;;  %v23117_v38 = vld [vmem:[#allocation141_spill] sm:$0xff]  ;;  %vm3378_vm11 = vcmask 458112   ;;  %vm3385_vm5 = vcmask 523712  }
 0xdd2   : > { %v7439_v48 = vpop.trf.xlu1  ;;  %3302 = vperm.xlu0 %14749, %v19863_v11   ;;  %v19954_v9 = vsel %vm10112_vm14, 1.0, %v23067_v34  ;;  %v4784_v11 = vrot.slane %v23114_v55, %v18795_v41  ;;  %v10080_v47 = vshll.u32 %v10079_v25, 16  ;;  %v3253_v25 = vrot.slane %v3238_v7, %v18834_v63 }
 0xdd3   : > { %v19960_v54 = vadd.s32 %v10065_v43, %v10063_v59  ;;  %13416 = vmatmul.mubr.msk.f32.gmra.mrb[126].mxu1 %vm833_vm4, %v7439_v48  ;;  %v19965_v60 = vpack.c.bf16 %v19954_v9, %v19951_v46  ;;  %v4792_v59 = vrot.slane %v23114_v55, %v18801_v61  ;;  %v4796_v43 = vrot.slane %v23114_v55, %v18804_v33 }
 0xdd4   : > { %14600 = vmatpush3.bf16.msra.mxu1 %v23117_v38  ;;  %v10077_v21 = vpop.xlane.xlu0 %10076  ;;  %7547 = vmatprep.mubr.f32.mxu1 %v23067_v34  ;;  %v4800_v48 = vrot.slane %v23114_v55, %v18807_v1  ;;  %v2354_v38 = vrot.slane %v23108_v50, %v18801_v61  ;;  %v3246_v55 = vrot.slane %v3237_v22, %v18834_v63  ;;  %vm3392_vm12 = vcmask 589312  }
 0xdd5   : > { %23116 = vst [vmem:[#allocation172_spill] sm:$0xff] %v19960_v54  ;;  %v10078_v35 = vcvt.f32.s32 %v10077_v21  ;;  %14601 = vmatprep.subr.bf16.mxu1 %v23071_v5  ;;  %vm10113_vm15 = vcmp.eq.s32.totalorder %v23065_v44, %v19960_v54  ;;  %v5386_v50 = vcombine.low %v4772_v51, %v4776_v57  ;;  %v5387_v14 = vcombine.low %v4780_v30, %v4784_v11 }
 0xdd6   : > { %14635 = vmatpush1.bf16.xpose.msk.msra.mxu0 %vm15744_vm6, %v19965_v60  ;;  %v7440_v19 = vpop.trf.xlu1  ;;  %3308 = vperm.xlu0 %14749, %v19869_v58   ;;  %v5388_v49 = vcombine.low %v4788_v36, %v4792_v59  ;;  %v20010_v22 = vsel %vm10113_vm15, 1.0, %v23067_v34  ;;  %v3239_v51 = vcombine.low %v2350_v20, %v2354_v38  ;;  %v3261_v32 = vcombine.low %v3246_v55, %v3253_v25  ;;  %v23123_v25 = vld [vmem:[#allocation20_spill] sm:$0xff] }
 0xdd7   : > { %v19990_v21 = vadd.s32 %v10080_v47, %v10078_v35  ;;  %13417 = vmatmul.mubr.msk.f32.gmra.mrb[128].mxu1 %vm833_vm4, %v7440_v19  ;;  %14636 = vmatprep.subr.bf16.mxu0 %v23071_v5  ;;  %v5389_v35 = vcombine.low %v4796_v43, %v4800_v48  ;;  %v23121_v19 = vrot.slane %v19882_v23, %v18834_v63  ;;  %vm3399_vm13 = vcmask 654912  }
 0xdd8   : > { %14603 = vmatpush3.bf16.msra.mxu1 %v23120_v15  ;;  %v10092_v58 = vpop.xlane.xlu0 %10091  ;;  %14327 = vmatprep.mubr.msk.f32.mxu1 %vm14914_vm2, %v23067_v34  ;;  %v5396_v57 = vrot.slane %v5386_v50, %v18834_v63  ;;  %v5403_v30 = vrot.slane %v5387_v14, %v18834_v63  ;;  %v5410_v20 = vrot.slane %v5388_v49, %v18834_v63  ;;  %v23124_v50 = vld [vmem:[#allocation80_spill] sm:$0xff]  ;;  %v3359_v49 = vadd.s32 4294967264, %v23065_v44 }
 0xdd9   : > { %23118 = vst [vmem:[#allocation174_spill] sm:$0xff] %v19990_v21  ;;  %vm10114_vm7 = vcmp.eq.s32.totalorder %v23065_v44, %v19990_v21  ;;  %v3089_v47 = vcombine.low %v23121_v19, %v3088_v45  ;;  %14640 = vmatprep.subr.bf16.mxu1 %v23071_v5  ;;  %v10093_v15 = vcvt.f32.s32 %v10092_v58  ;;  %v3186_v45 = vrot.slane %v3172_v42, %v18834_v63  ;;  %v23125_v58 = vld [vmem:[#allocation24_spill] sm:$0xff] }
 0xdda   : > { %3314 = vperm.xlu0 %14749, %v19880_v26   ;;  %v20013_v7 = vsel %vm10114_vm7, 1.0, %v23067_v34  ;;  %v10095_v26 = vshll.u32 %v10094_v37, 16  ;;  %v5417_v11 = vrot.slane %v5389_v35, %v18834_v63  ;;  %v3260_v42 = vrot.slane %v3239_v51, %v18834_v63 }
 0xddb   : > { %14328 = vmatmul.mubr.msk.f32.vlgmr.msra.gmra.mrb[130].mxu1 %vm833_vm4, %v19580_v10  ;;  %v20019_v23 = vpack.c.bf16 %v20013_v7, %v20010_v22  ;;  %v3187_v37 = vcombine.low %v3179_v62, %v3186_v45  ;;  %v3268_v36 = vrot.slane %v3261_v32, %v18834_v63  ;;  %v5418_v59 = vcombine.low %v5396_v57, %v5403_v30 }
 0xddc   : > { %14330 = vmatprep.mubr.msk.f32.mxu1 %vm14914_vm2, %v23067_v34  ;;  %v20028_v10 = vadd.s32 %v10095_v26, %v10093_v15  ;;  %v5419_v43 = vcombine.low %v5410_v20, %v5417_v11  ;;  %v3380_v32 = vadd.s32 4294967240, %v23065_v44  ;;  %v3387_v30 = vadd.s32 4294967232, %v23065_v44 }
 0xddd   : > { %v5426_v38 = vrot.slane %v5418_v59, %v18834_v63  ;;  %vm22674_vm14 = vcmask 720512   ;;  %vm3413_vm15 = vcmask 786112   ;;  %vm22675_vm7 = vcmask 851712  }
 0xdde   : > { %23122 = vst [vmem:[#allocation94_spill] sm:$0xff] %v20028_v10  ;;  %14639 = vmatpush1.bf16.xpose.msk.msra.mxu0 %vm15744_vm6, %v20019_v23  ;;  %3320 = vperm.xlu0 %14749, %v3089_v47   ;;  %vm10115_vm8 = vcmp.eq.s32.totalorder %v23065_v44, %v20028_v10  ;;  %v5433_v55 = vrot.slane %v5419_v43, %v18834_v63  ;;  %v3373_v47 = vadd.s32 4294967248, %v23065_v44 }
 0xddf   : > { %14331 = vmatmul.mubr.msk.f32.gmra.mrb[132].mxu1 %vm833_vm4, %v19583_v52  ;;  %10451 = vmatprep.subr.mxu0 %v23067_v34  ;;  %v3275_v52 = vrot.slane %v3260_v42, %v18834_v63 }
 0xde0   : > { %14333 = vmatprep.mubr.msk.f32.mxu1 %vm14914_vm2, %v23067_v34 }
 0xde1   : > { %14650 = vmatpush1.bf16.xpose.msk.msra.mxu1 %vm15744_vm6, %v19589_v53  ;;  %v3276_v48 = vcombine.low %v3268_v36, %v3275_v52  ;;  %v13500_v53 = vsel %vm10115_vm8, 1.0, %v23067_v34  ;;  %vm3427_vm8 = vcmask 917312  }
 0xde2   : > { %3326 = vperm.xlu0 %14749, %v3187_v37   ;;  %14641 = vmatprep.subr.bf16.mxu1 %v23071_v5 }
 0xde3   : > { %14334 = vmatmul.mubr.msk.f32.gmra.mrb[134].mxu1 %vm833_vm4, %v19635_v3  ;;  %v5434_v3 = vcombine.low %v5426_v38, %v5433_v55 }
 0xde4   : > { %14336 = vmatprep.mubr.msk.f32.mxu1 %vm14914_vm2, %v23067_v34 }
 0xde6   : > { %13538 = vmatpush1.xpose.msk.msra.mxu0 %vm833_vm4, %v13500_v53  ;;  %3332 = vperm.xlu0 %14749, %v3276_v48   ;;  %v3394_v48 = vadd.s32 4294967224, %v23065_v44 }
 0xde7   : > { %14337 = vmatmul.mubr.msk.f32.gmra.mrb[136].mxu1 %vm833_vm4, %v19638_v29  ;;  %v23126_v29 = vld [vmem:[#allocation26_spill] sm:$0xff] }
 0xde8   : > { %14339 = vmatprep.mubr.msk.f32.mxu1 %vm14914_vm2, %v23067_v34 }
 0xde9   : > { %14651 = vmatpush1.bf16.xpose.msk.msra.mxu1 %vm15744_vm6, %v23123_v25 }
 0xdea   : > { %6263 = vperm.xlu0 %14749, %v5434_v3   ;;  %14642 = vmatprep.subr.bf16.mxu1 %v23071_v5 }
 0xdeb   : > { %14340 = vmatmul.mubr.msk.f32.gmra.mrb[138].mxu1 %vm833_vm4, %v23124_v50 }
 0xdec   : > { %14342 = vmatprep.mubr.msk.f32.mxu1 %vm14914_vm2, %v23067_v34 }
 0xdef   : > { %14343 = vmatmul.mubr.msk.f32.gmra.mrb[140].mxu1 %vm833_vm4, %v23125_v58 }
 0xdf0   : > { %14345 = vmatprep.mubr.msk.f32.mxu1 %vm14914_vm2, %v23067_v34 }
 0xdf1   : > { %14652 = vmatpush1.bf16.xpose.msk.msra.mxu1 %vm15744_vm6, %v23126_v29 }
 0xdf2   : > { %14643 = vmatprep.subr.bf16.mxu1 %v23071_v5 }
 0xdf3   : > { %14346 = vmatmul.mubr.msk.f32.gmra.mrb[142].mxu1 %vm833_vm4, %v19737_v17 }
 0xdf4   : > { %14348 = vmatprep.mubr.msk.f32.mxu1 %vm14914_vm2, %v23067_v34 }
 0xdf7   : > { %14349 = vmatmul.mubr.msk.f32.gmra.mrb[144].mxu1 %vm833_vm4, %v19740_v28 }
 0xdf8   : > { %14351 = vmatprep.mubr.msk.f32.mxu1 %vm14914_vm2, %v23067_v34  ;;  %v10387_v14 = vpop.trf.xlu0 }
 0xdf9   : > { %14653 = vmatpush1.bf16.xpose.msk.msra.mxu1 %vm15744_vm6, %v19748_v18  ;;  %13539 = vmatmul.mubr.msk.f32.vlgmr.msra.gmra.mrb[160].mxu0 %vm833_vm4, %v10387_v14 }
 0xdfa   : > { %14644 = vmatprep.subr.bf16.mxu1 %v23071_v5  ;;  %10485 = vmatprep.mubr.f32.mxu0 %v23067_v34 }
 0xdfb   : > { %14352 = vmatmul.mubr.msk.f32.gmra.mrb[146].mxu1 %vm833_vm4, %v19787_v0 }
 0xdfc   : > { %14354 = vmatprep.mubr.msk.f32.mxu1 %vm14914_vm2, %v23067_v34  ;;  %v10388_v17 = vpop.trf.xlu0 }
 0xdfd   : > { %13540 = vmatmul.mubr.msk.f32.gmra.mrb[162].mxu0 %vm833_vm4, %v10388_v17 }
 0xdff   : > { %14355 = vmatmul.mubr.msk.f32.gmra.mrb[148].mxu1 %vm833_vm4, %v19790_v39 }
 0xe00   : > { %14357 = vmatprep.mubr.msk.f32.mxu1 %vm14914_vm2, %v23067_v34 }
 0xe01   : > { %14654 = vmatpush1.bf16.xpose.msk.msra.mxu1 %vm15744_vm6, %v19798_v40 }
 0xe02   : > { %14645 = vmatprep.subr.bf16.mxu1 %v23071_v5 }
 0xe03   : > { %14358 = vmatmul.mubr.msk.f32.gmra.mrb[150].mxu1 %vm833_vm4, %v19833_v13 }
 0xe04   : > { %14360 = vmatprep.mubr.msk.f32.mxu1 %vm14914_vm2, %v23067_v34  ;;  %v3279_v18 = vpop.permute.xlu1 %3278 }
 0xe07   : > { %14361 = vmatmul.mubr.msk.f32.gmra.mrb[152].mxu1 %vm833_vm4, %v19836_v16  ;;  %v3338_v16 = vadd.s32 4294967288, %v23065_v44 }
 0xe08   : > { %14363 = vmatprep.mubr.msk.f32.mxu1 %vm14914_vm2, %v23067_v34  ;;  %v3288_v0 = vpop.permute.xlu1 %3287 }
 0xe09   : > { %14655 = vmatpush1.bf16.xpose.msk.msra.mxu1 %vm15744_vm6, %v19844_v27  ;;  %v3345_v27 = vadd.s32 4294967280, %v23065_v44 }
 0xe0a   : > { %14646 = vmatprep.subr.bf16.mxu1 %v23071_v5 }
 0xe0b   : > { %14364 = vmatmul.mubr.msk.f32.gmra.mrb[154].mxu1 %vm833_vm4, %v19893_v4 }
 0xe0c   : > { %14366 = vmatprep.mubr.msk.f32.mxu1 %vm14914_vm2, %v23067_v34  ;;  %v3300_v39 = vpop.permute.xlu1 %3299 }
 0xe0f   : > { %14367 = vmatmul.mubr.msk.f32.gmra.mrb[156].mxu1 %vm833_vm4, %v19896_v12  ;;  %v23127_v12 = vld [vmem:[#allocation173_spill] sm:$0xff] }
 0xe10   : > { %14369 = vmatprep.mubr.msk.f32.mxu1 %vm14914_vm2, %v23067_v34  ;;  %v20156_v13 = vpop.permute.xlu1 %3305  ;;  %v20190_v57 = vsub.s32 %v3373_v47, %v23127_v12  ;;  %v20200_v52 = vsub.s32 %v3380_v32, %v23127_v12  ;;  %v20205_v55 = vsub.s32 %v3387_v30, %v23127_v12  ;;  %v20214_v17 = vsub.s32 %v3394_v48, %v23127_v12 }
 0xe11   : > { %14656 = vmatpush1.bf16.xpose.msk.msra.mxu1 %vm15744_vm6, %v19907_v24  ;;  %v20162_v24 = vsub.s32 %v23065_v44, %v23127_v12  ;;  %v3436_v32 = vadd.s32 4294967176, %v23065_v44 }
 0xe12   : > { %14647 = vmatprep.subr.bf16.mxu1 %v23071_v5  ;;  %23134 = vst [vmem:[#allocation177_spill] sm:$0xff] %v20190_v57  ;;  %23135 = vst [vmem:[#allocation180_spill] sm:$0xff] %v20200_v52  ;;  %v3384_v14 = vrot.slane %v3300_v39, %v20200_v52 }
 0xe13   : > { %14370 = vmatmul.mubr.msk.f32.gmra.mrb[158].mxu1 %vm833_vm4, %v19951_v46  ;;  %23128 = vst [vmem:[#allocation175_spill] sm:$0xff] %v20162_v24  ;;  %v20166_v46 = vsub.s32 %v3338_v16, %v23127_v12  ;;  %23136 = vst [vmem:[#allocation30_spill] sm:$0xff] %v20205_v55 }
 0xe14   : > { %14372 = vmatprep.mubr.msk.f32.mxu1 %vm14914_vm2, %v23067_v34  ;;  %v20173_v19 = vpop.permute.xlu1 %3311  ;;  %23137 = vst [vmem:[#allocation16_spill] sm:$0xff] %v20214_v17 }
 0xe15   : > { %23129 = vst [vmem:[#allocation13_spill] sm:$0xff] %v20166_v46 }
 0xe17   : > { %14373 = vmatmul.mubr.msk.f32.gmra.mrb[160].mxu1 %vm833_vm4, %v19954_v9  ;;  %v3366_v9 = vadd.s32 4294967256, %v23065_v44 }
 0xe18   : > { %14375 = vmatprep.mubr.msk.f32.mxu1 %vm14914_vm2, %v23067_v34  ;;  %v3318_v37 = vpop.permute.xlu1 %3317 }
 0xe19   : > { %14657 = vmatpush1.bf16.xpose.msk.msra.mxu1 %vm15744_vm6, %v19965_v60  ;;  %v20170_v60 = vsub.s32 %v3345_v27, %v23127_v12  ;;  %v20183_v51 = vsub.s32 %v3366_v9, %v23127_v12  ;;  %v3398_v27 = vrot.slane %v20156_v13, %v20214_v17 }
 0xe1a   : > { %14648 = vmatprep.subr.bf16.mxu1 %v23071_v5  ;;  %v10389_v5 = vpop.trf.xlu0 }
 0xe1b   : > { %14376 = vmatmul.mubr.msk.f32.gmra.mrb[162].mxu1 %vm833_vm4, %v20010_v22  ;;  %23130 = vst [vmem:[#allocation176_spill] sm:$0xff] %v20170_v60  ;;  %v3337_v22 = vrot.slane %v3279_v18, %v20162_v24  ;;  %23132 = vst [vmem:[#allocation14_spill] sm:$0xff] %v20183_v51 }
 0xe1c   : > { %14378 = vmatprep.mubr.msk.f32.mxu1 %vm14914_vm2, %v23067_v34 }
 0xe1e   : > { %v10390_v28 = vpop.trf.xlu0 }
 0xe1f   : > { %14379 = vmatmul.mubr.msk.f32.gmra.mrb[164].mxu1 %vm833_vm4, %v20013_v7 }
 0xe20   : > { %14381 = vmatprep.mubr.msk.f32.mxu1 %vm14914_vm2, %v23067_v34  ;;  %vm3343_vm2 = vcmask 130112  }
 0xe21   : > { %14658 = vmatpush1.bf16.xpose.msk.msra.mxu1 %vm15744_vm6, %v20019_v23  ;;  %v20186_v23 = vsub.s32 %v3359_v49, %v23127_v12  ;;  %vm3357_vm6 = vcmask 261312   ;;  %v3429_v49 = vadd.s32 4294967184, %v23065_v44 }
 0xe22   : > { %14649 = vmatprep.subr.mxu1 %v23067_v34 }
 0xe23   : > { %14382 = vmatmul.mubr.msk.f32.gmra.mrb[166].mxu1 %vm833_vm4, %v13500_v53  ;;  %23133 = vst [vmem:[#allocation17_spill] sm:$0xff] %v20186_v23 }
 0xe24   : > { %10491 = vmatprep.mubr.f32.mxu1 %v23067_v34 }
 0xe29   : > { %14659 = vmatpush1.xpose.msk.msra.mxu1 %vm833_vm4, %v13500_v53  ;;  %v3401_v53 = vadd.s32 4294967216, %v23065_v44 }
 0xe2b   : > { %v20218_v18 = vsub.s32 %v3401_v53, %v23127_v12 }
 0xe2c   : > { %13541 = vmatmul.mubr.msk.f32.vlgmr.msra.gmra.mrb[168].mxu1 %vm833_vm4, %v10389_v5  ;;  %v3408_v5 = vadd.s32 4294967208, %v23065_v44 }
 0xe2d   : > { %10497 = vmatprep.mubr.f32.mxu1 %v23067_v34  ;;  %v3352_v34 = vadd.s32 4294967272, %v23065_v44  ;;  %23138 = vst [vmem:[#allocation178_spill] sm:$0xff] %v20218_v18 }
 0xe2f   : > { %v20180_v7 = vsub.s32 %v3352_v34, %v23127_v12  ;;  %v3422_v34 = vadd.s32 4294967192, %v23065_v44 }
 0xe30   : > { %13542 = vmatmul.mubr.msk.f32.gmra.mrb[170].mxu1 %vm833_vm4, %v10390_v28  ;;  %vm3350_vm4 = vcmask 195712   ;;  %v3324_v28 = vpop.permute.xlu1 %3323 }
 0xe31   : > { %23131 = vst [vmem:[#allocation28_spill] sm:$0xff] %v20180_v7  ;;  %v3356_v42 = vrot.slane %v3288_v0, %v20180_v7  ;;  %v3415_v0 = vadd.s32 4294967200, %v23065_v44 }
 0xe33   : > { %v20231_v9 = vsub.s32 %v3415_v0, %v23127_v12 }
 0xe35   : > { %23140 = vst [vmem:[#allocation32_spill] sm:$0xff] %v20231_v9 }
 0xe3d   : > { %v3282_v8 = vpop.permute.xlu0 %3281 }
 0xe3e   : > { %v3342_v62 = vrot.slane %v3282_v8, %v20166_v46 }
 0xe40   : > { %v3344_v26 = vsel %vm3343_vm2, %v3342_v62, %v3337_v22 }
 0xe41   : > { %v3285_v40 = vpop.permute.xlu0 %3284 }
 0xe42   : > { %v3349_v15 = vrot.slane %v3285_v40, %v20170_v60 }
 0xe44   : > { %v3351_v20 = vsel %vm3350_vm4, %v3349_v15, %v3344_v26  ;;  %v20244_v26 = vsub.s32 %v3429_v49, %v23127_v12 }
 0xe45   : > { %v3291_v4 = vpop.permute.xlu0 %3290  ;;  %v3358_v38 = vsel %vm3357_vm6, %v3356_v42, %v3351_v20 }
 0xe46   : > { %v3363_v11 = vrot.slane %v3291_v4, %v20186_v23  ;;  %v20227_v4 = vsub.s32 %v3408_v5, %v23127_v12  ;;  %23142 = vst [vmem:[#allocation23_spill] sm:$0xff] %v20244_v26 }
 0xe48   : > { %v3365_v3 = vsel %vm3364_vm10, %v3363_v11, %v3358_v38  ;;  %23139 = vst [vmem:[#allocation21_spill] sm:$0xff] %v20227_v4  ;;  %v3412_v22 = vrot.slane %v20173_v19, %v20227_v4  ;;  %v20251_v19 = vsub.s32 %v3436_v32, %v23127_v12  ;;  %v23146_v32 = vmov 0 }
 0xe49   : > { %v3294_v35 = vpop.permute.xlu0 %3293 }
 0xe4a   : > { %v3370_v36 = vrot.slane %v3294_v35, %v20183_v51  ;;  %v3330_v35 = vpop.permute.xlu1 %3329  ;;  %23143 = vst [vmem:[#allocation140_spill] sm:$0xff] %v20251_v19 }
 0xe4b   : > { %v3450_v48 = vrot.slane %v3330_v35, %v20166_v46 }
 0xe4c   : > { %v3372_v25 = vsel %vm3371_vm1, %v3370_v36, %v3365_v3  ;;  %v3440_v3 = vrot.slane %v3324_v28, %v20251_v19 }
 0xe4d   : > { %v3297_v45 = vpop.permute.xlu0 %3296 }
 0xe4e   : > { %v3377_v59 = vrot.slane %v3297_v45, %v20190_v57  ;;  %v20240_v45 = vsub.s32 %v3422_v34, %v23127_v12 }
 0xe50   : > { %v3379_v50 = vsel %vm3378_vm11, %v3377_v59, %v3372_v25  ;;  %23141 = vst [vmem:[#allocation139_spill] sm:$0xff] %v20240_v45  ;;  %v3426_v36 = vrot.slane %v3318_v37, %v20240_v45  ;;  %v6261_v59 = vpop.permute.xlu1 %6260 }
 0xe51   : > { %v3303_v43 = vpop.permute.xlu0 %3302  ;;  %v3386_v8 = vsel %vm3385_vm5, %v3384_v14, %v3379_v50  ;;  %v23144_v14 = vld [vmem:[#allocation83_spill] sm:$0xff] }
 0xe52   : > { %v3391_v58 = vrot.slane %v3303_v43, %v20205_v55  ;;  %v4836_v5 = vrot.slane %v23144_v14, %v18784_v6  ;;  %v4844_v28 = vrot.slane %v23144_v14, %v18792_v31  ;;  %v4852_v34 = vrot.slane %v23144_v14, %v18798_v2 }
 0xe53   : > { %v4856_v49 = vrot.slane %v23144_v14, %v18801_v61 }
 0xe54   : > { %v3393_v40 = vsel %vm3392_vm12, %v3391_v58, %v3386_v8  ;;  %v6267_v50 = vpop.permute.xlu1 %6266 }
 0xe55   : > { %v3309_v29 = vpop.permute.xlu0 %3308  ;;  %v3400_v47 = vsel %vm3399_vm13, %v3398_v27, %v3393_v40  ;;  %v4840_v40 = vrot.slane %v23144_v14, %v18787_v56  ;;  %v6328_v35 = vrot.slane %v6267_v50, %v20170_v60 }
 0xe56   : > { %v3405_v16 = vrot.slane %v3309_v29, %v20218_v18 }
 0xe58   : > { %v3407_v62 = vsel %vm22674_vm14, %v3405_v16, %v3400_v47  ;;  %vm3434_vm14 = vcmask 982912   ;;  %v4848_v16 = vrot.slane %v23144_v14, %v18795_v41 }
 0xe59   : > { %v3315_v39 = vpop.permute.xlu0 %3314  ;;  %v3414_v30 = vsel %vm3413_vm15, %v3412_v22, %v3407_v62  ;;  %v4860_v62 = vrot.slane %v23144_v14, %v18804_v33  ;;  %v23145_v22 = vlaneseq }
 0xe5a   : > { %v3419_v15 = vrot.slane %v3315_v39, %v20231_v9  ;;  %v6319_v39 = vrot.slane %v6261_v59, %v20162_v24 }
 0xe5c   : > { %v3421_v20 = vsel %vm22675_vm7, %v3419_v15, %v3414_v30  ;;  %vm22676_vm7 = vcmask 1048512   ;;  %v4864_v15 = vrot.slane %v23144_v14, %v18807_v1 }
 0xe5d   : > { %v3321_v13 = vpop.permute.xlu0 %3320  ;;  %v3428_v43 = vsel %vm3427_vm8, %v3426_v36, %v3421_v20  ;;  %v5486_v36 = vcombine.low %v4852_v34, %v4856_v49 }
 0xe5e   : > { %v3433_v11 = vrot.slane %v3321_v13, %v20244_v26  ;;  %v5487_v59 = vcombine.low %v4860_v62, %v4864_v15 }
 0xe60   : > { %v3435_v38 = vsel %vm3434_vm14, %v3433_v11, %v3428_v43  ;;  %v5484_v11 = vcombine.low %v4836_v5, %v4840_v40 }
 0xe61   : > { %v3327_v42 = vpop.permute.xlu0 %3326  ;;  %v3442_v58 = vsel %vm22676_vm7, %v3440_v3, %v3435_v38  ;;  %vm20285_vm7 = vcmp.lt.s32.totalorder %v23145_v22, 150  ;;  %v5508_v3 = vrot.slane %v5486_v36, %v18834_v63 }
 0xe62   : > { %v3446_v44 = vrot.slane %v3327_v42, %v20162_v24  ;;  %v23147_v32 = vsel %vm20285_vm7, 4294967295, %v23146_v32  ;;  %v5485_v42 = vcombine.low %v4844_v28, %v4848_v16  ;;  %v5494_v38 = vrot.slane %v5484_v11, %v18834_v63  ;;  %v23162_v24 = vld [vmem:[#allocation98_spill] sm:$0xff] }
 0xe63   : > { %23148 = vst [vmem:[#allocation81_spill] sm:$0xff] %v23147_v32  ;;  %v5316_v45 = vrot.slane %v23162_v24, %v18784_v6  ;;  %v5320_v12 = vrot.slane %v23162_v24, %v18787_v56  ;;  %v5324_v9 = vrot.slane %v23162_v24, %v18792_v31  ;;  %v5328_v4 = vrot.slane %v23162_v24, %v18795_v41 }
 0xe64   : > { %v3451_v25 = vsel %vm3343_vm2, %v3450_v48, %v3446_v44  ;;  %v23150_v44 = vld [vmem:[#allocation85_spill] sm:$0xff] }
 0xe65   : > { %v3333_v53 = vpop.permute.xlu0 %3332  ;;  %v4900_v43 = vrot.slane %v23150_v44, %v18784_v6  ;;  %v4904_v48 = vrot.slane %v23150_v44, %v18787_v56  ;;  %v4912_v50 = vrot.slane %v23150_v44, %v18795_v41  ;;  %v4924_v14 = vrot.slane %v23150_v44, %v18804_v33 }
 0xe66   : > { %v3455_v37 = vrot.slane %v3333_v53, %v20170_v60  ;;  %v5501_v53 = vrot.slane %v5485_v42, %v18834_v63  ;;  %v4928_v5 = vrot.slane %v23150_v44, %v18807_v1 }
 0xe68   : > { %v3456_v29 = vsel %vm3350_vm4, %v3455_v37, %v3451_v25  ;;  %v4908_v37 = vrot.slane %v23150_v44, %v18792_v31  ;;  %v5515_v25 = vrot.slane %v5487_v59, %v18834_v63  ;;  %v5585_v34 = vcombine.low %v4924_v14, %v4928_v5 }
 0xe69   : > { %v3457_v0 = vcombine.low %v3442_v58, %v3456_v29  ;;  %v6264_v8 = vpop.permute.xlu0 %6263  ;;  %v4916_v58 = vrot.slane %v23150_v44, %v18798_v2  ;;  %v4920_v29 = vrot.slane %v23150_v44, %v18801_v61 }
 0xe6a   : > { %v6323_v27 = vrot.slane %v6264_v8, %v20166_v46  ;;  %v5582_v8 = vcombine.low %v4900_v43, %v4904_v48  ;;  %v20322_v40 = vcombine.low %v5508_v3, %v5515_v25  ;;  %v5583_v28 = vcombine.low %v4908_v37, %v4912_v50 }
 0xe6b   : > { %v3464_v47 = vrot.slane %v3457_v0, %v18834_v63  ;;  %v20320_v0 = vcombine.low %v5494_v38, %v5501_v53  ;;  %v5584_v16 = vcombine.low %v4916_v58, %v4920_v29  ;;  %v5613_v3 = vrot.slane %v5585_v34, %v18834_v63 }
 0xe6c   : > { %v6324_v13 = vsel %vm3343_vm2, %v6323_v27, %v6319_v39  ;;  %v23151_v39 = vld [vmem:[#allocation87_spill] sm:$0xff]  ;;  %v5592_v44 = vrot.slane %v5582_v8, %v18834_v63  ;;  %v5599_v43 = vrot.slane %v5583_v28, %v18834_v63 }
 0xe6d   : > { %v3471_v30 = vrot.slane %v3464_v47, %v18834_v63  ;;  %v20291_v20 = vsel %vm3350_vm4, %v6328_v35, %v6324_v13  ;;  %v4964_v27 = vrot.slane %v23151_v39, %v18784_v6  ;;  %v4968_v49 = vrot.slane %v23151_v39, %v18787_v56 }
 0xe6e   : > { %23149 = vst [vmem:[#allocation179_spill] sm:$0xff] %v20291_v20  ;;  %v4972_v35 = vrot.slane %v23151_v39, %v18792_v31  ;;  %v4976_v47 = vrot.slane %v23151_v39, %v18795_v41  ;;  %v4980_v62 = vrot.slane %v23151_v39, %v18798_v2  ;;  %v4984_v15 = vrot.slane %v23151_v39, %v18801_v61 }
 0xe6f   : > { %3476 = vst.msk [vmem:[%s20295_s17] ss:$4 sm:$0x3] %vm20285_vm7, %v3471_v30  ;;  %v4988_v13 = vrot.slane %v23151_v39, %v18804_v33  ;;  %v4992_v22 = vrot.slane %v23151_v39, %v18807_v1  ;;  %v23152_v30 = vld [vmem:[#allocation89_spill] sm:$0xff]  ;;  %v5606_v53 = vrot.slane %v5584_v16, %v18834_v63  ;;  %v5680_v50 = vcombine.low %v4964_v27, %v4968_v49 }
 0xe70   : > { %v5028_v11 = vrot.slane %v23152_v30, %v18784_v6  ;;  %v5032_v42 = vrot.slane %v23152_v30, %v18787_v56  ;;  %v5036_v36 = vrot.slane %v23152_v30, %v18792_v31  ;;  %v5040_v59 = vrot.slane %v23152_v30, %v18795_v41 }
 0xe71   : > { %v5044_v48 = vrot.slane %v23152_v30, %v18798_v2  ;;  %v5048_v38 = vrot.slane %v23152_v30, %v18801_v61  ;;  %v5052_v37 = vrot.slane %v23152_v30, %v18804_v33  ;;  %v5056_v25 = vrot.slane %v23152_v30, %v18807_v1 }
 0xe72   : > { %v5681_v58 = vcombine.low %v4972_v35, %v4976_v47  ;;  %v5682_v29 = vcombine.low %v4980_v62, %v4984_v15  ;;  %v5683_v14 = vcombine.low %v4988_v13, %v4992_v22  ;;  %v5778_v5 = vcombine.low %v5028_v11, %v5032_v42 }
 0xe73   : > { %v5779_v8 = vcombine.low %v5036_v36, %v5040_v59  ;;  %v5524_v28 = vrot.slane %v20320_v0, %v18834_v63  ;;  %v5780_v39 = vcombine.low %v5044_v48, %v5048_v38  ;;  %v5531_v16 = vrot.slane %v20322_v40, %v18834_v63  ;;  %v23153_v0 = vld [vmem:[#allocation91_spill] sm:$0xff]  ;;  %v23154_v38 = vld [vmem:[#allocation93_spill] sm:$0xff] }
 0xe74   : > { %v5614_v34 = vcombine.low %v5592_v44, %v5599_v43  ;;  %v5615_v32 = vcombine.low %v5606_v53, %v5613_v3  ;;  %v5781_v21 = vcombine.low %v5052_v37, %v5056_v25  ;;  %v5690_v60 = vrot.slane %v5680_v50, %v18834_v63 }
 0xe75   : > { %v5697_v30 = vrot.slane %v5681_v58, %v18834_v63  ;;  %v5704_v27 = vrot.slane %v5682_v29, %v18834_v63  ;;  %v5711_v49 = vrot.slane %v5683_v14, %v18834_v63  ;;  %v5788_v35 = vrot.slane %v5778_v5, %v18834_v63 }
 0xe76   : > { %v5795_v47 = vrot.slane %v5779_v8, %v18834_v63  ;;  %v5092_v62 = vrot.slane %v23153_v0, %v18784_v6  ;;  %v5096_v40 = vrot.slane %v23153_v0, %v18787_v56  ;;  %v5802_v15 = vrot.slane %v5780_v39, %v18834_v63 }
 0xe77   : > { %v5100_v13 = vrot.slane %v23153_v0, %v18792_v31  ;;  %v5104_v22 = vrot.slane %v23153_v0, %v18795_v41  ;;  %v5108_v11 = vrot.slane %v23153_v0, %v18798_v2  ;;  %v5809_v42 = vrot.slane %v5781_v21, %v18834_v63 }
 0xe78   : > { %v5112_v36 = vrot.slane %v23153_v0, %v18801_v61  ;;  %v5116_v59 = vrot.slane %v23153_v0, %v18804_v33  ;;  %v5120_v44 = vrot.slane %v23153_v0, %v18807_v1  ;;  %v5622_v43 = vrot.slane %v5614_v34, %v18834_v63 }
 0xe79   : > { %v5629_v48 = vrot.slane %v5615_v32, %v18834_v63  ;;  %v5156_v53 = vrot.slane %v23154_v38, %v18784_v6  ;;  %v5160_v3 = vrot.slane %v23154_v38, %v18787_v56  ;;  %v5164_v21 = vrot.slane %v23154_v38, %v18792_v31 }
 0xe7a   : > { %v5168_v37 = vrot.slane %v23154_v38, %v18795_v41  ;;  %v5172_v25 = vrot.slane %v23154_v38, %v18798_v2  ;;  %v5176_v50 = vrot.slane %v23154_v38, %v18801_v61  ;;  %v20402_v58 = vcombine.low %v5690_v60, %v5697_v30 }
 0xe7b   : > { %v20404_v32 = vcombine.low %v5704_v27, %v5711_v49  ;;  %v20406_v29 = vcombine.low %v5788_v35, %v5795_v47  ;;  %v20408_v14 = vcombine.low %v5092_v62, %v5096_v40  ;;  %v20410_v5 = vcombine.low %v5802_v15, %v5809_v42 }
 0xe7c   : > { %v20412_v8 = vcombine.low %v5100_v13, %v5104_v22  ;;  %v20414_v39 = vcombine.low %v5108_v11, %v5112_v36  ;;  %v20416_v34 = vcombine.low %v5116_v59, %v5120_v44  ;;  %v5180_v0 = vrot.slane %v23154_v38, %v18804_v33  ;;  %v23159_v59 = vld [vmem:[#allocation95_spill] sm:$0xff] }
 0xe7d   : > { %23155 = vst [vmem:[#allocation141_spill] sm:$0xff] %v20406_v29  ;;  %23156 = vst [vmem:[#allocation25_spill] sm:$0xff] %v20410_v5  ;;  %v5184_v60 = vrot.slane %v23154_v38, %v18807_v1  ;;  %v20422_v30 = vcombine.low %v5156_v53, %v5160_v3  ;;  %v20424_v27 = vcombine.low %v5524_v28, %v5531_v16 }
 0xe7e   : > { %v20426_v49 = vcombine.low %v5622_v43, %v5629_v48  ;;  %v20428_v35 = vcombine.low %v5164_v21, %v5168_v37  ;;  %v20430_v47 = vcombine.low %v5172_v25, %v5176_v50  ;;  %v5220_v44 = vrot.slane %v23159_v59, %v18784_v6  ;;  %v23161_v48 = vld [vmem:[#allocation96_spill] sm:$0xff] }
 0xe7f   : > { %23157 = vst [vmem:[#allocation142_spill] sm:$0xff] %v20424_v27  ;;  %v20448_v42 = vcombine.low %v5180_v0, %v5184_v60  ;;  %v5224_v43 = vrot.slane %v23159_v59, %v18787_v56  ;;  %v5228_v53 = vrot.slane %v23159_v59, %v18792_v31  ;;  %v5232_v3 = vrot.slane %v23159_v59, %v18795_v41  ;;  %v23160_v0 = vld [vmem:[#allocation97_spill] sm:$0xff] }
 0xe80   : > { %23158 = vst [vmem:[#allocation20_spill] sm:$0xff] %v20426_v49  ;;  %v5236_v21 = vrot.slane %v23159_v59, %v18798_v2  ;;  %v5240_v37 = vrot.slane %v23159_v59, %v18801_v61  ;;  %v5244_v25 = vrot.slane %v23159_v59, %v18804_v33  ;;  %v5248_v50 = vrot.slane %v23159_v59, %v18807_v1 }
 0xe81   : > { %v5284_v60 = vrot.slane %v23160_v0, %v18784_v6  ;;  %v5288_v15 = vrot.slane %v23160_v0, %v18787_v56  ;;  %v5292_v28 = vrot.slane %v23160_v0, %v18792_v31  ;;  %v5296_v62 = vrot.slane %v23160_v0, %v18795_v41 }
 0xe82   : > { %v5300_v40 = vrot.slane %v23160_v0, %v18798_v2  ;;  %v5304_v38 = vrot.slane %v23160_v0, %v18801_v61  ;;  %v5308_v59 = vrot.slane %v23160_v0, %v18804_v33  ;;  %v5312_v36 = vrot.slane %v23160_v0, %v18807_v1 }
 0xe83   : > { %v5252_v22 = vrot.slane %v23161_v48, %v18784_v6  ;;  %v5256_v11 = vrot.slane %v23161_v48, %v18787_v56  ;;  %v5260_v13 = vrot.slane %v23161_v48, %v18792_v31  ;;  %v5264_v16 = vrot.slane %v23161_v48, %v18795_v41 }
 0xe84   : > { %v5268_v46 = vrot.slane %v23161_v48, %v18798_v2  ;;  %v5272_v26 = vrot.slane %v23161_v48, %v18801_v61  ;;  %v5276_v0 = vrot.slane %v23161_v48, %v18804_v33  ;;  %v5280_v19 = vrot.slane %v23161_v48, %v18807_v1 }
 0xe85   : > { %v6072_v18 = vcombine.low %v5220_v44, %v5224_v43  ;;  %v6073_v17 = vcombine.low %v5228_v53, %v5232_v3  ;;  %v6074_v55 = vcombine.low %v5236_v21, %v5240_v37  ;;  %v6075_v52 = vcombine.low %v5244_v25, %v5248_v50 }
 0xe86   : > { %v6170_v57 = vcombine.low %v5284_v60, %v5288_v15  ;;  %v6171_v51 = vcombine.low %v5292_v28, %v5296_v62  ;;  %v6172_v20 = vcombine.low %v5300_v40, %v5304_v38  ;;  %v6173_v48 = vcombine.low %v5308_v59, %v5312_v36 }
 0xe87   : > { %v6121_v23 = vcombine.low %v5252_v22, %v5256_v11  ;;  %v6122_v7 = vcombine.low %v5260_v13, %v5264_v16  ;;  %v6123_v10 = vcombine.low %v5268_v46, %v5272_v26  ;;  %v6124_v54 = vcombine.low %v5276_v0, %v5280_v19 }
 0xe88   : > { %v5332_v49 = vrot.slane %v23162_v24, %v18798_v2  ;;  %v5336_v27 = vrot.slane %v23162_v24, %v18801_v61  ;;  %v6219_v29 = vcombine.low %v5316_v45, %v5320_v12  ;;  %v6220_v5 = vcombine.low %v5324_v9, %v5328_v4 }
 0xe89   : > { %v6005_v44 = vrot.slane %v20448_v42, %v18834_v63  ;;  %v6082_v15 = vrot.slane %v6072_v18, %v18834_v63  ;;  %v6089_v62 = vrot.slane %v6073_v17, %v18834_v63  ;;  %v6096_v40 = vrot.slane %v6074_v55, %v18834_v63 }
 0xe8a   : > { %v6103_v46 = vrot.slane %v6075_v52, %v18834_v63  ;;  %v6180_v26 = vrot.slane %v6170_v57, %v18834_v63  ;;  %v6187_v19 = vrot.slane %v6171_v51, %v18834_v63  ;;  %v6194_v13 = vrot.slane %v6172_v20, %v18834_v63  ;;  %v23163_v51 = vld [vmem:[#allocation120_spill] sm:$0xff] }
 0xe8b   : > { %v6201_v12 = vrot.slane %v6173_v48, %v18834_v63  ;;  %v6131_v24 = vrot.slane %v6121_v23, %v18834_v63  ;;  %v6138_v4 = vrot.slane %v6122_v7, %v18834_v63  ;;  %v6145_v18 = vrot.slane %v6123_v10, %v18834_v63 }
 0xe8c   : > { %v6152_v17 = vrot.slane %v6124_v54, %v18834_v63  ;;  %v6221_v55 = vcombine.low %v5332_v49, %v5336_v27  ;;  %v6228_v52 = vrot.slane %v6219_v29, %v18834_v63  ;;  %v6235_v57 = vrot.slane %v6220_v5, %v18834_v63 }
 0xe8d   : > { %v7690_v9 = vrot.slane %v23163_v51, %v18784_v6  ;;  %v7694_v45 = vrot.slane %v23163_v51, %v18787_v56  ;;  %v7698_v23 = vrot.slane %v23163_v51, %v18792_v31  ;;  %v7702_v10 = vrot.slane %v23163_v51, %v18795_v41 }
 0xe8e   : > { %v7706_v54 = vrot.slane %v23163_v51, %v18798_v2  ;;  %v7710_v20 = vrot.slane %v23163_v51, %v18801_v61  ;;  %v7714_v29 = vrot.slane %v23163_v51, %v18804_v33  ;;  %v7718_v5 = vrot.slane %v23163_v51, %v18807_v1 }
 0xe8f   : > { %v23164_v49 = vrot.slane %v20412_v8, %v18834_v63  ;;  %v23165_v28 = vrot.slane %v20408_v14, %v18834_v63  ;;  %v23166_v22 = vrot.slane %v20416_v34, %v18834_v63  ;;  %v23167_v11 = vrot.slane %v20414_v39, %v18834_v63 }
 0xe90   : > { %v23168_v36 = vrot.slane %v20428_v35, %v18834_v63  ;;  %v23169_v43 = vrot.slane %v20422_v30, %v18834_v63  ;;  %v23170_v8 = vrot.slane %v20430_v47, %v18834_v63  ;;  %v6104_v53 = vcombine.low %v6082_v15, %v6089_v62 }
 0xe91   : > { %v5908_v16 = vcombine.low %v23165_v28, %v23164_v49  ;;  %v5909_v42 = vcombine.low %v23167_v11, %v23166_v22  ;;  %v6105_v34 = vcombine.low %v6096_v40, %v6103_v46  ;;  %v6202_v3 = vcombine.low %v6180_v26, %v6187_v19  ;;  %v23176_v11 = vld [vmem:[#allocation141_spill] sm:$0xff] }
 0xe92   : > { %v6006_v38 = vcombine.low %v23169_v43, %v23168_v36  ;;  %v6007_v14 = vcombine.low %v23170_v8, %v6005_v44  ;;  %v6203_v21 = vcombine.low %v6194_v13, %v6201_v12  ;;  %v6153_v39 = vcombine.low %v6131_v24, %v6138_v4 }
 0xe93   : > { %v6154_v37 = vcombine.low %v6145_v18, %v6152_v17  ;;  %v6242_v35 = vrot.slane %v6221_v55, %v18834_v63  ;;  %v6243_v25 = vcombine.low %v6228_v52, %v6235_v57  ;;  %v8287_v30 = vcombine.low %v7690_v9, %v7694_v45  ;;  %v23171_v9 = vld [vmem:[#allocation122_spill] sm:$0xff] }
 0xe94   : > { %v8288_v60 = vcombine.low %v7698_v23, %v7702_v10  ;;  %v8289_v59 = vcombine.low %v7706_v54, %v7710_v20  ;;  %v8290_v0 = vcombine.low %v7714_v29, %v7718_v5  ;;  %v5916_v48 = vrot.slane %v5908_v16, %v18834_v63  ;;  %v23174_v16 = vld [vmem:[#allocation25_spill] sm:$0xff] }
 0xe95   : > { %v5923_v44 = vrot.slane %v5909_v42, %v18834_v63  ;;  %v6014_v15 = vrot.slane %v6006_v38, %v18834_v63  ;;  %v6021_v62 = vrot.slane %v6007_v14, %v18834_v63  ;;  %v6112_v40 = vrot.slane %v6104_v53, %v18834_v63 }
 0xe96   : > { %v6119_v46 = vrot.slane %v6105_v34, %v18834_v63  ;;  %v6210_v26 = vrot.slane %v6202_v3, %v18834_v63  ;;  %v6217_v19 = vrot.slane %v6203_v21, %v18834_v63  ;;  %v6161_v13 = vrot.slane %v6153_v39, %v18834_v63  ;;  %v23180_v39 = vld [vmem:[#allocation121_spill] sm:$0xff] }
 0xe97   : > { %v6168_v12 = vrot.slane %v6154_v37, %v18834_v63  ;;  %v6250_v24 = vrot.slane %v6243_v25, %v18834_v63  ;;  %v6257_v4 = vrot.slane %v6242_v35, %v18834_v63  ;;  %v8297_v17 = vrot.slane %v8287_v30, %v18834_v63 }
 0xe98   : > { %v8304_v55 = vrot.slane %v8288_v60, %v18834_v63  ;;  %v8311_v52 = vrot.slane %v8289_v59, %v18834_v63  ;;  %v8318_v57 = vrot.slane %v8290_v0, %v18834_v63  ;;  %v7754_v45 = vrot.slane %v23171_v9, %v18784_v6  ;;  %v23181_v59 = vld [vmem:[#allocation124_spill] sm:$0xff] }
 0xe99   : > { %v7758_v23 = vrot.slane %v23171_v9, %v18787_v56  ;;  %v7762_v10 = vrot.slane %v23171_v9, %v18792_v31  ;;  %v7770_v54 = vrot.slane %v23171_v9, %v18798_v2  ;;  %v7774_v20 = vrot.slane %v23171_v9, %v18801_v61 }
 0xe9a   : > { %v7778_v29 = vrot.slane %v23171_v9, %v18804_v33  ;;  %v7782_v5 = vrot.slane %v23171_v9, %v18807_v1  ;;  %v23173_v49 = vrot.slane %v20402_v58, %v18834_v63  ;;  %v23175_v22 = vrot.slane %v23174_v16, %v18834_v63  ;;  %v23186_v16 = vld [vmem:[#allocation146_spill] sm:$0xff] }
 0xe9b   : > { %v23177_v42 = vrot.slane %v23176_v11, %v18834_v63  ;;  %v20627_v43 = vcombine.low %v5916_v48, %v5923_v44  ;;  %v20629_v38 = vcombine.low %v6014_v15, %v6021_v62  ;;  %v20633_v14 = vcombine.low %v6210_v26, %v6217_v19  ;;  %v23183_v19 = vld [vmem:[#allocation143_spill] sm:$0xff] }
 0xe9c   : > { %v20635_v58 = vcombine.low %v6161_v13, %v6168_v12  ;;  %v20637_v53 = vcombine.low %v6250_v24, %v6257_v4  ;;  %v20640_v3 = vcombine.low %v8297_v17, %v8304_v55  ;;  %v20642_v21 = vcombine.low %v8311_v52, %v8318_v57  ;;  %v23184_v12 = vld [vmem:[#allocation144_spill] sm:$0xff] }
 0xe9d   : > { %v20625_v36 = vcombine.low %v23177_v42, %v23175_v22  ;;  %v7722_v37 = vrot.slane %v23180_v39, %v18784_v6  ;;  %v7726_v35 = vrot.slane %v23180_v39, %v18787_v56  ;;  %v20650_v25 = vcombine.low %v7754_v45, %v7758_v23 }
 0xe9e   : > { %v7531_v7 = vpop.f32.mrb[122].mxu1  ;;  %23178 = vst [vmem:[#allocation80_spill] sm:$0xff] %v20635_v58  ;;  %23179 = vst [vmem:[#allocation24_spill] sm:$0xff] %v20637_v53  ;;  %v20654_v30 = vcombine.low %v7770_v54, %v7774_v20  ;;  %v20656_v60 = vcombine.low %v7778_v29, %v7782_v5  ;;  %v7818_v0 = vrot.slane %v23181_v59, %v18784_v6 }
 0xe9f   : > { %13419 = vst [vmem:[%s17010_s30 + $0x80] sm:$0xff] %v7531_v7  ;;  %v7533_v27 = vpop.f32.mrb[123].mxu1  ;;  %v7766_v7 = vrot.slane %v23171_v9, %v18795_v41  ;;  %v7826_v48 = vrot.slane %v23181_v59, %v18792_v31  ;;  %v7830_v44 = vrot.slane %v23181_v59, %v18795_v41  ;;  %v7834_v62 = vrot.slane %v23181_v59, %v18798_v2 }
 0xea0   : > { %13420 = vst.msk [vmem:[%s17010_s30 + $0x88] sm:$0xff] %vm3478_vm9, %v7533_v27  ;;  %v23172_v27 = vrot.slane %v20404_v32, %v18834_v63  ;;  %v20631_v32 = vcombine.low %v6112_v40, %v6119_v46  ;;  %v7838_v40 = vrot.slane %v23181_v59, %v18801_v61  ;;  %v7842_v46 = vrot.slane %v23181_v59, %v18804_v33 }
 0xea1   : > { %v7846_v26 = vrot.slane %v23181_v59, %v18807_v1  ;;  %v7734_v17 = vrot.slane %v23180_v39, %v18795_v41  ;;  %v8327_v55 = vrot.slane %v20640_v3, %v18834_v63  ;;  %v8334_v52 = vrot.slane %v20642_v21, %v18834_v63 }
 0xea2   : > { %v7537_v50 = vpop.f32.mrb[124].mxu1  ;;  %v20617_v28 = vcombine.low %v23173_v49, %v23172_v27  ;;  %v8395_v57 = vrot.slane %v20650_v25, %v18834_v63  ;;  %v8409_v45 = vrot.slane %v20654_v30, %v18834_v63  ;;  %v8416_v23 = vrot.slane %v20656_v60, %v18834_v63  ;;  %v23185_v27 = vld [vmem:[#allocation145_spill] sm:$0xff] }
 0xea3   : > { %13421 = vst [vmem:[%s17010_s30 + $0x90] sm:$0xff] %v7537_v50  ;;  %v7539_v47 = vpop.f32.mrb[125].mxu1  ;;  %v20652_v50 = vcombine.low %v7762_v10, %v7766_v7  ;;  %v7738_v10 = vrot.slane %v23180_v39, %v18798_v2  ;;  %v8484_v20 = vcombine.low %v7826_v48, %v7830_v44  ;;  %v8485_v29 = vcombine.low %v7834_v62, %v7838_v40 }
 0xea4   : > { %13422 = vst.msk [vmem:[%s17010_s30 + $0x98] sm:$0xff] %vm3478_vm9, %v7539_v47  ;;  %v7822_v47 = vrot.slane %v23181_v59, %v18787_v56  ;;  %v8486_v5 = vcombine.low %v7842_v46, %v7846_v26  ;;  %v7742_v62 = vrot.slane %v23180_v39, %v18801_v61  ;;  %v7746_v40 = vrot.slane %v23180_v39, %v18804_v33  ;;  %v23188_v26 = vld [vmem:[#allocation147_spill] sm:$0xff] }
 0xea5   : > { %v7750_v46 = vrot.slane %v23180_v39, %v18807_v1 }
 0xea6   : > { %v7543_v18 = vpop.f32.mrb[126].mxu1  ;;  %v8483_v54 = vcombine.low %v7818_v0, %v7822_v47 }
 0xea7   : > { %13423 = vst [vmem:[%s17010_s30 + $0xa0] sm:$0xff] %v7543_v18  ;;  %v7545_v51 = vpop.f32.mrb[127].mxu1  ;;  %v7730_v18 = vrot.slane %v23180_v39, %v18792_v31 }
 0xea8   : > { %13424 = vst.msk [vmem:[%s17010_s30 + $0xa8] sm:$0xff] %vm3478_vm9, %v7545_v51  ;;  %v8402_v51 = vrot.slane %v20652_v50, %v18834_v63 }
 0xeaa   : > { %v7549_v8 = vpop.f32.mrb[128].mxu1 }
 0xeab   : > { %13425 = vst [vmem:[%s17010_s30 + $0xb0] sm:$0xff] %v7549_v8  ;;  %v7551_v34 = vpop.f32.mrb[129].mxu1  ;;  %v23187_v8 = vld [vmem:[#allocation126_spill] sm:$0xff] }
 0xeac   : > { %13426 = vst.msk [vmem:[%s17010_s30 + $0xb8] sm:$0xff] %vm3478_vm9, %v7551_v34  ;;  %v7882_v34 = vrot.slane %v23187_v8, %v18784_v6  ;;  %v7886_v25 = vrot.slane %v23187_v8, %v18787_v56  ;;  %v7890_v50 = vrot.slane %v23187_v8, %v18792_v31  ;;  %v7894_v30 = vrot.slane %v23187_v8, %v18795_v41 }
 0xead   : > { %v7898_v60 = vrot.slane %v23187_v8, %v18798_v2  ;;  %v7902_v0 = vrot.slane %v23187_v8, %v18801_v61  ;;  %v7906_v47 = vrot.slane %v23187_v8, %v18804_v33  ;;  %v7910_v48 = vrot.slane %v23187_v8, %v18807_v1 }
 0xeae   : > { %v10277_v15 = vpop.f32.mrb[130].mxu1  ;;  %v20745_v8 = vcombine.low %v8395_v57, %v8402_v51 }
 0xeaf   : > { %v10504_v13 = vsub.f32 %v23183_v19, %v10277_v15  ;;  %v10618_v24 = vadd.f32 %v10277_v15, %v23184_v12  ;;  %v14329_v4 = vpop.f32.mrb[131].mxu1  ;;  %v8493_v15 = vrot.slane %v8483_v54, %v18834_v63  ;;  %v8514_v54 = vrot.slane %v8486_v5, %v18834_v63 }
 0xeb0   : > { %v8338_v5 = vcombine.low %v7738_v10, %v7742_v62 }
 0xeb1   : > { %v10523_v9 = vmul.f32 %v10504_v13, %v10504_v13  ;;  %12355 = vst.msk [vmem:[%s20671_s19] sm:$0xff] %vm463_vm0, %v10618_v24  ;;  %v23189_v13 = vld [vmem:[#allocation148_spill] sm:$0xff] }
 0xeb2   : > { %v10282_v7 = vpop.f32.mrb[132].mxu1  ;;  %v8360_v10 = vrot.slane %v8338_v5, %v18834_v63 }
 0xeb3   : > { %v10505_v49 = vsub.f32 %v23185_v27, %v10282_v7  ;;  %v10619_v22 = vadd.f32 %v10282_v7, %v23186_v16  ;;  %v14332_v11 = vpop.f32.mrb[133].mxu1  ;;  %v10542_v42 = vsel %vm463_vm0, %v10523_v9, 0.0  ;;  %v8500_v9 = vrot.slane %v8484_v20, %v18834_v63 }
 0xeb4   : > { %10543 = vadd.xlane.f32.xlu1 %v10542_v42  ;;  %v8507_v7 = vrot.slane %v8485_v29, %v18834_v63  ;;  %v8581_v27 = vcombine.low %v7882_v34, %v7886_v25  ;;  %v8584_v11 = vcombine.low %v7906_v47, %v7910_v48  ;;  %v8336_v42 = vcombine.low %v7722_v37, %v7726_v35  ;;  %v23190_v25 = vld [vmem:[#allocation149_spill] sm:$0xff] }
 0xeb5   : > { %v10524_v59 = vmul.f32 %v10505_v49, %v10505_v49  ;;  %12356 = vst.msk [vmem:[%s20671_s19 + $0x8] sm:$0xff] %vm463_vm0, %v10619_v22  ;;  %v8582_v49 = vcombine.low %v7890_v50, %v7894_v30  ;;  %v8583_v22 = vcombine.low %v7898_v60, %v7902_v0  ;;  %v8337_v29 = vcombine.low %v7730_v18, %v7734_v17  ;;  %v23191_v30 = vld [vmem:[#allocation150_spill] sm:$0xff] }
 0xeb6   : > { %v10287_v44 = vpop.f32.mrb[134].mxu1  ;;  %v8339_v34 = vcombine.low %v7746_v40, %v7750_v46  ;;  %v20750_v47 = vcombine.low %v8409_v45, %v8416_v23  ;;  %v20752_v48 = vcombine.low %v8493_v15, %v8500_v9  ;;  %v20754_v39 = vcombine.low %v8507_v7, %v8514_v54  ;;  %v23192_v15 = vld [vmem:[#allocation128_spill] sm:$0xff]  ;;  %v23193_v40 = vld [vmem:[#allocation99_spill] sm:$0xff] }
 0xeb7   : > { %v10506_v19 = vsub.f32 %v23188_v26, %v10287_v44  ;;  %v10620_v12 = vadd.f32 %v10287_v44, %v23189_v13  ;;  %v14335_v24 = vpop.f32.mrb[135].mxu1  ;;  %v10545_v4 = vsel %vm463_vm0, %v10524_v59, 0.0  ;;  %v8591_v37 = vrot.slane %v8581_v27, %v18834_v63  ;;  %v23194_v26 = vld [vmem:[#allocation100_spill] sm:$0xff] }
 0xeb8   : > { %10546 = vadd.xlane.f32.xlu1 %v10545_v4  ;;  %v8598_v35 = vrot.slane %v8582_v49, %v18834_v63  ;;  %v8605_v17 = vrot.slane %v8583_v22, %v18834_v63  ;;  %v8612_v57 = vrot.slane %v8584_v11, %v18834_v63  ;;  %v8346_v51 = vrot.slane %v8336_v42, %v18834_v63 }
 0xeb9   : > { %v10525_v16 = vmul.f32 %v10506_v19, %v10506_v19  ;;  %12357 = vst.msk [vmem:[%s20671_s19 + $0x10] sm:$0xff] %vm463_vm0, %v10620_v12  ;;  %v8353_v23 = vrot.slane %v8337_v29, %v18834_v63  ;;  %v8367_v44 = vrot.slane %v8339_v34, %v18834_v63  ;;  %v7946_v62 = vrot.slane %v23192_v15, %v18784_v6  ;;  %v23195_v34 = vld [vmem:[#allocation34_spill] sm:$0xff] }
 0xeba   : > { %v10292_v20 = vpop.f32.mrb[136].mxu1  ;;  %v7950_v24 = vrot.slane %v23192_v15, %v18787_v56  ;;  %v7954_v4 = vrot.slane %v23192_v15, %v18792_v31  ;;  %v7958_v9 = vrot.slane %v23192_v15, %v18795_v41  ;;  %v7962_v7 = vrot.slane %v23192_v15, %v18798_v2 }
 0xebb   : > { %v10507_v50 = vsub.f32 %v23190_v25, %v10292_v20  ;;  %v10621_v59 = vadd.f32 %v10292_v20, %v23191_v30  ;;  %v14338_v60 = vpop.f32.mrb[137].mxu1  ;;  %v10548_v0 = vsel %vm463_vm0, %v10525_v16, 0.0  ;;  %v7966_v54 = vrot.slane %v23192_v15, %v18801_v61 }
 0xebc   : > { %10549 = vadd.xlane.f32.xlu1 %v10548_v0  ;;  %v8613_v49 = vcombine.low %v8591_v37, %v8598_v35  ;;  %v7970_v16 = vrot.slane %v23192_v15, %v18804_v33  ;;  %v7974_v22 = vrot.slane %v23192_v15, %v18807_v1  ;;  %v8425_v42 = vrot.slane %v20745_v8, %v18834_v63 }
 0xebd   : > { %v10526_v18 = vmul.f32 %v10507_v50, %v10507_v50  ;;  %12358 = vst.msk [vmem:[%s20671_s19 + $0x18] sm:$0xff] %vm463_vm0, %v10621_v59  ;;  %v8432_v20 = vrot.slane %v20750_v47, %v18834_v63  ;;  %v8614_v29 = vcombine.low %v8605_v17, %v8612_v57  ;;  %v8368_v5 = vcombine.low %v8346_v51, %v8353_v23  ;;  %v23196_v50 = vld [vmem:[#allocation33_spill] sm:$0xff] }
 0xebe   : > { %v10297_v45 = vpop.f32.mrb[138].mxu1  ;;  %v8369_v0 = vcombine.low %v8360_v10, %v8367_v44  ;;  %v8523_v37 = vrot.slane %v20752_v48, %v18834_v63  ;;  %v8679_v35 = vcombine.low %v7946_v62, %v7950_v24  ;;  %v8681_v8 = vcombine.low %v7962_v7, %v7966_v54  ;;  %v23197_v48 = vld [vmem:[#allocation123_spill] sm:$0xff]  ;;  %v23198_v62 = vld [vmem:[#allocation36_spill] sm:$0xff] }
 0xebf   : > { %v10508_v46 = vsub.f32 %v23193_v40, %v10297_v45  ;;  %v10622_v19 = vadd.f32 %v10297_v45, %v23194_v26  ;;  %v14341_v13 = vpop.f32.mrb[139].mxu1  ;;  %v10551_v12 = vsel %vm463_vm0, %v10526_v18, 0.0  ;;  %v8680_v18 = vcombine.low %v7954_v4, %v7958_v9 }
 0xec0   : > { %10552 = vadd.xlane.f32.xlu1 %v10551_v12  ;;  %v8530_v47 = vrot.slane %v20754_v39, %v18834_v63  ;;  %v8621_v17 = vrot.slane %v8613_v49, %v18834_v63  ;;  %v8682_v57 = vcombine.low %v7970_v16, %v7974_v22  ;;  %v8628_v23 = vrot.slane %v8614_v29, %v18834_v63 }
 0xec1   : > { %v10527_v27 = vmul.f32 %v10508_v46, %v10508_v46  ;;  %12359 = vst.msk [vmem:[%s20671_s19 + $0x20] sm:$0xff] %vm463_vm0, %v10622_v19  ;;  %v8376_v10 = vrot.slane %v8368_v5, %v18834_v63  ;;  %v7786_v44 = vrot.slane %v23197_v48, %v18784_v6  ;;  %v7790_v15 = vrot.slane %v23197_v48, %v18787_v56  ;;  %v23199_v46 = vld [vmem:[#allocation35_spill] sm:$0xff] }
 0xec2   : > { %v10302_v11 = vpop.f32.mrb[140].mxu1  ;;  %v8383_v13 = vrot.slane %v8369_v0, %v18834_v63  ;;  %v8689_v12 = vrot.slane %v8679_v35, %v18834_v63  ;;  %v8696_v24 = vrot.slane %v8680_v18, %v18834_v63  ;;  %v8703_v4 = vrot.slane %v8681_v8, %v18834_v63 }
 0xec3   : > { %v10509_v25 = vsub.f32 %v23195_v34, %v10302_v11  ;;  %v10623_v30 = vadd.f32 %v10302_v11, %v23196_v50  ;;  %v14344_v59 = vpop.f32.mrb[141].mxu1  ;;  %v10554_v60 = vsel %vm463_vm0, %v10527_v27, 0.0  ;;  %v7794_v9 = vrot.slane %v23197_v48, %v18792_v31  ;;  %v23200_v34 = vld [vmem:[#allocation38_spill] sm:$0xff]  ;;  %v23201_v50 = vld [vmem:[#allocation37_spill] sm:$0xff] }
 0xec4   : > { %10555 = vadd.xlane.f32.xlu1 %v10554_v60  ;;  %v8710_v54 = vrot.slane %v8682_v57, %v18834_v63  ;;  %v7798_v27 = vrot.slane %v23197_v48, %v18795_v41  ;;  %v7802_v49 = vrot.slane %v23197_v48, %v18798_v2  ;;  %v7806_v22 = vrot.slane %v23197_v48, %v18801_v61 }
 0xec5   : > { %v10528_v45 = vmul.f32 %v10509_v25, %v10509_v25  ;;  %12360 = vst.msk [vmem:[%s20671_s19 + $0x28] sm:$0xff] %vm463_vm0, %v10623_v30  ;;  %v7810_v11 = vrot.slane %v23197_v48, %v18804_v33  ;;  %v7814_v29 = vrot.slane %v23197_v48, %v18807_v1  ;;  %v20829_v5 = vcombine.low %v7786_v44, %v7790_v15 }
 0xec6   : > { %v10307_v51 = vpop.f32.mrb[142].mxu1  ;;  %v20840_v0 = vcombine.low %v8327_v55, %v8334_v52  ;;  %v20842_v35 = vcombine.low %v8425_v42, %v8432_v20  ;;  %v20844_v18 = vcombine.low %v8523_v37, %v8530_v47  ;;  %v20846_v8 = vcombine.low %v8621_v17, %v8628_v23  ;;  %v23206_v20 = vld [vmem:[#allocation130_spill] sm:$0xff]  ;;  %v23207_v47 = vld [vmem:[#allocation40_spill] sm:$0xff]  ;;  %v23208_v23 = vld [vmem:[#allocation39_spill] sm:$0xff] }
 0xec7   : > { %v10510_v40 = vsub.f32 %v23198_v62, %v10307_v51  ;;  %v10624_v26 = vadd.f32 %v10307_v51, %v23199_v46  ;;  %v14347_v39 = vpop.f32.mrb[143].mxu1  ;;  %v10557_v19 = vsel %vm463_vm0, %v10528_v45, 0.0  ;;  %v20848_v45 = vcombine.low %v8376_v10, %v8383_v13 }
 0xec8   : > { %10558 = vadd.xlane.f32.xlu1 %v10557_v19  ;;  %23202 = vst [vmem:[#allocation26_spill] sm:$0xff] %v20842_v35  ;;  %23203 = vst [vmem:[#allocation83_spill] sm:$0xff] %v20844_v18  ;;  %v20852_v51 = vcombine.low %v8689_v12, %v8696_v24  ;;  %v20854_v21 = vcombine.low %v8703_v4, %v8710_v54  ;;  %v8435_v48 = vcombine.low %v7794_v9, %v7798_v27  ;;  %v23209_v24 = vld [vmem:[#allocation125_spill] sm:$0xff] }
 0xec9   : > { %v10529_v7 = vmul.f32 %v10510_v40, %v10510_v40  ;;  %12361 = vst.msk [vmem:[%s20671_s19 + $0x30] sm:$0xff] %vm463_vm0, %v10624_v26  ;;  %23204 = vst [vmem:[#allocation85_spill] sm:$0xff] %v20846_v8  ;;  %v8436_v55 = vcombine.low %v7802_v49, %v7806_v22  ;;  %v8437_v52 = vcombine.low %v7810_v11, %v7814_v29  ;;  %v23211_v11 = vld [vmem:[#allocation41_spill] sm:$0xff] }
 0xeca   : > { %v10312_v16 = vpop.f32.mrb[144].mxu1  ;;  %23205 = vst [vmem:[#allocation87_spill] sm:$0xff] %v20848_v45  ;;  %v8444_v42 = vrot.slane %v20829_v5, %v18834_v63  ;;  %v8010_v37 = vrot.slane %v23206_v20, %v18784_v6  ;;  %v8014_v62 = vrot.slane %v23206_v20, %v18787_v56  ;;  %v8018_v40 = vrot.slane %v23206_v20, %v18792_v31 }
 0xecb   : > { %v10511_v25 = vsub.f32 %v23200_v34, %v10312_v16  ;;  %v10625_v30 = vadd.f32 %v10312_v16, %v23201_v50  ;;  %v14350_v59 = vpop.f32.mrb[145].mxu1  ;;  %v10560_v60 = vsel %vm463_vm0, %v10529_v7, 0.0  ;;  %v8022_v46 = vrot.slane %v23206_v20, %v18795_v41  ;;  %v23210_v16 = vld [vmem:[#allocation42_spill] sm:$0xff] }
 0xecc   : > { %10561 = vadd.xlane.f32.xlu1 %v10560_v60  ;;  %v8026_v26 = vrot.slane %v23206_v20, %v18798_v2  ;;  %v8030_v39 = vrot.slane %v23206_v20, %v18801_v61  ;;  %v8034_v13 = vrot.slane %v23206_v20, %v18804_v33  ;;  %v8038_v12 = vrot.slane %v23206_v20, %v18807_v1 }
 0xecd   : > { %v10530_v57 = vmul.f32 %v10511_v25, %v10511_v25  ;;  %12362 = vst.msk [vmem:[%s20671_s19 + $0x38] sm:$0xff] %vm463_vm0, %v10625_v30  ;;  %v7850_v4 = vrot.slane %v23209_v24, %v18784_v6  ;;  %v7854_v7 = vrot.slane %v23209_v24, %v18787_v56  ;;  %v7858_v54 = vrot.slane %v23209_v24, %v18792_v31 }
 0xece   : > { %v10317_v3 = vpop.f32.mrb[146].mxu1  ;;  %v7862_v27 = vrot.slane %v23209_v24, %v18795_v41  ;;  %v7866_v49 = vrot.slane %v23209_v24, %v18798_v2  ;;  %v7870_v25 = vrot.slane %v23209_v24, %v18801_v61  ;;  %v8451_v50 = vrot.slane %v8435_v48, %v18834_v63 }
 0xecf   : > { %v10512_v17 = vsub.f32 %v23207_v47, %v10317_v3  ;;  %v10626_v10 = vadd.f32 %v10317_v3, %v23208_v23  ;;  %v14353_v44 = vpop.f32.mrb[147].mxu1  ;;  %v10563_v15 = vsel %vm463_vm0, %v10530_v57, 0.0  ;;  %v8458_v30 = vrot.slane %v8436_v55, %v18834_v63  ;;  %v23212_v55 = vld [vmem:[#allocation44_spill] sm:$0xff] }
 0xed0   : > { %10564 = vadd.xlane.f32.xlu0 %v10563_v15  ;;  %v7874_v59 = vrot.slane %v23209_v24, %v18804_v33  ;;  %v7878_v60 = vrot.slane %v23209_v24, %v18807_v1  ;;  %v8465_v3 = vrot.slane %v8437_v52, %v18834_v63  ;;  %v8777_v20 = vcombine.low %v8010_v37, %v8014_v62 }
 0xed1   : > { %v10531_v19 = vmul.f32 %v10512_v17, %v10512_v17  ;;  %12363 = vst.msk [vmem:[%s20671_s19 + $0x40] sm:$0xff] %vm463_vm0, %v10626_v10  ;;  %v8778_v47 = vcombine.low %v8018_v40, %v8022_v46  ;;  %v8779_v23 = vcombine.low %v8026_v26, %v8030_v39  ;;  %v8780_v10 = vcombine.low %v8034_v13, %v8038_v12 }
 0xed2   : > { %v10322_v9 = vpop.f32.mrb[148].mxu1  ;;  %v8532_v48 = vcombine.low %v7850_v4, %v7854_v7  ;;  %v8533_v44 = vcombine.low %v7858_v54, %v7862_v27  ;;  %v8719_v52 = vrot.slane %v20852_v51, %v18834_v63  ;;  %v8726_v37 = vrot.slane %v20854_v21, %v18834_v63  ;;  %v23214_v7 = vld [vmem:[#allocation46_spill] sm:$0xff]  ;;  %v23215_v27 = vld [vmem:[#allocation45_spill] sm:$0xff] }
 0xed3   : > { %v10513_v22 = vsub.f32 %v23210_v16, %v10322_v9  ;;  %v10627_v29 = vadd.f32 %v10322_v9, %v23211_v11  ;;  %v14356_v5 = vpop.f32.mrb[149].mxu1  ;;  %v10566_v34 = vsel %vm463_vm0, %v10531_v19, 0.0  ;;  %v23213_v19 = vld [vmem:[#allocation43_spill] sm:$0xff]  ;;  %v20910_v62 = vcombine.low %v8444_v42, %v8451_v50 }
 0xed4   : > { %10567 = vadd.xlane.f32.xlu1 %v10566_v34  ;;  %v8535_v40 = vcombine.low %v7874_v59, %v7878_v60  ;;  %v20914_v26 = vcombine.low %v8458_v30, %v8465_v3  ;;  %v8787_v39 = vrot.slane %v8777_v20, %v18834_v63  ;;  %v8794_v13 = vrot.slane %v8778_v47, %v18834_v63 }
 0xed5   : > { %v10532_v57 = vmul.f32 %v10513_v22, %v10513_v22  ;;  %12364 = vst.msk [vmem:[%s20671_s19 + $0x48] sm:$0xff] %vm463_vm0, %v10627_v29  ;;  %v8534_v22 = vcombine.low %v7866_v49, %v7870_v25  ;;  %v8801_v4 = vrot.slane %v8779_v23, %v18834_v63  ;;  %v8808_v51 = vrot.slane %v8780_v10, %v18834_v63  ;;  %v23216_v25 = vld [vmem:[#allocation133_spill] sm:$0xff]  ;;  %v23234_v23 = vld [vmem:[#allocation58_spill] sm:$0xff] }
 0xed6   : > { %v10327_v17 = vpop.f32.mrb[150].mxu1  ;;  %v8542_v21 = vrot.slane %v8532_v48, %v18834_v63  ;;  %v8549_v42 = vrot.slane %v8533_v44, %v18834_v63  ;;  %v8563_v34 = vrot.slane %v8535_v40, %v18834_v63  ;;  %v8106_v50 = vrot.slane %v23216_v25, %v18784_v6  ;;  %v23218_v44 = vld [vmem:[#allocation48_spill] sm:$0xff] }
 0xed7   : > { %v10514_v15 = vsub.f32 %v23212_v55, %v10327_v17  ;;  %v10628_v9 = vadd.f32 %v10327_v17, %v23213_v19  ;;  %v14359_v16 = vpop.f32.mrb[151].mxu1  ;;  %v10569_v24 = vsel %vm463_vm0, %v10532_v57, 0.0  ;;  %v8556_v5 = vrot.slane %v8534_v22, %v18834_v63 }
 0xed8   : > { %10570 = vadd.xlane.f32.xlu1 %v10569_v24  ;;  %v8110_v30 = vrot.slane %v23216_v25, %v18787_v56  ;;  %v8114_v59 = vrot.slane %v23216_v25, %v18792_v31  ;;  %v8118_v57 = vrot.slane %v23216_v25, %v18795_v41  ;;  %v8122_v3 = vrot.slane %v23216_v25, %v18798_v2 }
 0xed9   : > { %v10533_v46 = vmul.f32 %v10514_v15, %v10514_v15  ;;  %12365 = vst.msk [vmem:[%s20671_s19 + $0x50] sm:$0xff] %vm463_vm0, %v10628_v9  ;;  %v8126_v20 = vrot.slane %v23216_v25, %v18801_v61  ;;  %v20941_v17 = vcombine.low %v8719_v52, %v8726_v37  ;;  %v8130_v10 = vrot.slane %v23216_v25, %v18804_v33  ;;  %v23219_v15 = vld [vmem:[#allocation47_spill] sm:$0xff] }
 0xeda   : > { %v10332_v12 = vpop.f32.mrb[152].mxu1  ;;  %v8134_v48 = vrot.slane %v23216_v25, %v18807_v1  ;;  %v20954_v22 = vcombine.low %v8787_v39, %v8794_v13  ;;  %v20956_v52 = vcombine.low %v8801_v4, %v8808_v51  ;;  %v20958_v37 = vcombine.low %v8542_v21, %v8549_v42  ;;  %v23221_v4 = vld [vmem:[#allocation50_spill] sm:$0xff]  ;;  %v23222_v21 = vld [vmem:[#allocation49_spill] sm:$0xff] }
 0xedb   : > { %v10515_v54 = vsub.f32 %v23214_v7, %v10332_v12  ;;  %v10629_v49 = vadd.f32 %v10332_v12, %v23215_v27  ;;  %v14362_v11 = vpop.f32.mrb[153].mxu1  ;;  %v10572_v29 = vsel %vm463_vm0, %v10533_v46, 0.0  ;;  %23217 = vst [vmem:[#allocation89_spill] sm:$0xff] %v20941_v17  ;;  %v20960_v40 = vcombine.low %v8556_v5, %v8563_v34 }
 0xedc   : > { %10573 = vadd.xlane.f32.xlu1 %v10572_v29  ;;  %v8924_v12 = vcombine.low %v8106_v50, %v8110_v30  ;;  %v8925_v7 = vcombine.low %v8114_v59, %v8118_v57  ;;  %v23220_v11 = vld [vmem:[#allocation127_spill] sm:$0xff] }
 0xedd   : > { %v10534_v60 = vmul.f32 %v10515_v54, %v10515_v54  ;;  %12366 = vst.msk [vmem:[%s20671_s19 + $0x58] sm:$0xff] %vm463_vm0, %v10629_v49  ;;  %v8926_v54 = vcombine.low %v8122_v3, %v8126_v20  ;;  %v8927_v49 = vcombine.low %v8130_v10, %v8134_v48  ;;  %v7914_v29 = vrot.slane %v23220_v11, %v18784_v6  ;;  %v23223_v10 = vld [vmem:[#allocation142_spill] sm:$0xff] }
 0xede   : > { %v10337_v47 = vpop.f32.mrb[154].mxu1  ;;  %v7918_v39 = vrot.slane %v23220_v11, %v18787_v56  ;;  %v7922_v13 = vrot.slane %v23220_v11, %v18792_v31  ;;  %v7926_v25 = vrot.slane %v23220_v11, %v18795_v41  ;;  %v7930_v50 = vrot.slane %v23220_v11, %v18798_v2 }
 0xedf   : > { %v10516_v55 = vsub.f32 %v23218_v44, %v10337_v47  ;;  %v10630_v19 = vadd.f32 %v10337_v47, %v23219_v15  ;;  %v14365_v9 = vpop.f32.mrb[155].mxu1  ;;  %v10575_v16 = vsel %vm463_vm0, %v10534_v60, 0.0  ;;  %v7934_v30 = vrot.slane %v23220_v11, %v18801_v61 }
 0xee0   : > { %10576 = vadd.xlane.f32.xlu1 %v10575_v16  ;;  %v7938_v59 = vrot.slane %v23220_v11, %v18804_v33  ;;  %v7942_v60 = vrot.slane %v23220_v11, %v18807_v1  ;;  %v8934_v20 = vrot.slane %v8924_v12, %v18834_v63  ;;  %v8941_v47 = vrot.slane %v8925_v7, %v18834_v63  ;;  %v23224_v9 = vld [vmem:[#allocation52_spill] sm:$0xff] }
 0xee1   : > { %v10535_v46 = vmul.f32 %v10516_v55, %v10516_v55  ;;  %12367 = vst.msk [vmem:[%s20671_s19 + $0x60] sm:$0xff] %vm463_vm0, %v10630_v19  ;;  %v8948_v55 = vrot.slane %v8926_v54, %v18834_v63  ;;  %v8955_v15 = vrot.slane %v8927_v49, %v18834_v63  ;;  %v20994_v19 = vcombine.low %v7914_v29, %v7918_v39 }
 0xee2   : > { %v10342_v27 = vpop.f32.mrb[156].mxu1  ;;  %v20999_v11 = vcombine.low %v7922_v13, %v7926_v25  ;;  %v21007_v49 = vcombine.low %v7938_v59, %v7942_v60  ;;  %v21011_v39 = vcombine.low %v8934_v20, %v8941_v47  ;;  %v23228_v60 = vld [vmem:[#allocation54_spill] sm:$0xff]  ;;  %v23229_v20 = vld [vmem:[#allocation53_spill] sm:$0xff] }
 0xee3   : > { %v10517_v51 = vsub.f32 %v23221_v4, %v10342_v27  ;;  %v10631_v42 = vadd.f32 %v10342_v27, %v23222_v21  ;;  %v14368_v5 = vpop.f32.mrb[157].mxu1  ;;  %v10578_v34 = vsel %vm463_vm0, %v10535_v46, 0.0  ;;  %v23225_v46 = vld [vmem:[#allocation51_spill] sm:$0xff]  ;;  %v23226_v21 = vld [vmem:[#allocation134_spill] sm:$0xff]  ;;  %v21018_v25 = vcombine.low %v8948_v55, %v8955_v15  ;;  %v23235_v15 = vld [vmem:[#allocation57_spill] sm:$0xff] }
 0xee4   : > { %10579 = vadd.xlane.f32.xlu1 %v10578_v34  ;;  %v8138_v13 = vrot.slane %v23226_v21, %v18784_v6  ;;  %v23227_v5 = vld [vmem:[#allocation20_spill] sm:$0xff]  ;;  %v8150_v59 = vrot.slane %v23226_v21, %v18795_v41 }
 0xee5   : > { %v10536_v57 = vmul.f32 %v10517_v51, %v10517_v51  ;;  %12368 = vst.msk [vmem:[%s20671_s19 + $0x68] sm:$0xff] %vm463_vm0, %v10631_v42  ;;  %v21005_v51 = vcombine.low %v7930_v50, %v7934_v30  ;;  %v8142_v42 = vrot.slane %v23226_v21, %v18787_v56  ;;  %v8146_v30 = vrot.slane %v23226_v21, %v18792_v31 }
 0xee6   : > { %6269 = vperm.xlu0 %14749, %v23223_v10   ;;  %v10347_v48 = vpop.f32.mrb[158].mxu1 }
 0xee7   : > { %v10518_v16 = vsub.f32 %v23224_v9, %v10347_v48  ;;  %v10632_v27 = vadd.f32 %v10347_v48, %v23225_v46  ;;  %v14371_v12 = vpop.f32.mrb[159].mxu1  ;;  %v10581_v7 = vsel %vm463_vm0, %v10536_v57, 0.0  ;;  %v8158_v46 = vrot.slane %v23226_v21, %v18801_v61 }
 0xee8   : > { %10582 = vadd.xlane.f32.xlu1 %v10581_v7  ;;  %v8162_v12 = vrot.slane %v23226_v21, %v18804_v33  ;;  %v8166_v7 = vrot.slane %v23226_v21, %v18807_v1 }
 0xee9   : > { %v10537_v29 = vmul.f32 %v10518_v16, %v10518_v16  ;;  %12369 = vst.msk [vmem:[%s20671_s19 + $0x70] sm:$0xff] %vm463_vm0, %v10632_v27  ;;  %v8154_v16 = vrot.slane %v23226_v21, %v18798_v2  ;;  %v23232_v21 = vld [vmem:[#allocation55_spill] sm:$0xff] }
 0xeea   : > { %6275 = vperm.xlu0 %14749, %v23227_v5   ;;  %v10352_v34 = vpop.f32.mrb[160].mxu1  ;;  %v8976_v45 = vcombine.low %v8162_v12, %v8166_v7  ;;  %v23236_v12 = vld [vmem:[#allocation60_spill] sm:$0xff] }
 0xeeb   : > { %v10519_v57 = vsub.f32 %v23228_v60, %v10352_v34  ;;  %v10633_v47 = vadd.f32 %v10352_v34, %v23229_v20  ;;  %v14374_v10 = vpop.f32.mrb[161].mxu1  ;;  %v10584_v48 = vsel %vm463_vm0, %v10537_v29, 0.0  ;;  %v21045_v29 = vcombine.low %v8138_v13, %v8142_v42  ;;  %v23230_v60 = vld [vmem:[#allocation129_spill] sm:$0xff] }
 0xeec   : > { %10585 = vadd.xlane.f32.xlu1 %v10584_v48  ;;  %v21048_v34 = vcombine.low %v8146_v30, %v8150_v59  ;;  %v7978_v20 = vrot.slane %v23230_v60, %v18784_v6  ;;  %v23231_v10 = vld [vmem:[#allocation56_spill] sm:$0xff]  ;;  %v7990_v30 = vrot.slane %v23230_v60, %v18795_v41  ;;  %v7994_v59 = vrot.slane %v23230_v60, %v18798_v2 }
 0xeed   : > { %v10538_v27 = vmul.f32 %v10519_v57, %v10519_v57  ;;  %12370 = vst.msk [vmem:[%s20671_s19 + $0x78] sm:$0xff] %vm463_vm0, %v10633_v47  ;;  %v7982_v57 = vrot.slane %v23230_v60, %v18787_v56  ;;  %v7986_v47 = vrot.slane %v23230_v60, %v18792_v31  ;;  %v7998_v4 = vrot.slane %v23230_v60, %v18801_v61 }
 0xeee   : > { %6281 = vperm.xlu0 %14749, %v20617_v28   ;;  %v10357_v5 = vpop.f32.mrb[162].mxu1  ;;  %v8002_v54 = vrot.slane %v23230_v60, %v18804_v33  ;;  %v8975_v17 = vcombine.low %v8154_v16, %v8158_v46  ;;  %v8983_v58 = vrot.slane %v21045_v29, %v18834_v63 }
 0xeef   : > { %v10520_v48 = vsub.f32 %v23231_v10, %v10357_v5  ;;  %v10634_v13 = vadd.f32 %v10357_v5, %v23232_v21  ;;  %v14377_v42 = vpop.f32.mrb[163].mxu1  ;;  %v10587_v28 = vsel %vm463_vm0, %v10538_v27, 0.0  ;;  %v8006_v10 = vrot.slane %v23230_v60, %v18807_v1  ;;  %v23233_v27 = vld [vmem:[#allocation135_spill] sm:$0xff] }
 0xef0   : > { %10588 = vadd.xlane.f32.xlu1 %v10587_v28  ;;  %v8170_v21 = vrot.slane %v23233_v27, %v18784_v6  ;;  %v8174_v42 = vrot.slane %v23233_v27, %v18787_v56  ;;  %v8178_v28 = vrot.slane %v23233_v27, %v18792_v31  ;;  %v8182_v44 = vrot.slane %v23233_v27, %v18795_v41 }
 0xef1   : > { %v10539_v5 = vmul.f32 %v10520_v48, %v10520_v48  ;;  %12371 = vst.msk [vmem:[%s20671_s19 + $0x80] sm:$0xff] %vm463_vm0, %v10634_v13  ;;  %v8186_v60 = vrot.slane %v23233_v27, %v18798_v2  ;;  %v8190_v48 = vrot.slane %v23233_v27, %v18801_v61  ;;  %v8194_v13 = vrot.slane %v23233_v27, %v18804_v33 }
 0xef2   : > { %6287 = vperm.xlu0 %14749, %v20625_v36   ;;  %v10362_v3 = vpop.f32.mrb[164].mxu1  ;;  %v8198_v55 = vrot.slane %v23233_v27, %v18807_v1  ;;  %v8728_v8 = vcombine.low %v7978_v20, %v7982_v57  ;;  %v8729_v53 = vcombine.low %v7986_v47, %v7990_v30  ;;  %v8731_v35 = vcombine.low %v8002_v54, %v8006_v10 }
 0xef3   : > { %v10521_v24 = vsub.f32 %v23234_v23, %v10362_v3  ;;  %v10635_v9 = vadd.f32 %v10362_v3, %v23235_v15  ;;  %v14380_v50 = vpop.f32.mrb[165].mxu1  ;;  %v10590_v36 = vsel %vm463_vm0, %v10539_v5, 0.0  ;;  %v8730_v23 = vcombine.low %v7994_v59, %v7998_v4  ;;  %v23238_v59 = vld [vmem:[#allocation131_spill] sm:$0xff] }
 0xef4   : > { %10591 = vadd.xlane.f32.xlu1 %v10590_v36  ;;  %v8990_v50 = vrot.slane %v21048_v34, %v18834_v63  ;;  %v9022_v15 = vcombine.low %v8170_v21, %v8174_v42  ;;  %v9023_v16 = vcombine.low %v8178_v28, %v8182_v44  ;;  %v9024_v46 = vcombine.low %v8186_v60, %v8190_v48 }
 0xef5   : > { %v10540_v18 = vmul.f32 %v10521_v24, %v10521_v24  ;;  %12372 = vst.msk [vmem:[%s20671_s19 + $0x88] sm:$0xff] %vm463_vm0, %v10635_v9  ;;  %v23237_v24 = vld [vmem:[#allocation59_spill] sm:$0xff]  ;;  %v9025_v29 = vcombine.low %v8194_v13, %v8198_v55  ;;  %v8997_v4 = vrot.slane %v8975_v17, %v18834_v63  ;;  %v8738_v54 = vrot.slane %v8728_v8, %v18834_v63 }
 0xef6   : > { %6293 = vperm.xlu0 %14749, %v20627_v43   ;;  %v10367_v3 = vpop.f32.mrb[166].mxu1  ;;  %v9004_v43 = vrot.slane %v8976_v45, %v18834_v63  ;;  %v8745_v34 = vrot.slane %v8729_v53, %v18834_v63  ;;  %v8752_v44 = vrot.slane %v8730_v23, %v18834_v63  ;;  %v8759_v30 = vrot.slane %v8731_v35, %v18834_v63 }
 0xef7   : > { %v10522_v7 = vsub.f32 %v23236_v12, %v10367_v3  ;;  %v10636_v20 = vadd.f32 %v10367_v3, %v23237_v24  ;;  %v14383_v9 = vpop.f32.mrb[167].mxu1  ;;  %v10593_v57 = vsel %vm463_vm0, %v10540_v18, 0.0  ;;  %v8042_v18 = vrot.slane %v23238_v59, %v18784_v6 }
 0xef8   : > { %10594 = vadd.xlane.f32.xlu1 %v10593_v57  ;;  %v9032_v17 = vrot.slane %v9022_v15, %v18834_v63  ;;  %v8046_v45 = vrot.slane %v23238_v59, %v18787_v56  ;;  %v8050_v53 = vrot.slane %v23238_v59, %v18792_v31  ;;  %v8054_v8 = vrot.slane %v23238_v59, %v18795_v41 }
 0xef9   : > { %v10541_v47 = vmul.f32 %v10522_v7, %v10522_v7  ;;  %12373 = vst.msk [vmem:[%s20671_s19 + $0x90] sm:$0x3f] %vm518_vm3, %v10636_v20  ;;  %v9039_v35 = vrot.slane %v9023_v16, %v18834_v63  ;;  %v9046_v10 = vrot.slane %v9024_v46, %v18834_v63  ;;  %v9053_v5 = vrot.slane %v9025_v29, %v18834_v63  ;;  %s14801_s19 = scalar_lea.vmem %s22087_s22, 128 }
 0xefa   : > { %6299 = vperm.xlu0 %14749, %v20629_v38   ;;  %v23239_v38 = vrot.slane %v20999_v11, %v18834_v63  ;;  %v23240_v27 = vrot.slane %v20994_v19, %v18834_v63  ;;  %v23241_v42 = vrot.slane %v21007_v49, %v18834_v63  ;;  %v23242_v28 = vrot.slane %v21005_v51, %v18834_v63  ;;  %p14802_p12 = scmp.ne.s32.totalorder %s22087_s22, %s14801_s19  ;;  %p14809_p2 = scmp.lt.s32.totalorder %s14807_s1, %s14801_s19 }
 0xefb   : > { %v10596_v55 = vsel %vm518_vm3, %v10541_v47, 0.0  ;;  %v9005_v48 = vcombine.low %v8983_v58, %v8990_v50  ;;  %v9006_v13 = vcombine.low %v8997_v4, %v9004_v43  ;;  %v8760_v36 = vcombine.low %v8738_v54, %v8745_v34 }
 0xefc   : > { %10597 = vadd.xlane.f32.xlu1 %v10596_v55  ;;  %v8662_v21 = vcombine.low %v23240_v27, %v23239_v38  ;;  %v8663_v60 = vcombine.low %v23242_v28, %v23241_v42  ;;  %v8761_v23 = vcombine.low %v8752_v44, %v8759_v30  ;;  %v8058_v3 = vrot.slane %v23238_v59, %v18798_v2  ;;  %v23247_v30 = vld [vmem:[#allocation136_spill] sm:$0xff]  ;;  %p14803_p13 = pnand %p14802_p12, %p15009_p4  ;;  %p14810_p3 = por %p14809_p2, %p14808_p1 }
 0xefd   : > { %v8062_v11 = vrot.slane %v23238_v59, %v18801_v61  ;;  %v8066_v19 = vrot.slane %v23238_v59, %v18804_v33  ;;  %v8070_v49 = vrot.slane %v23238_v59, %v18807_v1  ;;  %v8826_v51 = vcombine.low %v8042_v18, %v8046_v45 }
 0xefe   : > { %6305 = vperm.xlu0 %14749, %v20631_v32   ;;  %v8827_v15 = vcombine.low %v8050_v53, %v8054_v8  ;;  %v8964_v58 = vrot.slane %v21011_v39, %v18834_v63  ;;  %v8971_v50 = vrot.slane %v21018_v25, %v18834_v63  ;;  %v9054_v16 = vcombine.low %v9032_v17, %v9039_v35  ;;  %p14804_p0 = pneg %p14803_p13 }
 0xeff   : > { %v9055_v46 = vcombine.low %v9046_v10, %v9053_v5  ;;  %v8670_v12 = vrot.slane %v8662_v21, %v18834_v63  ;;  %v8677_v32 = vrot.slane %v8663_v60, %v18834_v63  ;;  %v9013_v7 = vrot.slane %v9005_v48, %v18834_v63 }
 0xf00   : > { %v9020_v24 = vrot.slane %v9006_v13, %v18834_v63  ;;  %v23243_v20 = vrot.slane %v20914_v26, %v18834_v63  ;;  %v23244_v9 = vrot.slane %v20910_v62, %v18834_v63  ;;  %v8768_v25 = vrot.slane %v8760_v36, %v18834_v63  ;;  %p14811_p5 = pnand %p14810_p3, %p14804_p0 }
 0xf01   : > { %v8775_v57 = vrot.slane %v8761_v23, %v18834_v63  ;;  %v8828_v29 = vcombine.low %v8058_v3, %v8062_v11  ;;  %v23245_v4 = vrot.slane %v20956_v52, %v18834_v63  ;;  %v23246_v43 = vrot.slane %v20954_v22, %v18834_v63 }
 0xf02   : > { %v21158_v39 = vcombine.low %v23244_v9, %v23243_v20  ;;  %6311 = vperm.xlu0 %14749, %v20633_v14   ;;  %v8829_v26 = vcombine.low %v8066_v19, %v8070_v49  ;;  %v8836_v62 = vrot.slane %v8826_v51, %v18834_v63  ;;  %v8843_v34 = vrot.slane %v8827_v15, %v18834_v63  ;;  %v23251_v49 = vld [vmem:[#allocation26_spill] sm:$0xff]  ;;  %v23252_v51 = vld [vmem:[#allocation27_spill] sm:$0xff] }
 0xf03   : > { %v21169_v54 = vcombine.low %v23246_v43, %v23245_v4  ;;  %v9062_v47 = vrot.slane %v9054_v16, %v18834_v63  ;;  %v9069_v44 = vrot.slane %v9055_v46, %v18834_v63  ;;  %v8202_v14 = vrot.slane %v23247_v30, %v18784_v6 }
 0xf04   : > { %v8206_v52 = vrot.slane %v23247_v30, %v18787_v56  ;;  %v23248_v22 = vrot.slane %v20960_v40, %v18834_v63  ;;  %v23249_v59 = vrot.slane %v20958_v37, %v18834_v63  ;;  %v21187_v17 = vcombine.low %v8964_v58, %v8971_v50 }
 0xf05   : > { %v21189_v45 = vcombine.low %v8670_v12, %v8677_v32  ;;  %v21191_v53 = vcombine.low %v9013_v7, %v9020_v24  ;;  %v21193_v8 = vcombine.low %v8768_v25, %v8775_v57  ;;  %v8850_v55 = vrot.slane %v8828_v29, %v18834_v63  ;;  %v23253_v57 = vld [vmem:[#allocation80_spill] sm:$0xff] }
 0xf06   : > { %v21185_v18 = vcombine.low %v23249_v59, %v23248_v22  ;;  %v8210_v35 = vrot.slane %v23247_v30, %v18792_v31  ;;  %v8214_v40 = vrot.slane %v23247_v30, %v18795_v41  ;;  %9210 = vperm.xlu0 %14749, %v20840_v0   ;;  %v8857_v37 = vrot.slane %v8829_v26, %v18834_v63  ;;  %v23250_v0 = vld [vmem:[#allocation18_spill] sm:$0xff]  ;;  %v23255_v22 = vld [vmem:[#allocation137_spill] sm:$0xff] }
 0xf07   : > { %v21202_v10 = vcombine.low %v8836_v62, %v8843_v34  ;;  %v8218_v5 = vrot.slane %v23247_v30, %v18798_v2  ;;  %v8222_v38 = vrot.slane %v23247_v30, %v18801_v61  ;;  %v21208_v27 = vcombine.low %v9062_v47, %v9069_v44  ;;  %v23254_v62 = vld [vmem:[#allocation83_spill] sm:$0xff] }
 0xf08   : > { %v8226_v21 = vrot.slane %v23247_v30, %v18804_v33  ;;  %v8230_v42 = vrot.slane %v23247_v30, %v18807_v1  ;;  %v21214_v28 = vcombine.low %v8202_v14, %v8206_v52  ;;  %v10640_v60 = vrot.slane %v23250_v0, %v18784_v6 }
 0xf09   : > { %v10644_v48 = vrot.slane %v23250_v0, %v18787_v56  ;;  %v10648_v13 = vrot.slane %v23250_v0, %v18792_v31  ;;  %v10652_v36 = vrot.slane %v23250_v0, %v18795_v41  ;;  %v10656_v23 = vrot.slane %v23250_v0, %v18798_v2 }
 0xf0a   : > { %v10660_v3 = vrot.slane %v23250_v0, %v18801_v61  ;;  %v10664_v11 = vrot.slane %v23250_v0, %v18804_v33  ;;  %v10668_v19 = vrot.slane %v23250_v0, %v18807_v1  ;;  %9216 = vperm.xlu0 %14749, %v23251_v49   ;;  %v10672_v15 = vrot.slane %v23252_v51, %v18784_v6 }
 0xf0b   : > { %v10676_v58 = vrot.slane %v23252_v51, %v18787_v56  ;;  %v10680_v50 = vrot.slane %v23252_v51, %v18792_v31  ;;  %v10684_v16 = vrot.slane %v23252_v51, %v18795_v41  ;;  %v10688_v46 = vrot.slane %v23252_v51, %v18798_v2 }
 0xf0c   : > { %v10692_v12 = vrot.slane %v23252_v51, %v18801_v61  ;;  %v10696_v32 = vrot.slane %v23252_v51, %v18804_v33  ;;  %v10700_v7 = vrot.slane %v23252_v51, %v18807_v1  ;;  %v21249_v24 = vcombine.low %v8850_v55, %v8857_v37 }
 0xf0d   : > { %v8866_v20 = vrot.slane %v21202_v10, %v18834_v63  ;;  %v9072_v9 = vcombine.low %v8210_v35, %v8214_v40  ;;  %v9073_v25 = vcombine.low %v8218_v5, %v8222_v38  ;;  %6308 = vperm.xlu1 %14748, %v23253_v57   ;;  %v9074_v29 = vcombine.low %v8226_v21, %v8230_v42  ;;  %v23256_v38 = vld [vmem:[#allocation24_spill] sm:$0xff]  ;;  %v23261_v57 = vld [vmem:[#allocation89_spill] sm:$0xff] }
 0xf0e   : > { %v9081_v4 = vrot.slane %v21214_v28, %v18834_v63  ;;  %v11237_v43 = vcombine.low %v10640_v60, %v10644_v48  ;;  %v11238_v26 = vcombine.low %v10648_v13, %v10652_v36  ;;  %9222 = vperm.xlu0 %14749, %v23254_v62   ;;  %v11239_v34 = vcombine.low %v10656_v23, %v10660_v3  ;;  %v23257_v60 = vld [vmem:[#allocation85_spill] sm:$0xff] }
 0xf0f   : > { %v11240_v47 = vcombine.low %v10664_v11, %v10668_v19  ;;  %v11286_v44 = vcombine.low %v10672_v15, %v10676_v58  ;;  %v11287_v30 = vcombine.low %v10680_v50, %v10684_v16  ;;  %v11288_v14 = vcombine.low %v10688_v46, %v10692_v12  ;;  %v23258_v19 = vld [vmem:[#allocation29_spill] sm:$0xff]  ;;  %v23259_v46 = vld [vmem:[#allocation87_spill] sm:$0xff] }
 0xf10   : > { %v11289_v52 = vcombine.low %v10696_v32, %v10700_v7  ;;  %v8234_v59 = vrot.slane %v23255_v22, %v18784_v6  ;;  %v8238_v55 = vrot.slane %v23255_v22, %v18787_v56  ;;  %v8873_v35 = vrot.slane %v21249_v24, %v18834_v63  ;;  %v23260_v7 = vld [vmem:[#allocation31_spill] sm:$0xff] }
 0xf11   : > { %v9088_v40 = vrot.slane %v9072_v9, %v18834_v63  ;;  %v9095_v37 = vrot.slane %v9073_v25, %v18834_v63  ;;  %6314 = vperm.xlu1 %14748, %v23256_v38   ;;  %v9102_v21 = vrot.slane %v9074_v29, %v18834_v63  ;;  %v11247_v42 = vrot.slane %v11237_v43, %v18834_v63 }
 0xf12   : > { %v11254_v28 = vrot.slane %v11238_v26, %v18834_v63  ;;  %v8246_v0 = vrot.slane %v23255_v22, %v18795_v41  ;;  %9228 = vperm.xlu0 %14749, %v23257_v60   ;;  %v11261_v48 = vrot.slane %v11239_v34, %v18834_v63  ;;  %v11268_v13 = vrot.slane %v11240_v47, %v18834_v63 }
 0xf13   : > { %v11296_v36 = vrot.slane %v11286_v44, %v18834_v63  ;;  %v11303_v23 = vrot.slane %v11287_v30, %v18834_v63  ;;  %v11310_v3 = vrot.slane %v11288_v14, %v18834_v63  ;;  %v11317_v11 = vrot.slane %v11289_v52, %v18834_v63 }
 0xf14   : > { %v10704_v49 = vrot.slane %v23258_v19, %v18784_v6  ;;  %v10708_v51 = vrot.slane %v23258_v19, %v18787_v56  ;;  %v10712_v15 = vrot.slane %v23258_v19, %v18792_v31  ;;  %v10716_v58 = vrot.slane %v23258_v19, %v18795_v41 }
 0xf15   : > { %v10720_v50 = vrot.slane %v23258_v19, %v18798_v2  ;;  %v10724_v16 = vrot.slane %v23258_v19, %v18801_v61  ;;  %9213 = vperm.xlu1 %14748, %v23259_v46   ;;  %v10728_v12 = vrot.slane %v23258_v19, %v18804_v33  ;;  %v10732_v32 = vrot.slane %v23258_v19, %v18807_v1 }
 0xf16   : > { %v10736_v9 = vrot.slane %v23260_v7, %v18784_v6  ;;  %v10740_v25 = vrot.slane %v23260_v7, %v18787_v56  ;;  %9234 = vperm.xlu0 %14749, %v23261_v57   ;;  %v10744_v29 = vrot.slane %v23260_v7, %v18792_v31  ;;  %v10748_v43 = vrot.slane %v23260_v7, %v18795_v41 }
 0xf17   : > { %v10752_v26 = vrot.slane %v23260_v7, %v18798_v2  ;;  %v10756_v62 = vrot.slane %v23260_v7, %v18801_v61  ;;  %v9103_v34 = vcombine.low %v9081_v4, %v9088_v40  ;;  %v9104_v47 = vcombine.low %v9095_v37, %v9102_v21 }
 0xf18   : > { %v10760_v44 = vrot.slane %v23260_v7, %v18804_v33  ;;  %v10764_v30 = vrot.slane %v23260_v7, %v18807_v1  ;;  %v11269_v14 = vcombine.low %v11247_v42, %v11254_v28  ;;  %v11270_v52 = vcombine.low %v11261_v48, %v11268_v13 }
 0xf19   : > { %v11318_v38 = vcombine.low %v11296_v36, %v11303_v23  ;;  %v11319_v60 = vcombine.low %v11310_v3, %v11317_v11  ;;  %9219 = vperm.xlu1 %14748, %v21158_v39   ;;  %v11335_v19 = vcombine.low %v10704_v49, %v10708_v51  ;;  %v11336_v46 = vcombine.low %v10712_v15, %v10716_v58 }
 0xf1a   : > { %v11337_v57 = vcombine.low %v10720_v50, %v10724_v16  ;;  %v11338_v5 = vcombine.low %v10728_v12, %v10732_v32  ;;  %9240 = vperm.xlu0 %14749, %v21169_v54   ;;  %v11384_v4 = vcombine.low %v10736_v9, %v10740_v25  ;;  %v11385_v40 = vcombine.low %v10744_v29, %v10748_v43  ;;  %v23262_v50 = vld [vmem:[#allocation19_spill] sm:$0xff] }
 0xf1b   : > { %v11386_v37 = vcombine.low %v10752_v26, %v10756_v62  ;;  %v8250_v21 = vrot.slane %v23255_v22, %v18798_v2  ;;  %v9111_v7 = vrot.slane %v9103_v34, %v18834_v63  ;;  %v9118_v42 = vrot.slane %v9104_v47, %v18834_v63  ;;  %v23263_v26 = vld [vmem:[#allocation22_spill] sm:$0xff] }
 0xf1c   : > { %v11387_v28 = vcombine.low %v10760_v44, %v10764_v30  ;;  %v8254_v39 = vrot.slane %v23255_v22, %v18801_v61  ;;  %v11277_v48 = vrot.slane %v11269_v14, %v18834_v63  ;;  %v11284_v13 = vrot.slane %v11270_v52, %v18834_v63 }
 0xf1d   : > { %v11326_v54 = vrot.slane %v11318_v38, %v18834_v63  ;;  %v11333_v36 = vrot.slane %v11319_v60, %v18834_v63  ;;  %9225 = vperm.xlu1 %14748, %v21185_v18   ;;  %v11345_v23 = vrot.slane %v11335_v19, %v18834_v63  ;;  %v11352_v3 = vrot.slane %v11336_v46, %v18834_v63  ;;  %v21337_v18 = vpop.permute.xlu1 %6272 }
 0xf1e   : > { %v11359_v11 = vrot.slane %v11337_v57, %v18834_v63  ;;  %v11366_v49 = vrot.slane %v11338_v5, %v18834_v63  ;;  %9249 = vperm.xlu0 %14749, %v21187_v17   ;;  %v11394_v51 = vrot.slane %v11384_v4, %v18834_v63  ;;  %v11401_v15 = vrot.slane %v11385_v40, %v18834_v63 }
 0xf1f   : > { %v11408_v58 = vrot.slane %v11386_v37, %v18834_v63  ;;  %v10768_v16 = vrot.slane %v23262_v50, %v18784_v6  ;;  %v11415_v12 = vrot.slane %v11387_v28, %v18834_v63  ;;  %v10772_v32 = vrot.slane %v23262_v50, %v18787_v56 }
 0xf20   : > { %v10776_v5 = vrot.slane %v23262_v50, %v18792_v31  ;;  %v10780_v17 = vrot.slane %v23262_v50, %v18795_v41  ;;  %v10784_v9 = vrot.slane %v23262_v50, %v18798_v2  ;;  %v10788_v25 = vrot.slane %v23262_v50, %v18801_v61 }
 0xf21   : > { %v10792_v29 = vrot.slane %v23262_v50, %v18804_v33  ;;  %v10796_v43 = vrot.slane %v23262_v50, %v18807_v1  ;;  %9231 = vperm.xlu1 %14748, %v21189_v45   ;;  %v10800_v62 = vrot.slane %v23263_v26, %v18784_v6  ;;  %v10804_v34 = vrot.slane %v23263_v26, %v18787_v56  ;;  %v21380_v37 = vpop.permute.xlu1 %6278 }
 0xf22   : > { %v10808_v47 = vrot.slane %v23263_v26, %v18792_v31  ;;  %v10812_v44 = vrot.slane %v23263_v26, %v18795_v41  ;;  %9252 = vperm.xlu0 %14749, %v21191_v53   ;;  %v10816_v30 = vrot.slane %v23263_v26, %v18798_v2  ;;  %v10820_v45 = vrot.slane %v23263_v26, %v18801_v61 }
 0xf23   : > { %v10824_v14 = vrot.slane %v23263_v26, %v18804_v33  ;;  %v10828_v52 = vrot.slane %v23263_v26, %v18807_v1  ;;  %v8874_v38 = vcombine.low %v8866_v20, %v8873_v35  ;;  %v9119_v53 = vcombine.low %v9111_v7, %v9118_v42  ;;  %v23264_v42 = vld [vmem:[#allocation84_spill] sm:$0xff] }
 0xf24   : > { %v11285_v60 = vcombine.low %v11277_v48, %v11284_v13  ;;  %v21378_v19 = vcombine.low %v11326_v54, %v11333_v36  ;;  %v11367_v46 = vcombine.low %v11345_v23, %v11352_v3  ;;  %v11368_v57 = vcombine.low %v11359_v11, %v11366_v49 }
 0xf25   : > { %v11416_v4 = vcombine.low %v11394_v51, %v11401_v15  ;;  %v11417_v40 = vcombine.low %v11408_v58, %v11415_v12  ;;  %9237 = vperm.xlu1 %14748, %v21193_v8   ;;  %v11433_v28 = vcombine.low %v10768_v16, %v10772_v32  ;;  %v11434_v50 = vcombine.low %v10776_v5, %v10780_v17  ;;  %v21408_v5 = vpop.permute.xlu1 %6284 }
 0xf26   : > { %v11435_v26 = vcombine.low %v10784_v9, %v10788_v25  ;;  %v11436_v24 = vcombine.low %v10792_v29, %v10796_v43  ;;  %9255 = vperm.xlu0 %14749, %v21208_v27   ;;  %v11482_v10 = vcombine.low %v10800_v62, %v10804_v34  ;;  %v11483_v20 = vcombine.low %v10808_v47, %v10812_v44  ;;  %v23265_v44 = vld [vmem:[#allocation86_spill] sm:$0xff] }
 0xf27   : > { %v11484_v35 = vcombine.low %v10816_v30, %v10820_v45  ;;  %v11485_v7 = vcombine.low %v10824_v14, %v10828_v52  ;;  %v10864_v48 = vrot.slane %v23264_v42, %v18784_v6  ;;  %v10868_v13 = vrot.slane %v23264_v42, %v18787_v56 }
 0xf28   : > { %v10872_v54 = vrot.slane %v23264_v42, %v18792_v31  ;;  %v10876_v8 = vrot.slane %v23264_v42, %v18795_v41  ;;  %v10880_v36 = vrot.slane %v23264_v42, %v18798_v2  ;;  %v10884_v27 = vrot.slane %v23264_v42, %v18801_v61 }
 0xf29   : > { %v10888_v23 = vrot.slane %v23264_v42, %v18804_v33  ;;  %v10892_v3 = vrot.slane %v23264_v42, %v18807_v1  ;;  %9243 = vperm.xlu1 %14748, %v8874_v38   ;;  %v11375_v11 = vrot.slane %v11367_v46, %v18834_v63  ;;  %v11382_v49 = vrot.slane %v11368_v57, %v18834_v63 }
 0xf2a   : > { %v11424_v51 = vrot.slane %v11416_v4, %v18834_v63  ;;  %v11431_v15 = vrot.slane %v11417_v40, %v18834_v63  ;;  %9258 = vperm.xlu0 %14749, %v9119_v53   ;;  %v11443_v58 = vrot.slane %v11433_v28, %v18834_v63  ;;  %v11450_v16 = vrot.slane %v11434_v50, %v18834_v63 }
 0xf2b   : > { %v11457_v12 = vrot.slane %v11435_v26, %v18834_v63  ;;  %v11464_v32 = vrot.slane %v11436_v24, %v18834_v63  ;;  %v11492_v17 = vrot.slane %v11482_v10, %v18834_v63  ;;  %v11499_v9 = vrot.slane %v11483_v20, %v18834_v63  ;;  %v21432_v20 = vpop.permute.xlu1 %6290 }
 0xf2c   : > { %v11506_v25 = vrot.slane %v11484_v35, %v18834_v63  ;;  %v11513_v29 = vrot.slane %v11485_v7, %v18834_v63  ;;  %v11580_v43 = vcombine.low %v10864_v48, %v10868_v13  ;;  %v11581_v62 = vcombine.low %v10872_v54, %v10876_v8  ;;  %v23266_v8 = vld [vmem:[#allocation88_spill] sm:$0xff] }
 0xf2d   : > { %v11582_v34 = vcombine.low %v10880_v36, %v10884_v27  ;;  %v11583_v47 = vcombine.low %v10888_v23, %v10892_v3  ;;  %v10896_v30 = vrot.slane %v23265_v44, %v18784_v6  ;;  %v10900_v45 = vrot.slane %v23265_v44, %v18787_v56 }
 0xf2e   : > { %v10904_v14 = vrot.slane %v23265_v44, %v18792_v31  ;;  %v10908_v52 = vrot.slane %v23265_v44, %v18795_v41  ;;  %12160 = vperm.xlu0 %14749, %v11285_v60   ;;  %v10912_v38 = vrot.slane %v23265_v44, %v18798_v2  ;;  %v10916_v53 = vrot.slane %v23265_v44, %v18801_v61 }
 0xf2f   : > { %v10920_v46 = vrot.slane %v23265_v44, %v18804_v33  ;;  %v10924_v57 = vrot.slane %v23265_v44, %v18807_v1  ;;  %v11383_v4 = vcombine.low %v11375_v11, %v11382_v49  ;;  %v11432_v40 = vcombine.low %v11424_v51, %v11431_v15 }
 0xf30   : > { %v11465_v28 = vcombine.low %v11443_v58, %v11450_v16  ;;  %v11466_v50 = vcombine.low %v11457_v12, %v11464_v32  ;;  %v11514_v26 = vcombine.low %v11492_v17, %v11499_v9  ;;  %v11515_v24 = vcombine.low %v11506_v25, %v11513_v29 }
 0xf31   : > { %v11590_v60 = vrot.slane %v11580_v43, %v18834_v63  ;;  %v11597_v10 = vrot.slane %v11581_v62, %v18834_v63  ;;  %v11604_v35 = vrot.slane %v11582_v34, %v18834_v63  ;;  %v11611_v7 = vrot.slane %v11583_v47, %v18834_v63  ;;  %v21465_v62 = vpop.permute.xlu1 %6296 }
 0xf32   : > { %v11629_v42 = vcombine.low %v10896_v30, %v10900_v45  ;;  %v11630_v48 = vcombine.low %v10904_v14, %v10908_v52  ;;  %12163 = vperm.xlu0 %14749, %v21378_v19   ;;  %v11631_v13 = vcombine.low %v10912_v38, %v10916_v53  ;;  %v11632_v54 = vcombine.low %v10920_v46, %v10924_v57  ;;  %v23267_v30 = vld [vmem:[#allocation90_spill] sm:$0xff] }
 0xf33   : > { %v10928_v36 = vrot.slane %v23266_v8, %v18784_v6  ;;  %v10932_v27 = vrot.slane %v23266_v8, %v18787_v56  ;;  %v10936_v23 = vrot.slane %v23266_v8, %v18792_v31  ;;  %v10940_v3 = vrot.slane %v23266_v8, %v18795_v41 }
 0xf34   : > { %v10944_v11 = vrot.slane %v23266_v8, %v18798_v2  ;;  %v10948_v19 = vrot.slane %v23266_v8, %v18801_v61  ;;  %v11473_v49 = vrot.slane %v11465_v28, %v18834_v63  ;;  %v11480_v51 = vrot.slane %v11466_v50, %v18834_v63 }
 0xf35   : > { %v10952_v15 = vrot.slane %v23266_v8, %v18804_v33  ;;  %v10956_v58 = vrot.slane %v23266_v8, %v18807_v1  ;;  %v11522_v16 = vrot.slane %v11514_v26, %v18834_v63  ;;  %v11529_v12 = vrot.slane %v11515_v24, %v18834_v63  ;;  %v21495_v8 = vpop.permute.xlu1 %6302 }
 0xf36   : > { %v21457_v32 = vcombine.low %v11590_v60, %v11597_v10  ;;  %v21459_v17 = vcombine.low %v11604_v35, %v11611_v7  ;;  %12166 = vperm.xlu0 %14749, %v11383_v4   ;;  %v11639_v9 = vrot.slane %v11629_v42, %v18834_v63  ;;  %v11646_v25 = vrot.slane %v11630_v48, %v18834_v63 }
 0xf37   : > { %v11653_v29 = vrot.slane %v11631_v13, %v18834_v63  ;;  %v11660_v43 = vrot.slane %v11632_v54, %v18834_v63  ;;  %v11678_v34 = vcombine.low %v10928_v36, %v10932_v27  ;;  %v11679_v47 = vcombine.low %v10936_v23, %v10940_v3 }
 0xf38   : > { %v11680_v44 = vcombine.low %v10944_v11, %v10948_v19  ;;  %v10960_v45 = vrot.slane %v23267_v30, %v18784_v6  ;;  %v11681_v14 = vcombine.low %v10952_v15, %v10956_v58  ;;  %v10964_v52 = vrot.slane %v23267_v30, %v18787_v56  ;;  %v23268_v11 = vld [vmem:[#allocation170_spill] sm:$0xff] }
 0xf39   : > { %v10968_v38 = vrot.slane %v23267_v30, %v18792_v31  ;;  %v10972_v53 = vrot.slane %v23267_v30, %v18795_v41  ;;  %v10976_v46 = vrot.slane %v23267_v30, %v18798_v2  ;;  %v10980_v57 = vrot.slane %v23267_v30, %v18801_v61 }
 0xf3a   : > { %v10984_v4 = vrot.slane %v23267_v30, %v18804_v33  ;;  %v10988_v28 = vrot.slane %v23267_v30, %v18807_v1  ;;  %12169 = vperm.xlu0 %14749, %v11432_v40   ;;  %v11481_v50 = vcombine.low %v11473_v49, %v11480_v51  ;;  %v11530_v26 = vcombine.low %v11522_v16, %v11529_v12 }
 0xf3b   : > { %v8258_v24 = vrot.slane %v23255_v22, %v18804_v33  ;;  %v8262_v60 = vrot.slane %v23255_v22, %v18807_v1  ;;  %v11620_v10 = vrot.slane %v21457_v32, %v18834_v63  ;;  %v11627_v35 = vrot.slane %v21459_v17, %v18834_v63 }
 0xf3c   : > { %v11661_v7 = vcombine.low %v11639_v9, %v11646_v25  ;;  %v11662_v42 = vcombine.low %v11653_v29, %v11660_v43  ;;  %v11688_v48 = vrot.slane %v11678_v34, %v18834_v63  ;;  %v11695_v40 = vrot.slane %v11679_v47, %v18834_v63 }
 0xf3d   : > { %v11702_v13 = vrot.slane %v11680_v44, %v18834_v63  ;;  %v11709_v54 = vrot.slane %v11681_v14, %v18834_v63  ;;  %v11727_v36 = vcombine.low %v10960_v45, %v10964_v52  ;;  %v11728_v27 = vcombine.low %v10968_v38, %v10972_v53 }
 0xf3e   : > { %v11729_v23 = vcombine.low %v10976_v46, %v10980_v57  ;;  %v11730_v3 = vcombine.low %v10984_v4, %v10988_v28  ;;  %12172 = vperm.xlu0 %14749, %v11481_v50   ;;  %v11024_v19 = vrot.slane %v23268_v11, %v18784_v6  ;;  %v11028_v49 = vrot.slane %v23268_v11, %v18787_v56 }
 0xf3f   : > { %v11032_v51 = vrot.slane %v23268_v11, %v18792_v31  ;;  %v11036_v15 = vrot.slane %v23268_v11, %v18795_v41  ;;  %v11040_v58 = vrot.slane %v23268_v11, %v18798_v2  ;;  %v11044_v16 = vrot.slane %v23268_v11, %v18801_v61 }
 0xf40   : > { %v11048_v12 = vrot.slane %v23268_v11, %v18804_v33  ;;  %v11052_v32 = vrot.slane %v23268_v11, %v18807_v1  ;;  %v11669_v17 = vrot.slane %v11661_v7, %v18834_v63  ;;  %v11676_v9 = vrot.slane %v11662_v42, %v18834_v63 }
 0xf41   : > { %v11710_v25 = vcombine.low %v11688_v48, %v11695_v40  ;;  %v11711_v29 = vcombine.low %v11702_v13, %v11709_v54  ;;  %v21515_v43 = vpop.xlane.xlu1 %10543  ;;  %v11737_v34 = vrot.slane %v11727_v36, %v18834_v63  ;;  %v11744_v47 = vrot.slane %v11728_v27, %v18834_v63 }
 0xf42   : > { %v11751_v44 = vrot.slane %v11729_v23, %v18834_v63  ;;  %v11758_v30 = vrot.slane %v11730_v3, %v18834_v63  ;;  %12175 = vperm.xlu0 %14749, %v11530_v26   ;;  %v11825_v45 = vcombine.low %v11024_v19, %v11028_v49  ;;  %v9120_v14 = vcombine.low %v8234_v59, %v8238_v55  ;;  %v23270_v55 = vld [vmem:[#allocation138_spill] sm:$0xff] }
 0xf43   : > { %v23269_v52 = vrot.slane %v23255_v22, %v18792_v31  ;;  %v9122_v53 = vcombine.low %v8250_v21, %v8254_v39  ;;  %v11826_v46 = vcombine.low %v11032_v51, %v11036_v15  ;;  %v11827_v57 = vcombine.low %v11040_v58, %v11044_v16 }
 0xf44   : > { %v11828_v4 = vcombine.low %v11048_v12, %v11052_v32  ;;  %v9123_v28 = vcombine.low %v8258_v24, %v8262_v60  ;;  %v11628_v50 = vcombine.low %v11620_v10, %v11627_v35  ;;  %v11677_v59 = vcombine.low %v11669_v17, %v11676_v9  ;;  %v23271_v24 = vld [vmem:[#allocation172_spill] sm:$0xff] }
 0xf45   : > { %v9121_v38 = vcombine.low %v23269_v52, %v8246_v0  ;;  %v8266_v26 = vrot.slane %v23270_v55, %v18784_v6  ;;  %v8270_v7 = vrot.slane %v23270_v55, %v18787_v56  ;;  %v21543_v0 = vpop.xlane.xlu1 %10546  ;;  %v11718_v42 = vrot.slane %v11710_v25, %v18834_v63 }
 0xf46   : > { %v11725_v48 = vrot.slane %v11711_v29, %v18834_v63  ;;  %v11759_v22 = vcombine.low %v11737_v34, %v11744_v47  ;;  %v11760_v21 = vcombine.low %v11751_v44, %v11758_v30  ;;  %12181 = vperm.xlu0 %14749, %v11628_v50   ;;  %v11835_v39 = vrot.slane %v11825_v45, %v18834_v63 }
 0xf47   : > { %v11152_v60 = vrot.slane %v23271_v24, %v18784_v6  ;;  %v11156_v10 = vrot.slane %v23271_v24, %v18787_v56  ;;  %v11160_v35 = vrot.slane %v23271_v24, %v18792_v31  ;;  %v11842_v40 = vrot.slane %v11826_v46, %v18834_v63 }
 0xf48   : > { %v11849_v13 = vrot.slane %v11827_v57, %v18834_v63  ;;  %v11856_v54 = vrot.slane %v11828_v4, %v18834_v63  ;;  %v11164_v36 = vrot.slane %v23271_v24, %v18795_v41  ;;  %v11168_v27 = vrot.slane %v23271_v24, %v18798_v2  ;;  %v23272_v57 = vld [vmem:[#allocation94_spill] sm:$0xff] }
 0xf49   : > { %v11172_v23 = vrot.slane %v23271_v24, %v18801_v61  ;;  %v11176_v3 = vrot.slane %v23271_v24, %v18804_v33  ;;  %v11180_v11 = vrot.slane %v23271_v24, %v18807_v1  ;;  %v21567_v19 = vpop.xlane.xlu1 %10549  ;;  %v9130_v49 = vrot.slane %v9120_v14, %v18834_v63 }
 0xf4a   : > { %v9137_v51 = vrot.slane %v9121_v38, %v18834_v63  ;;  %v9144_v15 = vrot.slane %v9122_v53, %v18834_v63  ;;  %v9151_v58 = vrot.slane %v9123_v28, %v18834_v63  ;;  %12184 = vperm.xlu0 %14749, %v11677_v59   ;;  %v11767_v16 = vrot.slane %v11759_v22, %v18834_v63 }
 0xf4b   : > { %v11774_v12 = vrot.slane %v11760_v21, %v18834_v63  ;;  %v8274_v32 = vrot.slane %v23270_v55, %v18792_v31  ;;  %v8278_v17 = vrot.slane %v23270_v55, %v18795_v41  ;;  %v11857_v9 = vcombine.low %v11835_v39, %v11842_v40 }
 0xf4c   : > { %v11858_v25 = vcombine.low %v11849_v13, %v11856_v54  ;;  %v12021_v29 = vcombine.low %v11152_v60, %v11156_v10  ;;  %v12022_v34 = vcombine.low %v11160_v35, %v11164_v36  ;;  %v11726_v47 = vcombine.low %v11718_v42, %v11725_v48 }
 0xf4d   : > { %v12023_v44 = vcombine.low %v11168_v27, %v11172_v23  ;;  %v12024_v30 = vcombine.low %v11176_v3, %v11180_v11  ;;  %v21579_v45 = vpop.xlane.xlu1 %10552  ;;  %v9152_v14 = vcombine.low %v9130_v49, %v9137_v51  ;;  %v9153_v52 = vcombine.low %v9144_v15, %v9151_v58 }
 0xf4e   : > { %v9169_v38 = vcombine.low %v8266_v26, %v8270_v7  ;;  %12187 = vperm.xlu0 %14749, %v11726_v47   ;;  %v11775_v53 = vcombine.low %v11767_v16, %v11774_v12  ;;  %v9170_v46 = vcombine.low %v8274_v32, %v8278_v17  ;;  %v11216_v4 = vrot.slane %v23272_v57, %v18784_v6 }
 0xf4f   : > { %v11220_v28 = vrot.slane %v23272_v57, %v18787_v56  ;;  %v11865_v50 = vrot.slane %v11857_v9, %v18834_v63  ;;  %v11872_v59 = vrot.slane %v11858_v25, %v18834_v63  ;;  %v12031_v42 = vrot.slane %v12021_v29, %v18834_v63 }
 0xf50   : > { %v12038_v48 = vrot.slane %v12022_v34, %v18834_v63  ;;  %v12045_v22 = vrot.slane %v12023_v44, %v18834_v63  ;;  %v12052_v26 = vrot.slane %v12024_v30, %v18834_v63  ;;  %v11224_v7 = vrot.slane %v23272_v57, %v18792_v31 }
 0xf51   : > { %v11228_v21 = vrot.slane %v23272_v57, %v18795_v41  ;;  %v21595_v39 = vpop.xlane.xlu1 %10555  ;;  %v9160_v24 = vrot.slane %v9152_v14, %v18834_v63  ;;  %v8282_v60 = vrot.slane %v23270_v55, %v18798_v2  ;;  %v8286_v10 = vrot.slane %v23270_v55, %v18801_v61 }
 0xf52   : > { %12190 = vperm.xlu0 %14749, %v11775_v53   ;;  %v11873_v35 = vcombine.low %v11865_v50, %v11872_v59  ;;  %v9167_v40 = vrot.slane %v9153_v52, %v18834_v63  ;;  %v9178_v13 = vrot.slane %v9169_v38, %v18834_v63  ;;  %v9185_v54 = vrot.slane %v9170_v46, %v18834_v63  ;;  %v23273_v53 = vld [vmem:[#allocation61_spill] sm:$0xff]  ;;  %v23277_v59 = vld [vmem:[#allocation63_spill] sm:$0xff] }
 0xf53   : > { %v12053_v36 = vcombine.low %v12031_v42, %v12038_v48  ;;  %v12054_v27 = vcombine.low %v12045_v22, %v12052_v26  ;;  %v12119_v23 = vcombine.low %v11216_v4, %v11220_v28  ;;  %v12120_v3 = vcombine.low %v11224_v7, %v11228_v21  ;;  %v23274_v46 = vld [vmem:[#allocation101_spill] sm:$0xff]  ;;  %v23275_v4 = vld [vmem:[#allocation62_spill] sm:$0xff]  ;;  %v23278_v42 = vld [vmem:[#allocation103_spill] sm:$0xff] }
 0xf54   : > { %v9171_v11 = vcombine.low %v8282_v60, %v8286_v10  ;;  %v11232_v49 = vrot.slane %v23272_v57, %v18798_v2  ;;  %v11236_v51 = vrot.slane %v23272_v57, %v18801_v61  ;;  %v9168_v15 = vcombine.low %v9160_v24, %v9167_v40  ;;  %v23276_v28 = vld [vmem:[#allocation102_spill] sm:$0xff]  ;;  %v23279_v22 = vld [vmem:[#allocation64_spill] sm:$0xff]  ;;  %v23281_v60 = vld [vmem:[#allocation65_spill] sm:$0xff] }
 0xf55   : > { %v21609_v55 = vpop.xlane.xlu1 %10558  ;;  %v9193_v58 = vcombine.low %v9178_v13, %v9185_v54  ;;  %v12061_v16 = vrot.slane %v12053_v36, %v18834_v63  ;;  %v12068_v12 = vrot.slane %v12054_v27, %v18834_v63  ;;  %v12128_v32 = vrot.slane %v12119_v23, %v18834_v63  ;;  %v23280_v26 = vld [vmem:[#allocation104_spill] sm:$0xff]  ;;  %v23282_v10 = vld [vmem:[#allocation105_spill] sm:$0xff]  ;;  %v23283_v40 = vld [vmem:[#allocation66_spill] sm:$0xff] }
 0xf56   : > { %12196 = vperm.xlu0 %14749, %v11873_v35   ;;  %v12135_v17 = vrot.slane %v12120_v3, %v18834_v63  ;;  %v9192_v9 = vrot.slane %v9171_v11, %v18834_v63  ;;  %v12121_v25 = vcombine.low %v11232_v49, %v11236_v51  ;;  %v4699_v57 = vadd.f32 %v23274_v46, %v23273_v53  ;;  %v23284_v13 = vld [vmem:[#allocation106_spill] sm:$0xff]  ;;  %v23285_v36 = vld [vmem:[#allocation67_spill] sm:$0xff]  ;;  %v23287_v11 = vld [vmem:[#allocation68_spill] sm:$0xff] }
 0xf57   : > { %v12069_v29 = vcombine.low %v12061_v16, %v12068_v12  ;;  %v9200_v34 = vrot.slane %v9193_v58, %v18834_v63  ;;  %v4700_v50 = vadd.f32 %v23276_v28, %v23275_v4  ;;  %v4701_v48 = vadd.f32 %v23278_v42, %v23277_v59  ;;  %v23286_v27 = vld [vmem:[#allocation107_spill] sm:$0xff]  ;;  %v23290_v58 = vld [vmem:[#allocation108_spill] sm:$0xff]  ;;  %v23291_v12 = vld [vmem:[#allocation70_spill] sm:$0xff] }
 0xf58   : > { %v12143_v47 = vcombine.low %v12128_v32, %v12135_v17  ;;  %v9207_v30 = vrot.slane %v9192_v9, %v18834_v63  ;;  %v12142_v14 = vrot.slane %v12121_v25, %v18834_v63  ;;  %v4702_v7 = vadd.f32 %v23280_v26, %v23279_v22  ;;  %v23288_v49 = vld [vmem:[#allocation111_spill] sm:$0xff]  ;;  %v23292_v32 = vld [vmem:[#allocation109_spill] sm:$0xff]  ;;  %v23293_v9 = vld [vmem:[#allocation152_spill] sm:$0xff] }
 0xf59   : > { %v21617_v44 = vpop.xlane.xlu1 %10561  ;;  %v4703_v35 = vadd.f32 %v23282_v10, %v23281_v60  ;;  %v4704_v54 = vadd.f32 %v23284_v13, %v23283_v40  ;;  %v21640_v23 = vadd.f32 %v23286_v27, %v23285_v36  ;;  %v21645_v51 = vadd.f32 %v23288_v49, %v23287_v11  ;;  %v23298_v53 = vld [vmem:[#allocation73_spill] sm:$0xff]  ;;  %v23300_v59 = vld [vmem:[#allocation74_spill] sm:$0xff]  ;;  %v23302_v26 = vld [vmem:[#allocation151_spill] sm:$0xff] }
 0xf5a   : > { %9261 = vperm.xlu0 %14749, %v9168_v15   ;;  %v9208_v52 = vcombine.low %v9200_v34, %v9207_v30  ;;  %v12150_v38 = vrot.slane %v12143_v47, %v18834_v63  ;;  %v12157_v3 = vrot.slane %v12142_v14, %v18834_v63  ;;  %v23289_v15 = vld [vmem:[#allocation69_spill] sm:$0xff]  ;;  %v21653_v17 = vadd.f32 %v23292_v32, %v23291_v12  ;;  %v23295_v34 = vld [vmem:[#allocation110_spill] sm:$0xff]  ;;  %v23296_v30 = vld [vmem:[#allocation72_spill] sm:$0xff] }
 0xf5b   : > { %v21649_v16 = vadd.f32 %v23290_v58, %v23289_v15  ;;  %v7650_v25 = vadd.f32 %v23293_v9, %v4700_v50  ;;  %v23297_v14 = vld [vmem:[#allocation112_spill] sm:$0xff]  ;;  %v23299_v46 = vld [vmem:[#allocation113_spill] sm:$0xff]  ;;  %v23301_v42 = vld [vmem:[#allocation114_spill] sm:$0xff]  ;;  %v7649_v60 = vadd.f32 %v23302_v26, %v4699_v57  ;;  %v10493_v9 = vpop.f32.mrb[168].mxu1  ;;  %vm12393_vm0 = vcmask 7168  }
 0xf5c   : > { %v21666_v4 = vadd.f32 %v23299_v46, %v23298_v53  ;;  %v12158_v28 = vcombine.low %v12150_v38, %v12157_v3  ;;  %v21670_v22 = vadd.f32 %v23301_v42, %v23300_v59  ;;  %v23303_v10 = vld [vmem:[#allocation153_spill] sm:$0xff]  ;;  %v23304_v27 = vld [vmem:[#allocation75_spill] sm:$0xff]  ;;  %v23306_v38 = vld [vmem:[#allocation76_spill] sm:$0xff]  ;;  %13548 = vst [vmem:[%s17010_s30 + $0xe0] sm:$0xff] %v10493_v9  ;;  %v10495_v59 = vpop.f32.mrb[169].mxu1  ;;  %vm23328_vm3 = vcmask 720512  }
 0xf5d   : > { %v21630_v21 = vpop.xlane.xlu0 %10564  ;;  %v10600_v50 = vadd.f32 %v21543_v0, %v7650_v25  ;;  %v7651_v40 = vadd.f32 %v23303_v10, %v4701_v48  ;;  %v23305_v11 = vld [vmem:[#allocation115_spill] sm:$0xff]  ;;  %v23307_v3 = vld [vmem:[#allocation116_spill] sm:$0xff]  ;;  %v23308_v58 = vld [vmem:[#allocation77_spill] sm:$0xff]  ;;  %v10481_v48 = vpop.f32.mrb[160].mxu0  ;;  %13549 = vst.msk [vmem:[%s17010_s30 + $0xe8] sm:$0xff] %vm3478_vm9, %v10495_v59 }
 0xf5e   : > { %12208 = vperm.xlu0 %14749, %v12069_v29   ;;  %v23294_v29 = vld [vmem:[#allocation71_spill] sm:$0xff]  ;;  %v21679_v49 = vadd.f32 %v23305_v11, %v23304_v27  ;;  %v21683_v15 = vadd.f32 %v23307_v3, %v23306_v38  ;;  %v23309_v12 = vld [vmem:[#allocation117_spill] sm:$0xff]  ;;  %v23310_v32 = vld [vmem:[#allocation28_spill] sm:$0xff]  ;;  %13544 = vst [vmem:[%s17010_s30 + $0xc0] sm:$0xff] %v10481_v48  ;;  %v10483_v46 = vpop.f32.mrb[161].mxu0 }
 0xf5f   : > { %v21658_v47 = vadd.f32 %v23295_v34, %v23294_v29  ;;  %v21687_v57 = vadd.f32 %v23309_v12, %v23308_v58  ;;  %v23311_v25 = vld [vmem:[#allocation17_spill] sm:$0xff]  ;;  %v10599_v34 = vadd.f32 %v21515_v43, %v7649_v60  ;;  %v23314_v26 = vld [vmem:[#allocation132_spill] sm:$0xff]  ;;  %13545 = vst.msk [vmem:[%s17010_s30 + $0xc8] sm:$0xff] %vm3478_vm9, %v10483_v46  ;;  %v10487_v43 = vpop.f32.mrb[162].mxu0  ;;  %v23317_v12 = vld [vmem:[#allocation14_spill] sm:$0xff] }
 0xf60   : > { %v6338_v29 = vrot.slane %v21337_v18, %v23311_v25  ;;  %v8074_v10 = vrot.slane %v23314_v26, %v18784_v6  ;;  %v8078_v18 = vrot.slane %v23314_v26, %v18787_v56  ;;  %13546 = vst [vmem:[%s17010_s30 + $0xd0] sm:$0xff] %v10487_v43  ;;  %v23316_v3 = vld [vmem:[#allocation156_spill] sm:$0xff]  ;;  %v23318_v9 = vld [vmem:[#allocation177_spill] sm:$0xff] }
 0xf61   : > { %v21632_v24 = vpop.xlane.xlu1 %10567  ;;  %v7654_v58 = vadd.f32 %v23316_v3, %v4704_v54  ;;  %v8102_v3 = vrot.slane %v23314_v26, %v18807_v1 }
 0xf62   : > { %9264 = vperm.xlu0 %14749, %v9208_v52   ;;  %v21662_v52 = vadd.f32 %v23297_v14, %v23296_v30  ;;  %v10601_v30 = vadd.f32 %v21567_v19, %v7651_v40  ;;  %v23312_v14 = vld [vmem:[#allocation154_spill] sm:$0xff]  ;;  %v10499_v19 = vpop.f32.mrb[170].mxu1  ;;  %v12395_v40 = vsel %vm12393_vm0, %v10600_v50, 0.0  ;;  %v8086_v50 = vrot.slane %v23314_v26, %v18795_v41 }
 0xf63   : > { %v7652_v53 = vadd.f32 %v23312_v14, %v4702_v7  ;;  %v23315_v7 = vld [vmem:[#allocation155_spill] sm:$0xff]  ;;  %13550 = vst [vmem:[%s17010_s30 + $0xf0] sm:$0xff] %v10499_v19  ;;  %v10501_v48 = vpop.f32.mrb[171].mxu1  ;;  %v12394_v14 = vsel %vm12393_vm0, %v10599_v34, 0.0 }
 0xf64   : > { %v7653_v60 = vadd.f32 %v23315_v7, %v4703_v35  ;;  %v8082_v35 = vrot.slane %v23314_v26, %v18792_v31  ;;  %13551 = vst.msk [vmem:[%s17010_s30 + $0xf8] sm:$0xff] %vm3478_vm9, %v10501_v48  ;;  %v12396_v54 = vadd.f32 %v12395_v40, %v12394_v14  ;;  %v23320_v40 = vld [vmem:[#allocation180_spill] sm:$0xff]  ;;  %v21752_v14 = vcombine.low %v8074_v10, %v8078_v18  ;;  %v23325_v10 = vld [vmem:[#allocation178_spill] sm:$0xff] }
 0xf65   : > { %v6270_v13 = vpop.permute.xlu0 %6269  ;;  %v21675_v36 = vpop.xlane.xlu1 %10570  ;;  %v6368_v18 = vrot.slane %v21432_v20, %v23325_v10 }
 0xf66   : > { %v6333_v0 = vrot.slane %v6270_v13, %v23310_v32  ;;  %12214 = vperm.xlu0 %14749, %v12158_v28   ;;  %v23313_v28 = vld [vmem:[#allocation179_spill] sm:$0xff]  ;;  %v10602_v13 = vadd.f32 %v21579_v45, %v7652_v53  ;;  %v10489_v45 = vpop.f32.mrb[163].mxu0  ;;  %v12397_v53 = vsel %vm12393_vm0, %v10601_v30, 0.0  ;;  %v10603_v46 = vadd.f32 %v21595_v39, %v7653_v60 }
 0xf67   : > { %13547 = vst.msk [vmem:[%s17010_s30 + $0xd8] sm:$0xff] %vm3478_vm9, %v10489_v45  ;;  %v10604_v39 = vadd.f32 %v21609_v55, %v7654_v58  ;;  %v12398_v60 = vadd.f32 %v12397_v53, %v12396_v54  ;;  %v23322_v58 = vld [vmem:[#allocation158_spill] sm:$0xff]  ;;  %v21754_v53 = vcombine.low %v8082_v35, %v8086_v50  ;;  %vm23334_vm9 = vcmask 851712  }
 0xf68   : > { %v6334_v42 = vsel %vm3357_vm6, %v6333_v0, %v23313_v28  ;;  %v8090_v28 = vrot.slane %v23314_v26, %v18798_v2  ;;  %v12399_v30 = vsel %vm12393_vm0, %v10602_v13, 0.0  ;;  %v12401_v13 = vsel %vm12393_vm0, %v10603_v46, 0.0 }
 0xf69   : > { %v6339_v27 = vsel %vm3364_vm10, %v6338_v29, %v6334_v42  ;;  %v6276_v11 = vpop.permute.xlu0 %6275  ;;  %v21711_v38 = vpop.xlane.xlu1 %10573  ;;  %v6348_v29 = vrot.slane %v21380_v37, %v23318_v9  ;;  %v8094_v42 = vrot.slane %v23314_v26, %v18801_v61  ;;  %v23319_v37 = vld [vmem:[#allocation157_spill] sm:$0xff]  ;;  %v7656_v45 = vadd.f32 %v23322_v58, %v21645_v51  ;;  %v23324_v51 = vld [vmem:[#allocation16_spill] sm:$0xff] }
 0xf6a   : > { %v6343_v0 = vrot.slane %v6276_v11, %v23317_v12  ;;  %v7655_v34 = vadd.f32 %v23319_v37, %v21640_v23  ;;  %v8098_v11 = vrot.slane %v23314_v26, %v18804_v33  ;;  %v12400_v48 = vadd.f32 %v12399_v30, %v12398_v60 }
 0xf6b   : > { %v12403_v54 = vsel %vm12393_vm0, %v10604_v39, 0.0  ;;  %v10606_v26 = vadd.f32 %v21630_v21, %v7656_v45  ;;  %v23326_v21 = vld [vmem:[#allocation159_spill] sm:$0xff] }
 0xf6c   : > { %v6344_v59 = vsel %vm3371_vm1, %v6343_v0, %v6339_v27  ;;  %v23321_v0 = vld [vmem:[#allocation30_spill] sm:$0xff]  ;;  %v10605_v55 = vadd.f32 %v21617_v44, %v7655_v34  ;;  %v12402_v34 = vadd.f32 %v12401_v13, %v12400_v48  ;;  %v7658_v39 = vadd.f32 %v23326_v21, %v21653_v17  ;;  %v23330_v45 = vld [vmem:[#allocation163_spill] sm:$0xff] }
 0xf6d   : > { %v6349_v43 = vsel %vm3378_vm11, %v6348_v29, %v6344_v59  ;;  %v6282_v19 = vpop.permute.xlu0 %6281  ;;  %v10577_v7 = vpop.xlane.xlu1 %10576  ;;  %v6358_v23 = vrot.slane %v21408_v5, %v23321_v0  ;;  %v23323_v5 = vld [vmem:[#allocation162_spill] sm:$0xff]  ;;  %v7661_v48 = vadd.f32 %v23330_v45, %v21666_v4 }
 0xf6e   : > { %v6353_v27 = vrot.slane %v6282_v19, %v23320_v40  ;;  %v7657_v59 = vadd.f32 %v23323_v5, %v21649_v16  ;;  %v8877_v19 = vcombine.low %v8090_v28, %v8094_v42  ;;  %v12405_v35 = vsel %vm12393_vm0, %v10605_v55, 0.0  ;;  %v23329_v55 = vld [vmem:[#allocation161_spill] sm:$0xff]  ;;  %v23337_v45 = vld [vmem:[#allocation78_spill] sm:$0xff] }
 0xf6f   : > { %v12404_v16 = vadd.f32 %v12403_v54, %v12402_v34  ;;  %v8892_v28 = vrot.slane %v21754_v53, %v18834_v63  ;;  %v12407_v42 = vsel %vm12393_vm0, %v10606_v26, 0.0  ;;  %v10608_v20 = vadd.f32 %v21675_v36, %v7658_v39  ;;  %v23332_v53 = vld [vmem:[#allocation32_spill] sm:$0xff]  ;;  %v23333_v26 = vld [vmem:[#allocation82_spill] sm:$0xff] }
 0xf70   : > { %v6354_v29 = vsel %vm3385_vm5, %v6353_v27, %v6349_v43  ;;  %v8878_v43 = vcombine.low %v8098_v11, %v8102_v3  ;;  %v10607_v50 = vadd.f32 %v21632_v24, %v7657_v59  ;;  %v8885_v27 = vrot.slane %v21752_v14, %v18834_v63  ;;  %v23327_v11 = vld [vmem:[#allocation160_spill] sm:$0xff] }
 0xf71   : > { %v6359_v46 = vsel %vm3392_vm12, %v6358_v23, %v6354_v29  ;;  %v6288_v44 = vpop.permute.xlu0 %6287  ;;  %v10580_v37 = vpop.xlane.xlu1 %10579  ;;  %v7659_v3 = vadd.f32 %v23327_v11, %v21658_v47  ;;  %v12406_v13 = vadd.f32 %v12405_v35, %v12404_v16  ;;  %v7660_v58 = vadd.f32 %v23329_v55, %v21662_v52  ;;  %v23331_v29 = vld [vmem:[#allocation21_spill] sm:$0xff] }
 0xf72   : > { %v6363_v30 = vrot.slane %v6288_v44, %v23324_v51  ;;  %v6378_v54 = vrot.slane %v21465_v62, %v23332_v53  ;;  %v12409_v36 = vsel %vm12393_vm0, %v10607_v50, 0.0  ;;  %v10832_v5 = vrot.slane %v23333_v26, %v18784_v6  ;;  %v23335_v50 = vld [vmem:[#allocation164_spill] sm:$0xff] }
 0xf73   : > { %v10609_v47 = vadd.f32 %v21711_v38, %v7659_v3  ;;  %v12408_v59 = vadd.f32 %v12407_v42, %v12406_v13  ;;  %v10836_v52 = vrot.slane %v23333_v26, %v18787_v56  ;;  %v10840_v4 = vrot.slane %v23333_v26, %v18792_v31 }
 0xf74   : > { %v6364_v60 = vsel %vm3399_vm13, %v6363_v30, %v6359_v46  ;;  %v12411_v44 = vsel %vm12393_vm0, %v10608_v20, 0.0  ;;  %v10610_v34 = vadd.f32 %v10577_v7, %v7660_v58  ;;  %v7662_v21 = vadd.f32 %v23335_v50, %v21670_v22 }
 0xf75   : > { %v6369_v24 = vsel %vm23328_vm3, %v6368_v18, %v6364_v60  ;;  %v6294_v23 = vpop.permute.xlu0 %6293  ;;  %v10583_v17 = vpop.xlane.xlu1 %10582  ;;  %v10844_v18 = vrot.slane %v23333_v26, %v18795_v41  ;;  %v12410_v35 = vadd.f32 %v12409_v36, %v12408_v59  ;;  %v8899_v39 = vrot.slane %v8877_v19, %v18834_v63 }
 0xf76   : > { %v6373_v14 = vrot.slane %v6294_v23, %v23331_v29  ;;  %v8906_v16 = vrot.slane %v8878_v43, %v18834_v63  ;;  %v12413_v60 = vsel %vm12393_vm0, %v10609_v47, 0.0  ;;  %v10611_v7 = vadd.f32 %v10580_v37, %v7661_v48  ;;  %v23336_v23 = vld [vmem:[#allocation165_spill] sm:$0xff]  ;;  %v23338_v48 = vld [vmem:[#allocation118_spill] sm:$0xff] }
 0xf77   : > { %v10848_v42 = vrot.slane %v23333_v26, %v18798_v2  ;;  %v10852_v20 = vrot.slane %v23333_v26, %v18801_v61  ;;  %v12412_v11 = vadd.f32 %v12411_v44, %v12410_v35  ;;  %v10856_v3 = vrot.slane %v23333_v26, %v18804_v33 }
 0xf78   : > { %v6374_v46 = vsel %vm3413_vm15, %v6373_v14, %v6369_v24  ;;  %v10860_v22 = vrot.slane %v23333_v26, %v18807_v1  ;;  %v11531_v24 = vcombine.low %v10832_v5, %v10836_v52  ;;  %v12415_v19 = vsel %vm12393_vm0, %v10610_v34, 0.0 }
 0xf79   : > { %v21796_v62 = vsel %vm23334_vm9, %v6378_v54, %v6374_v46  ;;  %v21798_v30 = vpop.permute.xlu0 %6299  ;;  %v10586_v38 = vpop.xlane.xlu1 %10585  ;;  %v10612_v43 = vadd.f32 %v10583_v17, %v7662_v21  ;;  %v7663_v37 = vadd.f32 %v23336_v23, %v21679_v49  ;;  %v11532_v58 = vcombine.low %v10840_v4, %v10844_v18  ;;  %v23339_v17 = vld [vmem:[#allocation166_spill] sm:$0xff]  ;;  %v23340_v49 = vld [vmem:[#allocation167_spill] sm:$0xff] }
 0xf7a   : > { %v4716_v14 = vadd.f32 %v23338_v48, %v23337_v45  ;;  %v12414_v54 = vadd.f32 %v12413_v60, %v12412_v11  ;;  %v21822_v36 = vcombine.low %v8885_v27, %v8892_v28  ;;  %v21824_v47 = vcombine.low %v8899_v39, %v8906_v16  ;;  %v23344_v48 = vld [vmem:[#allocation79_spill] sm:$0xff] }
 0xf7b   : > { %v12417_v26 = vsel %vm12393_vm0, %v10611_v7, 0.0  ;;  %v10613_v5 = vadd.f32 %v10586_v38, %v7663_v37  ;;  %v7664_v59 = vadd.f32 %v23339_v17, %v21683_v15  ;;  %v7665_v46 = vadd.f32 %v23340_v49, %v21687_v57  ;;  %v23341_v38 = vld [vmem:[#allocation12_spill] sm:$0xff]  ;;  %v23343_v37 = vld [vmem:[#allocation173_spill] sm:$0xff] }
 0xf7c   : > { %v12416_v52 = vadd.f32 %v12415_v19, %v12414_v54  ;;  %v11533_v44 = vcombine.low %v10848_v42, %v10852_v20  ;;  %v11534_v4 = vcombine.low %v10856_v3, %v10860_v22  ;;  %v11541_v34 = vrot.slane %v11531_v24, %v18834_v63  ;;  %v23342_v3 = vld [vmem:[#allocation168_spill] sm:$0xff]  ;;  %v23345_v54 = vld [vmem:[#allocation119_spill] sm:$0xff] }
 0xf7d   : > { %v21818_v13 = vpop.permute.xlu0 %6305  ;;  %v10589_v55 = vpop.xlane.xlu1 %10588  ;;  %v12419_v18 = vsel %vm12393_vm0, %v10612_v43, 0.0  ;;  %v11548_v50 = vrot.slane %v11532_v58, %v18834_v63  ;;  %v10992_v21 = vrot.slane %v23341_v38, %v18784_v6  ;;  %v10996_v57 = vrot.slane %v23341_v38, %v18787_v56 }
 0xf7e   : > { %v10614_v27 = vadd.f32 %v10589_v55, %v7664_v59  ;;  %v12418_v15 = vadd.f32 %v12417_v26, %v12416_v52  ;;  %v11000_v39 = vrot.slane %v23341_v38, %v18792_v31  ;;  %v11004_v16 = vrot.slane %v23341_v38, %v18795_v41 }
 0xf7f   : > { %v12421_v60 = vsel %vm12393_vm0, %v10613_v5, 0.0  ;;  %v11008_v42 = vrot.slane %v23341_v38, %v18798_v2  ;;  %v11012_v20 = vrot.slane %v23341_v38, %v18801_v61  ;;  %v7666_v22 = vadd.f32 %v23342_v3, %v4716_v14 }
 0xf80   : > { %v12420_v11 = vadd.f32 %v12419_v18, %v12418_v15  ;;  %v11016_v24 = vrot.slane %v23341_v38, %v18804_v33  ;;  %v11020_v19 = vrot.slane %v23341_v38, %v18807_v1  ;;  %v12423_v43 = vsel %vm12393_vm0, %v10614_v27, 0.0 }
 0xf81   : > { %v21833_v28 = vpop.permute.xlu0 %6311  ;;  %v10592_v35 = vpop.xlane.xlu1 %10591  ;;  %v402_v55 = vadd.s32 144, %v23343_v37  ;;  %v11555_v58 = vrot.slane %v11533_v44, %v18834_v63  ;;  %v11562_v45 = vrot.slane %v11534_v4, %v18834_v63  ;;  %v4717_v26 = vadd.f32 %v23345_v54, %v23344_v48 }
 0xf82   : > { %v10615_v7 = vadd.f32 %v10592_v35, %v7665_v46  ;;  %v12422_v5 = vadd.f32 %v12421_v60, %v12420_v11  ;;  %v11563_v59 = vcombine.low %v11541_v34, %v11548_v50  ;;  %v11776_v46 = vcombine.low %v10992_v21, %v10996_v57  ;;  %v23346_v35 = vld [vmem:[#allocation169_spill] sm:$0xff] }
 0xf83   : > { %v11777_v52 = vcombine.low %v11000_v39, %v11004_v16  ;;  %v11778_v18 = vcombine.low %v11008_v42, %v11012_v20  ;;  %v7667_v38 = vadd.f32 %v23346_v35, %v4717_v26  ;;  %v8915_v44 = vrot.slane %v21822_v36, %v18834_v63  ;;  %v23348_v20 = vld [vmem:[#allocation139_spill] sm:$0xff] }
 0xf84   : > { %v12425_v49 = vsel %vm12393_vm0, %v10615_v7, 0.0  ;;  %v12424_v27 = vadd.f32 %v12423_v43, %v12422_v5  ;;  %v11779_v4 = vcombine.low %v11016_v24, %v11020_v19  ;;  %vm441_vm3 = vcmp.lt.s32.totalorder %v402_v55, 150  ;;  %v23347_v7 = vld [vmem:[#allocation171_spill] sm:$0xff] }
 0xf85   : > { %v10595_v23 = vpop.xlane.xlu1 %10594  ;;  %v21860_v14 = vpop.permute.xlu0 %9210  ;;  %v8922_v11 = vrot.slane %v21824_v47, %v18834_v63  ;;  %v11564_v34 = vcombine.low %v11555_v58, %v11562_v45  ;;  %vm12429_vm9 = vcmask 5120   ;;  %v11571_v57 = vrot.slane %v11563_v59, %v18834_v63  ;;  %v23349_v26 = vld [vmem:[#allocation175_spill] sm:$0xff] }
 0xf86   : > { %v10616_v17 = vadd.f32 %v10595_v23, %v7666_v22  ;;  %v12426_v50 = vadd.f32 %v12425_v49, %v12424_v27  ;;  %v11786_v39 = vrot.slane %v11776_v46, %v18834_v63  ;;  %v11793_v16 = vrot.slane %v11777_v52, %v18834_v63  ;;  %v23350_v46 = vld [vmem:[#allocation140_spill] sm:$0xff]  ;;  %v23351_v35 = vld [vmem:[#allocation23_spill] sm:$0xff] }
 0xf87   : > { %v11800_v36 = vrot.slane %v11778_v18, %v18834_v63  ;;  %v11056_v42 = vrot.slane %v23347_v7, %v18784_v6  ;;  %v6383_v3 = vrot.slane %v21798_v30, %v23348_v20  ;;  %v11807_v19 = vrot.slane %v11779_v4, %v18834_v63  ;;  %v23352_v4 = vld [vmem:[#allocation13_spill] sm:$0xff] }
 0xf88   : > { %v12427_v15 = vsel %vm12393_vm0, %v10616_v17, 0.0  ;;  %v11578_v37 = vrot.slane %v11564_v34, %v18834_v63  ;;  %v11060_v55 = vrot.slane %v23347_v7, %v18787_v56  ;;  %v11064_v58 = vrot.slane %v23347_v7, %v18792_v31 }
 0xf89   : > { %v10598_v60 = vpop.xlane.xlu1 %10597  ;;  %v12428_v22 = vadd.f32 %v12427_v15, %v12426_v50  ;;  %v9217_v47 = vpop.permute.xlu0 %9216  ;;  %v11068_v48 = vrot.slane %v23347_v7, %v18795_v41  ;;  %v11072_v30 = vrot.slane %v23347_v7, %v18798_v2  ;;  %v11076_v54 = vrot.slane %v23347_v7, %v18801_v61 }
 0xf8a   : > { %v10617_v21 = vadd.f32 %v10598_v60, %v7667_v38  ;;  %v11808_v17 = vcombine.low %v11786_v39, %v11793_v16  ;;  %v11080_v59 = vrot.slane %v23347_v7, %v18804_v33  ;;  %v6384_v49 = vsel %vm3427_vm8, %v6383_v3, %v21796_v62 }
 0xf8b   : > { %v6393_v52 = vrot.slane %v21818_v13, %v23350_v46  ;;  %v11809_v18 = vcombine.low %v11800_v36, %v11807_v19  ;;  %v11084_v27 = vrot.slane %v23347_v7, %v18807_v1  ;;  %v6388_v38 = vrot.slane %v21495_v8, %v23351_v35 }
 0xf8c   : > { %v12392_v24 = vsel %vm441_vm3, %v10617_v21, 0.0  ;;  %v6402_v15 = vrot.slane %v21833_v28, %v23352_v4  ;;  %v21902_v34 = vcombine.low %v8915_v44, %v8922_v11  ;;  %v21904_v50 = vcombine.low %v11571_v57, %v11578_v37  ;;  %v23353_v21 = vld [vmem:[#allocation176_spill] sm:$0xff] }
 0xf8d   : > { %v12430_v43 = vsel %vm12429_vm9, %v12392_v24, 0.0  ;;  %v6309_v23 = vpop.permute.xlu1 %6308  ;;  %v9223_v62 = vpop.permute.xlu0 %9222  ;;  %v11874_v13 = vcombine.low %v11056_v42, %v11060_v55  ;;  %v11875_v16 = vcombine.low %v11064_v58, %v11068_v48  ;;  %v11876_v36 = vcombine.low %v11072_v30, %v11076_v54 }
 0xf8e   : > { %v12431_v45 = vadd.f32 %v12430_v43, %v12428_v22  ;;  %v6398_v5 = vrot.slane %v6309_v23, %v23349_v26  ;;  %v6389_v3 = vsel %vm3434_vm14, %v6388_v38, %v6384_v49  ;;  %v11816_v8 = vrot.slane %v11808_v17, %v18834_v63  ;;  %v23354_v22 = vld [vmem:[#allocation15_spill] sm:$0xff] }
 0xf8f   : > { %v11088_v28 = vrot.slane %v23354_v22, %v18784_v6  ;;  %vm23355_vm0 = vcmask 1048512   ;;  %v11823_v57 = vrot.slane %v11809_v18, %v18834_v63  ;;  %v11877_v24 = vcombine.low %v11080_v59, %v11084_v27 }
 0xf90   : > { %12432 = vadd.xlane.f32.xlu1 %v12431_v45  ;;  %v6403_v7 = vsel %vm3343_vm2, %v6402_v15, %v6398_v5  ;;  %v6394_v44 = vsel %vm23355_vm0, %v6393_v52, %v6389_v3  ;;  %v11092_v43 = vrot.slane %v23354_v22, %v18787_v56  ;;  %v11096_v23 = vrot.slane %v23354_v22, %v18792_v31 }
 0xf91   : > { %v6315_v60 = vpop.permute.xlu1 %6314  ;;  %v11100_v37 = vrot.slane %v23354_v22, %v18795_v41  ;;  %v9269_v55 = vrot.slane %v21860_v14, %v23349_v26  ;;  %v11104_v45 = vrot.slane %v23354_v22, %v18798_v2  ;;  %v11108_v48 = vrot.slane %v23354_v22, %v18801_v61  ;;  %v9229_v59 = vpop.permute.xlu0 %9228 }
 0xf92   : > { %v6407_v39 = vrot.slane %v6315_v60, %v23353_v21  ;;  %v9278_v30 = vrot.slane %v9217_v47, %v23353_v21  ;;  %v11112_v5 = vrot.slane %v23354_v22, %v18804_v33  ;;  %v11116_v17 = vrot.slane %v23354_v22, %v18807_v1 }
 0xf93   : > { %v11884_v49 = vrot.slane %v11874_v13, %v18834_v63  ;;  %v11891_v52 = vrot.slane %v11875_v16, %v18834_v63  ;;  %v11898_v18 = vrot.slane %v11876_v36, %v18834_v63  ;;  %v21940_v15 = vcombine.low %v11816_v8, %v11823_v57  ;;  %v23356_v16 = vld [vmem:[#allocation174_spill] sm:$0xff] }
 0xf94   : > { %v6408_v11 = vsel %vm3350_vm4, %v6407_v39, %v6403_v7  ;;  %v11905_v60 = vrot.slane %v11877_v24, %v18834_v63  ;;  %v11923_v3 = vcombine.low %v11088_v28, %v11092_v43  ;;  %v11924_v7 = vcombine.low %v11096_v23, %v11100_v37 }
 0xf95   : > { %v6409_v19 = vcombine.low %v6394_v44, %v6408_v11  ;;  %v9214_v42 = vpop.permute.xlu1 %9213  ;;  %v11925_v22 = vcombine.low %v11104_v45, %v11108_v48  ;;  %v9288_v13 = vrot.slane %v9223_v62, %v23311_v25  ;;  %v11926_v44 = vcombine.low %v11112_v5, %v11116_v17 }
 0xf96   : > { %v9273_v58 = vrot.slane %v9214_v42, %v23352_v4  ;;  %v11184_v36 = vrot.slane %v23356_v16, %v18784_v6  ;;  %v11188_v11 = vrot.slane %v23356_v16, %v18787_v56  ;;  %v11192_v57 = vrot.slane %v23356_v16, %v18792_v31 }
 0xf97   : > { %v6416_v54 = vrot.slane %v6409_v19, %v18834_v63  ;;  %v11196_v28 = vrot.slane %v23356_v16, %v18795_v41  ;;  %v11200_v62 = vrot.slane %v23356_v16, %v18798_v2  ;;  %v11204_v43 = vrot.slane %v23356_v16, %v18801_v61 }
 0xf98   : > { %v9274_v14 = vsel %vm3343_vm2, %v9273_v58, %v9269_v55  ;;  %v11208_v23 = vrot.slane %v23356_v16, %v18804_v33  ;;  %v11212_v37 = vrot.slane %v23356_v16, %v18807_v1  ;;  %v9235_v55 = vpop.permute.xlu0 %9234  ;;  %v11906_v45 = vcombine.low %v11884_v49, %v11891_v52 }
 0xf99   : > { %v6423_v47 = vrot.slane %v6416_v54, %v18834_v63  ;;  %v9279_v27 = vsel %vm3350_vm4, %v9278_v30, %v9274_v14  ;;  %v9220_v38 = vpop.permute.xlu1 %9219  ;;  %v11907_v48 = vcombine.low %v11898_v18, %v11905_v60  ;;  %v11933_v30 = vrot.slane %v11923_v3, %v18834_v63 }
 0xf9a   : > { %v9283_v39 = vrot.slane %v9220_v38, %v23310_v32  ;;  %v9298_v54 = vrot.slane %v9229_v59, %v23318_v9  ;;  %v11940_v5 = vrot.slane %v11924_v7, %v18834_v63  ;;  %v11947_v17 = vrot.slane %v11925_v22, %v18834_v63 }
 0xf9b   : > { %13293 = vst.msk [vmem:[%s20295_s17 + $0x1] ss:$4 sm:$0x3] %vm20285_vm7, %v6423_v47  ;;  %v11954_v14 = vrot.slane %v11926_v44, %v18834_v63  ;;  %v12071_v38 = vcombine.low %v11192_v57, %v11196_v28  ;;  %v12072_v18 = vcombine.low %v11200_v62, %v11204_v43  ;;  %v12073_v59 = vcombine.low %v11208_v23, %v11212_v37 }
 0xf9c   : > { %v9284_v8 = vsel %vm3357_vm6, %v9283_v39, %v9279_v27  ;;  %v12070_v27 = vcombine.low %v11184_v36, %v11188_v11  ;;  %v23358_v39 = vld [vmem:[#allocation92_spill] sm:$0xff]  ;;  %v9241_v36 = vpop.permute.xlu0 %9240  ;;  %v11914_v11 = vrot.slane %v11906_v45, %v18834_v63  ;;  %vm23359_vm3 = vcmask 720512  }
 0xf9d   : > { %v9289_v24 = vsel %vm3364_vm10, %v9288_v13, %v9284_v8  ;;  %v9226_v42 = vpop.permute.xlu1 %9225  ;;  %v11120_v13 = vrot.slane %v23358_v39, %v18784_v6  ;;  %v11124_v60 = vrot.slane %v23358_v39, %v18787_v56  ;;  %v11128_v7 = vrot.slane %v23358_v39, %v18792_v31 }
 0xf9e   : > { %v9293_v58 = vrot.slane %v9226_v42, %v23317_v12  ;;  %v11132_v22 = vrot.slane %v23358_v39, %v18795_v41  ;;  %v11136_v6 = vrot.slane %v23358_v39, %v18798_v2  ;;  %v11140_v44 = vrot.slane %v23358_v39, %v18801_v61 }
 0xf9f   : > { %v11144_v16 = vrot.slane %v23358_v39, %v18804_v33  ;;  %v11148_v56 = vrot.slane %v23358_v39, %v18807_v1  ;;  %v11921_v41 = vrot.slane %v11907_v48, %v18834_v63  ;;  %v11955_v8 = vcombine.low %v11933_v30, %v11940_v5 }
 0xfa0   : > { %v9294_v47 = vsel %vm3371_vm1, %v9293_v58, %v9289_v24  ;;  %v11956_v61 = vcombine.low %v11947_v17, %v11954_v14  ;;  %v12080_v28 = vrot.slane %v12070_v27, %v18834_v63  ;;  %v12087_v33 = vrot.slane %v12071_v38, %v18834_v63 }
 0xfa1   : > { %9246 = vperm.xlu1 %14748, %v21902_v34   ;;  %v9299_v49 = vsel %vm3378_vm11, %v9298_v54, %v9294_v47  ;;  %v9232_v52 = vpop.permute.xlu1 %9231  ;;  %v9308_v34 = vrot.slane %v9235_v55, %v23321_v0  ;;  %v12094_v62 = vrot.slane %v12072_v18, %v18834_v63  ;;  %v12101_v24 = vrot.slane %v12073_v59, %v18834_v63 }
 0xfa2   : > { %v9303_v3 = vrot.slane %v9232_v52, %v23320_v40  ;;  %v11972_v42 = vcombine.low %v11120_v13, %v11124_v60  ;;  %v9318_v43 = vrot.slane %v9241_v36, %v23325_v10  ;;  %v11973_v23 = vcombine.low %v11128_v7, %v11132_v22 }
 0xfa3   : > { %v11974_v37 = vcombine.low %v11136_v6, %v11140_v44  ;;  %v11922_v45 = vcombine.low %v11914_v11, %v11921_v41  ;;  %v11963_v48 = vrot.slane %v11955_v8, %v18834_v63  ;;  %v11970_v30 = vrot.slane %v11956_v61, %v18834_v63 }
 0xfa4   : > { %v9304_v31 = vsel %vm3385_vm5, %v9303_v3, %v9299_v49  ;;  %v12102_v54 = vcombine.low %v12080_v28, %v12087_v33  ;;  %v12103_v5 = vcombine.low %v12094_v62, %v12101_v24  ;;  %v11982_v17 = vrot.slane %v11972_v42, %v18834_v63  ;;  %v9250_v3 = vpop.permute.xlu0 %9249 }
 0xfa5   : > { %12178 = vperm.xlu1 %14748, %v21904_v50   ;;  %v9309_v2 = vsel %vm3392_vm12, %v9308_v34, %v9304_v31  ;;  %v9238_v57 = vpop.permute.xlu1 %9237  ;;  %v11975_v50 = vcombine.low %v11144_v16, %v11148_v56  ;;  %v11989_v14 = vrot.slane %v11973_v23, %v18834_v63  ;;  %v11996_v47 = vrot.slane %v11974_v37, %v18834_v63 }
 0xfa6   : > { %v9313_v1 = vrot.slane %v9238_v57, %v23324_v51  ;;  %v11971_v38 = vcombine.low %v11963_v48, %v11970_v30  ;;  %v12117_v39 = vrot.slane %v12103_v5, %v18834_v63  ;;  %vm23361_vm9 = vcmask 851712  }
 0xfa7   : > { %v12003_v27 = vrot.slane %v11975_v50, %v18834_v63  ;;  %v12004_v13 = vcombine.low %v11982_v17, %v11989_v14 }
 0xfa8   : > { %v9314_v55 = vsel %vm3399_vm13, %v9313_v1, %v9309_v2  ;;  %v9253_v7 = vpop.permute.xlu0 %9252 }
 0xfa9   : > { %12193 = vperm.xlu1 %14748, %v21940_v15   ;;  %v9319_v58 = vsel %vm23359_vm3, %v9318_v43, %v9314_v55  ;;  %v12110_v15 = vrot.slane %v12102_v54, %v18834_v63  ;;  %v12005_v49 = vcombine.low %v11996_v47, %v12003_v27  ;;  %v12012_v18 = vrot.slane %v12004_v13, %v18834_v63  ;;  %v9244_v28 = vpop.permute.xlu1 %9243 }
 0xfaa   : > { %v9323_v42 = vrot.slane %v9244_v28, %v23331_v29  ;;  %v9338_v48 = vrot.slane %v9253_v7, %v23351_v35 }
 0xfab   : > { %v12118_v52 = vcombine.low %v12110_v15, %v12117_v39  ;;  %v12019_v59 = vrot.slane %v12005_v49, %v18834_v63 }
 0xfac   : > { %v9256_v22 = vpop.permute.xlu0 %9255  ;;  %v9324_v27 = vsel %vm3413_vm15, %v9323_v42, %v9319_v58 }
 0xfad   : > { %12199 = vperm.xlu1 %14748, %v11922_v45   ;;  %v12020_v60 = vcombine.low %v12012_v18, %v12019_v59  ;;  %v9333_v45 = vrot.slane %v9250_v3, %v23348_v20 }
 0xfb0   : > { %v9259_v6 = vpop.permute.xlu0 %9258 }
 0xfb1   : > { %12202 = vperm.xlu1 %14748, %v11971_v38   ;;  %v9348_v39 = vrot.slane %v9259_v6, %v23349_v26 }
 0xfb4   : > { %v12161_v34 = vpop.permute.xlu0 %12160 }
 0xfb5   : > { %12211 = vperm.xlu1 %14748, %v12118_v52   ;;  %v12219_v23 = vrot.slane %v12161_v34, %v23349_v26  ;;  %v9343_v52 = vrot.slane %v9256_v22, %v23350_v46 }
 0xfb8   : > { %v12164_v44 = vpop.permute.xlu0 %12163 }
 0xfb9   : > { %12205 = vperm.xlu1 %14748, %v12020_v60   ;;  %v12223_v62 = vrot.slane %v12164_v44, %v23352_v4 }
 0xfbb   : > { %v12224_v5 = vsel %vm3343_vm2, %v12223_v62, %v12219_v23 }
 0xfbc   : > { %v12167_v16 = vpop.permute.xlu0 %12166 }
 0xfbd   : > { %v12228_v43 = vrot.slane %v12167_v16, %v23353_v21 }
 0xfc0   : > { %v12170_v56 = vpop.permute.xlu0 %12169 }
 0xfc1   : > { %v12233_v37 = vrot.slane %v12170_v56, %v23310_v32  ;;  %v12229_v32 = vsel %vm3350_vm4, %v12228_v43, %v12224_v5 }
 0xfc4   : > { %v12173_v36 = vpop.permute.xlu0 %12172 }
 0xfc5   : > { %v12238_v30 = vrot.slane %v12173_v36, %v23311_v25  ;;  %v12234_v25 = vsel %vm3357_vm6, %v12233_v37, %v12229_v32  ;;  %vm23362_vm6 = vmmov %vm23355_vm0 }
 0xfc7   : > { %v12239_v18 = vsel %vm3364_vm10, %v12238_v30, %v12234_v25  ;;  %vm23363_vm10 = vmmov %vm23359_vm3 }
 0xfc8   : > { %v12176_v31 = vpop.permute.xlu0 %12175 }
 0xfc9   : > { %v12243_v38 = vrot.slane %v12176_v31, %v23317_v12 }
 0xfcb   : > { %v12244_v6 = vsel %vm3371_vm1, %v12243_v38, %v12239_v18  ;;  %vm23364_vm1 = vmmov %vm23361_vm9 }
 0xfcc   : > { %v12182_v11 = vpop.permute.xlu0 %12181 }
 0xfcd   : > { %v12253_v34 = vrot.slane %v12182_v11, %v23320_v40 }
 0xfd0   : > { %v12185_v41 = vpop.permute.xlu0 %12184 }
 0xfd1   : > { %v12258_v31 = vrot.slane %v12185_v41, %v23321_v0 }
 0xfd4   : > { %v12188_v8 = vpop.permute.xlu0 %12187 }
 0xfd5   : > { %v12263_v40 = vrot.slane %v12188_v8, %v23324_v51 }
 0xfd8   : > { %v12191_v2 = vpop.permute.xlu0 %12190 }
 0xfd9   : > { %v12268_v0 = vrot.slane %v12191_v2, %v23325_v10 }
 0xfdc   : > { %v22021_v57 = vpop.permute.xlu0 %12196 }
 0xfdd   : > { %v12278_v51 = vrot.slane %v22021_v57, %v23332_v53 }
 0xfe0   : > { %v9262_v61 = vpop.permute.xlu0 %9261 }
 0xfe1   : > { %v9352_v17 = vrot.slane %v9262_v61, %v23352_v4 }
 0xfe3   : > { %v9353_v60 = vsel %vm3343_vm2, %v9352_v17, %v9348_v39 }
 0xfe4   : > { %v22023_v33 = vpop.permute.xlu0 %12208 }
 0xfe5   : > { %v12298_v10 = vrot.slane %v22023_v33, %v23349_v26 }
 0xfe8   : > { %v9265_v50 = vpop.permute.xlu0 %9264 }
 0xfe9   : > { %v9357_v15 = vrot.slane %v9265_v50, %v23353_v21 }
 0xfeb   : > { %v9358_v44 = vsel %vm3350_vm4, %v9357_v15, %v9353_v60 }
 0xfec   : > { %v12215_v2 = vpop.permute.xlu0 %12214 }
 0xfed   : > { %v12307_v57 = vrot.slane %v12215_v2, %v23353_v21 }
0x101d   : > { %v12433_v1 = vpop.xlane.xlu1 %12432 }
0x101e   : > { %v12434_v24 = vrot.slane %v12433_v1, 4 }
0x1020   : > { %v12435_v55 = vadd.f32 %v12434_v24, %v12433_v1 }
0x1021   : > { %v9247_v54 = vpop.permute.xlu1 %9246 }
0x1022   : > { %v12436_v14 = vrot.slane %v12435_v55, 2  ;;  %v9328_v47 = vrot.slane %v9247_v54, %v23332_v53 }
0x1024   : > { %v9329_v13 = vsel %vm23361_vm9, %v9328_v47, %v9324_v27  ;;  %v12437_v49 = vadd.f32 %v12436_v14, %v12435_v55 }
0x1025   : > { %v9334_v59 = vsel %vm3427_vm8, %v9333_v45, %v9329_v13  ;;  %v12179_v58 = vpop.permute.xlu1 %12178 }
0x1026   : > { %v9339_v12 = vsel %vm3434_vm14, %v9338_v48, %v9334_v59  ;;  %v12248_v3 = vrot.slane %v12179_v58, %v23318_v9  ;;  %v12438_v7 = vrot.slane %v12437_v49, 1 }
0x1027   : > { %v9344_v22 = vsel %vm23362_vm6, %v9343_v52, %v9339_v12 }
0x1028   : > { %v9359_v16 = vcombine.low %v9344_v22, %v9358_v44  ;;  %v12249_v56 = vsel %vm3378_vm11, %v12248_v3, %v12244_v6  ;;  %v12439_v36 = vadd.f32 %v12438_v7, %v12437_v49  ;;  %vm23365_vm11 = vmmov %vm23355_vm0 }
0x1029   : > { %v12254_v61 = vsel %vm3385_vm5, %v12253_v34, %v12249_v56  ;;  %v12194_v28 = vpop.permute.xlu1 %12193 }
0x102a   : > { %v9366_v9 = vrot.slane %v9359_v16, %v18834_v63  ;;  %14662 = vpush %v12439_v36  ;;  %v12259_v1 = vsel %vm3392_vm12, %v12258_v31, %v12254_v61  ;;  %v12273_v41 = vrot.slane %v12194_v28, %v23331_v29 }
0x102b   : > { %v12264_v24 = vsel %vm3399_vm13, %v12263_v40, %v12259_v1 }
0x102c   : > { %v9373_v11 = vrot.slane %v9366_v9, %v18834_v63  ;;  %v12269_v42 = vsel %vm23363_vm10, %v12268_v0, %v12264_v24 }
0x102d   : > { %v12200_v62 = vpop.permute.xlu1 %12199  ;;  %v12274_v23 = vsel %vm3413_vm15, %v12273_v41, %v12269_v42 }
0x102e   : > { %13418 = vst.msk [vmem:[%s20295_s17 + $0x2] ss:$4 sm:$0x3] %vm20285_vm7, %v9373_v11  ;;  %v12283_v37 = vrot.slane %v12200_v62, %v23348_v20  ;;  %v12279_v29 = vsel %vm23364_vm1, %v12278_v51, %v12274_v23 }
0x1030   : > { %v12284_v20 = vsel %vm3427_vm8, %v12283_v37, %v12279_v29 }
0x1031   : > { %v12203_v43 = vpop.permute.xlu1 %12202 }
0x1032   : > { %v12288_v55 = vrot.slane %v12203_v43, %v23351_v35 }
0x1034   : > { %v12289_v26 = vsel %vm3434_vm14, %v12288_v55, %v12284_v20 }
0x1035   : > { %v12212_v8 = vpop.permute.xlu1 %12211 }
0x1036   : > { %v12302_v50 = vrot.slane %v12212_v8, %v23352_v4 }
0x1038   : > { %v12303_v45 = vsel %vm3343_vm2, %v12302_v50, %v12298_v10 }
0x1039   : > { %v12206_v53 = vpop.permute.xlu1 %12205  ;;  %v12308_v33 = vsel %vm3350_vm4, %v12307_v57, %v12303_v45 }
0x103a   : > { %v12293_v4 = vrot.slane %v12206_v53, %v23350_v46 }
0x103c   : > { %v12294_v48 = vsel %vm23365_vm11, %v12293_v4, %v12289_v26 }
0x103d   : > { %v12309_v30 = vcombine.low %v12294_v48, %v12308_v33 }
0x103f   : > { %v12316_v35 = vrot.slane %v12309_v30, %v18834_v63 }
0x1041   : > { %v12323_v54 = vrot.slane %v12316_v35, %v18834_v63 }
0x1043   : > { %13543 = vst.msk [vmem:[%s20295_s17 + $0x3] ss:$4 sm:$0x3] %vm20285_vm7, %v12323_v54 }
0x1044   : > { %14814 = shalt.err (!%p14811_p5)
}
0x1045   : > { %s14815_s17 = scalar_lea.hbm %s22094_s18, 128  ;;  %s14819_s23 = scalar_lea.hbm %s22363_s4, 256 }
0x1046   : > { %p14816_p6 = scmp.ne.s32.totalorder %s22094_s18, %s14815_s17  ;;  %p14820_p10 = scmp.lt.u32.totalorder %s22094_s18, %s22363_s4 }
0x1047   : > { %p14821_p11 = scmp.lt.u32.totalorder %s14819_s23, %s14815_s17  ;;  %p14823_p13 = scmp.lt.u32.totalorder %s14815_s17, %s22094_s18 }
0x1048   : > { %p14817_p7 = pnand %p14816_p6, %p15009_p4 }
0x1049   : > { %p14822_p12 = por %p14821_p11, %p14820_p10 }
0x104a   : > { %p14818_p9 = pneg %p14817_p7 }
0x104b   : > { %p14824_p0 = por %p14823_p13, %p14822_p12 }
0x104d   : > { %p14825_p1 = pnand %p14824_p0, %p14818_p9 }
0x104f   : > { %14828 = shalt.err (!%p14825_p1)
}
0x1050   : > { %14665 = dma.vmem_to_hbm [thread:$0]  (%p15009_p4), %s22087_s22, 128, %s22094_s18, %s12453_s10  }
0x1051   : > { %s23366_s19 = sshll.u32 %s15246_s16, 3  ;;  %s12458_s12 = scalar_lea.sflag [#allocation5], %s22019_s20 }
0x1052   : > { %s22123_s15 = scalar_lea.vmem [#allocation7], %s23366_s19 }
0x105b   : > { %s14663_s1 = spop %14662 }
0x105c   : > { %v12441_v63 = vstv %s14663_s1 }
0x105d   : > { %12442 = vst [vmem:[%s22123_s15] sm:$0xff] %v12441_v63 }
0x105e   : > { %s13583_s17 = sshll.u32 %s14903_s27, 10  ;;  %s12518_s8 = sshll.u32 %s17010_s30, 4  ;;  %s12519_s8 = int_to_ptr.vmem [resolvable:$true] %s12518_s8 }
0x105f   : > { %s12501_s16 = scalar_lea.hbm %s22364_s5, %s13583_s17  ;;  %s14919_s18 = smov 1024  }
0x1060   : > { %14666 = sst [smem:[#allocation9]] (%p15009_p4), %s14919_s18  ;;  %s14920_s10 = smov 2048  }
0x1061   : > { %14667 = sst [smem:[#allocation9 + $0x1]] (%p15009_p4), %s14920_s10  ;;  %s14921_s0 = smov 4  }
0x1062   : > { %14668 = sst [smem:[#allocation9 + $0x2]] (%p15009_p4), %s14921_s0  ;;  %s14922_s1 = smov 256  }
0x1063   : > { %14669 = sst [smem:[#allocation9 + $0x3]] (%p15009_p4), %s14922_s1  ;;  %s14923_s30 = smov 16  }
0x1064   : > { %14670 = sst [smem:[#allocation9 + $0x4]] (%p15009_p4), %s14922_s1  ;;  %s14924_s19 = smov [#allocation8]  }
0x1065   : > { %14671 = sst [smem:[#allocation9 + $0x5]] (%p15009_p4), %s14923_s30  ;;  %s14925_s17 = smov 0  }
0x1066   : > { %14672 = dma.general (%p15009_p4), %s12519_s8, 4096, %s12501_s16, %s12458_s12, %s14924_s19, [#allocation9], %s14925_s17, 0  }
0x1067   : > { %12540 = sbr.rel (!%p15009_p4) target bundleno = 4241 (0x1091), region = 48  ;;  %v12723_v46 = vld [vmem:[%s15257_s21] sm:$0xff] (%p15009_p4)  ;;  %v12725_v21 = vld [vmem:[%s15257_s21 + $0x8] sm:$0xff] (%p15009_p4)  ;;  %v12727_v19 = vld [vmem:[%s15257_s21 + $0x10] sm:$0xff] (%p15009_p4) }
0x1068   : > { %s14664_s23 = smul.u32 (%p15009_p4), 152, %s14903_s27  ;;  %v12729_v5 = vld [vmem:[%s15257_s21 + $0x18] sm:$0xff] (%p15009_p4)  ;;  %v12731_v17 = vld [vmem:[%s15257_s21 + $0x20] sm:$0xff] (%p15009_p4)  ;;  %v12733_v14 = vld [vmem:[%s15257_s21 + $0x28] sm:$0xff] (%p15009_p4) }
0x1069   : > { %v12735_v47 = vld [vmem:[%s15257_s21 + $0x30] sm:$0xff] (%p15009_p4)  ;;  %v12737_v27 = vld [vmem:[%s15257_s21 + $0x38] sm:$0xff] (%p15009_p4)  ;;  %v12739_v32 = vld [vmem:[%s15257_s21 + $0x40] sm:$0xff] (%p15009_p4) }
0x106a   : > { %s22160_s16 = scalar_lea.vmem (%p15009_p4), %s22365_s6, %s14664_s23  ;;  %v12741_v38 = vld [vmem:[%s15257_s21 + $0x48] sm:$0xff] (%p15009_p4)  ;;  %v12743_v15 = vld [vmem:[%s15257_s21 + $0x50] sm:$0xff] (%p15009_p4)  ;;  %v12745_v39 = vld [vmem:[%s15257_s21 + $0x58] sm:$0xff] (%p15009_p4) }
0x106b   : > { %12724 = vst [vmem:[%s22160_s16] sm:$0xff] (%p15009_p4), %v12723_v46  ;;  %12726 = vst [vmem:[%s22160_s16 + $0x8] sm:$0xff] (%p15009_p4), %v12725_v21  ;;  %v12747_v25 = vld [vmem:[%s15257_s21 + $0x60] sm:$0xff] (%p15009_p4)  ;;  %v12749_v13 = vld [vmem:[%s15257_s21 + $0x68] sm:$0xff] (%p15009_p4) }
0x106c   : > { %12728 = vst [vmem:[%s22160_s16 + $0x10] sm:$0xff] (%p15009_p4), %v12727_v19  ;;  %12730 = vst [vmem:[%s22160_s16 + $0x18] sm:$0xff] (%p15009_p4), %v12729_v5  ;;  %v12751_v49 = vld [vmem:[%s15257_s21 + $0x70] sm:$0xff] (%p15009_p4)  ;;  %v12753_v52 = vld [vmem:[%s15257_s21 + $0x78] sm:$0xff] (%p15009_p4) }
0x106d   : > { %12732 = vst [vmem:[%s22160_s16 + $0x20] sm:$0xff] (%p15009_p4), %v12731_v17  ;;  %12734 = vst [vmem:[%s22160_s16 + $0x28] sm:$0xff] (%p15009_p4), %v12733_v14  ;;  %v12755_v18 = vld [vmem:[%s15257_s21 + $0x80] sm:$0xff] (%p15009_p4)  ;;  %v12757_v59 = vld [vmem:[%s15257_s21 + $0x88] sm:$0xff] (%p15009_p4) }
0x106e   : > { %12736 = vst [vmem:[%s22160_s16 + $0x30] sm:$0xff] %v12735_v47  ;;  %12738 = vst [vmem:[%s22160_s16 + $0x38] sm:$0xff] %v12737_v27  ;;  %v12759_v58 = vld [vmem:[%s15257_s21 + $0x90] sm:$0xff]  ;;  %v12761_v60 = vld [vmem:[%s15257_s21 + $0x98] sm:$0xff] }
0x106f   : > { %12740 = vst [vmem:[%s22160_s16 + $0x40] sm:$0xff] %v12739_v32  ;;  %12742 = vst [vmem:[%s22160_s16 + $0x48] sm:$0xff] %v12741_v38  ;;  %v12763_v12 = vld [vmem:[%s15257_s21 + $0xa0] sm:$0xff]  ;;  %v12765_v3 = vld [vmem:[%s15257_s21 + $0xa8] sm:$0xff] }
0x1070   : > { %12744 = vst [vmem:[%s22160_s16 + $0x50] sm:$0xff] %v12743_v15  ;;  %12746 = vst [vmem:[%s22160_s16 + $0x58] sm:$0xff] %v12745_v39  ;;  %v12767_v7 = vld [vmem:[%s15257_s21 + $0xb0] sm:$0xff]  ;;  %v12769_v6 = vld [vmem:[%s15257_s21 + $0xb8] sm:$0xff] }
0x1071   : > { %12748 = vst [vmem:[%s22160_s16 + $0x60] sm:$0xff] %v12747_v25  ;;  %12750 = vst [vmem:[%s22160_s16 + $0x68] sm:$0xff] %v12749_v13  ;;  %v12771_v34 = vld [vmem:[%s15257_s21 + $0xc0] sm:$0xff]  ;;  %v12773_v44 = vld [vmem:[%s15257_s21 + $0xc8] sm:$0xff] }
0x1072   : > { %12752 = vst [vmem:[%s22160_s16 + $0x70] sm:$0xff] %v12751_v49  ;;  %12754 = vst [vmem:[%s22160_s16 + $0x78] sm:$0xff] %v12753_v52  ;;  %v12775_v22 = vld [vmem:[%s15257_s21 + $0xd0] sm:$0xff]  ;;  %v12777_v16 = vld [vmem:[%s15257_s21 + $0xd8] sm:$0xff] }
0x1073   : > { %12756 = vst [vmem:[%s22160_s16 + $0x80] sm:$0xff] %v12755_v18  ;;  %12758 = vst [vmem:[%s22160_s16 + $0x88] sm:$0xff] %v12757_v59  ;;  %v12779_v56 = vld [vmem:[%s15257_s21 + $0xe0] sm:$0xff]  ;;  %v12781_v36 = vld [vmem:[%s15257_s21 + $0xe8] sm:$0xff] }
0x1074   : > { %12760 = vst [vmem:[%s22160_s16 + $0x90] sm:$0xff] %v12759_v58  ;;  %12762 = vst [vmem:[%s22160_s16 + $0x130] sm:$0xff] %v12761_v60  ;;  %v12783_v31 = vld [vmem:[%s15257_s21 + $0xf0] sm:$0xff]  ;;  %v12785_v61 = vld [vmem:[%s15257_s21 + $0xf8] sm:$0xff] }
0x1075   : > { %12764 = vst [vmem:[%s22160_s16 + $0x138] sm:$0xff] %v12763_v12  ;;  %12766 = vst [vmem:[%s22160_s16 + $0x140] sm:$0xff] %v12765_v3  ;;  %v12787_v28 = vld [vmem:[%s15257_s21 + $0x100] sm:$0xff]  ;;  %v12789_v9 = vld [vmem:[%s15257_s21 + $0x108] sm:$0xff] }
0x1076   : > { %12768 = vst [vmem:[%s22160_s16 + $0x148] sm:$0xff] %v12767_v7  ;;  %12770 = vst [vmem:[%s22160_s16 + $0x150] sm:$0xff] %v12769_v6  ;;  %v12791_v1 = vld [vmem:[%s15257_s21 + $0x110] sm:$0xff]  ;;  %v12793_v40 = vld [vmem:[%s15257_s21 + $0x118] sm:$0xff] }
0x1077   : > { %12772 = vst [vmem:[%s22160_s16 + $0x158] sm:$0xff] %v12771_v34  ;;  %12774 = vst [vmem:[%s22160_s16 + $0x160] sm:$0xff] %v12773_v44  ;;  %v12795_v11 = vld [vmem:[%s15257_s21 + $0x120] sm:$0xff]  ;;  %v12797_v62 = vld [vmem:[%s15257_s21 + $0x128] sm:$0xff] }
0x1078   : > { %12776 = vst [vmem:[%s22160_s16 + $0x168] sm:$0xff] %v12775_v22  ;;  %12778 = vst [vmem:[%s22160_s16 + $0x170] sm:$0xff] %v12777_v16  ;;  %v12799_v24 = vld [vmem:[%s15257_s21 + $0x130] sm:$0xff]  ;;  %v12801_v0 = vld [vmem:[%s15257_s21 + $0x138] sm:$0xff] }
0x1079   : > { %12780 = vst [vmem:[%s22160_s16 + $0x178] sm:$0xff] %v12779_v56  ;;  %12782 = vst [vmem:[%s22160_s16 + $0x180] sm:$0xff] %v12781_v36  ;;  %v12803_v41 = vld [vmem:[%s15257_s21 + $0x140] sm:$0xff]  ;;  %v12805_v42 = vld [vmem:[%s15257_s21 + $0x148] sm:$0xff] }
0x107a   : > { %12784 = vst [vmem:[%s22160_s16 + $0x188] sm:$0xff] %v12783_v31  ;;  %12786 = vst [vmem:[%s22160_s16 + $0x190] sm:$0xff] %v12785_v61  ;;  %v12807_v43 = vld [vmem:[%s15257_s21 + $0x150] sm:$0xff]  ;;  %v12809_v23 = vld [vmem:[%s15257_s21 + $0x158] sm:$0xff] }
0x107b   : > { %12788 = vst [vmem:[%s22160_s16 + $0x198] sm:$0xff] %v12787_v28  ;;  %12790 = vst [vmem:[%s22160_s16 + $0x1a0] sm:$0xff] %v12789_v9  ;;  %v12811_v51 = vld [vmem:[%s15257_s21 + $0x160] sm:$0xff]  ;;  %v12813_v8 = vld [vmem:[%s15257_s21 + $0x168] sm:$0xff] }
0x107c   : > { %12792 = vst [vmem:[%s22160_s16 + $0x1a8] sm:$0xff] %v12791_v1  ;;  %12794 = vst [vmem:[%s22160_s16 + $0x1b0] sm:$0xff] %v12793_v40  ;;  %v12815_v37 = vld [vmem:[%s15257_s21 + $0x170] sm:$0xff]  ;;  %v12817_v50 = vld [vmem:[%s15257_s21 + $0x178] sm:$0xff] }
0x107d   : > { %12796 = vst [vmem:[%s22160_s16 + $0x1b8] sm:$0xff] %v12795_v11  ;;  %12798 = vst [vmem:[%s22160_s16 + $0x1c0] sm:$0xff] %v12797_v62  ;;  %v12819_v10 = vld [vmem:[%s15257_s21 + $0x180] sm:$0xff]  ;;  %v12821_v2 = vld [vmem:[%s15257_s21 + $0x188] sm:$0xff] }
0x107e   : > { %12800 = vst [vmem:[%s22160_s16 + $0x260] sm:$0xff] %v12799_v24  ;;  %12802 = vst [vmem:[%s22160_s16 + $0x268] sm:$0xff] %v12801_v0  ;;  %v12823_v29 = vld [vmem:[%s15257_s21 + $0x190] sm:$0xff]  ;;  %v12825_v55 = vld [vmem:[%s15257_s21 + $0x198] sm:$0xff] }
0x107f   : > { %12804 = vst [vmem:[%s22160_s16 + $0x270] sm:$0xff] %v12803_v41  ;;  %12806 = vst [vmem:[%s22160_s16 + $0x278] sm:$0xff] %v12805_v42  ;;  %v12827_v45 = vld [vmem:[%s15257_s21 + $0x1a0] sm:$0xff]  ;;  %v12829_v53 = vld [vmem:[%s15257_s21 + $0x1a8] sm:$0xff] }
0x1080   : > { %12808 = vst [vmem:[%s22160_s16 + $0x280] sm:$0xff] %v12807_v43  ;;  %12810 = vst [vmem:[%s22160_s16 + $0x288] sm:$0xff] %v12809_v23  ;;  %v12831_v57 = vld [vmem:[%s15257_s21 + $0x1b0] sm:$0xff]  ;;  %v12833_v20 = vld [vmem:[%s15257_s21 + $0x1b8] sm:$0xff] }
0x1081   : > { %12812 = vst [vmem:[%s22160_s16 + $0x290] sm:$0xff] %v12811_v51  ;;  %12814 = vst [vmem:[%s22160_s16 + $0x298] sm:$0xff] %v12813_v8  ;;  %v12835_v4 = vld [vmem:[%s15257_s21 + $0x1c0] sm:$0xff]  ;;  %v12837_v26 = vld [vmem:[%s15257_s21 + $0x1c8] sm:$0xff] }
0x1082   : > { %12816 = vst [vmem:[%s22160_s16 + $0x2a0] sm:$0xff] %v12815_v37  ;;  %12818 = vst [vmem:[%s22160_s16 + $0x2a8] sm:$0xff] %v12817_v50  ;;  %v12839_v33 = vld [vmem:[%s15257_s21 + $0x1d0] sm:$0xff]  ;;  %v12841_v48 = vld [vmem:[%s15257_s21 + $0x1d8] sm:$0xff] }
0x1083   : > { %12820 = vst [vmem:[%s22160_s16 + $0x2b0] sm:$0xff] %v12819_v10  ;;  %12822 = vst [vmem:[%s22160_s16 + $0x2b8] sm:$0xff] %v12821_v2  ;;  %v12843_v30 = vld [vmem:[%s15257_s21 + $0x1e0] sm:$0xff]  ;;  %v12845_v35 = vld [vmem:[%s15257_s21 + $0x1e8] sm:$0xff] }
0x1084   : > { %12824 = vst [vmem:[%s22160_s16 + $0x2c0] sm:$0xff] %v12823_v29  ;;  %12826 = vst [vmem:[%s22160_s16 + $0x2c8] sm:$0xff] %v12825_v55  ;;  %v12847_v54 = vld [vmem:[%s15257_s21 + $0x1f0] sm:$0xff]  ;;  %v12849_v63 = vld [vmem:[%s15257_s21 + $0x1f8] sm:$0xff] }
0x1085   : > { %12828 = vst [vmem:[%s22160_s16 + $0x2d0] sm:$0xff] %v12827_v45  ;;  %12830 = vst [vmem:[%s22160_s16 + $0x2d8] sm:$0xff] %v12829_v53  ;;  %v12851_v46 = vld [vmem:[%s15257_s21 + $0x200] sm:$0xff]  ;;  %v12853_v21 = vld [vmem:[%s15257_s21 + $0x208] sm:$0xff] }
0x1086   : > { %12832 = vst [vmem:[%s22160_s16 + $0x2e0] sm:$0xff] %v12831_v57  ;;  %12834 = vst [vmem:[%s22160_s16 + $0x2e8] sm:$0xff] %v12833_v20  ;;  %v12855_v19 = vld [vmem:[%s15257_s21 + $0x210] sm:$0xff]  ;;  %v12857_v5 = vld [vmem:[%s15257_s21 + $0x218] sm:$0xff] }
0x1087   : > { %12836 = vst [vmem:[%s22160_s16 + $0x2f0] sm:$0xff] %v12835_v4  ;;  %12838 = vst [vmem:[%s22160_s16 + $0x390] sm:$0xff] %v12837_v26  ;;  %v12859_v17 = vld [vmem:[%s15257_s21 + $0x220] sm:$0xff]  ;;  %v12861_v14 = vld [vmem:[%s15257_s21 + $0x228] sm:$0xff] }
0x1088   : > { %12840 = vst [vmem:[%s22160_s16 + $0x398] sm:$0xff] %v12839_v33  ;;  %12842 = vst [vmem:[%s22160_s16 + $0x3a0] sm:$0xff] %v12841_v48  ;;  %v12863_v47 = vld [vmem:[%s15257_s21 + $0x230] sm:$0xff]  ;;  %v12865_v27 = vld [vmem:[%s15257_s21 + $0x238] sm:$0xff] }
0x1089   : > { %12844 = vst [vmem:[%s22160_s16 + $0x3a8] sm:$0xff] %v12843_v30  ;;  %12846 = vst [vmem:[%s22160_s16 + $0x3b0] sm:$0xff] %v12845_v35  ;;  %v12867_v32 = vld [vmem:[%s15257_s21 + $0x240] sm:$0xff]  ;;  %v12869_v38 = vld [vmem:[%s15257_s21 + $0x248] sm:$0xff] }
0x108a   : > { %12848 = vst [vmem:[%s22160_s16 + $0x3b8] sm:$0xff] %v12847_v54  ;;  %12850 = vst [vmem:[%s22160_s16 + $0x3c0] sm:$0xff] %v12849_v63  ;;  %v12871_v15 = vld [vmem:[%s15257_s21 + $0x250] sm:$0xff]  ;;  %v12873_v39 = vld [vmem:[%s15257_s21 + $0x258] sm:$0xff] }
0x108b   : > { %12852 = vst [vmem:[%s22160_s16 + $0x3c8] sm:$0xff] %v12851_v46  ;;  %12854 = vst [vmem:[%s22160_s16 + $0x3d0] sm:$0xff] %v12853_v21 }
0x108c   : > { %12856 = vst [vmem:[%s22160_s16 + $0x3d8] sm:$0xff] %v12855_v19  ;;  %12858 = vst [vmem:[%s22160_s16 + $0x3e0] sm:$0xff] %v12857_v5 }
0x108d   : > { %12860 = vst [vmem:[%s22160_s16 + $0x3e8] sm:$0xff] %v12859_v17  ;;  %12862 = vst [vmem:[%s22160_s16 + $0x3f0] sm:$0xff] %v12861_v14 }
0x108e   : > { %12864 = vst [vmem:[%s22160_s16 + $0x3f8] sm:$0xff] %v12863_v47  ;;  %12866 = vst [vmem:[%s22160_s16 + $0x400] sm:$0xff] %v12865_v27 }
0x108f   : > { %12868 = vst [vmem:[%s22160_s16 + $0x408] sm:$0xff] %v12867_v32  ;;  %12870 = vst [vmem:[%s22160_s16 + $0x410] sm:$0xff] %v12869_v38 }
0x1090   : > { %12872 = vst [vmem:[%s22160_s16 + $0x418] sm:$0xff] %v12871_v15  ;;  %12874 = vst [vmem:[%s22160_s16 + $0x420] sm:$0xff] %v12873_v39 }
0x1091 PF: > { %s23367_s18 = sshll.u32 %s14903_s27, 7  ;;  %s12888_s30 = sshll.u32 %s22123_s15, 4  ;;  %s12889_s30 = int_to_ptr.vmem [resolvable:$true] %s12888_s30 }
0x1092   : > { %s22313_s1 = scalar_lea.hbm %s22366_s7, %s23367_s18  ;;  %s14829_s19 = scalar_lea.vmem %s12889_s30, 128 }
0x1093   : > { %p14830_p2 = scmp.ne.s32.totalorder %s12889_s30, %s14829_s19  ;;  %s14926_s17 = smov [#allocation7]  }
0x1094   : > { %s14833_s21 = sshll.u32 %s14926_s17, 4  ;;  %s14834_s21 = int_to_ptr.vmem [resolvable:$false] %s14833_s21 }
0x1095   : > { %p14831_p3 = pnand %p14830_p2, %p15009_p4  ;;  %s14835_s23 = scalar_lea.vmem %s14834_s21, 256 }
0x1096   : > { %p14836_p6 = scmp.lt.s32.totalorder %s12889_s30, %s14834_s21  ;;  %p14837_p7 = scmp.lt.s32.totalorder %s14835_s23, %s14829_s19 }
0x1097   : > { %p14832_p5 = pneg %p14831_p3 }
0x1098   : > { %p14838_p9 = por %p14837_p7, %p14836_p6 }
0x109a   : > { %p14839_p10 = pnand %p14838_p9, %p14832_p5 }
0x109c   : > { %14842 = shalt.err (!%p14839_p10)
}
0x109d   : > { %s14843_s27 = scalar_lea.hbm %s22313_s1, 128  ;;  %s14847_s22 = scalar_lea.hbm %s22366_s7, 256 }
0x109e   : > { %p14844_p11 = scmp.ne.s32.totalorder %s22313_s1, %s14843_s27  ;;  %p14848_p0 = scmp.lt.u32.totalorder %s22313_s1, %s22366_s7 }
0x109f   : > { %p14849_p1 = scmp.lt.u32.totalorder %s14847_s22, %s14843_s27  ;;  %p14851_p3 = scmp.lt.u32.totalorder %s14843_s27, %s22313_s1 }
0x10a0   : > { %p14845_p12 = pnand %p14844_p11, %p15009_p4 }
0x10a1   : > { %p14850_p2 = por %p14849_p1, %p14848_p0 }
0x10a2   : > { %p14846_p13 = pneg %p14845_p12 }
0x10a3   : > { %p14852_p5 = por %p14851_p3, %p14850_p2 }
0x10a5   : > { %p14853_p6 = pnand %p14852_p5, %p14846_p13 }
0x10a7   : > { %14856 = shalt.err (!%p14853_p6)
}
0x10a8   : > { %14673 = dma.vmem_to_hbm [thread:$0]  (%p15009_p4), %s12889_s30, 128, %s22313_s1, %s12458_s12  }
0x10a9 PF: > { %p14687_p7 = scmp.ge.s32.totalorder %s14911_s29, 2  ;;  %s12912_s10 = sand.u32 1, %s14891_s24  }
0x10aa   : > { %s12913_s0 = scalar_lea.sflag [#allocation3], %s12912_s10 }
0x10ab   : > { %p14678_p9 = pnand %p14687_p7, %p15018_p8 }
0x10ad   : > { %14882 = dma.done.wait (!%p14678_p9), %s12913_s0, 128  }
0x10ae   : > { %14884 = vsyncadd (!%p14678_p9), %s12913_s0, 4294967168  ;;  %s23368_s19 = sadd.s32 4294967294, %s14911_s29  }
0x10af   : > { %s12921_s17 = sand.u32 1, %s23368_s19  }
0x10b0   : > { %s12922_s21 = scalar_lea.sflag [#allocation5], %s12921_s17 }
0x10b1   : > { %14886 = dma.done.wait (!%p14678_p9), %s12922_s21, 4224  }
0x10b2   : > { %14888 = vsyncadd (!%p14678_p9), %s12922_s21, 4294963072  ;;  %s24_s29 = sadd.s32 1, %s14911_s29   ;;  %s23369_s24 = smov %s14895_s25 }
0x10b3   : > { %p21_p4 = scmp.ge.s32.totalorder %s24_s29, 4   ;;  %s23370_s25 = smov %s14899_s26 }
0x10b4   : > { %s23371_s26 = smov %s15024_s14  ;;  %s23372_s27 = smov %s14907_s28 }
0x10b5   : > { %s23373_s28 = smov %s23375_s9  ;;  %23 = sbr.rel (!%p21_p4) target bundleno = 9 (0x9), region = 178 }
0x10bc   :  { %12943 = vsyncpa [#allocation3], 1 }
0x10bd   :  { %12945 = vsyncpa [#allocation3 + $0x1], 1 }
0x10be   :  { %12946 = vsyncpa [#allocation5], 1 }
0x10bf   :  { %12948 = vsyncpa [#allocation5 + $0x1], 1 }

</bundles_post_ra>
